<compile_context>
chip_gen: v6e
topology: v6e:2x2x1
jax: 0.10.0
libtpu: 0.0.40
codegen_flags: <defaults>
</compile_context>

<pallas_src>
import functools

import numpy as np
import jax
import jax.numpy as jnp
from jax.experimental import pallas as pl
from jax.experimental.pallas import tpu as pltpu


def _round_up(x, m):
    return ((x + m - 1) // m) * m


def _pick_vmem_limit():
    """Generation-aware scoped-VMEM cap: ~half of physical VMEM, <=64 MiB.

    v7x (64 MiB physical) -> 32 MiB; v5e/v6e (128 MiB physical) -> 64 MiB.
    """
    cap = 128 * 1024 * 1024
    get_info = getattr(pltpu, "get_tpu_info", None)
    if get_info is not None:
        try:
            cap = int(getattr(get_info(), "vmem_capacity_bytes", cap))
        except Exception:
            pass
    return int(min(cap // 2, 64 * 1024 * 1024))


def _geo_embed_kernel(idx_ref, tc_ref, wd_ref, wa_ref, bias_ref, out_ref, *,
                      angle_k, reduction_a):
    """One tile of TP pair rows.

    idx_ref : (R, TP) f32   row 0 = distance index, rows 1..K = angle indices,
                            rows K+1..R-1 = zero padding (R = K+1 rounded to 8).
                            Transposed layout -> lane-dense HBM->VMEM DMA.
    tc_ref  : (2, H)  f32   row 0 = [div | div], row 1 = [0 | pi/2] phase
    wd_ref  : (H, H)  mm    permuted proj_d weight ([sin-half ; cos-half] rows)
    wa_ref  : (H, H)  mm    permuted proj_a weight (1/K pre-folded for 'mean')
    bias_ref: (1, H)  f32   bd + ba (hoisted out of the k reduction)
    out_ref : (TP, H)
    """
    div2 = tc_ref[0:1, :]                       # (1, H)  = [div | div]
    phase = tc_ref[1:2, :]                      # (1, H)  = [0 .. 0 | pi/2 .. pi/2]
    mm_dtype = wd_ref.dtype

    # Small XLU transpose puts the pair index back on sublanes for the
    # (TP,1) x (1,H) broadcasts below; the XLU is otherwise idle here.
    idx = jnp.transpose(idx_ref[...])           # (TP, R)

    # sin(x*div2 + phase) == [sin(x*div) | cos(x*div)]  (pi/2 phase trick):
    # one EUP pass per index column and a single full-H matmul contraction.

    # Distance embedding: one (TP, H) @ (H, H) MXU dot, f32 accumulation.
    sc_d = jnp.sin(idx[:, 0:1] * div2 + phase).astype(mm_dtype)
    acc = jnp.dot(sc_d, wd_ref[...], preferred_element_type=jnp.float32)

    # Angular embeddings: per-k sin -> dot -> running max/mean accumulator.
    # Wa stays RHS-resident across the K dots; EUP sin(k+1) overlaps MXU dot(k).
    a_red = None
    for kk in range(angle_k):
        sc_a = jnp.sin(idx[:, kk + 1:kk + 2] * div2 + phase).astype(mm_dtype)
        a_k = jnp.dot(sc_a, wa_ref[...], preferred_element_type=jnp.float32)
        if a_red is None:
            a_red = a_k
        elif reduction_a == 'max':
            a_red = jnp.maximum(a_red, a_k)
        else:                                   # 'mean': 1/K already in Wa
            a_red = a_red + a_k

    out_ref[...] = (acc + a_red + bias_ref[...]).astype(out_ref.dtype)


class GeometricStructureEmbeddingPallas:
    def __init__(self, hidden_dim, sigma_d, sigma_a, angle_k, reduction_a='max',
                 key=None, pair_tile=4096, use_bf16_matmul=True,
                 out_dtype=jnp.float32):
        if hidden_dim % 2 != 0:
            raise ValueError('hidden_dim must be even.')
        if reduction_a not in ('max', 'mean'):
            raise ValueError(f'Unsupported reduction mode: {reduction_a}.')
        self.hidden_dim = hidden_dim
        self.sigma_d = sigma_d
        self.sigma_a = sigma_a
        self.factor_a = 180.0 / (self.sigma_a * np.pi)
        self.angle_k = angle_k
        self.reduction_a = reduction_a
        self.out_dtype = out_dtype
        # Pair-row tile (multiple of 128). 4096 amortizes the ~0.35us
        # per-grid-step overhead; the live set (~15-20 MiB at H=128, bf16
        # matmuls) still fits under the v7x 32 MiB scoped-VMEM cap below.
        self.pair_tile = max(128, _round_up(pair_tile, 128))
        self._mm_dtype = jnp.bfloat16 if use_bf16_matmul else jnp.float32
        self._vmem_limit = _pick_vmem_limit()

        # Deterministic parameter init (nn.Linear-style uniform bounds).
        if key is None:
            key = jax.random.PRNGKey(42)
        k1, k2, k3, k4 = jax.random.split(key, 4)
        bound = 1.0 / np.sqrt(hidden_dim)
        self.Wd = jax.random.uniform(k1, (hidden_dim, hidden_dim), jnp.float32, -bound, bound)
        self.bd = jax.random.uniform(k2, (hidden_dim,), jnp.float32, -bound, bound)
        self.Wa = jax.random.uniform(k3, (hidden_dim, hidden_dim), jnp.float32, -bound, bound)
        self.ba = jax.random.uniform(k4, (hidden_dim,), jnp.float32, -bound, bound)

        # SinusoidalPositionalEmbedding div_term.
        Hh = hidden_dim // 2
        div_indices = np.arange(0, hidden_dim, 2, dtype=np.float32)
        div_term = np.exp(div_indices * (-np.log(10000.0) / hidden_dim)).astype(np.float32)
        self.div_term = jnp.asarray(div_term)[None, :]                       # (1, H//2)

        # Permute W^T rows so the kernel can use the [sin-half | cos-half]
        # layout produced by the pi/2-phase trick (one full-H contraction
        # per projection).  For 'mean' the 1/K scaling is folded into Wa.
        perm = np.concatenate([np.arange(0, hidden_dim, 2),
                               np.arange(1, hidden_dim, 2)])
        wa_eff = self.Wa.T[perm]
        if reduction_a == 'mean':
            wa_eff = wa_eff / float(angle_k)
        self.Wd_full = self.Wd.T[perm].astype(self._mm_dtype)               # (H, H)
        self.Wa_full = wa_eff.astype(self._mm_dtype)                        # (H, H)
        self.bias_total = (self.bd + self.ba)[None, :].astype(jnp.float32)  # (1, H)

        # Trig constants: row 0 = [div | div], row 1 = [0 | pi/2] phase.
        div2 = np.concatenate([div_term, div_term]).astype(np.float32)       # (H,)
        phase = np.concatenate([np.zeros(Hh, np.float32),
                                np.full(Hh, np.pi / 2.0, np.float32)])       # (H,)
        self.trig_consts = jnp.asarray(np.stack([div2, phase], axis=0))      # (2, H)

    # ------------------------------------------------------------------ glue
    def get_embedding_indices(self, points):
        """points: (B, N, 3) -> d_indices (B,N,N), a_indices (B,N,N,k)."""
        # TODO(synk): fuse this into the Pallas kernel (scalar-prefetch the kNN
        # indices, DMA points) to avoid the (B,N,N,K,3) HBM temporaries at
        # large N; kept in plain JAX here (data-dependent top_k / gather).
        B, N, _ = points.shape
        x2 = jnp.sum(points ** 2, axis=-1)                                   # (B,N)
        sq = (x2[:, :, None]
              - 2.0 * jnp.einsum('bnd,bmd->bnm', points, points)
              + x2[:, None, :])
        sq = jnp.clip(sq, 0.0, None)
        dist_map = jnp.sqrt(sq)                                              # (B,N,N)
        d_indices = dist_map / self.sigma_d

        k = self.angle_k
        _, knn_indices = jax.lax.top_k(-dist_map, k + 1)                     # (B,N,k+1)
        knn_indices = knn_indices[:, :, 1:]                                  # drop self
        knn_points = jax.vmap(lambda pts, idx: pts[idx])(points, knn_indices)  # (B,N,k,3)

        ref_vectors = knn_points - points[:, :, None, :]                     # (B,N,k,3)
        anc_vectors = points[:, None, :, :] - points[:, :, None, :]          # (B,N,N,3)
        ref_e = ref_vectors[:, :, None, :, :]                                # (B,N,1,k,3)
        anc_e = anc_vectors[:, :, :, None, :]                                # (B,N,N,1,3)
        cross = jnp.cross(ref_e, anc_e)                                      # (B,N,N,k,3)
        sin_values = jnp.linalg.norm(cross, axis=-1)
        cos_values = jnp.sum(ref_e * anc_e, axis=-1)
        angles = jnp.arctan2(sin_values, cos_values)
        a_indices = angles * self.factor_a                                   # (B,N,N,k)
        return d_indices, a_indices

    # --------------------------------------------------------------- forward
    def __call__(self, points):
        d_idx, a_idx = self.get_embedding_indices(points)
        B, N, _ = points.shape
        H = self.hidden_dim
        K = self.angle_k
        R = _round_up(K + 1, 8)                     # index rows, sublane-padded

        P = B * N * N
        P128 = _round_up(P, 128)
        TP = min(self.pair_tile, P128)
        # Keep >= 2 grid steps when possible so both v7x TensorCores get work.
        if TP >= P128 and P128 >= 256:
            TP = _round_up(P128 // 2, 128)
        P_pad = _round_up(P, TP)

        # Pack [d ; a_1..a_K] transposed to (R, P_pad): the per-step idx DMA is
        # then lane-dense rows instead of TP strided 16-byte granules.
        idx_rows = jnp.concatenate(
            [d_idx.reshape(1, P), a_idx.reshape(P, K).T],
            axis=0).astype(jnp.float32)                                      # (K+1, P)
        idx_rows = jnp.pad(idx_rows, ((0, R - (K + 1)), (0, P_pad - P)))     # (R, P_pad)

        kernel = functools.partial(_geo_embed_kernel,
                                   angle_k=K, reduction_a=self.reduction_a)

        out = pl.pallas_call(
            kernel,
            out_shape=jax.ShapeDtypeStruct((P_pad, H), self.out_dtype),
            grid_spec=pltpu.PrefetchScalarGridSpec(
                num_scalar_prefetch=0,
                grid=(P_pad // TP,),
                in_specs=[
                    pl.BlockSpec((R, TP), lambda i: (0, i)),   # packed indices (transposed)
                    pl.BlockSpec((2, H), lambda i: (0, 0)),    # [div|div], phase
                    pl.BlockSpec((H, H), lambda i: (0, 0)),    # Wd_full
                    pl.BlockSpec((H, H), lambda i: (0, 0)),    # Wa_full (1/K folded for mean)
                    pl.BlockSpec((1, H), lambda i: (0, 0)),    # bd + ba
                ],
                out_specs=pl.BlockSpec((TP, H), lambda i: (i, 0)),
            ),
            compiler_params=pltpu.CompilerParams(
                dimension_semantics=("parallel",),
                vmem_limit_bytes=self._vmem_limit),
        )(idx_rows, self.trig_consts, self.Wd_full, self.Wa_full, self.bias_total)

        return out[:P].reshape(B, N, N, H)

    # ------------------------------------------------------ pure-JAX reference
    def reference_forward(self, points):
        d_idx, a_idx = self.get_embedding_indices(points)
        H = self.hidden_dim
        div = self.div_term[0]                                   # (H//2,)

        def sinusoidal(x):
            om = x[..., None] * div                              # (..., H//2)
            emb = jnp.stack([jnp.sin(om), jnp.cos(om)], axis=-1) # (..., H//2, 2)
            return emb.reshape(*x.shape, H)

        d_emb = sinusoidal(d_idx) @ self.Wd.T + self.bd          # (B,N,N,H)
        a_emb = sinusoidal(a_idx) @ self.Wa.T + self.ba          # (B,N,N,k,H)
        if self.reduction_a == 'max':
            a_emb = jnp.max(a_emb, axis=3)
        else:
            a_emb = jnp.mean(a_emb, axis=3)
        return d_emb + a_emb


if __name__ == "__main__":
    key = jax.random.PRNGKey(0)
    B, N = 2, 8
    hidden_dim = 32
    points = jax.random.normal(key, (B, N, 3), dtype=jnp.float32)

    # Fast default path: bf16 MXU inputs with f32 accumulation.  Tolerance
    # reflects bf16 input quantization only; the algorithm is checked tightly
    # against the f32 path below.
    for reduction in ('max', 'mean'):
        module = GeometricStructureEmbeddingPallas(
            hidden_dim=hidden_dim, sigma_d=0.2, sigma_a=15.0, angle_k=3,
            reduction_a=reduction)
        out = jax.block_until_ready(module(points))
        assert out.shape == (B, N, N, hidden_dim)
        ref = jax.block_until_ready(module.reference_forward(points))
        np.testing.assert_allclose(np.asarray(out), np.asarray(ref),
                                   atol=1e-1, rtol=1e-1)

    # Tight numerical check with f32 matmuls (same kernel structure).
    for reduction in ('max', 'mean'):
        module = GeometricStructureEmbeddingPallas(
            hidden_dim=hidden_dim, sigma_d=0.2, sigma_a=15.0, angle_k=3,
            reduction_a=reduction, use_bf16_matmul=False)
        out = jax.block_until_ready(module(points))
        ref = jax.block_until_ready(module.reference_forward(points))
        np.testing.assert_allclose(np.asarray(out), np.asarray(ref),
                                   atol=2e-4, rtol=2e-4)

    print("KERNEL_OK")
</pallas_src>

<mosaic_0001>
module attributes {stable_mosaic.version = 11 : i64} {
  func.func @_geo_embed_kernel(%arg0: i32, %arg1: memref<8x128xf32, #tpu.memory_space<vmem>>, %arg2: memref<2x32xf32, #tpu.memory_space<vmem>>, %arg3: memref<32x32xbf16, #tpu.memory_space<vmem>>, %arg4: memref<32x32xbf16, #tpu.memory_space<vmem>>, %arg5: memref<1x32xf32, #tpu.memory_space<vmem>>, %arg6: memref<128x32xf32, #tpu.memory_space<vmem>>) attributes {dimension_semantics = [#tpu.dimension_semantics<parallel>], iteration_bounds = array<i64: 1>, scalar_prefetch = 0 : i64, scratch_operands = 0 : i64, tpu.core_type = #tpu.core_type<tc>, window_params = [{transform_indices = @transform_0, window_bounds = array<i64: 8, 128>}, {pipeline_mode = #tpu.pipeline_mode<synchronous>, transform_indices = @transform_1, window_bounds = array<i64: 2, 32>}, {pipeline_mode = #tpu.pipeline_mode<synchronous>, transform_indices = @transform_2, window_bounds = array<i64: 32, 32>}, {pipeline_mode = #tpu.pipeline_mode<synchronous>, transform_indices = @transform_3, window_bounds = array<i64: 32, 32>}, {pipeline_mode = #tpu.pipeline_mode<synchronous>, transform_indices = @transform_4, window_bounds = array<i64: 1, 32>}, {transform_indices = @transform_5, window_bounds = array<i64: 128, 32>}]} {
    %c0 = arith.constant 0 : index
    %c0_0 = arith.constant 0 : index
    %0 = vector.load %arg2[%c0, %c0_0] : memref<2x32xf32, #tpu.memory_space<vmem>>, vector<1x32xf32>
    %c1 = arith.constant 1 : index
    %c0_1 = arith.constant 0 : index
    %1 = vector.load %arg2[%c1, %c0_1] : memref<2x32xf32, #tpu.memory_space<vmem>>, vector<1x32xf32>
    %c0_2 = arith.constant 0 : index
    %c0_3 = arith.constant 0 : index
    %2 = vector.load %arg1[%c0_2, %c0_3] : memref<8x128xf32, #tpu.memory_space<vmem>>, vector<8x128xf32>
    %3 = tpu.transpose %2, [1, 0] : vector<8x128xf32> -> vector<128x8xf32>
    %4 = vector.extract_strided_slice %3 {offsets = [0, 0], sizes = [128, 1], strides = [1, 1]} : vector<128x8xf32> to vector<128x1xf32>
    %5 = vector.broadcast %4 : vector<128x1xf32> to vector<128x32xf32>
    %6 = vector.broadcast %0 : vector<1x32xf32> to vector<128x32xf32>
    %7 = arith.mulf %5, %6 : vector<128x32xf32>
    %8 = vector.broadcast %1 : vector<1x32xf32> to vector<128x32xf32>
    %9 = arith.addf %7, %8 : vector<128x32xf32>
    %10 = math.sin %9 : vector<128x32xf32>
    %11 = arith.truncf %10 : vector<128x32xf32> to vector<128x32xbf16>
    %c0_4 = arith.constant 0 : index
    %c0_5 = arith.constant 0 : index
    %12 = vector.load %arg3[%c0_4, %c0_5] : memref<32x32xbf16, #tpu.memory_space<vmem>>, vector<32x32xbf16>
    %cst = arith.constant dense<0.000000e+00> : vector<128x32xf32>
    %13 = tpu.matmul %11, %12, %cst {dimension_numbers = #tpu.dot_dimension_numbers<[1], [0], [0], [1], [0, 0, 1, 1], [], []>} : vector<128x32xbf16>, vector<32x32xbf16>, vector<128x32xf32> -> vector<128x32xf32>
    %14 = vector.extract_strided_slice %3 {offsets = [0, 1], sizes = [128, 1], strides = [1, 1]} : vector<128x8xf32> to vector<128x1xf32>
    %15 = vector.broadcast %14 : vector<128x1xf32> to vector<128x32xf32>
    %16 = vector.broadcast %0 : vector<1x32xf32> to vector<128x32xf32>
    %17 = arith.mulf %15, %16 : vector<128x32xf32>
    %18 = vector.broadcast %1 : vector<1x32xf32> to vector<128x32xf32>
    %19 = arith.addf %17, %18 : vector<128x32xf32>
    %20 = math.sin %19 : vector<128x32xf32>
    %21 = arith.truncf %20 : vector<128x32xf32> to vector<128x32xbf16>
    %c0_6 = arith.constant 0 : index
    %c0_7 = arith.constant 0 : index
    %22 = vector.load %arg4[%c0_6, %c0_7] : memref<32x32xbf16, #tpu.memory_space<vmem>>, vector<32x32xbf16>
    %cst_8 = arith.constant dense<0.000000e+00> : vector<128x32xf32>
    %23 = tpu.matmul %21, %22, %cst_8 {dimension_numbers = #tpu.dot_dimension_numbers<[1], [0], [0], [1], [0, 0, 1, 1], [], []>} : vector<128x32xbf16>, vector<32x32xbf16>, vector<128x32xf32> -> vector<128x32xf32>
    %24 = vector.extract_strided_slice %3 {offsets = [0, 2], sizes = [128, 1], strides = [1, 1]} : vector<128x8xf32> to vector<128x1xf32>
    %25 = vector.broadcast %24 : vector<128x1xf32> to vector<128x32xf32>
    %26 = vector.broadcast %0 : vector<1x32xf32> to vector<128x32xf32>
    %27 = arith.mulf %25, %26 : vector<128x32xf32>
    %28 = vector.broadcast %1 : vector<1x32xf32> to vector<128x32xf32>
    %29 = arith.addf %27, %28 : vector<128x32xf32>
    %30 = math.sin %29 : vector<128x32xf32>
    %31 = arith.truncf %30 : vector<128x32xf32> to vector<128x32xbf16>
    %c0_9 = arith.constant 0 : index
    %c0_10 = arith.constant 0 : index
    %32 = vector.load %arg4[%c0_9, %c0_10] : memref<32x32xbf16, #tpu.memory_space<vmem>>, vector<32x32xbf16>
    %cst_11 = arith.constant dense<0.000000e+00> : vector<128x32xf32>
    %33 = tpu.matmul %31, %32, %cst_11 {dimension_numbers = #tpu.dot_dimension_numbers<[1], [0], [0], [1], [0, 0, 1, 1], [], []>} : vector<128x32xbf16>, vector<32x32xbf16>, vector<128x32xf32> -> vector<128x32xf32>
    %34 = arith.maximumf %23, %33 : vector<128x32xf32>
    %35 = vector.extract_strided_slice %3 {offsets = [0, 3], sizes = [128, 1], strides = [1, 1]} : vector<128x8xf32> to vector<128x1xf32>
    %36 = vector.broadcast %35 : vector<128x1xf32> to vector<128x32xf32>
    %37 = vector.broadcast %0 : vector<1x32xf32> to vector<128x32xf32>
    %38 = arith.mulf %36, %37 : vector<128x32xf32>
    %39 = vector.broadcast %1 : vector<1x32xf32> to vector<128x32xf32>
    %40 = arith.addf %38, %39 : vector<128x32xf32>
    %41 = math.sin %40 : vector<128x32xf32>
    %42 = arith.truncf %41 : vector<128x32xf32> to vector<128x32xbf16>
    %c0_12 = arith.constant 0 : index
    %c0_13 = arith.constant 0 : index
    %43 = vector.load %arg4[%c0_12, %c0_13] : memref<32x32xbf16, #tpu.memory_space<vmem>>, vector<32x32xbf16>
    %cst_14 = arith.constant dense<0.000000e+00> : vector<128x32xf32>
    %44 = tpu.matmul %42, %43, %cst_14 {dimension_numbers = #tpu.dot_dimension_numbers<[1], [0], [0], [1], [0, 0, 1, 1], [], []>} : vector<128x32xbf16>, vector<32x32xbf16>, vector<128x32xf32> -> vector<128x32xf32>
    %45 = arith.maximumf %34, %44 : vector<128x32xf32>
    %46 = arith.addf %13, %45 : vector<128x32xf32>
    %c0_15 = arith.constant 0 : index
    %c0_16 = arith.constant 0 : index
    %47 = vector.load %arg5[%c0_15, %c0_16] : memref<1x32xf32, #tpu.memory_space<vmem>>, vector<1x32xf32>
    %48 = vector.broadcast %47 : vector<1x32xf32> to vector<128x32xf32>
    %49 = arith.addf %46, %48 : vector<128x32xf32>
    %c0_17 = arith.constant 0 : index
    %c0_18 = arith.constant 0 : index
    %50 = vector.load %arg6[%c0_17, %c0_18] : memref<128x32xf32, #tpu.memory_space<vmem>>, vector<128x32xf32>
    tpu.vector_store %arg6[%c0_17, %c0_18], %49 {strides = array<i32>} : memref<128x32xf32, #tpu.memory_space<vmem>>, vector<128x32xf32>,
    return
  }
  func.func @transform_0(%arg0: i32) -> (i32, i32) {
    %c0_i32 = arith.constant 0 : i32
    %c0_i32_0 = arith.constant 0 : i32
    return %c0_i32, %arg0 : i32, i32
  }
  func.func @transform_1(%arg0: i32) -> (i32, i32) {
    %c0_i32 = arith.constant 0 : i32
    %c0_i32_0 = arith.constant 0 : i32
    %c0_i32_1 = arith.constant 0 : i32
    return %c0_i32, %c0_i32_0 : i32, i32
  }
  func.func @transform_2(%arg0: i32) -> (i32, i32) {
    %c0_i32 = arith.constant 0 : i32
    %c0_i32_0 = arith.constant 0 : i32
    %c0_i32_1 = arith.constant 0 : i32
    return %c0_i32, %c0_i32_0 : i32, i32
  }
  func.func @transform_3(%arg0: i32) -> (i32, i32) {
    %c0_i32 = arith.constant 0 : i32
    %c0_i32_0 = arith.constant 0 : i32
    %c0_i32_1 = arith.constant 0 : i32
    return %c0_i32, %c0_i32_0 : i32, i32
  }
  func.func @transform_4(%arg0: i32) -> (i32, i32) {
    %c0_i32 = arith.constant 0 : i32
    %c0_i32_0 = arith.constant 0 : i32
    %c0_i32_1 = arith.constant 0 : i32
    return %c0_i32, %c0_i32_0 : i32, i32
  }
  func.func @transform_5(%arg0: i32) -> (i32, i32) {
    %c0_i32 = arith.constant 0 : i32
    %c0_i32_0 = arith.constant 0 : i32
    return %arg0, %c0_i32 : i32, i32
  }
}

</mosaic_0001>

<bundles_post_ra>
// kernel: tpu_custom_call.1
= control target key start
LH: loop header
LB: loop body
LE: loop exit
PB: predicated region body
PF: predicated region fallthrough
CT: control target
= control target key end

     0   :  { %10 = vsyncpa [#allocation3], 0  ;;  %s16996_s0 = inlined_call_operand.hbm [shape: f32[8,128], index: 0, kind: input, shape index: {}]   ;;  %s16997_s1 = inlined_call_operand.hbm [shape: f32[2,32], index: 1, kind: input, shape index: {}]   ;;  %s16998_s2 = inlined_call_operand.hbm [shape: bf16[32,32], index: 2, kind: input, shape index: {}]   ;;  %s16999_s3 = inlined_call_operand.hbm [shape: bf16[32,32], index: 3, kind: input, shape index: {}]   ;;  %s17000_s4 = inlined_call_operand.vmem [shape: f32[1,32], index: 4, kind: input, shape index: {}]   ;;  %s17001_s5 = inlined_call_operand.vmem [shape: f32[128,32], index: 5, kind: output, shape index: {}]  }
   0x1   :  { %11 = vsyncpa [#allocation5], 0 }
   0x2   :  { %12 = vsyncpa [#allocation8], 0  ;;  %s8899_s18 = smov [#allocation4]   ;;  %s8900_s20 = smov [#allocation2]  }
   0x3   :  { %s29_s19 = sshll.u32 %s8899_s18, 4  ;;  %s19_s21 = sshll.u32 %s8900_s20, 4  ;;  %s30_s19 = int_to_ptr.vmem [resolvable:$true] %s29_s19  ;;  %s20_s21 = int_to_ptr.vmem [resolvable:$true] %s19_s21 }
   0x4   :  { %s8821_s22 = scalar_lea.vmem %s30_s19, 32  ;;  %p8826_p1 = scmp.lt.s32.totalorder %s30_s19, %s30_s19 }
   0x5   :  { %p8822_p0 = scmp.ne.s32.totalorder %s30_s19, %s8821_s22  ;;  %p8827_p2 = scmp.lt.s32.totalorder %s8821_s22, %s8821_s22 }
   0x7   :  { %p8828_p3 = por %p8827_p2, %p8826_p1 }
   0x9   :  { %p8829_p4 = pnand %p8828_p3, %p8822_p0 }
   0xb   :  { %8832 = shalt.err (!%p8829_p4)
}
   0xc   :  { %32 = dma.hbm_to_vmem [thread:$0]  %s16997_s1, 32, %s30_s19, [#allocation5]  }
   0xd   :  { %s8841_s25 = scalar_lea.vmem %s20_s21, 128  ;;  %p8846_p6 = scmp.lt.s32.totalorder %s20_s21, %s20_s21 }
   0xe   :  { %p8842_p5 = scmp.ne.s32.totalorder %s20_s21, %s8841_s25  ;;  %p8847_p7 = scmp.lt.s32.totalorder %s8841_s25, %s8841_s25 }
  0x10   :  { %p8848_p8 = por %p8847_p7, %p8846_p6 }
  0x12   :  { %p8849_p9 = pnand %p8848_p8, %p8842_p5 }
  0x14   :  { %8852 = shalt.err (!%p8849_p9)
}
  0x15   :  { %22 = dma.hbm_to_vmem [thread:$0]  %s16996_s0, 128, %s20_s21, [#allocation3]  }
  0x16   :  { %s8901_s28 = smov [#allocation6]  }
  0x17   :  { %s38_s29 = sshll.u32 %s8901_s28, 4  ;;  %s39_s29 = int_to_ptr.vmem [resolvable:$true] %s38_s29 }
  0x18   :  { %s8861_s30 = scalar_lea.vmem %s39_s29, 256  ;;  %p8866_p11 = scmp.lt.s32.totalorder %s39_s29, %s39_s29 }
  0x19   :  { %p8862_p10 = scmp.ne.s32.totalorder %s39_s29, %s8861_s30  ;;  %p8867_p12 = scmp.lt.s32.totalorder %s8861_s30, %s8861_s30 }
  0x1b   :  { %p8868_p13 = por %p8867_p12, %p8866_p11 }
  0x1d   :  { %p8869_p0 = pnand %p8868_p13, %p8862_p10 }
  0x1f   :  { %8872 = shalt.err (!%p8869_p0)
}
  0x20   :  { %s8902_s1 = smov 64   ;;  %s8903_s6 = smov 4  }
  0x21   :  { %44 = dma.hbm_to_vmem [thread:$0]  %s16998_s2, 256, %s39_s29, [#allocation5], %s8902_s1, %s8902_s1, %s8903_s6  }
  0x22   :  { %s8904_s9 = smov [#allocation7]  }
  0x23   :  { %s50_s10 = sshll.u32 %s8904_s9, 4  ;;  %s51_s10 = int_to_ptr.vmem [resolvable:$true] %s50_s10 }
  0x24   :  { %s8881_s0 = scalar_lea.vmem %s51_s10, 256  ;;  %p8886_p2 = scmp.lt.s32.totalorder %s51_s10, %s51_s10 }
  0x25   :  { %p8882_p1 = scmp.ne.s32.totalorder %s51_s10, %s8881_s0  ;;  %p8887_p3 = scmp.lt.s32.totalorder %s8881_s0, %s8881_s0 }
  0x27   :  { %p8888_p4 = por %p8887_p3, %p8886_p2 }
  0x29   :  { %p8889_p5 = pnand %p8888_p4, %p8882_p1 }
  0x2b   :  { %8892 = shalt.err (!%p8889_p5)
}
  0x2c   :  { %56 = dma.hbm_to_vmem [thread:$0]  %s16999_s3, 256, %s51_s10, [#allocation8], %s8902_s1, %s8902_s1, %s8903_s6  }
  0x2d   :  { %8893 = dma.done.wait [#allocation3], 128  }
  0x2e   :  { %8894 = vsyncadd [#allocation3], 4294967168 }
  0x2f   :  { %8895 = dma.done.wait [#allocation5], 288  }
  0x30   :  { %8896 = vsyncadd [#allocation5], 4294967008 }
  0x31   :  { %8897 = dma.done.wait [#allocation8], 256  }
  0x32   :  { %8898 = vsyncadd [#allocation8], 4294967040  ;;  %v8905_v0 = vmov 2   ;;  %v74_v1 = vld [vmem:[#allocation2] sm:$0xff]  ;;  %v8906_v2 = vmov 1   ;;  %v8907_v5 = vmov 3  }
  0x33   :  { %8487 = vset.pattern.permute.xlu1 %v8905_v0  ;;  %75 = vxpose.xlu0.b32.start.end [1/1] (short) %v74_v1, 128  ;;  %v8908_v9 = vmov 0   ;;  %v9042_v23 = vld [vmem:[#allocation4] ss:$0 sm:$0xff]  ;;  %v9046_v26 = vld [vmem:[#allocation4 + $0x1] ss:$0 sm:$0xff] }
  0x34   :  { %v17016_v45 = vmov 920167782   ;;  %v17005_v48 = vmov 2475754826   ;;  %v17014_v50 = vmov 1326507024  }
  0x35   :  { %v17007_v52 = vmov 2131351028   ;;  %v17011_v54 = vmov 2102212464   ;;  %v17009_v61 = vmov 683565275  }
  0x5c   :  { %8486 = vset.pattern.permute.xlu0 %v8906_v2 }
  0xaf   :  { %v91_v3 = vpop.trf.xlu0 }
  0xb0   :  { %3810 = vperm.xlu1 %8487, %v91_v3   ;;  %1904 = vperm.xlu0 %8486, %v91_v3  }
  0xb3   :  { %v92_v4 = vpop.trf.xlu0 }
  0xb4   :  { %8488 = vset.pattern.permute.xlu1 %v8907_v5  ;;  %8491 = vset.pattern.permute.xlu0 %v8907_v5 }
  0xb5   :  { %5715 = vperm.xlu1 %8488, %v91_v3   ;;  %5719 = vperm.xlu0 %8491, %v92_v4  }
  0xb7   :  { %v93_v6 = vpop.trf.xlu0 }
  0xb9   :  { %8489 = vset.pattern.permute.xlu1 %v8906_v2 }
  0xba   :  { %1908 = vperm.xlu1 %8489, %v92_v4  }
  0xbb   :  { %v94_v7 = vpop.trf.xlu0 }
  0xbe   :  { %8490 = vset.pattern.permute.xlu1 %v8905_v0 }
  0xbf   :  { %3814 = vperm.xlu1 %8490, %v92_v4   ;;  %v8963_v8 = vpop.trf.xlu0 }
  0xc3   :  { %8492 = vset.pattern.permute.xlu1 %v8908_v9  ;;  %v8966_v10 = vpop.trf.xlu0 }
  0xc4   :  { %114 = vperm.xlu1 %8492, %v92_v4   ;;  %5735 = vperm.xlu0 %8491, %v8966_v10  }
  0xc7   :  { %v8969_v11 = vpop.trf.xlu0 }
  0xc8   :  { %8493 = vset.pattern.permute.xlu1 %v8906_v2  ;;  %8522 = vset.pattern.permute.xlu0 %v8905_v0 }
  0xc9   :  { %1912 = vperm.xlu1 %8493, %v93_v6  }
  0xcb   :  { %v8973_v12 = vpop.trf.xlu0 }
  0xcd   :  { %8494 = vset.pattern.permute.xlu1 %v8905_v0 }
  0xce   :  { %3818 = vperm.xlu1 %8494, %v93_v6  }
  0xcf   :  { %v8976_v13 = vpop.trf.xlu0 }
  0xd2   :  { %8495 = vset.pattern.permute.xlu1 %v8907_v5 }
  0xd3   :  { %5723 = vperm.xlu1 %8495, %v93_v6   ;;  %v8979_v14 = vpop.trf.xlu0 }
  0xd7   :  { %8496 = vset.pattern.permute.xlu1 %v8908_v9  ;;  %v8982_v15 = vpop.trf.xlu0 }
  0xd8   :  { %119 = vperm.xlu1 %8496, %v93_v6  }
  0xdb   :  { %v8984_v16 = vpop.trf.xlu0 }
  0xdc   :  { %8497 = vset.pattern.permute.xlu1 %v8906_v2 }
  0xdd   :  { %1916 = vperm.xlu1 %8497, %v94_v7  }
  0xdf   :  { %v8987_v17 = vpop.trf.xlu0 }
  0xe0   :  { %3858 = vperm.xlu0 %8522, %v8987_v17  }
  0xe1   :  { %8498 = vset.pattern.permute.xlu1 %v8905_v0 }
  0xe2   :  { %3822 = vperm.xlu1 %8498, %v94_v7  }
  0xe3   :  { %v8991_v18 = vpop.trf.xlu0 }
  0xe6   :  { %8499 = vset.pattern.permute.xlu1 %v8907_v5 }
  0xe7   :  { %5727 = vperm.xlu1 %8499, %v94_v7   ;;  %v8994_v19 = vpop.trf.xlu0 }
  0xeb   :  { %8500 = vset.pattern.permute.xlu1 %v8906_v2  ;;  %v8997_v20 = vpop.trf.xlu0 }
  0xec   :  { %1920 = vperm.xlu1 %8500, %v8963_v8   ;;  %3870 = vperm.xlu0 %8522, %v8997_v20  }
  0xf0   :  { %8501 = vset.pattern.permute.xlu1 %v8905_v0  ;;  %8525 = vset.pattern.permute.xlu0 %v8907_v5 }
  0xf1   :  { %3826 = vperm.xlu1 %8501, %v8963_v8   ;;  %5751 = vperm.xlu0 %8525, %v8979_v14  }
  0xf5   :  { %8502 = vset.pattern.permute.xlu1 %v8906_v2  ;;  %5767 = vperm.xlu0 %8525, %v8991_v18  }
  0xf6   :  { %1924 = vperm.xlu1 %8502, %v8966_v10  }
  0xf9   :  { %8528 = vset.pattern.permute.xlu0 %v8908_v9 }
  0xfa   :  { %8503 = vset.pattern.permute.xlu1 %v8905_v0  ;;  %109 = vperm.xlu0 %8528, %v91_v3  }
  0xfb   :  { %3830 = vperm.xlu1 %8503, %v8966_v10  }
  0xfe   :  { %124 = vperm.xlu0 %8528, %v94_v7  }
  0xff   :  { %8504 = vset.pattern.permute.xlu1 %v8906_v2 }
 0x100   :  { %1928 = vperm.xlu1 %8504, %v8969_v11  }
 0x102   :  { %129 = vperm.xlu0 %8528, %v8963_v8  }
 0x104   :  { %8505 = vset.pattern.permute.xlu1 %v8905_v0 }
 0x105   :  { %3834 = vperm.xlu1 %8505, %v8969_v11  }
 0x106   :  { %144 = vperm.xlu0 %8528, %v8973_v12  }
 0x109   :  { %8506 = vset.pattern.permute.xlu1 %v8906_v2 }
 0x10a   :  { %1932 = vperm.xlu1 %8506, %v8973_v12   ;;  %149 = vperm.xlu0 %8528, %v8976_v13  }
 0x10e   :  { %8507 = vset.pattern.permute.xlu1 %v8905_v0  ;;  %164 = vperm.xlu0 %8528, %v8984_v16  }
 0x10f   :  { %3838 = vperm.xlu1 %8507, %v8973_v12  }
 0x112   :  { %169 = vperm.xlu0 %8528, %v8987_v17  }
 0x113   :  { %8508 = vset.pattern.permute.xlu1 %v8906_v2 }
 0x114   :  { %1936 = vperm.xlu1 %8508, %v8976_v13  }
 0x116   :  { %184 = vperm.xlu0 %8528, %v8997_v20  }
 0x118   :  { %8509 = vset.pattern.permute.xlu1 %v8905_v0 }
 0x119   :  { %3842 = vperm.xlu1 %8509, %v8976_v13  }
 0x11a   :  { %8530 = vset.pattern.permute.xlu0 %v8907_v5 }
 0x11d   :  { %8510 = vset.pattern.permute.xlu1 %v8906_v2 }
 0x11e   :  { %1940 = vperm.xlu1 %8510, %v8979_v14  }
 0x122   :  { %8511 = vset.pattern.permute.xlu1 %v8905_v0 }
 0x123   :  { %3846 = vperm.xlu1 %8511, %v8979_v14  }
 0x127   :  { %8512 = vset.pattern.permute.xlu1 %v8906_v2 }
 0x128   :  { %1944 = vperm.xlu1 %8512, %v8982_v15  }
 0x12b   :  { %v9036_v21 = vpop.permute.xlu1 %3810  ;;  %v9039_v22 = vpop.permute.xlu0 %1904 }
 0x12c   :  { %8513 = vset.pattern.permute.xlu1 %v8905_v0 }
 0x12d   :  { %3850 = vperm.xlu1 %8513, %v8982_v15  }
 0x130   :  { %v5716_v24 = vpop.permute.xlu1 %5715  ;;  %v5720_v28 = vpop.permute.xlu0 %5719 }
 0x131   :  { %v5778_v25 = vmul.f32 %v9042_v23, %v5716_v24  ;;  %8514 = vset.pattern.permute.xlu1 %v8906_v2  ;;  %v5779_v30 = vmul.f32 %v9042_v23, %v5720_v28 }
 0x132   :  { %1948 = vperm.xlu1 %8514, %v8984_v16  }
 0x133   :  { %v9050_v27 = vadd.f32 %v9046_v26, %v5778_v25  ;;  %v9057_v32 = vadd.f32 %v9046_v26, %v5779_v30  ;;  %v3873_v25 = vmul.f32 %v9042_v23, %v9036_v21 }
 0x135   :  { %17444 = vst [vmem:[#allocation12_spill] sm:$0xff] %v9050_v27  ;;  %v5813_v29 = vand.u32 2139095040, %v9050_v27  ;;  %17445 = vst [vmem:[#allocation13_spill] sm:$0xff] %v9057_v32  ;;  %v5917_v34 = vand.u32 2139095040, %v9057_v32  ;;  %v9067_v41 = vpop.permute.xlu1 %1908  ;;  %v17004_v43 = vand.u32 2147483647, %v9050_v27 }
 0x136   :  { %8515 = vset.pattern.permute.xlu1 %v8905_v0  ;;  %v17003_v30 = vand.u32 2147483647, %v9057_v32 }
 0x137   :  { %3854 = vperm.xlu1 %8515, %v8984_v16   ;;  %v5814_v31 = vshrl.u32 %v5813_v29, 23  ;;  %v5918_v36 = vshrl.u32 %v5917_v34, 23  ;;  %v5817_v58 = vand.u32 8388607, %v17004_v43 }
 0x139   :  { %v8010_v33 = vadd.s32 4294967169, %v5814_v31  ;;  %v8014_v37 = vadd.s32 4294967169, %v5918_v36  ;;  %v5818_v28 = vor.u32 8388608, %v5817_v58 }
 0x13a   :  { %v9076_v47 = vpop.permute.xlu1 %3814 }
 0x13b   :  { %8516 = vset.pattern.permute.xlu1 %v8906_v2  ;;  %v5820_v35 = vadd.s32 1, %v8010_v33  ;;  %v5924_v40 = vadd.s32 1, %v8014_v37 }
 0x13c   :  { %1952 = vperm.xlu1 %8516, %v8987_v17  }
 0x13d   :  { %vm5821_vm0 = vcmp.gt.s32.totalorder %v5820_v35, 0  ;;  %vm5925_vm1 = vcmp.gt.s32.totalorder %v5924_v40, 0 }
 0x13e   :  { %v5822_v38 = vsel %vm5821_vm0, %v5820_v35, 0  ;;  %v5926_v44 = vsel %vm5925_vm1, %v5924_v40, 0 }
 0x13f   :  { %v5824_v39 = vand.u32 31, %v5822_v38  ;;  %v5928_v57 = vand.u32 31, %v5926_v44  ;;  %v9091_v59 = vshrl.u32 %v5822_v38, 5  ;;  %v115_v24 = vpop.permute.xlu1 %114  ;;  %v9132_v37 = vshrl.u32 %v5926_v44, 5 }
 0x140   :  { %1956 = vperm.xlu1 %8516, %v8991_v18   ;;  %v192_v33 = vmul.f32 %v9042_v23, %v115_v24 }
 0x141   :  { %v9069_v42 = vsub.s32 32, %v5824_v39  ;;  %v5836_v56 = vshll.u32 %v17011_v54, %v5824_v39  ;;  %v5839_v60 = vshll.u32 %v17016_v45, %v5824_v39  ;;  %v5827_v62 = vshll.u32 %v17009_v61, %v5824_v39 }
 0x142   :  { %v5830_v63 = vshll.u32 %v17005_v48, %v5824_v39  ;;  %v9103_v7 = vsub.s32 32, %v5928_v57  ;;  %vm5845_vm2 = vcmp.lt.s32.totalorder %v9091_v59, 4  ;;  %vm5842_vm3 = vcmp.lt.s32.totalorder %v9091_v59, 1 }
 0x143   :  { %v5837_v46 = vshrl.u32 %v17016_v45, %v9069_v42  ;;  %v5828_v49 = vshrl.u32 %v17005_v48, %v9069_v42  ;;  %v5840_v51 = vshrl.u32 %v17014_v50, %v9069_v42  ;;  %v5831_v53 = vshrl.u32 %v17007_v52, %v9069_v42 }
 0x144   :  { %8517 = vset.pattern.permute.xlu1 %v8905_v0  ;;  %v5834_v55 = vshrl.u32 %v17011_v54, %v9069_v42  ;;  %vm5844_vm4 = vcmp.lt.s32.totalorder %v9091_v59, 3  ;;  %v5940_v34 = vshll.u32 %v17011_v54, %v5928_v57  ;;  %v5941_v35 = vshrl.u32 %v17016_v45, %v9103_v7 }
 0x145   :  { %3862 = vperm.xlu1 %8517, %v8991_v18   ;;  %v5838_v1 = vor.u32 %v5837_v46, %v5836_v56  ;;  %v9097_v3 = vor.u32 %v5828_v49, %v5827_v62  ;;  %v9099_v4 = vor.u32 %v5831_v53, %v5830_v63  ;;  %v5943_v38 = vshll.u32 %v17016_v45, %v5928_v57 }
 0x146   :  { %v5931_v46 = vshll.u32 %v17009_v61, %v5928_v57  ;;  %v5934_v49 = vshll.u32 %v17005_v48, %v5928_v57  ;;  %v5932_v44 = vshrl.u32 %v17005_v48, %v9103_v7  ;;  %v5935_v53 = vshrl.u32 %v17007_v52, %v9103_v7 }
 0x147   :  { %v5851_v29 = vsel %vm5845_vm2, %v5838_v1, 920167782  ;;  %v9150_v56 = vadd.f32 %v9046_v26, %v192_v33  ;;  %vm5843_vm5 = vcmp.lt.s32.totalorder %v9091_v59, 2  ;;  %v5942_v58 = vor.u32 %v5941_v35, %v5940_v34 }
 0x148   :  { %vm5949_vm6 = vcmp.lt.s32.totalorder %v9132_v37, 4  ;;  %v9160_v63 = vadd.f32 %v9046_v26, %v3873_v25  ;;  %v5936_v24 = vor.u32 %v5935_v53, %v5934_v49  ;;  %vm5946_vm7 = vcmp.lt.s32.totalorder %v9132_v37, 1 }
 0x149   :  { %8518 = vset.pattern.permute.xlu1 %v8906_v2  ;;  %17446 = vst [vmem:[#allocation14_spill] sm:$0xff] %v9150_v56  ;;  %vm5948_vm8 = vcmp.lt.s32.totalorder %v9132_v37, 3  ;;  %vm5947_vm9 = vcmp.lt.s32.totalorder %v9132_v37, 2 }
 0x14a   :  { %1960 = vperm.xlu1 %8518, %v8994_v19   ;;  %17447 = vst [vmem:[#allocation15_spill] sm:$0xff] %v9160_v63 }
 0x14e   :  { %8519 = vset.pattern.permute.xlu1 %v8905_v0  ;;  %v5833_v0 = vshll.u32 %v17007_v52, %v5824_v39  ;;  %v5944_v39 = vshrl.u32 %v17014_v50, %v9103_v7 }
 0x14f   :  { %3866 = vperm.xlu1 %8519, %v8994_v19  }
 0x150   :  { %v9101_v6 = vor.u32 %v5834_v55, %v5833_v0  ;;  %v5938_v55 = vshrl.u32 %v17011_v54, %v9103_v7  ;;  %v5945_v62 = vor.u32 %v5944_v39, %v5943_v38 }
 0x152   :  { %v5854_v21 = vsel %vm5842_vm3, %v9099_v4, %v9101_v6  ;;  %v5852_v36 = vsel %vm5844_vm4, %v9101_v6, %v5851_v29 }
 0x153   :  { %8520 = vset.pattern.permute.xlu1 %v8906_v2  ;;  %v5841_v2 = vor.u32 %v5840_v51, %v5839_v60  ;;  %v5937_v51 = vshll.u32 %v17007_v52, %v5928_v57  ;;  %v1967_v60 = vmul.f32 %v9042_v23, %v9039_v22  ;;  %v5933_v22 = vor.u32 %v5932_v44, %v5931_v46 }
 0x154   :  { %1964 = vperm.xlu1 %8520, %v8997_v20  }
 0x155   :  { %v5855_v31 = vsel %vm5845_vm2, %v5841_v2, 1326507024  ;;  %v5921_v2 = vand.u32 8388607, %v17003_v30  ;;  %v5939_v29 = vor.u32 %v5938_v55, %v5937_v51  ;;  %v9187_v35 = vadd.f32 %v9046_v26, %v1967_v60 }
 0x156   :  { %v5856_v40 = vsel %vm5844_vm4, %v5838_v1, %v5855_v31  ;;  %v9164_v1 = vshll.u32 %v5818_v28, 8  ;;  %v334_v31 = vand.u32 2139095040, %v9150_v56  ;;  %v5954_v38 = vsel %vm5946_vm7, %v5933_v22, %v5936_v24 }
 0x157   :  { %v5857_v57 = vsel %vm5843_vm5, %v5854_v21, %v5856_v40  ;;  %17448 = vst [vmem:[#allocation16_spill] sm:$0xff] %v9187_v35  ;;  %v3908_v40 = vand.u32 2139095040, %v9160_v63  ;;  %v5958_v46 = vsel %vm5946_vm7, %v5936_v24, %v5939_v29  ;;  %v5826_v51 = vshrl.u32 %v17009_v61, %v9069_v42 }
 0x158   :  { %8521 = vset.pattern.permute.xlu1 %v8907_v5  ;;  %v9170_v33 = vmul.u32.u64.low %v9164_v1, %v5857_v57  ;;  %v9171_v21 = vmul.u32.u64.high %v9164_v1, %v5857_v57, %v9170_v33  ;;  %v335_v34 = vshrl.u32 %v334_v31, 23  ;;  %v2002_v55 = vand.u32 2139095040, %v9187_v35 }
 0x159   :  { %5731 = vperm.xlu1 %8521, %v8963_v8   ;;  %v5850_v8 = vsel %vm5842_vm3, %v9097_v3, %v9099_v4  ;;  %v3909_v57 = vshrl.u32 %v3908_v40, 23  ;;  %v5930_v31 = vshrl.u32 %v17009_v61, %v9103_v7 }
 0x15a   :  { %v5853_v0 = vsel %vm5843_vm5, %v5850_v8, %v5852_v36  ;;  %v5959_v8 = vsel %vm5949_vm6, %v5945_v62, 1326507024  ;;  %v5922_v36 = vor.u32 8388608, %v5921_v2  ;;  %v7804_v53 = vadd.s32 4294967169, %v335_v34 }
 0x15b   :  { %v9177_v25 = vmul.u32.u64.low %v9164_v1, %v5853_v0  ;;  %v9178_v28 = vmul.u32.u64.high %v9164_v1, %v5853_v0, %v9177_v25  ;;  %v5960_v49 = vsel %vm5948_vm8, %v5942_v58, %v5959_v8  ;;  %v5951_v8 = vsel %vm5949_vm6, %v5939_v29, 2102212464 }
 0x15c   :  { %v9210_v60 = vshll.u32 %v5922_v36, 8  ;;  %v341_v62 = vadd.s32 1, %v7804_v53  ;;  %v7938_v36 = vadd.s32 4294967169, %v3909_v57  ;;  %v5952_v59 = vsel %vm5948_vm8, %v5936_v24, %v5951_v8 }
 0x15d   :  { %5739 = vperm.xlu1 %8521, %v8969_v11   ;;  %vm5867_vm10 = vc.u32 %v9171_v21, %v9177_v25 }
 0x15e   :  { %vm342_vm11 = vcmp.gt.s32.totalorder %v341_v62, 0 }
 0x15f   :  { %v343_v34 = vsel %vm342_vm11, %v341_v62, 0 }
 0x160   :  { %v345_v7 = vand.u32 31, %v343_v34  ;;  %v9267_v37 = vshrl.u32 %v343_v34, 5 }
 0x161   :  { %5743 = vperm.xlu1 %8521, %v8973_v12   ;;  %v5955_v12 = vsel %vm5949_vm6, %v5942_v58, 920167782  ;;  %v5961_v58 = vsel %vm5947_vm9, %v5958_v46, %v5960_v49  ;;  %v5950_v49 = vsel %vm5946_vm7, %v5930_v31, %v5933_v22  ;;  %v17002_v22 = vand.u32 2147483647, %v9150_v56 }
 0x162   :  { %v5956_v39 = vsel %vm5948_vm8, %v5939_v29, %v5955_v12  ;;  %v357_v57 = vshll.u32 %v17011_v54, %v345_v7  ;;  %v354_v62 = vshll.u32 %v17007_v52, %v345_v7  ;;  %vm366_vm13 = vcmp.lt.s32.totalorder %v9267_v37, 4 }
 0x163   :  { %v5957_v44 = vsel %vm5947_vm9, %v5954_v38, %v5956_v39  ;;  %v2003_v38 = vshrl.u32 %v2002_v55, 23  ;;  %vm363_vm15 = vcmp.lt.s32.totalorder %v9267_v37, 1  ;;  %vm365_vm0 = vcmp.lt.s32.totalorder %v9267_v37, 3 }
 0x164   :  { %v9222_v0 = vmul.u32.u64.low %v9210_v60, %v5957_v44  ;;  %v9223_v2 = vmul.u32.u64.high %v9210_v60, %v5957_v44, %v9222_v0 }
 0x165   :  { %8523 = vset.pattern.permute.xlu1 %v8908_v9  ;;  %v7864_v29 = vadd.s32 4294967169, %v2003_v38 }
 0x166   :  { %134 = vperm.xlu1 %8523, %v8966_v10   ;;  %v5847_v10 = vsel %vm5845_vm2, %v9101_v6, 2102212464  ;;  %v5846_v6 = vsel %vm5842_vm3, %v5826_v51, %v9097_v3  ;;  %v9229_v3 = vmul.u32.u64.low %v9210_v60, %v5961_v58  ;;  %v9230_v33 = vmul.u32.u64.high %v9210_v60, %v5961_v58, %v9229_v3 }
 0x167   :  { %v5848_v42 = vsel %vm5844_vm4, %v9099_v4, %v5847_v10  ;;  %v5736_v4 = vpop.permute.xlu0 %5735  ;;  %v9245_v10 = vsub.s32 32, %v345_v7  ;;  %v5972_v44 = vadd.s32 1, %v9223_v2  ;;  %v348_v58 = vshll.u32 %v17009_v61, %v345_v7 }
 0x168   :  { %v5849_v12 = vsel %vm5843_vm5, %v5846_v6, %v5848_v42  ;;  %v5783_v40 = vmul.f32 %v9042_v23, %v5736_v4  ;;  %vm5971_vm12 = vc.u32 %v9230_v33, %v9222_v0  ;;  %v351_v42 = vshll.u32 %v17005_v48, %v345_v7 }
 0x169   :  { %v5865_v46 = vmul.u32 %v9164_v1, %v5849_v12  ;;  %v5953_v1 = vsel %vm5947_vm9, %v5950_v49, %v5952_v59  ;;  %v349_v53 = vshrl.u32 %v17005_v48, %v9245_v10  ;;  %v352_v55 = vshrl.u32 %v17007_v52, %v9245_v10  ;;  %v1913_v49 = vpop.permute.xlu1 %1912 }
 0x16a   :  { %139 = vperm.xlu1 %8523, %v8969_v11   ;;  %v5868_v11 = vadd.s32 1, %v9178_v28  ;;  %v9257_v24 = vadd.f32 %v9046_v26, %v5783_v40  ;;  %v358_v6 = vshrl.u32 %v17016_v45, %v9245_v10  ;;  %v361_v31 = vshrl.u32 %v17014_v50, %v9245_v10 }
 0x16b   :  { %v5973_v3 = vsel %vm5971_vm12, %v5972_v44, %v9223_v2  ;;  %v338_v4 = vand.u32 8388607, %v17002_v22  ;;  %v9283_v34 = vor.u32 %v349_v53, %v348_v58  ;;  %vm364_vm2 = vcmp.lt.s32.totalorder %v9267_v37, 2 }
 0x16c   :  { %v5869_v39 = vsel %vm5867_vm10, %v5868_v11, %v9178_v28  ;;  %v1968_v28 = vmul.f32 %v9042_v23, %v9067_v41  ;;  %17449 = vst [vmem:[#allocation17_spill] sm:$0xff] %v9257_v24  ;;  %v355_v41 = vshrl.u32 %v17011_v54, %v9245_v10  ;;  %v360_v11 = vshll.u32 %v17016_v45, %v345_v7 }
 0x16d   :  { %v9248_v51 = vadd.s32 %v5869_v39, %v5865_v46  ;;  %v359_v12 = vor.u32 %v358_v6, %v357_v57  ;;  %v6333_v8 = vand.u32 2139095040, %v9257_v24  ;;  %v2009_v39 = vadd.s32 1, %v7864_v29 }
 0x16e   :  { %8524 = vset.pattern.permute.xlu1 %v8907_v5  ;;  %v362_v38 = vor.u32 %v361_v31, %v360_v11  ;;  %v5969_v7 = vmul.u32 %v9210_v60, %v5953_v1  ;;  %v9291_v2 = vadd.f32 %v9046_v26, %v1968_v28  ;;  %v339_v29 = vor.u32 8388608, %v338_v4 }
 0x16f   :  { %5747 = vperm.xlu1 %8524, %v8976_v13   ;;  %v3915_v13 = vadd.s32 1, %v7938_v36  ;;  %v356_v36 = vor.u32 %v355_v41, %v354_v62  ;;  %v372_v40 = vsel %vm366_vm13, %v359_v12, 920167782  ;;  %v5871_v59 = vadd.s32 536870912, %v9248_v51 }
 0x170   :  { %17450 = vst [vmem:[#allocation18_spill] sm:$0xff] %v9291_v2  ;;  %v376_v46 = vsel %vm366_vm13, %v362_v38, 1326507024  ;;  %v9299_v60 = vadd.s32 %v5973_v3, %v5969_v7  ;;  %v6334_v44 = vshrl.u32 %v6333_v8, 23  ;;  %vm2010_vm1 = vcmp.gt.s32.totalorder %v2009_v39, 0 }
 0x171   :  { %vm3916_vm14 = vcmp.gt.s32.totalorder %v3915_v13, 0  ;;  %v373_v1 = vsel %vm365_vm0, %v356_v36, %v372_v40  ;;  %v377_v53 = vsel %vm365_vm0, %v359_v12, %v376_v46  ;;  %v9318_v57 = vshrl.u32 %v5871_v59, 30 }
 0x172   :  { %v8030_v41 = vadd.s32 4294967169, %v6334_v44  ;;  %v3917_v58 = vsel %vm3916_vm14, %v3915_v13, 0  ;;  %v2106_v6 = vand.u32 2139095040, %v9291_v2  ;;  %v5975_v62 = vadd.s32 536870912, %v9299_v60 }
 0x173   :  { %5755 = vperm.xlu1 %8524, %v8982_v15   ;;  %v9326_v31 = vshll.u32 %v339_v29, 8  ;;  %v2011_v4 = vsel %vm2010_vm1, %v2009_v39, 0  ;;  %v9331_v13 = vand.u32 31, %v3917_v58  ;;  %v5873_v39 = vshll.u32 %v9318_v57, 30 }
 0x174   :  { %v6340_v3 = vadd.s32 1, %v8030_v41  ;;  %v2107_v38 = vshrl.u32 %v2106_v6, 23  ;;  %v9347_v29 = vshrl.u32 %v3917_v58, 5  ;;  %v9354_v44 = vand.u32 31, %v2011_v4 }
 0x175   :  { %17452 = vst [vmem:[#allocation20_spill] sm:$0xff] %v9331_v13  ;;  %v9373_v58 = vsub.s32 %v9248_v51, %v5873_v39  ;;  %vm5812_vm12 = vcmp.lt.s32.totalorder %v9050_v27, 0 }
 0x176   :  { %vm6341_vm3 = vcmp.gt.s32.totalorder %v6340_v3, 0  ;;  %17453 = vst [vmem:[#allocation21_spill] sm:$0xff] %v9347_v29  ;;  %17455 = vst [vmem:[#allocation23_spill] sm:$0xff] %v9354_v44  ;;  %v7868_v41 = vadd.s32 4294967169, %v2107_v38  ;;  %vm17101_vm9 = vcmp.lt.s32.totalorder %v9347_v29, 4 }
 0x177   :  { %5759 = vperm.xlu1 %8524, %v8984_v16   ;;  %v9285_v16 = vor.u32 %v352_v55, %v351_v42  ;;  %v1969_v55 = vmul.f32 %v9042_v23, %v1913_v49  ;;  %v6342_v46 = vsel %vm6341_vm3, %v6340_v3, 0  ;;  %v9345_v49 = vshrl.u32 %v5975_v62, 30 }
 0x178   :  { %v6344_v59 = vand.u32 31, %v6342_v46  ;;  %v17013_v62 = vand.u32 2147483647, %v9257_v24  ;;  %v9387_v38 = vshrl.u32 %v6342_v46, 5  ;;  %v17475_v29 = vmov 2131351028  }
 0x179   :  { %v371_v28 = vsel %vm363_vm15, %v9283_v34, %v9285_v16 }
 0x17a   :  { %v374_v42 = vsel %vm364_vm2, %v371_v28, %v373_v1  ;;  %v368_v28 = vsel %vm366_vm13, %v356_v36, 2102212464  ;;  %v9352_v1 = vshrl.u32 %v2011_v4, 5  ;;  %v6347_v39 = vshll.u32 %v17009_v61, %v6344_v59 }
 0x17b   :  { %8526 = vset.pattern.permute.xlu1 %v8908_v9  ;;  %v9334_v12 = vmul.u32.u64.low %v9326_v31, %v374_v42  ;;  %v9335_v8 = vmul.u32.u64.high %v9326_v31, %v374_v42, %v9334_v12  ;;  %v369_v42 = vsel %vm365_vm0, %v9285_v16, %v368_v28  ;;  %v6350_v28 = vshll.u32 %v17005_v48, %v6344_v59 }
 0x17c   :  { %154 = vperm.xlu1 %8526, %v8979_v14   ;;  %v375_v14 = vsel %vm363_vm15, %v9285_v16, %v356_v36  ;;  %17454 = vst [vmem:[#allocation22_spill] sm:$0xff] %v9352_v1  ;;  %v9369_v36 = vshll.u32 %v17016_v45, %v9331_v13  ;;  %vm6365_vm5 = vcmp.lt.s32.totalorder %v9387_v38, 4  ;;  %vm6362_vm6 = vcmp.lt.s32.totalorder %v9387_v38, 1 }
 0x17d   :  { %v378_v11 = vsel %vm364_vm2, %v375_v14, %v377_v53  ;;  %v347_v14 = vshrl.u32 %v17009_v61, %v9245_v10  ;;  %v9361_v53 = vsub.s32 32, %v9331_v13  ;;  %v5977_v10 = vshll.u32 %v9345_v49, 30 }
 0x17e   :  { %v9340_v7 = vmul.u32.u64.low %v9326_v31, %v378_v11  ;;  %v9341_v40 = vmul.u32.u64.high %v9326_v31, %v378_v11, %v9340_v7  ;;  %v6356_v11 = vshll.u32 %v17011_v54, %v6344_v59  ;;  %v389_v51 = vadd.s32 1, %v9335_v8 }
 0x17f   :  { %17456 = vst [vmem:[#allocation24_spill] sm:$0xff] %v9361_v53  ;;  %v367_v6 = vsel %vm363_vm15, %v347_v14, %v9283_v34  ;;  %v6359_v7 = vshll.u32 %v17016_v45, %v6344_v59  ;;  %v6353_v14 = vshll.u32 %v17007_v52, %v6344_v59  ;;  %v2113_v61 = vadd.s32 1, %v7868_v41 }
 0x180   :  { %159 = vperm.xlu1 %8526, %v8982_v15   ;;  %v9329_v15 = vadd.f32 %v9046_v26, %v1969_v55  ;;  %v9365_v55 = vshll.u32 %v17011_v54, %v9331_v13  ;;  %v370_v16 = vsel %vm364_vm2, %v367_v6, %v369_v42  ;;  %vm388_vm4 = vc.u32 %v9341_v40, %v9334_v12 }
 0x181   :  { %v9407_v6 = vsub.s32 32, %v9354_v44  ;;  %v3874_v42 = vmul.f32 %v9042_v23, %v9076_v47  ;;  %v390_v30 = vsel %vm388_vm4, %v389_v51, %v9335_v8  ;;  %v9421_v47 = vsub.s32 %v9299_v60, %v5977_v10 }
 0x182   :  { %17451 = vst [vmem:[#allocation19_spill] sm:$0xff] %v9329_v15  ;;  %vm6364_vm7 = vcmp.lt.s32.totalorder %v9387_v38, 3  ;;  %vm2114_vm8 = vcmp.gt.s32.totalorder %v2113_v61, 0  ;;  %vm6363_vm10 = vcmp.lt.s32.totalorder %v9387_v38, 2  ;;  %vm17108_vm13 = vcmp.lt.s32.totalorder %v9352_v1, 4 }
 0x183   :  { %17457 = vst [vmem:[#allocation25_spill] sm:$0xff] %v9407_v6  ;;  %v5980_v51 = vsub.s32 0, %v9421_v47  ;;  %v17474_v38 = vmov 2475754826  }
 0x184   :  { %8527 = vset.pattern.permute.xlu1 %v8907_v5  ;;  %v2210_v5 = vand.u32 2139095040, %v9329_v15 }
 0x185   :  { %5763 = vperm.xlu1 %8527, %v8987_v17   ;;  %v9358_v17 = vsub.s32 32, %v6344_v59  ;;  %v3932_v59 = vshrl.u32 %v17016_v45, %v9361_v53 }
 0x186   :  { %v2211_v4 = vshrl.u32 %v2210_v5, 23 }
 0x187   :  { %v6357_v3 = vshrl.u32 %v17016_v45, %v9358_v17  ;;  %v6360_v34 = vshrl.u32 %v17014_v50, %v9358_v17  ;;  %v6348_v46 = vshrl.u32 %v17005_v48, %v9358_v17  ;;  %v6351_v5 = vshrl.u32 %v17007_v52, %v9358_v17 }
 0x188   :  { %v6354_v37 = vshrl.u32 %v17011_v54, %v9358_v17  ;;  %v7872_v48 = vadd.s32 4294967169, %v2211_v4  ;;  %v5876_v52 = vsub.s32 0, %v9373_v58  ;;  %v386_v54 = vmul.u32 %v9326_v31, %v370_v16 }
 0x189   :  { %5771 = vperm.xlu1 %8527, %v8994_v19   ;;  %v6358_v22 = vor.u32 %v6357_v3, %v6356_v11  ;;  %v6361_v43 = vor.u32 %v6360_v34, %v6359_v7  ;;  %v9423_v11 = vor.u32 %v6348_v46, %v6347_v39  ;;  %v9425_v8 = vor.u32 %v6351_v5, %v6350_v28 }
 0x18a   :  { %v6355_v3 = vor.u32 %v6354_v37, %v6353_v14  ;;  %v9428_v4 = vadd.s32 %v390_v30, %v386_v54  ;;  %v2217_v10 = vadd.s32 1, %v7872_v48  ;;  %v2026_v54 = vshrl.u32 %v17016_v45, %v9407_v6 }
 0x18b   :  { %v6371_v31 = vsel %vm6365_vm5, %v6358_v22, 920167782  ;;  %v6375_v41 = vsel %vm6365_vm5, %v6361_v43, 1326507024  ;;  %v2029_v30 = vshrl.u32 %v17014_v50, %v9407_v6  ;;  %v6370_v43 = vsel %vm6362_vm6, %v9423_v11, %v9425_v8 }
 0x18c   :  { %v6372_v48 = vsel %vm6364_vm7, %v6355_v3, %v6371_v31  ;;  %v8011_v7 = vmin.u32 %v5876_v52, %v9373_v58  ;;  %v392_v34 = vadd.s32 536870912, %v9428_v4  ;;  %v6374_v16 = vsel %vm6362_vm6, %v9425_v8, %v6355_v3 }
 0x18d   :  { %5775 = vperm.xlu1 %8527, %v8997_v20   ;;  %v6337_v20 = vand.u32 8388607, %v17013_v62  ;;  %v6376_v39 = vsel %vm6364_vm7, %v6358_v22, %v6375_v41  ;;  %v17459_v28 = vmov 2102212464   ;;  %vm2218_vm11 = vcmp.gt.s32.totalorder %v2217_v10, 0 }
 0x18e   :  { %v2025_v46 = vshll.u32 %v17459_v28, %v9354_v44  ;;  %v2028_v37 = vshll.u32 %v17016_v45, %v9354_v44  ;;  %v6373_v22 = vsel %vm6363_vm10, %v6370_v43, %v6372_v48  ;;  %v8015_v31 = vmin.u32 %v5980_v51, %v9421_v47 }
 0x18f   :  { %v6338_v60 = vor.u32 8388608, %v6337_v20  ;;  %v9482_v41 = vshrl.u32 %v392_v34, 30  ;;  %v6367_v34 = vsel %vm6365_vm5, %v6355_v3, 2102212464 }
 0x190   :  { %v9476_v20 = vor.u32 %v2026_v54, %v2025_v46 }
 0x191   :  { %8529 = vset.pattern.permute.xlu1 %v8908_v9  ;;  %v9435_v9 = vadd.f32 %v9046_v26, %v3874_v42  ;;  %v9465_v14 = vshll.u32 %v6338_v60, 8  ;;  %v3819_v42 = vpop.permute.xlu1 %3818  ;;  %v2115_v60 = vsel %vm2114_vm8, %v2113_v61, 0  ;;  %v17463_v61 = vmov 683565275  }
 0x192   :  { %174 = vperm.xlu1 %8529, %v8991_v18   ;;  %v3935_v18 = vshrl.u32 %v17014_v50, %v9361_v53  ;;  %17461 = vst [vmem:[#allocation28_spill] sm:$0xff] %v9476_v20  ;;  %v3875_v54 = vmul.f32 %v9042_v23, %v3819_v42  ;;  %v9490_v43 = vand.u32 31, %v2115_v60  ;;  %v6346_v51 = vshrl.u32 %v17463_v61, %v9358_v17 }
 0x193   :  { %17458 = vst [vmem:[#allocation26_spill] sm:$0xff] %v9435_v9  ;;  %v4012_v5 = vand.u32 2139095040, %v9435_v9  ;;  %v9485_v50 = vmul.u32.u64.low %v9465_v14, %v6373_v22  ;;  %v9486_v45 = vmul.u32.u64.high %v9465_v14, %v6373_v22, %v9485_v50  ;;  %v394_v17 = vshll.u32 %v9482_v41, 30 }
 0x194   :  { %v3936_v52 = vor.u32 %v3935_v18, %v9369_v36  ;;  %v5878_v36 = vclz %v8011_v7  ;;  %v2219_v18 = vsel %vm2218_vm11, %v2217_v10, 0  ;;  %17462 = vst [vmem:[#allocation29_spill] sm:$0xff] %v9490_v43  ;;  %v5896_v7 = vsub.s32 4, %v9318_v57 }
 0x195   :  { %v4013_v62 = vshrl.u32 %v4012_v5, 23  ;;  %v5982_v10 = vclz %v8015_v31  ;;  %v9522_v22 = vadd.f32 %v9046_v26, %v3875_v54  ;;  %v9525_v42 = vsub.s32 32, %v9490_v43 }
 0x196   :  { %179 = vperm.xlu1 %8529, %v8994_v19   ;;  %v9468_v19 = vor.u32 %v3932_v59, %v9365_v55  ;;  %v6377_v55 = vsel %vm6363_vm10, %v6374_v16, %v6376_v39  ;;  %v2030_v59 = vor.u32 %v2029_v30, %v2028_v37  ;;  %v2221_v16 = vand.u32 31, %v2219_v18 }
 0x197   :  { %v9495_v48 = vmul.u32.u64.low %v9465_v14, %v6377_v55  ;;  %v9496_v30 = vmul.u32.u64.high %v9465_v14, %v6377_v55, %v9495_v48  ;;  %v8012_v46 = vadd.s32 4294967294, %v5878_v36  ;;  %v9510_v5 = vsel %vm17101_vm9, %v3936_v52, 1326507024  ;;  %17468 = vst [vmem:[#allocation34_spill] sm:$0xff] %v9522_v22  ;;  %17469 = vst [vmem:[#allocation35_spill] sm:$0xff] %v9525_v42 }
 0x198   :  { %17460 = vst [vmem:[#allocation27_spill] sm:$0xff] %v9468_v19  ;;  %v9504_v39 = vsel %vm17101_vm9, %v9468_v19, 920167782  ;;  %17465 = vst [vmem:[#allocation31_spill] sm:$0xff] %v9510_v5  ;;  %v9515_v37 = vsel %vm17108_vm13, %v9476_v20, 920167782  ;;  %v6366_v52 = vsel %vm6362_vm6, %v6346_v51, %v9423_v11  ;;  %v6368_v55 = vsel %vm6364_vm7, %v9425_v8, %v6367_v34 }
 0x199   :  { %17464 = vst [vmem:[#allocation30_spill] sm:$0xff] %v9504_v39  ;;  %17466 = vst [vmem:[#allocation32_spill] sm:$0xff] %v9515_v37  ;;  %v9519_v3 = vsel %vm17108_vm13, %v2030_v59, 1326507024  ;;  %v7942_v31 = vadd.s32 4294967169, %v4013_v62  ;;  %v9535_v36 = vadd.s32 %v9177_v25, %v9171_v21  ;;  %v9540_v59 = vsel %vm5812_vm12, %v5896_v7, %v9318_v57  ;;  %v5724_v7 = vpop.permute.xlu1 %5723 }
 0x19a   :  { %17467 = vst [vmem:[#allocation33_spill] sm:$0xff] %v9519_v3  ;;  %17470 = vst [vmem:[#allocation36_spill] sm:$0xff] %v9540_v59  ;;  %v8016_v54 = vadd.s32 4294967294, %v5982_v10  ;;  %v9542_v48 = vsub.s32 32, %v2221_v16  ;;  %vm8013_vm14 = vcmp.lt.s32.totalorder %v8012_v46, 0  ;;  %v9546_v62 = vadd.s32 %v9222_v0, %v9230_v33 }
 0x19b   :  { %v9548_v11 = vshrl.u32 %v2115_v60, 5  ;;  %v9551_v8 = vsub.s32 %v9428_v4, %v394_v17  ;;  %v2129_v21 = vshll.u32 %v17459_v28, %v9490_v43  ;;  %v6369_v25 = vsel %vm6363_vm10, %v6366_v52, %v6368_v55 }
 0x19c   :  { %v6388_v57 = vadd.s32 1, %v9486_v45  ;;  %v4116_v51 = vand.u32 2139095040, %v9522_v22  ;;  %v17472_v10 = vmov 920167782   ;;  %v4019_v4 = vadd.s32 1, %v7942_v31 }
 0x19d   :  { %17471 = vst [vmem:[#allocation37_spill] sm:$0xff] %v9548_v11  ;;  %v2130_v0 = vshrl.u32 %v17472_v10, %v9525_v42  ;;  %v9563_v33 = vshll.u32 %v17472_v10, %v9490_v43  ;;  %vm6387_vm15 = vc.u32 %v9496_v30, %v9485_v50  ;;  %v9567_v60 = vsel %vm8013_vm14, 0, %v8012_v46 }
 0x19e   :  { %vm8017_vm0 = vcmp.lt.s32.totalorder %v8016_v54, 0  ;;  %v2234_v34 = vshrl.u32 %v17472_v10, %v9542_v48  ;;  %v397_v17 = vsub.s32 0, %v9551_v8  ;;  %v6385_v52 = vmul.u32 %v9465_v14, %v6369_v25 }
 0x19f   :  { %v17473_v55 = vmov 1326507024   ;;  %v5780_v31 = vmul.f32 %v9042_v23, %v5724_v7  ;;  %v6389_v9 = vsel %vm6387_vm15, %v6388_v57, %v9486_v45  ;;  %v9578_v19 = vshrl.u32 %v2219_v18, 5 }
 0x1a0   :  { %v2237_v59 = vshrl.u32 %v17473_v55, %v9542_v48  ;;  %v2233_v46 = vshll.u32 %v17459_v28, %v2221_v16  ;;  %v4117_v5 = vshrl.u32 %v4116_v51, 23  ;;  %v2225_v39 = vshrl.u32 %v17474_v38, %v9542_v48 }
 0x1a1   :  { %v2228_v53 = vshrl.u32 %v17475_v29, %v9542_v48  ;;  %v2231_v14 = vshrl.u32 %v17459_v28, %v9542_v48  ;;  %v2236_v25 = vshll.u32 %v17472_v10, %v2221_v16  ;;  %v5886_v7 = vsub.s32 4294967266, %v9567_v60 }
 0x1a2   :  { %v9590_v45 = vsel %vm8017_vm0, 0, %v8016_v54  ;;  %v17476_v18 = vand.u32 2147483647, %v9329_v15  ;;  %v2235_v51 = vor.u32 %v2234_v34, %v2233_v46  ;;  %v2224_v13 = vshll.u32 %v17463_v61, %v2221_v16 }
 0x1a3   :  { %v2227_v63 = vshll.u32 %v17474_v38, %v2221_v16  ;;  %v2230_v43 = vshll.u32 %v17475_v29, %v2221_v16  ;;  %v2238_v2 = vor.u32 %v2237_v59, %v2236_v25  ;;  %v7805_v20 = vmin.u32 %v397_v17, %v9551_v8 }
 0x1a4   :  { %v2214_v57 = vand.u32 8388607, %v17476_v18  ;;  %v9598_v3 = vadd.s32 %v6389_v9, %v6385_v52  ;;  %v7946_v37 = vadd.s32 4294967169, %v4117_v5  ;;  %v9601_v1 = vadd.f32 %v9046_v26, %v5780_v31 }
 0x1a5   :  { %vm17102_vm1 = vcmp.lt.s32.totalorder %v9548_v11, 4  ;;  %v9604_v54 = vor.u32 %v2225_v39, %v2224_v13  ;;  %v9606_v34 = vor.u32 %v2228_v53, %v2227_v63  ;;  %v2232_v46 = vor.u32 %v2231_v14, %v2230_v43 }
 0x1a6   :  { %17477 = vst [vmem:[#allocation38_spill] sm:$0xff] %v9601_v1  ;;  %vm2242_vm2 = vcmp.lt.s32.totalorder %v9578_v19, 4  ;;  %v9609_v18 = vor.u32 %v2130_v0, %v2129_v21  ;;  %v2133_v16 = vshrl.u32 %v17473_v55, %v9525_v42  ;;  %vm4020_vm3 = vcmp.gt.s32.totalorder %v4019_v4, 0 }
 0x1a7   :  { %v2248_v9 = vsel %vm2242_vm2, %v2235_v51, 920167782  ;;  %v5887_v26 = vadd.s32 127, %v5886_v7  ;;  %v5990_v5 = vsub.s32 4294967266, %v9590_v45  ;;  %v2215_v59 = vor.u32 8388608, %v2214_v57 }
 0x1a8   :  { %17478 = vst [vmem:[#allocation39_spill] sm:$0xff] %v9609_v18  ;;  %v2252_v63 = vsel %vm2242_vm2, %v2238_v2, 1326507024  ;;  %v6391_v13 = vadd.s32 536870912, %v9598_v3  ;;  %vm2239_vm4 = vcmp.lt.s32.totalorder %v9578_v19, 1  ;;  %vm2241_vm5 = vcmp.lt.s32.totalorder %v9578_v19, 3 }
 0x1a9   :  { %v4123_v53 = vadd.s32 1, %v7946_v37  ;;  %v399_v43 = vclz %v7805_v20  ;;  %v2247_v39 = vsel %vm2239_vm4, %v9604_v54, %v9606_v34  ;;  %v2249_v21 = vsel %vm2241_vm5, %v2232_v46, %v2248_v9 }
 0x1aa   :  { %v6021_v0 = vand.u32 2139095040, %v9601_v1  ;;  %v2134_v2 = vor.u32 %v2133_v16, %v9563_v33  ;;  %v4021_v17 = vsel %vm4020_vm3, %v4019_v4, 0  ;;  %v2251_v52 = vsel %vm2239_vm4, %v9606_v34, %v2232_v46 }
 0x1ab   :  { %v2253_v20 = vsel %vm2241_vm5, %v2235_v51, %v2252_v63  ;;  %v5882_v37 = vsub.s32 32, %v9567_v60  ;;  %v5888_v31 = vshll.u32 %v5887_v26, 23  ;;  %v5986_v14 = vsub.s32 32, %v9590_v45 }
 0x1ac   :  { %vm2240_vm6 = vcmp.lt.s32.totalorder %v9578_v19, 2  ;;  %v5991_v25 = vadd.s32 127, %v5990_v5  ;;  %v9637_v7 = vshrl.u32 %v6391_v13, 30  ;;  %vm4124_vm7 = vcmp.gt.s32.totalorder %v4123_v53, 0 }
 0x1ad   :  { %v2250_v33 = vsel %vm2240_vm6, %v2247_v39, %v2249_v21  ;;  %v7806_v4 = vadd.s32 4294967294, %v399_v43  ;;  %v2254_v57 = vsel %vm2240_vm6, %v2251_v52, %v2253_v20  ;;  %v9643_v16 = vshll.u32 %v2215_v59, 8 }
 0x1ae   :  { %v6022_v51 = vshrl.u32 %v6021_v0, 23  ;;  %v5883_v9 = vshll.u32 %v9373_v58, %v9567_v60  ;;  %vm5916_vm8 = vcmp.lt.s32.totalorder %v9057_v32, 0  ;;  %v9651_v26 = vsel %vm17102_vm1, %v9609_v18, 920167782 }
 0x1af   :  { %17479 = vst [vmem:[#allocation40_spill] sm:$0xff] %v9651_v26  ;;  %v9653_v5 = vshrl.u32 %v4021_v17, 5  ;;  %v9655_v63 = vand.u32 31, %v4021_v17  ;;  %v5884_v13 = vshrl.u32 %v9535_v36, %v5882_v37  ;;  %v4125_v39 = vsel %vm4124_vm7, %v4123_v53, 0 }
 0x1b0   :  { %v9659_v59 = vmul.u32.u64.low %v9643_v16, %v2250_v33  ;;  %v9660_v43 = vmul.u32.u64.high %v9643_v16, %v2250_v33, %v9659_v59  ;;  %v5889_v58 = vor.u32 4788187, %v5888_v31  ;;  %v6393_v60 = vshll.u32 %v9637_v7, 30 }
 0x1b1   :  { %17480 = vst [vmem:[#allocation41_spill] sm:$0xff] %v9653_v5  ;;  %17481 = vst [vmem:[#allocation42_spill] sm:$0xff] %v9655_v63  ;;  %v9665_v21 = vmul.u32.u64.low %v9643_v16, %v2254_v57  ;;  %v9666_v0 = vmul.u32.u64.high %v9643_v16, %v2254_v57, %v9665_v21  ;;  %v5988_v52 = vshrl.u32 %v9546_v62, %v5986_v14  ;;  %v5992_v20 = vshll.u32 %v5991_v25, 23 }
 0x1b2   :  { %vm7807_vm10 = vcmp.lt.s32.totalorder %v7806_v4, 0  ;;  %v8018_v17 = vadd.s32 4294967169, %v6022_v51  ;;  %v6000_v36 = vsub.s32 4, %v9345_v49  ;;  %v9672_v37 = vsel %vm17102_vm1, %v2134_v2, 1326507024 }
 0x1b3   :  { %17482 = vst [vmem:[#allocation43_spill] sm:$0xff] %v9672_v37  ;;  %v9675_v53 = vsub.s32 32, %v9655_v63  ;;  %v4127_v31 = vand.u32 31, %v4125_v39  ;;  %v5885_v33 = vor.u32 %v5884_v13, %v5883_v9  ;;  %v5987_v57 = vshll.u32 %v9421_v47, %v9590_v45 }
 0x1b4   :  { %v9681_v62 = vshll.u32 %v17459_v28, %v9655_v63  ;;  %v2244_v14 = vsel %vm2242_vm2, %v2232_v46, 2102212464  ;;  %v9687_v25 = vshll.u32 %v17472_v10, %v9655_v63  ;;  %v9689_v2 = vsel %vm7807_vm10, 0, %v7806_v4 }
 0x1b5   :  { %17483 = vst [vmem:[#allocation44_spill] sm:$0xff] %v9675_v53  ;;  %v9692_v51 = vsub.s32 %v9598_v3, %v6393_v60  ;;  %v2223_v9 = vshrl.u32 %v17463_v61, %v9542_v48  ;;  %v5890_v47 = vand.u32 2147483647, %v5889_v58  ;;  %v5989_v45 = vor.u32 %v5988_v52, %v5987_v57  ;;  %v120_v52 = vpop.permute.xlu1 %119 }
 0x1b6   :  { %v5993_v13 = vor.u32 4788187, %v5992_v20  ;;  %v6028_v21 = vadd.s32 1, %v8018_v17  ;;  %v2245_v63 = vsel %vm2241_vm5, %v9606_v34, %v2244_v14  ;;  %v17038_v4 = vand.u32 2147483647, %v9522_v22 }
 0x1b7   :  { %v2243_v46 = vsel %vm2239_vm4, %v2223_v9, %v9604_v54  ;;  %v9703_v26 = vsub.s32 32, %v4127_v31  ;;  %v5892_v3 = vcvt.s32.f32 %v5885_v33  ;;  %v9708_v48 = vsel %vm5916_vm8, %v6000_v36, %v9345_v49 }
 0x1b8   :  { %17484 = vst [vmem:[#allocation45_spill] sm:$0xff] %v9708_v48  ;;  %v407_v58 = vsub.s32 4294967266, %v9689_v2  ;;  %v2265_v60 = vadd.s32 1, %v9660_v43  ;;  %v9714_v54 = vshrl.u32 %v17472_v10, %v9675_v53  ;;  %v6396_v34 = vsub.s32 0, %v9692_v51 }
 0x1b9   :  { %vm2264_vm11 = vc.u32 %v9666_v0, %v9659_v59  ;;  %vm6029_vm14 = vcmp.gt.s32.totalorder %v6028_v21, 0  ;;  %v9719_v20 = vmul.f32 %v5892_v3, %v5890_v47  ;;  %v5994_v17 = vand.u32 2147483647, %v5993_v13 }
 0x1ba   :  { %v5996_v49 = vcvt.s32.f32 %v5989_v45  ;;  %v2246_v36 = vsel %vm2240_vm6, %v2243_v46, %v2245_v63  ;;  %v387_v33 = vadd.s32 %v9334_v12, %v9341_v40  ;;  %v4120_v57 = vand.u32 8388607, %v17038_v4 }
 0x1bb   :  { %v4140_v14 = vshrl.u32 %v17472_v10, %v9703_v26  ;;  %v193_v9 = vmul.f32 %v9042_v23, %v120_v52  ;;  %v403_v48 = vsub.s32 32, %v9689_v2  ;;  %v408_v47 = vadd.s32 127, %v407_v58 }
 0x1bc   :  { %v2266_v13 = vsel %vm2264_vm11, %v2265_v60, %v9660_v43  ;;  %v6030_v45 = vsel %vm6029_vm14, %v6028_v21, 0  ;;  %v8031_v19 = vmin.u32 %v6396_v34, %v9692_v51  ;;  %v2262_v63 = vmul.u32 %v9643_v16, %v2246_v36 }
 0x1bd   :  { %v4139_v12 = vshll.u32 %v17459_v28, %v4127_v31  ;;  %v4143_v40 = vshrl.u32 %v17473_v55, %v9703_v26  ;;  %v9737_v46 = vshrl.u32 %v4125_v39, 5  ;;  %v4131_v23 = vshrl.u32 %v17474_v38, %v9703_v26 }
 0x1be   :  { %v4134_v3 = vshrl.u32 %v17475_v29, %v9703_v26  ;;  %v4137_v43 = vshrl.u32 %v17459_v28, %v9703_v26  ;;  %v9745_v21 = vadd.s32 %v2266_v13, %v2262_v63  ;;  %v4142_v16 = vshll.u32 %v17472_v10, %v4127_v31 }
 0x1bf   :  { %v4141_v58 = vor.u32 %v4140_v14, %v4139_v12  ;;  %v6032_v60 = vand.u32 31, %v6030_v45  ;;  %v405_v52 = vshrl.u32 %v387_v33, %v403_v48  ;;  %v4130_v34 = vshll.u32 %v17463_v61, %v4127_v31 }
 0x1c0   :  { %v4133_v39 = vshll.u32 %v17474_v38, %v4127_v31  ;;  %v4136_v36 = vshll.u32 %v17475_v29, %v4127_v31  ;;  %v404_v4 = vshll.u32 %v9551_v8, %v9689_v2  ;;  %v409_v18 = vshll.u32 %v408_v47, 23 }
 0x1c1   :  { %v4121_v37 = vor.u32 8388608, %v4120_v57  ;;  %v4144_v11 = vor.u32 %v4143_v40, %v4142_v16  ;;  %v9753_v42 = vor.u32 %v4131_v23, %v4130_v34  ;;  %vm4148_vm15 = vcmp.lt.s32.totalorder %v9737_v46, 4  ;;  %v9791_v23 = vld [vmem:[#allocation4 + $0x1] ss:$0 sm:$0xff] }
 0x1c2   :  { %v9755_v13 = vor.u32 %v4134_v3, %v4133_v39  ;;  %v4138_v14 = vor.u32 %v4137_v43, %v4136_v36  ;;  %v6398_v48 = vclz %v8031_v19  ;;  %v2268_v33 = vadd.s32 536870912, %v9745_v21 }
 0x1c3   :  { %v4154_v63 = vsel %vm4148_vm15, %v4141_v58, 920167782  ;;  %v9761_v31 = vsub.s32 32, %v6032_v60  ;;  %v9764_v2 = vmul.f32 %v5996_v49, %v5994_v17  ;;  %v9766_v57 = vor.u32 %v405_v52, %v404_v4 }
 0x1c4   :  { %v9770_v47 = vadd.s32 %v9485_v50, %v9496_v30  ;;  %vm4145_vm0 = vcmp.lt.s32.totalorder %v9737_v46, 1  ;;  %vm4147_vm2 = vcmp.lt.s32.totalorder %v9737_v46, 3  ;;  %v4158_v19 = vsel %vm4148_vm15, %v4144_v11, 1326507024 }
 0x1c5   :  { %v17044_v12 = vand.u32 2147483647, %v9601_v1  ;;  %v9777_v40 = vor.u32 4788187, %v409_v18  ;;  %v4153_v4 = vsel %vm4145_vm0, %v9753_v42, %v9755_v13  ;;  %v4155_v50 = vsel %vm4147_vm2, %v4138_v14, %v4154_v63 }
 0x1c6   :  { %v9785_v30 = vshll.u32 %v4121_v37, 8  ;;  %v8032_v17 = vadd.s32 4294967294, %v6398_v48  ;;  %v9787_v49 = vshrl.u32 %v2268_v33, 30  ;;  %v6045_v11 = vshrl.u32 %v17472_v10, %v9761_v31 }
 0x1c7   :  { %v9794_v18 = vadd.f32 %v9791_v23, %v193_v9  ;;  %vm4146_vm3 = vcmp.lt.s32.totalorder %v9737_v46, 2  ;;  %v4157_v3 = vsel %vm4145_vm0, %v9755_v13, %v4138_v14  ;;  %v4159_v37 = vsel %vm4147_vm2, %v4141_v58, %v4158_v19 }
 0x1c8   :  { %17485 = vst [vmem:[#allocation46_spill] sm:$0xff] %v9787_v49  ;;  %v6048_v43 = vshrl.u32 %v17473_v55, %v9761_v31  ;;  %v4156_v16 = vsel %vm4146_vm3, %v4153_v4, %v4155_v50  ;;  %v6025_v52 = vand.u32 8388607, %v17044_v12  ;;  %v9808_v9 = vshrl.u32 %v6030_v45, 5 }
 0x1c9   :  { %17486 = vst [vmem:[#allocation47_spill] sm:$0xff] %v9794_v18  ;;  %v6044_v34 = vshll.u32 %v17459_v28, %v6032_v60  ;;  %v6036_v39 = vshrl.u32 %v17474_v38, %v9761_v31  ;;  %v6039_v36 = vshrl.u32 %v17475_v29, %v9761_v31  ;;  %v6042_v58 = vshrl.u32 %v17459_v28, %v9761_v31 }
 0x1ca   :  { %v6047_v48 = vshll.u32 %v17472_v10, %v6032_v60  ;;  %v2270_v33 = vshll.u32 %v9787_v49, 30  ;;  %v4160_v63 = vsel %vm4146_vm3, %v4157_v3, %v4159_v37  ;;  %v438_v19 = vand.u32 2139095040, %v9794_v18 }
 0x1cb   :  { %v6046_v45 = vor.u32 %v6045_v11, %v6044_v34  ;;  %v6035_v4 = vshll.u32 %v17463_v61, %v6032_v60  ;;  %v6038_v50 = vshll.u32 %v17474_v38, %v6032_v60  ;;  %v6041_v12 = vshll.u32 %v17475_v29, %v6032_v60 }
 0x1cc   :  { %v6049_v8 = vor.u32 %v6048_v43, %v6047_v48  ;;  %v4150_v6 = vsel %vm4148_vm15, %v4138_v14, 2102212464  ;;  %v9828_v44 = vmul.u32.u64.low %v9785_v30, %v4156_v16  ;;  %v9829_v35 = vmul.u32.u64.high %v9785_v30, %v4156_v16, %v9828_v44 }
 0x1cd   :  { %v439_v1 = vshrl.u32 %v438_v19, 23  ;;  %v9832_v3 = vor.u32 %v6036_v39, %v6035_v4  ;;  %v9834_v11 = vor.u32 %v6039_v36, %v6038_v50  ;;  %v6043_v37 = vor.u32 %v6042_v58, %v6041_v12  ;;  %v1917_v36 = vpop.permute.xlu1 %1916 }
 0x1ce   :  { %17487 = vst [vmem:[#allocation48_spill] sm:$0xff] %v9828_v44  ;;  %vm6053_vm4 = vcmp.lt.s32.totalorder %v9808_v9, 4  ;;  %v9838_v34 = vmul.u32.u64.low %v9785_v30, %v4160_v63  ;;  %v9839_v60 = vmul.u32.u64.high %v9785_v30, %v4160_v63, %v9838_v34  ;;  %vm8033_vm5 = vcmp.lt.s32.totalorder %v8032_v17, 0 }
 0x1cf   :  { %v6059_v14 = vsel %vm6053_vm4, %v6046_v45, 920167782  ;;  %v7808_v43 = vadd.s32 4294967169, %v439_v1  ;;  %v9844_v16 = vsub.s32 %v9745_v21, %v2270_v33  ;;  %v4129_v39 = vshrl.u32 %v17463_v61, %v9703_v26 }
 0x1d0   :  { %17488 = vst [vmem:[#allocation49_spill] sm:$0xff] %v9839_v60  ;;  %v6063_v12 = vsel %vm6053_vm4, %v6049_v8, 1326507024  ;;  %v6026_v58 = vor.u32 8388608, %v6025_v52  ;;  %vm6050_vm6 = vcmp.lt.s32.totalorder %v9808_v9, 1  ;;  %vm6052_vm7 = vcmp.lt.s32.totalorder %v9808_v9, 3 }
 0x1d1   :  { %v445_v48 = vadd.s32 1, %v7808_v43  ;;  %v4149_v1 = vsel %vm4145_vm0, %v4129_v39, %v9753_v42  ;;  %v4151_v21 = vsel %vm4147_vm2, %v9755_v13, %v4150_v6  ;;  %v6058_v26 = vsel %vm6050_vm6, %v9832_v3, %v9834_v11  ;;  %v9869_v42 = vld [vmem:[#allocation4] ss:$0 sm:$0xff] }
 0x1d2   :  { %v6060_v8 = vsel %vm6052_vm7, %v6043_v37, %v6059_v14  ;;  %v6062_v52 = vsel %vm6050_vm6, %v9834_v11, %v6043_v37  ;;  %v6064_v33 = vsel %vm6052_vm7, %v6046_v45, %v6063_v12  ;;  %v1970_v6 = vmul.f32 %v9869_v42, %v1917_v36 }
 0x1d3   :  { %vm446_vm10 = vcmp.gt.s32.totalorder %v445_v48, 0  ;;  %v9873_v13 = vsel %vm8033_vm5, 0, %v8032_v17  ;;  %v2273_v63 = vsub.s32 0, %v9844_v16  ;;  %vm6051_vm11 = vcmp.lt.s32.totalorder %v9808_v9, 2  ;;  %v3823_v9 = vpop.permute.xlu1 %3822 }
 0x1d4   :  { %v447_v19 = vsel %vm446_vm10, %v445_v48, 0  ;;  %v4152_v50 = vsel %vm4146_vm3, %v4149_v1, %v4151_v21  ;;  %v6061_v45 = vsel %vm6051_vm11, %v6058_v26, %v6060_v8  ;;  %v4171_v14 = vadd.s32 1, %v9829_v35 }
 0x1d5   :  { %v449_v34 = vand.u32 31, %v447_v19  ;;  %v6065_v17 = vsel %vm6051_vm11, %v6062_v52, %v6064_v33  ;;  %v9885_v43 = vshll.u32 %v6026_v58, 8  ;;  %v17053_v39 = vand.u32 2147483647, %v9794_v18 }
 0x1d6   :  { %v6406_v12 = vsub.s32 4294967266, %v9873_v13  ;;  %vm4170_vm14 = vc.u32 %v9839_v60, %v9828_v44  ;;  %v9894_v36 = vadd.f32 %v9791_v23, %v1970_v6  ;;  %v7873_v48 = vmin.u32 %v2273_v63, %v9844_v16 }
 0x1d7   :  { %v9891_v46 = vsub.s32 32, %v449_v34  ;;  %v4168_v1 = vmul.u32 %v9785_v30, %v4152_v50  ;;  %v9899_v21 = vmul.u32.u64.low %v9885_v43, %v6061_v45  ;;  %v9900_v58 = vmul.u32.u64.high %v9885_v43, %v6061_v45, %v9899_v21 }
 0x1d8   :  { %17489 = vst [vmem:[#allocation50_spill] sm:$0xff] %v9894_v36  ;;  %v9904_v26 = vmul.u32.u64.low %v9885_v43, %v6065_v17  ;;  %v9905_v8 = vmul.u32.u64.high %v9885_v43, %v6065_v17, %v9904_v26  ;;  %v4172_v6 = vsel %vm4170_vm14, %v4171_v14, %v9829_v35  ;;  %v442_v30 = vand.u32 8388607, %v17053_v39 }
 0x1d9   :  { %v453_v52 = vshrl.u32 %v17474_v38, %v9891_v46  ;;  %v456_v33 = vshrl.u32 %v17475_v29, %v9891_v46  ;;  %v452_v63 = vshll.u32 %v17463_v61, %v449_v34  ;;  %v459_v50 = vshrl.u32 %v17459_v28, %v9891_v46 }
 0x1da   :  { %v455_v45 = vshll.u32 %v17474_v38, %v449_v34  ;;  %v461_v17 = vshll.u32 %v17459_v28, %v449_v34  ;;  %v462_v26 = vshrl.u32 %v17472_v10, %v9891_v46  ;;  %v2314_v4 = vand.u32 2139095040, %v9894_v36 }
 0x1db   :  { %v6055_v35 = vsel %vm6053_vm4, %v6043_v37, 2102212464  ;;  %v9924_v14 = vshrl.u32 %v447_v19, 5  ;;  %v9926_v39 = vor.u32 %v453_v52, %v452_v63  ;;  %v458_v18 = vshll.u32 %v17475_v29, %v449_v34 }
 0x1dc   :  { %v9929_v44 = vor.u32 %v456_v33, %v455_v45  ;;  %v463_v60 = vor.u32 %v462_v26, %v461_v17  ;;  %v464_v49 = vshll.u32 %v17472_v10, %v449_v34  ;;  %v465_v22 = vshrl.u32 %v17473_v55, %v9891_v46 }
 0x1dd   :  { %v6407_v15 = vadd.s32 127, %v6406_v12  ;;  %v2275_v38 = vclz %v7873_v48  ;;  %v6034_v28 = vshrl.u32 %v17463_v61, %v9761_v31  ;;  %v460_v37 = vor.u32 %v459_v50, %v458_v18 }
 0x1de   :  { %v9936_v19 = vadd.s32 %v4172_v6, %v4168_v1  ;;  %v443_v52 = vor.u32 8388608, %v442_v30  ;;  %v466_v63 = vor.u32 %v465_v22, %v464_v49  ;;  %v2315_v36 = vshrl.u32 %v2314_v4, 23 }
 0x1df   :  { %v6054_v33 = vsel %vm6050_vm6, %v6034_v28, %v9832_v3  ;;  %v6056_v34 = vsel %vm6052_vm7, %v9834_v11, %v6055_v35  ;;  %vm467_vm15 = vcmp.lt.s32.totalorder %v9924_v14, 1  ;;  %vm470_vm0 = vcmp.lt.s32.totalorder %v9924_v14, 4 }
 0x1e0   :  { %v6076_v31 = vadd.s32 1, %v9900_v58  ;;  %vm469_vm2 = vcmp.lt.s32.totalorder %v9924_v14, 3  ;;  %v475_v22 = vsel %vm467_vm15, %v9926_v39, %v9929_v44  ;;  %v476_v28 = vsel %vm470_vm0, %v463_v60, 920167782 }
 0x1e1   :  { %vm6075_vm3 = vc.u32 %v9905_v8, %v9899_v21  ;;  %vm468_vm4 = vcmp.lt.s32.totalorder %v9924_v14, 2  ;;  %v477_v49 = vsel %vm469_vm2, %v460_v37, %v476_v28  ;;  %v479_v18 = vsel %vm467_vm15, %v9929_v44, %v460_v37 }
 0x1e2   :  { %v478_v3 = vsel %vm468_vm4, %v475_v22, %v477_v49  ;;  %v480_v11 = vsel %vm470_vm0, %v466_v63, 1326507024  ;;  %v9966_v4 = vshll.u32 %v443_v52, 8  ;;  %v7876_v12 = vadd.s32 4294967169, %v2315_v36 }
 0x1e3   :  { %v7874_v48 = vadd.s32 4294967294, %v2275_v38  ;;  %v4174_v1 = vadd.s32 536870912, %v9936_v19  ;;  %v6057_v6 = vsel %vm6051_vm11, %v6054_v33, %v6056_v34  ;;  %v481_v30 = vsel %vm469_vm2, %v463_v60, %v480_v11 }
 0x1e4   :  { %v17490_v50 = vand.u32 2147483647, %v9050_v27  ;;  %v17491_v45 = vmov 0  ;;  %v6403_v17 = vshll.u32 %v9692_v51, %v9873_v13  ;;  %v482_v38 = vsel %vm468_vm4, %v479_v18, %v481_v30 }
 0x1e5   :  { %v9984_v36 = vmul.u32.u64.low %v9966_v4, %v478_v3  ;;  %v9985_v26 = vmul.u32.u64.high %v9966_v4, %v478_v3, %v9984_v36  ;;  %v17494_v60 = vsub.s32 32, %v9873_v13  ;;  %v6077_v52 = vsel %vm6075_vm3, %v6076_v31, %v9900_v58 }
 0x1e6   :  { %vm9975_vm5 = vcmp.le.f32.partialorder %v17490_v50, 0.7853982  ;;  %v9996_v51 = vmul.u32.u64.low %v9966_v4, %v482_v38  ;;  %v9997_v63 = vmul.u32.u64.high %v9966_v4, %v482_v38, %v9996_v51  ;;  %v10001_v33 = vshrl.u32 %v17473_v55, %v9675_v53 }
 0x1e7   :  { %v17492_v45 = vsel %vm9975_vm5, 4294967295, %v17491_v45  ;;  %v6404_v35 = vshrl.u32 %v9770_v47, %v17494_v60  ;;  %v6408_v34 = vshll.u32 %v6407_v15, 23  ;;  %v6073_v22 = vmul.u32 %v9885_v43, %v6057_v6 }
 0x1e8   :  { %17493 = vst [vmem:[#allocation51_spill] sm:$0xff] %v17492_v45  ;;  %v2321_v28 = vadd.s32 1, %v7876_v12  ;;  %v17495_v13 = vand.u32 2147483647, %v9057_v32  ;;  %v17496_v47 = vmov 0  ;;  %vm7875_vm7 = vcmp.lt.s32.totalorder %v7874_v48, 0 }
 0x1e9   :  { %v10010_v58 = vshrl.u32 %v4174_v1, 30  ;;  %v472_v31 = vsel %vm470_vm0, %v460_v37, 2102212464  ;;  %v3876_v49 = vmul.f32 %v9869_v42, %v3823_v9  ;;  %v17499_v15 = vxor.u32 2147483648, %v9719_v20 }
 0x1ea   :  { %vm10006_vm6 = vcmp.le.f32.partialorder %v17495_v13, 0.7853982  ;;  %v10020_v18 = vadd.s32 %v6077_v52, %v6073_v22  ;;  %v451_v3 = vshrl.u32 %v17463_v61, %v9891_v46  ;;  %vm2322_vm10 = vcmp.gt.s32.totalorder %v2321_v28, 0 }
 0x1eb   :  { %v17497_v47 = vsel %vm10006_vm6, 4294967295, %v17496_v47  ;;  %v5895_v43 = vsel %vm5812_vm12, %v17499_v15, %v9719_v20  ;;  %v5998_v11 = vxor.u32 2147483648, %v9764_v2  ;;  %v411_v12 = vand.u32 2147483647, %v9777_v40 }
 0x1ec   :  { %17498 = vst [vmem:[#allocation52_spill] sm:$0xff] %v17497_v47  ;;  %v413_v37 = vcvt.s32.f32 %v9766_v57  ;;  %v6405_v1 = vor.u32 %v6404_v35, %v6403_v17  ;;  %v6409_v6 = vor.u32 4788187, %v6408_v34  ;;  %v2278_v30 = vsel %vm7875_vm7, 0, %v7874_v48 }
 0x1ed   :  { %v471_v50 = vsel %vm467_vm15, %v451_v3, %v9926_v39  ;;  %v473_v20 = vsel %vm469_vm2, %v9929_v44, %v472_v31  ;;  %vm17074_vm12 = vcmp.lt.s32.totalorder %v9653_v5, 4  ;;  %v4176_v46 = vshll.u32 %v10010_v58, 30 }
 0x1ee   :  { %v493_v38 = vadd.s32 1, %v9985_v26  ;;  %v2323_v40 = vsel %vm2322_vm10, %v2321_v28, 0  ;;  %v10037_v57 = vadd.f32 %v9791_v23, %v3876_v49  ;;  %v10041_v48 = vor.u32 %v9714_v54, %v9681_v62 }
 0x1ef   :  { %v4040_v39 = vor.u32 %v10001_v33, %v9687_v25  ;;  %vm333_vm11 = vcmp.lt.s32.totalorder %v9150_v56, 0  ;;  %v6079_v44 = vadd.s32 536870912, %v10020_v18  ;;  %vm492_vm14 = vc.u32 %v9997_v63, %v9984_v36 }
 0x1f0   :  { %17500 = vst [vmem:[#allocation53_spill] sm:$0xff] %v10037_v57  ;;  %17501 = vst [vmem:[#allocation54_spill] sm:$0xff] %v10041_v48  ;;  %v5898_v17 = vsel %vm9975_vm5, %v9050_v27, %v5895_v43  ;;  %v5999_v9 = vsel %vm5916_vm8, %v5998_v11, %v9764_v2  ;;  %v414_v62 = vmul.f32 %v413_v37, %v411_v12  ;;  %v6410_v25 = vand.u32 2147483647, %v6409_v6 }
 0x1f1   :  { %v474_v54 = vsel %vm468_vm4, %v471_v50, %v473_v20  ;;  %v6412_v60 = vcvt.s32.f32 %v6405_v1  ;;  %v2283_v35 = vsub.s32 4294967266, %v2278_v30  ;;  %v2325_v52 = vand.u32 31, %v2323_v40 }
 0x1f2   :  { %v2279_v51 = vsub.s32 32, %v2278_v30  ;;  %v10058_v33 = vsub.s32 %v9936_v19, %v4176_v46  ;;  %v494_v34 = vsel %vm492_vm14, %v493_v38, %v9985_v26  ;;  %v4220_v22 = vand.u32 2139095040, %v10037_v57 }
 0x1f3   :  { %8535 = vcosq.f32 %v5898_v17  ;;  %v6002_v2 = vsel %vm10006_vm6, %v9057_v32, %v5999_v9  ;;  %v10065_v28 = vshrl.u32 %v6079_v44, 30  ;;  %v490_v14 = vmul.u32 %v9966_v4, %v474_v54 }
 0x1f4   :  { %8537 = vsinq.f32 %v5898_v17  ;;  %v415_v13 = vxor.u32 2147483648, %v414_v62  ;;  %v417_v31 = vsub.s32 4, %v9482_v41  ;;  %v2263_v19 = vadd.s32 %v9659_v59, %v9666_v0 }
 0x1f5   :  { %v6413_v49 = vmul.f32 %v6412_v60, %v6410_v25  ;;  %v2284_v26 = vadd.s32 127, %v2283_v35  ;;  %v10071_v15 = vadd.s32 %v494_v34, %v490_v14  ;;  %v10073_v43 = vsub.s32 32, %v2325_v52  ;;  %v17509_v60 = vld [vmem:[#allocation50_spill] sm:$0xff] }
 0x1f6   :  { %8539 = vcosq.f32 %v6002_v2  ;;  %v2281_v3 = vshrl.u32 %v2263_v19, %v2279_v51  ;;  %v4179_v11 = vsub.s32 0, %v10058_v33  ;;  %v4221_v12 = vshrl.u32 %v4220_v22, 23 }
 0x1f7   :  { %8541 = vsinq.f32 %v6002_v2  ;;  %v10079_v4 = vsel %vm17074_vm12, %v10041_v48, 920167782  ;;  %v10083_v59 = vsel %vm17074_vm12, %v4040_v39, 1326507024  ;;  %v6081_v0 = vshll.u32 %v10065_v28, 30 }
 0x1f8   :  { %17502 = vst [vmem:[#allocation55_spill] sm:$0xff] %v10079_v4  ;;  %17503 = vst [vmem:[#allocation56_spill] sm:$0xff] %v10083_v59  ;;  %v17504_v37 = vand.u32 2147483647, %v9150_v56  ;;  %v17505_v1 = vmov 0  ;;  %v416_v6 = vsel %vm333_vm11, %v415_v13, %v414_v62  ;;  %v10097_v50 = vsel %vm333_vm11, %v417_v31, %v9482_v41  ;;  %v5728_v31 = vpop.permute.xlu1 %5727 }
 0x1f9   :  { %17508 = vst [vmem:[#allocation58_spill] sm:$0xff] %v10097_v50  ;;  %vm6332_vm15 = vcmp.lt.s32.totalorder %v9257_v24, 0  ;;  %v2280_v46 = vshll.u32 %v9844_v16, %v2278_v30  ;;  %v6414_v38 = vxor.u32 2147483648, %v6413_v49  ;;  %v2285_v39 = vshll.u32 %v2284_v26, 23 }
 0x1fa   :  { %vm10088_vm8 = vcmp.le.f32.partialorder %v17504_v37, 0.7853982  ;;  %v496_v44 = vadd.s32 536870912, %v10071_v15  ;;  %v2338_v17 = vshrl.u32 %v17472_v10, %v10073_v43  ;;  %v7947_v62 = vmin.u32 %v4179_v11, %v10058_v33 }
 0x1fb   :  { %v17506_v1 = vsel %vm10088_vm8, 4294967295, %v17505_v1  ;;  %v2282_v9 = vor.u32 %v2281_v3, %v2280_v46  ;;  %v2341_v41 = vshrl.u32 %v17473_v55, %v10073_v43  ;;  %v7950_v54 = vadd.s32 4294967169, %v4221_v12 }
 0x1fc   :  { %17507 = vst [vmem:[#allocation57_spill] sm:$0xff] %v17506_v1  ;;  %v10109_v25 = vsub.s32 %v10020_v18, %v6081_v0  ;;  %v10112_v16 = vshrl.u32 %v2323_v40, 5  ;;  %v17510_v30 = vmov 2102212464   ;;  %v17511_v34 = vmov 2475754826  }
 0x1fd   :  { %v2337_v51 = vshll.u32 %v17510_v30, %v2325_v52  ;;  %v2329_v22 = vshrl.u32 %v17511_v34, %v10073_v43  ;;  %v2332_v2 = vshrl.u32 %v17475_v29, %v10073_v43  ;;  %v2335_v14 = vshrl.u32 %v17510_v30, %v10073_v43 }
 0x1fe   :  { %v2340_v13 = vshll.u32 %v17472_v10, %v2325_v52  ;;  %v17512_v18 = vand.u32 2147483647, %v9257_v24  ;;  %v17513_v19 = vmov 0  ;;  %v2286_v40 = vor.u32 4788187, %v2285_v39 }
 0x1ff   :  { %v10128_v26 = vshrl.u32 %v496_v44, 30  ;;  %v2328_v3 = vshll.u32 %v17463_v61, %v2325_v52  ;;  %v2339_v11 = vor.u32 %v2338_v17, %v2337_v51  ;;  %v2331_v12 = vshll.u32 %v17511_v34, %v2325_v52 }
 0x200   :  { %vm10124_vm0 = vcmp.le.f32.partialorder %v17512_v18, 0.7853982  ;;  %v2334_v0 = vshll.u32 %v17475_v29, %v2325_v52  ;;  %v2342_v37 = vor.u32 %v2341_v41, %v2340_v13  ;;  %v4227_v46 = vadd.s32 1, %v7950_v54  ;;  %v10137_v39 = vpop.eup %8535 }
 0x201   :  { %v17514_v19 = vsel %vm10124_vm0, 4294967295, %v17513_v19  ;;  %v4181_v20 = vclz %v7947_v62  ;;  %v6084_v35 = vsub.s32 0, %v10109_v25  ;;  %v17516_v18 = vand.u32 2147483647, %v17509_v60  ;;  %17517 = vst [vmem:[#allocation60_spill] sm:$0xff] %v10137_v39  ;;  %v10140_v17 = vpop.eup %8537 }
 0x202   :  { %17515 = vst [vmem:[#allocation59_spill] sm:$0xff] %v17514_v19  ;;  %v5781_v47 = vmul.f32 %v9869_v42, %v5728_v31  ;;  %v2330_v44 = vor.u32 %v2329_v22, %v2328_v3  ;;  %v2333_v27 = vor.u32 %v2332_v2, %v2331_v12  ;;  %v2336_v45 = vor.u32 %v2335_v14, %v2334_v0 }
 0x203   :  { %v2318_v32 = vand.u32 8388607, %v17516_v18  ;;  %vm2346_vm2 = vcmp.lt.s32.totalorder %v10112_v16, 4  ;;  %17518 = vst [vmem:[#allocation61_spill] sm:$0xff] %v10140_v17  ;;  %v419_v52 = vsel %vm10088_vm8, %v9150_v56, %v416_v6  ;;  %v6415_v62 = vsel %vm6332_vm15, %v6414_v38, %v6413_v49  ;;  %v10152_v14 = vpop.eup %8539  ;;  %v17521_v6 = vld [vmem:[#allocation19_spill] sm:$0xff] }
 0x204   :  { %v498_v41 = vshll.u32 %v10128_v26, 30  ;;  %v2352_v54 = vsel %vm2346_vm2, %v2339_v11, 920167782  ;;  %v2287_v51 = vand.u32 2147483647, %v2286_v40  ;;  %v2289_v22 = vcvt.s32.f32 %v2282_v9  ;;  %17519 = vst [vmem:[#allocation62_spill] sm:$0xff] %v10152_v14  ;;  %v10157_v49 = vpop.eup %8541 }
 0x205   :  { %v2356_v2 = vsel %vm2346_vm2, %v2342_v37, 1326507024  ;;  %vm4228_vm3 = vcmp.gt.s32.totalorder %v4227_v46, 0  ;;  %v7948_v13 = vadd.s32 4294967294, %v4181_v20  ;;  %v8019_v31 = vmin.u32 %v6084_v35, %v10109_v25  ;;  %17520 = vst [vmem:[#allocation63_spill] sm:$0xff] %v10157_v49  ;;  %v17523_v20 = vld [vmem:[#allocation34_spill] sm:$0xff] }
 0x206   :  { %vm2343_vm4 = vcmp.lt.s32.totalorder %v10112_v16, 1  ;;  %vm2345_vm7 = vcmp.lt.s32.totalorder %v10112_v16, 3  ;;  %vm2209_vm10 = vcmp.lt.s32.totalorder %v17521_v6, 0  ;;  %v2319_v38 = vor.u32 8388608, %v2318_v32  ;;  %v17529_v49 = vld [vmem:[#allocation49_spill] sm:$0xff] }
 0x207   :  { %v2351_v9 = vsel %vm2343_vm4, %v2330_v44, %v2333_v27  ;;  %v2353_v40 = vsel %vm2345_vm7, %v2336_v45, %v2352_v54  ;;  %v10165_v3 = vadd.f32 %v9791_v23, %v5781_v47  ;;  %vm4115_vm11 = vcmp.lt.s32.totalorder %v17523_v20, 0 }
 0x208   :  { %v10169_v35 = vsub.s32 %v10071_v15, %v498_v41  ;;  %v2355_v12 = vsel %vm2343_vm4, %v2333_v27, %v2336_v45  ;;  %v2357_v32 = vsel %vm2345_vm7, %v2339_v11, %v2356_v2  ;;  %v4229_v0 = vsel %vm4228_vm3, %v4227_v46, 0 }
 0x209   :  { %17522 = vst [vmem:[#allocation64_spill] sm:$0xff] %v10165_v3  ;;  %8543 = vcosq.f32 %v419_v52  ;;  %v6418_v37 = vsel %vm10124_vm0, %v9257_v24, %v6415_v62  ;;  %v2290_v47 = vmul.f32 %v2289_v22, %v2287_v51  ;;  %vm2344_vm14 = vcmp.lt.s32.totalorder %v10112_v16, 2 }
 0x20a   :  { %8545 = vsinq.f32 %v419_v52  ;;  %vm7949_vm12 = vcmp.lt.s32.totalorder %v7948_v13, 0  ;;  %v6086_v15 = vclz %v8019_v31  ;;  %v2354_v18 = vsel %vm2344_vm14, %v2351_v9, %v2353_v40  ;;  %v17526_v52 = vld [vmem:[#allocation46_spill] sm:$0xff] }
 0x20b   :  { %v2358_v41 = vsel %vm2344_vm14, %v2355_v12, %v2357_v32  ;;  %v10184_v11 = vshll.u32 %v2319_v38, 8  ;;  %v4231_v46 = vand.u32 31, %v4229_v0  ;;  %v6125_v54 = vand.u32 2139095040, %v10165_v3 }
 0x20c   :  { %v17524_v62 = vsub.s32 4, %v9637_v7  ;;  %8547 = vcosq.f32 %v6418_v37  ;;  %v2293_v22 = vsub.s32 4, %v17526_v52  ;;  %v501_v2 = vsub.s32 0, %v10169_v35 }
 0x20d   :  { %v2291_v31 = vxor.u32 2147483648, %v2290_v47  ;;  %v4199_v9 = vsub.s32 4, %v10010_v58  ;;  %v10198_v38 = vmul.u32.u64.low %v10184_v11, %v2354_v18  ;;  %v10199_v40 = vmul.u32.u64.high %v10184_v11, %v2354_v18, %v10198_v38 }
 0x20e   :  { %v10192_v51 = vsel %vm6332_vm15, %v17524_v62, %v9637_v7  ;;  %v10202_v12 = vsel %vm7949_vm12, 0, %v7948_v13  ;;  %v2348_v32 = vsel %vm2346_vm2, %v2336_v45, 2102212464  ;;  %v8020_v24 = vadd.s32 4294967294, %v6086_v15 }
 0x20f   :  { %17525 = vst [vmem:[#allocation65_spill] sm:$0xff] %v10192_v51  ;;  %17527 = vst [vmem:[#allocation46_spill] sm:$0xff] %v10198_v38  ;;  %v10207_v7 = vmul.u32.u64.low %v10184_v11, %v2358_v41  ;;  %v10208_v62 = vmul.u32.u64.high %v10184_v11, %v2358_v41, %v10207_v7  ;;  %v2327_v19 = vshrl.u32 %v17463_v61, %v10073_v43  ;;  %v10212_v51 = vsub.s32 32, %v4231_v46  ;;  %v17530_v41 = vld [vmem:[#allocation48_spill] sm:$0xff] }
 0x210   :  { %v6126_v14 = vshrl.u32 %v6125_v54, 23  ;;  %8549 = vsinq.f32 %v6418_v37  ;;  %v10217_v13 = vsel %vm2209_vm10, %v2293_v22, %v17526_v52  ;;  %v7809_v18 = vmin.u32 %v501_v2, %v10169_v35  ;;  %v3859_v54 = vpop.permute.xlu0 %3858 }
 0x211   :  { %17528 = vst [vmem:[#allocation66_spill] sm:$0xff] %v10217_v13  ;;  %v17080_v45 = vand.u32 2147483647, %v10037_v57  ;;  %v4169_v7 = vadd.s32 %v17530_v41, %v17529_v49  ;;  %v10226_v43 = vsel %vm4115_vm11, %v4199_v9, %v10010_v58  ;;  %v2347_v37 = vsel %vm2343_vm4, %v2327_v19, %v2330_v44 }
 0x212   :  { %17531 = vst [vmem:[#allocation49_spill] sm:$0xff] %v10226_v43  ;;  %v2349_v15 = vsel %vm2345_vm7, %v2333_v27, %v2348_v32  ;;  %v10234_v52 = vsel %vm2209_vm10, %v2291_v31, %v2290_v47  ;;  %v4185_v22 = vsub.s32 32, %v10202_v12  ;;  %v10239_v49 = vadd.s32 %v9899_v21, %v9905_v8 }
 0x213   :  { %v10242_v58 = vmul.f32 %v9869_v42, %v3859_v54  ;;  %v4189_v2 = vsub.s32 4294967266, %v10202_v12  ;;  %vm8021_vm12 = vcmp.lt.s32.totalorder %v8020_v24, 0  ;;  %v4244_v27 = vshrl.u32 %v17472_v10, %v10212_v51 }
 0x214   :  { %v8022_v19 = vadd.s32 4294967169, %v6126_v14  ;;  %v503_v44 = vclz %v7809_v18  ;;  %v2350_v47 = vsel %vm2344_vm14, %v2347_v37, %v2349_v15  ;;  %v4224_v31 = vand.u32 8388607, %v17080_v45 }
 0x215   :  { %v2369_v8 = vadd.s32 1, %v10199_v40  ;;  %v4235_v9 = vshrl.u32 %v17511_v34, %v10212_v51  ;;  %v4243_v32 = vshll.u32 %v17510_v30, %v4231_v46  ;;  %v4247_v41 = vshrl.u32 %v17473_v55, %v10212_v51 }
 0x216   :  { %v10258_v14 = vpop.eup %8543  ;;  %vm2368_vm15 = vc.u32 %v10208_v62, %v10198_v38  ;;  %v10262_v16 = vshrl.u32 %v4229_v0, 5  ;;  %v4238_v18 = vshrl.u32 %v17475_v29, %v10212_v51  ;;  %v4241_v37 = vshrl.u32 %v17510_v30, %v10212_v51 }
 0x217   :  { %17532 = vst [vmem:[#allocation48_spill] sm:$0xff] %v10258_v14  ;;  %v10268_v15 = vpop.eup %8545  ;;  %v4234_v54 = vshll.u32 %v17463_v61, %v4231_v46  ;;  %v4245_v45 = vor.u32 %v4244_v27, %v4243_v32  ;;  %v4246_v21 = vshll.u32 %v17472_v10, %v4231_v46  ;;  %v6132_v39 = vadd.s32 1, %v8022_v19 }
 0x218   :  { %17533 = vst [vmem:[#allocation67_spill] sm:$0xff] %v10268_v15  ;;  %v7810_v17 = vadd.s32 4294967294, %v503_v44  ;;  %v2366_v56 = vmul.u32 %v10184_v11, %v2350_v47  ;;  %v4237_v0 = vshll.u32 %v17511_v34, %v4231_v46  ;;  %v4240_v14 = vshll.u32 %v17475_v29, %v4231_v46 }
 0x219   :  { %v10275_v1 = vpop.eup %8547  ;;  %v2370_v50 = vsel %vm2368_vm15, %v2369_v8, %v10199_v40  ;;  %v10278_v43 = vor.u32 %v4235_v9, %v4234_v54  ;;  %v4248_v15 = vor.u32 %v4247_v41, %v4246_v21  ;;  %vm6133_vm2 = vcmp.gt.s32.totalorder %v6132_v39, 0 }
 0x21a   :  { %17534 = vst [vmem:[#allocation68_spill] sm:$0xff] %v10275_v1  ;;  %v10280_v13 = vor.u32 %v4238_v18, %v4237_v0  ;;  %v10282_v27 = vor.u32 %v4241_v37, %v4240_v14  ;;  %vm4252_vm3 = vcmp.lt.s32.totalorder %v10262_v16, 4  ;;  %v6134_v19 = vsel %vm6133_vm2, %v6132_v39, 0 }
 0x21b   :  { %v4225_v44 = vor.u32 8388608, %v4224_v31  ;;  %v4258_v46 = vsel %vm4252_vm3, %v4245_v45, 920167782  ;;  %v6136_v47 = vand.u32 31, %v6134_v19  ;;  %v10289_v40 = vshrl.u32 %v4169_v7, %v4185_v22 }
 0x21c   :  { %v10291_v8 = vadd.s32 127, %v4189_v2  ;;  %v10294_v21 = vsel %vm8021_vm12, 0, %v8020_v24  ;;  %v10296_v9 = vadd.s32 %v2370_v50, %v2366_v56  ;;  %vm4249_vm4 = vcmp.lt.s32.totalorder %v10262_v16, 1 }
 0x21d   :  { %v10298_v32 = vpop.eup %8549  ;;  %vm4251_vm7 = vcmp.lt.s32.totalorder %v10262_v16, 3  ;;  %v4262_v39 = vsel %vm4252_vm3, %v4248_v15, 1326507024  ;;  %v6137_v31 = vsub.s32 32, %v6136_v47  ;;  %vm7811_vm10 = vcmp.lt.s32.totalorder %v7810_v17, 0 }
 0x21e   :  { %17535 = vst [vmem:[#allocation69_spill] sm:$0xff] %v10298_v32  ;;  %v4257_v7 = vsel %vm4249_vm4, %v10278_v43, %v10280_v13  ;;  %v4259_v56 = vsel %vm4251_vm7, %v10282_v27, %v4258_v46  ;;  %v17536_v24 = vand.u32 2147483647, %v10165_v3  ;;  %v6094_v22 = vsub.s32 4294967266, %v10294_v21 }
 0x21f   :  { %vm4250_vm14 = vcmp.lt.s32.totalorder %v10262_v16, 2  ;;  %v4261_v2 = vsel %vm4249_vm4, %v10280_v13, %v10282_v27  ;;  %v10319_v41 = vshll.u32 %v4225_v44, 8  ;;  %v4263_v14 = vsel %vm4251_vm7, %v4245_v45, %v4262_v39 }
 0x220   :  { %v6129_v50 = vand.u32 8388607, %v17536_v24  ;;  %v6140_v18 = vshrl.u32 %v17511_v34, %v6137_v31  ;;  %v6143_v37 = vshrl.u32 %v17475_v29, %v6137_v31  ;;  %v6146_v15 = vshrl.u32 %v17510_v30, %v6137_v31 }
 0x221   :  { %v10326_v54 = vsel %vm7811_vm10, 0, %v7810_v17  ;;  %v2372_v0 = vadd.s32 536870912, %v10296_v9  ;;  %v4260_v46 = vsel %vm4250_vm14, %v4257_v7, %v4259_v56  ;;  %v6149_v24 = vshrl.u32 %v17472_v10, %v6137_v31 }
 0x222   :  { %v6130_v44 = vor.u32 8388608, %v6129_v50  ;;  %v6139_v11 = vshll.u32 %v17463_v61, %v6136_v47  ;;  %v6142_v45 = vshll.u32 %v17511_v34, %v6136_v47  ;;  %v6145_v39 = vshll.u32 %v17475_v29, %v6136_v47 }
 0x223   :  { %v4264_v1 = vsel %vm4250_vm14, %v4261_v2, %v4263_v14  ;;  %v6135_v32 = vshrl.u32 %v6134_v19, 5  ;;  %v6148_v17 = vshll.u32 %v17510_v30, %v6136_v47  ;;  %v6152_v48 = vshrl.u32 %v17473_v55, %v6137_v31 }
 0x224   :  { %v6141_v59 = vor.u32 %v6140_v18, %v6139_v11  ;;  %v6144_v4 = vor.u32 %v6143_v37, %v6142_v45  ;;  %v6147_v7 = vor.u32 %v6146_v15, %v6145_v39  ;;  %v6151_v56 = vshll.u32 %v17472_v10, %v6136_v47 }
 0x225   :  { %v6090_v50 = vsub.s32 32, %v10294_v21  ;;  %v6095_v5 = vadd.s32 127, %v6094_v22  ;;  %v6150_v53 = vor.u32 %v6149_v24, %v6148_v17  ;;  %v10343_v3 = vadd.f32 %v9791_v23, %v10242_v58 }
 0x226   :  { %v511_v2 = vsub.s32 4294967266, %v10326_v54  ;;  %v10347_v19 = vmul.u32.u64.low %v10319_v41, %v4260_v46  ;;  %v10348_v14 = vmul.u32.u64.high %v10319_v41, %v4260_v46, %v10347_v19  ;;  %v6153_v11 = vor.u32 %v6152_v48, %v6151_v56 }
 0x227   :  { %17537 = vst [vmem:[#allocation70_spill] sm:$0xff] %v10343_v3  ;;  %v10352_v18 = vmul.u32.u64.low %v10319_v41, %v4264_v1  ;;  %v10353_v37 = vmul.u32.u64.high %v10319_v41, %v4264_v1, %v10352_v18  ;;  %vm6154_vm12 = vcmp.lt.s32.totalorder %v6135_v32, 1  ;;  %vm6157_vm15 = vcmp.lt.s32.totalorder %v6135_v32, 4 }
 0x228   :  { %v10355_v47 = vshrl.u32 %v2372_v0, 30  ;;  %v6159_v22 = vsel %vm6157_vm15, %v6147_v7, 2102212464  ;;  %v6162_v15 = vsel %vm6154_vm12, %v6141_v59, %v6144_v4  ;;  %v6170_v58 = vshll.u32 %v6130_v44, 8 }
 0x229   :  { %v6138_v24 = vshrl.u32 %v17463_v61, %v6137_v31  ;;  %vm6156_vm2 = vcmp.lt.s32.totalorder %v6135_v32, 3  ;;  %v6163_v45 = vsel %vm6157_vm15, %v6150_v53, 920167782  ;;  %v6166_v39 = vsel %vm6154_vm12, %v6144_v4, %v6147_v7 }
 0x22a   :  { %vm6155_vm10 = vcmp.lt.s32.totalorder %v6135_v32, 2  ;;  %v6164_v46 = vsel %vm6156_vm2, %v6147_v7, %v6163_v45  ;;  %v6167_v17 = vsel %vm6157_vm15, %v6153_v11, 1326507024  ;;  %v5156_v48 = vand.u32 2139095040, %v10343_v3 }
 0x22b   :  { %v6158_v56 = vsel %vm6154_vm12, %v6138_v24, %v6141_v59  ;;  %v6160_v1 = vsel %vm6156_vm2, %v6144_v4, %v6159_v22  ;;  %v6165_v18 = vsel %vm6155_vm10, %v6162_v15, %v6164_v46  ;;  %v6168_v57 = vsel %vm6156_vm2, %v6150_v53, %v6167_v17  ;;  %v17542_v15 = vld [vmem:[#allocation38_spill] sm:$0xff] }
 0x22c   :  { %v507_v0 = vsub.s32 32, %v10326_v54  ;;  %v6169_v60 = vsel %vm6155_vm10, %v6166_v39, %v6168_v57  ;;  %v10362_v44 = vmul.u32.u64.low %v6170_v58, %v6165_v18  ;;  %v10363_v38 = vmul.u32.u64.high %v6170_v58, %v6165_v18, %v10362_v44 }
 0x22d   :  { %v17538_v31 = vand.u32 2147483647, %v17521_v6  ;;  %v17539_v7 = vmov 0  ;;  %v512_v11 = vadd.s32 127, %v511_v2  ;;  %v2374_v4 = vshll.u32 %v10355_v47, 30 }
 0x22e   :  { %v10373_v59 = vmul.u32.u64.low %v6170_v58, %v6169_v60  ;;  %v10374_v22 = vmul.u32.u64.high %v6170_v58, %v6169_v60, %v10373_v59  ;;  %v4191_v53 = vshll.u32 %v10291_v8, 23  ;;  %vm6020_vm12 = vcmp.lt.s32.totalorder %v17542_v15, 0 }
 0x22f   :  { %vm10368_vm9 = vcmp.le.f32.partialorder %v17538_v31, 0.7853982  ;;  %v491_v57 = vadd.s32 %v9984_v36, %v9997_v63  ;;  %v6161_v24 = vsel %vm6155_vm10, %v6158_v56, %v6160_v1  ;;  %v5157_v45 = vshrl.u32 %v5156_v48, 23 }
 0x230   :  { %v17540_v7 = vsel %vm10368_vm9, 4294967295, %v17539_v7  ;;  %v6091_v39 = vshll.u32 %v10109_v25, %v10294_v21  ;;  %v6092_v2 = vshrl.u32 %v10239_v49, %v6090_v50  ;;  %v6096_v46 = vshll.u32 %v6095_v5, 23 }
 0x231   :  { %17541 = vst [vmem:[#allocation71_spill] sm:$0xff] %v17540_v7  ;;  %v4254_v60 = vsel %vm4252_vm3, %v10282_v27, 2102212464  ;;  %v509_v17 = vshrl.u32 %v491_v57, %v507_v0  ;;  %v4233_v8 = vshrl.u32 %v17463_v61, %v10212_v51  ;;  %v6180_v18 = vadd.s32 1, %v10363_v38  ;;  %v1921_v0 = vpop.permute.xlu1 %1920 }
 0x232   :  { %v7986_v36 = vadd.s32 4294967169, %v5157_v45  ;;  %v513_v63 = vshll.u32 %v512_v11, 23  ;;  %v10391_v32 = vsub.s32 %v10296_v9, %v2374_v4  ;;  %v6177_v48 = vmul.u32 %v6170_v58, %v6161_v24 }
 0x233   :  { %vm6179_vm15 = vc.u32 %v10374_v22, %v10362_v44  ;;  %v4253_v5 = vsel %vm4249_vm4, %v4233_v8, %v10278_v43  ;;  %v4255_v25 = vsel %vm4251_vm7, %v10280_v13, %v4254_v60  ;;  %v6104_v27 = vsub.s32 4, %v10065_v28 }
 0x234   :  { %v6181_v51 = vsel %vm6179_vm15, %v6180_v18, %v10363_v38  ;;  %v5163_v49 = vadd.s32 1, %v7986_v36  ;;  %v508_v21 = vshll.u32 %v10169_v35, %v10326_v54  ;;  %v4275_v9 = vadd.s32 1, %v10348_v14 }
 0x235   :  { %v6182_v50 = vadd.s32 %v6181_v51, %v6177_v48  ;;  %v6093_v58 = vor.u32 %v6092_v2, %v6091_v39  ;;  %v6097_v56 = vor.u32 4788187, %v6096_v46  ;;  %vm4274_vm3 = vc.u32 %v10353_v37, %v10347_v19 }
 0x236   :  { %vm5164_vm4 = vcmp.gt.s32.totalorder %v5163_v49, 0  ;;  %v510_v43 = vor.u32 %v509_v17, %v508_v21  ;;  %v4256_v13 = vsel %vm4250_vm14, %v4253_v5, %v4255_v25  ;;  %v10414_v35 = vsel %vm10368_vm9, %v17521_v6, %v10234_v52 }
 0x237   :  { %v6183_v38 = vadd.s32 536870912, %v6182_v50  ;;  %v5165_v1 = vsel %vm5164_vm4, %v5163_v49, 0  ;;  %v514_v54 = vor.u32 4788187, %v513_v63  ;;  %v2377_v31 = vsub.s32 0, %v10391_v32 }
 0x238   :  { %v5167_v11 = vand.u32 31, %v5165_v1  ;;  %v17543_v4 = vshll.u32 %v10058_v33, %v10202_v12  ;;  %v10423_v16 = vor.u32 4788187, %v4191_v53  ;;  %v10428_v57 = vsel %vm6020_vm12, %v6104_v27, %v10065_v28 }
 0x239   :  { %v4276_v52 = vsel %vm4274_vm3, %v4275_v9, %v10348_v14  ;;  %v6100_v24 = vcvt.s32.f32 %v6093_v58  ;;  %v4272_v45 = vmul.u32 %v10319_v41, %v4256_v13  ;;  %v1971_v2 = vmul.f32 %v9869_v42, %v1921_v0 }
 0x23a   :  { %v10421_v59 = vor.u32 %v10289_v40, %v17543_v4  ;;  %v10432_v39 = vsub.s32 32, %v5167_v11  ;;  %v17544_v33 = vand.u32 2147483647, %v17542_v15  ;;  %v6098_v40 = vand.u32 2147483647, %v6097_v56 }
 0x23b   :  { %v517_v53 = vcvt.s32.f32 %v510_v43  ;;  %v10441_v46 = vshrl.u32 %v6183_v38, 30  ;;  %v17103_v28 = vand.u32 2147483647, %v10343_v3  ;;  %v515_v14 = vand.u32 2147483647, %v514_v54 }
 0x23c   :  { %vm10437_vm7 = vcmp.le.f32.partialorder %v17544_v33, 0.7853982  ;;  %v7877_v60 = vmin.u32 %v2377_v31, %v10391_v32  ;;  %v10445_v41 = vadd.s32 %v4276_v52, %v4272_v45  ;;  %v5170_v17 = vshll.u32 %v17463_v61, %v5167_v11 }
 0x23d   :  { %v5171_v8 = vshrl.u32 %v17511_v34, %v10432_v39  ;;  %v5173_v18 = vshll.u32 %v17511_v34, %v5167_v11  ;;  %v5174_v36 = vshrl.u32 %v17475_v29, %v10432_v39  ;;  %v5179_v63 = vshll.u32 %v17510_v30, %v5167_v11 }
 0x23e   :  { %v10454_v48 = vshrl.u32 %v5165_v1, 5  ;;  %v5176_v5 = vshll.u32 %v17475_v29, %v5167_v11  ;;  %v5177_v25 = vshrl.u32 %v17510_v30, %v10432_v39  ;;  %v10460_v51 = vadd.f32 %v9791_v23, %v1971_v2 }
 0x23f   :  { %v6101_v49 = vmul.f32 %v6100_v24, %v6098_v40  ;;  %v6185_v27 = vshll.u32 %v10441_v46, 30  ;;  %v5160_v21 = vand.u32 8388607, %v17103_v28  ;;  %v5180_v9 = vshrl.u32 %v17472_v10, %v10432_v39 }
 0x240   :  { %17547 = vst [vmem:[#allocation38_spill] sm:$0xff] %v10460_v51  ;;  %v518_v58 = vmul.f32 %v517_v53, %v515_v14  ;;  %v2379_v56 = vclz %v7877_v60  ;;  %v5182_v43 = vshll.u32 %v17472_v10, %v5167_v11  ;;  %v5183_v13 = vshrl.u32 %v17473_v55, %v10432_v39 }
 0x241   :  { %v4278_v38 = vadd.s32 536870912, %v10445_v41  ;;  %v5172_v23 = vor.u32 %v5171_v8, %v5170_v17  ;;  %v5175_v1 = vor.u32 %v5174_v36, %v5173_v18  ;;  %v5181_v0 = vor.u32 %v5180_v9, %v5179_v63  ;;  %v17548_v36 = vld [vmem:[#allocation47_spill] sm:$0xff] }
 0x242   :  { %v5178_v54 = vor.u32 %v5177_v25, %v5176_v5  ;;  %vm5185_vm14 = vcmp.lt.s32.totalorder %v10454_v48, 1  ;;  %vm5188_vm2 = vcmp.lt.s32.totalorder %v10454_v48, 4  ;;  %v2418_v31 = vand.u32 2139095040, %v10460_v51 }
 0x243   :  { %v10474_v4 = vsub.s32 %v6182_v50, %v6185_v27  ;;  %v5161_v52 = vor.u32 8388608, %v5160_v21  ;;  %v5184_v24 = vor.u32 %v5183_v13, %v5182_v43  ;;  %vm5187_vm10 = vcmp.lt.s32.totalorder %v10454_v48, 3 }
 0x244   :  { %v4193_v11 = vand.u32 2147483647, %v10423_v16  ;;  %v4195_v45 = vcvt.s32.f32 %v10421_v59  ;;  %v6102_v2 = vxor.u32 2147483648, %v6101_v49  ;;  %v6107_v33 = vsel %vm10437_vm7, 0, %v10428_v57 }
 0x245   :  { %v519_v40 = vxor.u32 2147483648, %v518_v58  ;;  %vm5186_vm15 = vcmp.lt.s32.totalorder %v10454_v48, 2  ;;  %v5193_v50 = vsel %vm5185_vm14, %v5172_v23, %v5175_v1  ;;  %v5194_v53 = vsel %vm5188_vm2, %v5181_v0, 920167782 }
 0x246   :  { %v10487_v14 = vshrl.u32 %v4278_v38, 30  ;;  %v5195_v16 = vsel %vm5187_vm10, %v5178_v54, %v5194_v53  ;;  %v5197_v59 = vsel %vm5185_vm14, %v5175_v1, %v5178_v54  ;;  %v2419_v60 = vshrl.u32 %v2418_v31, 23 }
 0x247   :  { %v7878_v17 = vadd.s32 4294967294, %v2379_v56  ;;  %v6188_v57 = vsub.s32 0, %v10474_v4  ;;  %v5198_v8 = vsel %vm5188_vm2, %v5184_v24, 1326507024  ;;  %v10496_v18 = vshll.u32 %v5161_v52, 8 }
 0x248   :  { %8551 = vcosq.f32 %v10414_v35  ;;  %v17549_v63 = vand.u32 2147483647, %v17548_v36  ;;  %v5196_v25 = vsel %vm5186_vm15, %v5193_v50, %v5195_v16  ;;  %v5199_v27 = vsel %vm5187_vm10, %v5181_v0, %v5198_v8  ;;  %v3871_v16 = vpop.permute.xlu0 %3870 }
 0x249   :  { %v4196_v21 = vmul.f32 %v4195_v45, %v4193_v11  ;;  %v6111_v9 = vadd.s32 3, %v6107_v33  ;;  %vm437_vm4 = vcmp.lt.s32.totalorder %v17548_v36, 0  ;;  %v5200_v56 = vsel %vm5186_vm15, %v5197_v59, %v5199_v27 }
 0x24a   :  { %vm10501_vm3 = vcmp.le.f32.partialorder %v17549_v63, 0.7853982  ;;  %v6103_v43 = vsel %vm6020_vm12, %v6102_v2, %v6101_v49  ;;  %v520_v13 = vsel %vm437_vm4, %v519_v40, %v518_v58  ;;  %v4280_v38 = vshll.u32 %v10487_v14, 30 }
 0x24b   :  { %v7880_v31 = vadd.s32 4294967169, %v2419_v60  ;;  %vm7879_vm1 = vcmp.lt.s32.totalorder %v7878_v17, 0  ;;  %v8023_v52 = vmin.u32 %v6188_v57, %v10474_v4  ;;  %v5169_v11 = vshrl.u32 %v17463_v61, %v10432_v39 }
 0x24c   :  { %v10519_v0 = vmul.u32.u64.low %v10496_v18, %v5196_v25  ;;  %v10520_v24 = vmul.u32.u64.high %v10496_v18, %v5196_v25, %v10519_v0  ;;  %v10526_v45 = vmul.u32.u64.low %v10496_v18, %v5200_v56  ;;  %v10527_v49 = vmul.u32.u64.high %v10496_v18, %v5200_v56, %v10526_v45  ;;  %v10565_v56 = vld [vmem:[#allocation4 + $0x1] ss:$0 sm:$0xff] }
 0x24d   :  { %v2425_v2 = vadd.s32 1, %v7880_v31  ;;  %v4197_v58 = vxor.u32 2147483648, %v4196_v21  ;;  %v6106_v33 = vsel %vm10437_vm7, %v17542_v15, %v6103_v43  ;;  %v521_v40 = vsub.s32 4, %v10128_v26 }
 0x24e   :  { %v5190_v50 = vsel %vm5188_vm2, %v5178_v54, 2102212464  ;;  %8553 = vsinq.f32 %v10414_v35  ;;  %v523_v39 = vsel %vm10501_vm3, %v17548_v36, %v520_v13  ;;  %v10540_v53 = vsub.s32 %v10445_v41, %v4280_v38 }
 0x24f   :  { %vm2426_vm12 = vcmp.gt.s32.totalorder %v2425_v2, 0  ;;  %v10542_v59 = vsel %vm7879_vm1, 0, %v7878_v17  ;;  %v6190_v12 = vclz %v8023_v52  ;;  %v3888_v57 = vmul.f32 %v9869_v42, %v3871_v16 }
 0x250   :  { %v2427_v60 = vsel %vm2426_vm12, %v2425_v2, 0  ;;  %8555 = vcosq.f32 %v6106_v33  ;;  %v5189_v54 = vsel %vm5185_vm14, %v5169_v11, %v5172_v23  ;;  %v5191_v35 = vsel %vm5187_vm10, %v5175_v1, %v5190_v50 }
 0x251   :  { %v2429_v8 = vand.u32 31, %v2427_v60  ;;  %v10551_v41 = vsel %vm4115_vm11, %v4197_v58, %v4196_v21  ;;  %8557 = vsinq.f32 %v6106_v33  ;;  %v10553_v63 = vand.u32 3, %v6111_v9 }
 0x252   :  { %v522_v17 = vsel %vm437_vm4, %v521_v40, %v10128_v26  ;;  %8559 = vcosq.f32 %v523_v39  ;;  %v2387_v42 = vsub.s32 4294967266, %v10542_v59  ;;  %v4283_v23 = vsub.s32 0, %v10540_v53 }
 0x253   :  { %v10560_v25 = vsub.s32 32, %v2429_v8  ;;  %v8024_v1 = vadd.s32 4294967294, %v6190_v12  ;;  %v5192_v27 = vsel %vm5186_vm15, %v5189_v54, %v5191_v35  ;;  %v17104_v21 = vand.u32 2147483647, %v10460_v51 }
 0x254   :  { %v10568_v9 = vadd.f32 %v10565_v56, %v3888_v57  ;;  %vm5210_vm1 = vc.u32 %v10527_v49, %v10519_v0  ;;  %v5211_v26 = vadd.s32 1, %v10520_v24  ;;  %v2441_v13 = vshll.u32 %v17510_v30, %v2429_v8 }
 0x255   :  { %v2433_v43 = vshrl.u32 %v17511_v34, %v10560_v25  ;;  %v10576_v38 = vpop.eup %8551  ;;  %v2436_v48 = vshrl.u32 %v17475_v29, %v10560_v25  ;;  %v2439_v31 = vshrl.u32 %v17510_v30, %v10560_v25  ;;  %v2442_v52 = vshrl.u32 %v17472_v10, %v10560_v25 }
 0x256   :  { %17552 = vst [vmem:[#allocation47_spill] sm:$0xff] %v10568_v9  ;;  %17553 = vst [vmem:[#allocation72_spill] sm:$0xff] %v10576_v38  ;;  %v2445_v11 = vshrl.u32 %v17473_v55, %v10560_v25  ;;  %v17554_v45 = vand.u32 2147483647, %v17523_v20  ;;  %v17555_v2 = vmov 0  ;;  %v7951_v58 = vmin.u32 %v4283_v23, %v10540_v53 }
 0x257   :  { %v5208_v33 = vmul.u32 %v10496_v18, %v5192_v27  ;;  %v10594_v40 = vshrl.u32 %v2427_v60, 5  ;;  %v2444_v50 = vshll.u32 %v17472_v10, %v2429_v8  ;;  %v2432_v16 = vshll.u32 %v17463_v61, %v2429_v8 }
 0x258   :  { %vm10588_vm11 = vcmp.le.f32.partialorder %v17554_v45, 0.7853982  ;;  %v2435_v12 = vshll.u32 %v17511_v34, %v2429_v8  ;;  %v2438_v57 = vshll.u32 %v17475_v29, %v2429_v8  ;;  %v2443_v54 = vor.u32 %v2442_v52, %v2441_v13 }
 0x259   :  { %v17556_v2 = vsel %vm10588_vm11, 4294967295, %v17555_v2  ;;  %vm8025_vm7 = vcmp.lt.s32.totalorder %v8024_v1, 0  ;;  %v5212_v35 = vsel %vm5210_vm1, %v5211_v26, %v10520_v24  ;;  %v2422_v18 = vand.u32 8388607, %v17104_v21 }
 0x25a   :  { %17557 = vst [vmem:[#allocation73_spill] sm:$0xff] %v17556_v2  ;;  %v2446_v60 = vor.u32 %v2445_v11, %v2444_v50  ;;  %v10606_v23 = vor.u32 %v2433_v43, %v2432_v16  ;;  %v10608_v27 = vor.u32 %v2436_v48, %v2435_v12  ;;  %v10610_v45 = vor.u32 %v2439_v31, %v2438_v57  ;;  %v17559_v50 = vld [vmem:[#allocation46_spill] sm:$0xff] }
 0x25b   :  { %v5468_v28 = vand.u32 2139095040, %v10568_v9  ;;  %v524_v8 = vsel %vm10501_vm3, 0, %v522_v17  ;;  %8561 = vsinq.f32 %v523_v39  ;;  %v2383_v13 = vsub.s32 32, %v10542_v59  ;;  %v10617_v24 = vpop.eup %8553 }
 0x25c   :  { %vm2450_vm14 = vcmp.lt.s32.totalorder %v10594_v40, 4  ;;  %17558 = vst [vmem:[#allocation74_spill] sm:$0xff] %v10617_v24  ;;  %v2388_v26 = vadd.s32 127, %v2387_v42  ;;  %v4285_v52 = vclz %v7951_v58  ;;  %v10619_v43 = vadd.s32 %v5212_v35, %v5208_v33 }
 0x25d   :  { %v2456_v48 = vsel %vm2450_vm14, %v2443_v54, 920167782  ;;  %v10624_v31 = vsel %vm8025_vm7, 0, %v8024_v1  ;;  %vm2447_vm2 = vcmp.lt.s32.totalorder %v10594_v40, 1  ;;  %vm2449_vm10 = vcmp.lt.s32.totalorder %v10594_v40, 3  ;;  %v8556_v39 = vpop.eup %8555 }
 0x25e   :  { %v2460_v5 = vsel %vm2450_vm14, %v2446_v60, 1326507024  ;;  %v2423_v17 = vor.u32 8388608, %v2422_v18  ;;  %v2455_v42 = vsel %vm2447_vm2, %v10606_v23, %v10608_v27  ;;  %v2457_v11 = vsel %vm2449_vm10, %v10610_v45, %v2456_v48  ;;  %v8558_v58 = vpop.eup %8557 }
 0x25f   :  { %v5469_v1 = vshrl.u32 %v5468_v28, 23  ;;  %v528_v33 = vadd.s32 3, %v524_v8  ;;  %v2367_v16 = vadd.s32 %v17559_v50, %v10208_v62  ;;  %v2459_v12 = vsel %vm2447_vm2, %v10608_v27, %v10610_v45  ;;  %v10645_v35 = vpop.eup %8559 }
 0x260   :  { %v2461_v57 = vsel %vm2449_vm10, %v2443_v54, %v2460_v5  ;;  %v4201_v28 = vsel %vm10588_vm11, %v17523_v20, %v10551_v41  ;;  %v6198_v18 = vsub.s32 4294967266, %v10624_v31  ;;  %v5214_v60 = vadd.s32 536870912, %v10619_v43 }
 0x261   :  { %vm2448_vm15 = vcmp.lt.s32.totalorder %v10594_v40, 2  ;;  %vm6114_vm3 = vcmp.eq.s32.totalorder %v10553_v63, 0  ;;  %v2385_v62 = vshrl.u32 %v2367_v16, %v2383_v13  ;;  %v7952_v8 = vadd.s32 4294967294, %v4285_v52 }
 0x262   :  { %v2458_v54 = vsel %vm2448_vm15, %v2455_v42, %v2457_v11  ;;  %v2389_v48 = vshll.u32 %v2388_v26, 23  ;;  %v2462_v5 = vsel %vm2448_vm15, %v2459_v12, %v2461_v57  ;;  %v10659_v50 = vshll.u32 %v2423_v17, 8  ;;  %v3827_v26 = vpop.permute.xlu1 %3826  ;;  %v10681_v57 = vld [vmem:[#allocation4] ss:$0 sm:$0xff] }
 0x263   :  { %v7998_v41 = vadd.s32 4294967169, %v5469_v1  ;;  %8563 = vcosq.f32 %v4201_v28  ;;  %v6118_v21 = vxor.u32 2147483648, %v8556_v39  ;;  %v10661_v20 = vand.u32 3, %v528_v33 }
 0x264   :  { %v2384_v2 = vshll.u32 %v10391_v32, %v10542_v59  ;;  %v6199_v6 = vadd.s32 127, %v6198_v18  ;;  %v10665_v13 = vshrl.u32 %v5214_v60, 30  ;;  %v6115_v11 = vxor.u32 2147483648, %v8558_v58 }
 0x265   :  { %v10668_v52 = vmul.u32.u64.low %v10659_v50, %v2458_v54  ;;  %v10669_v42 = vmul.u32.u64.high %v10659_v50, %v2458_v54, %v10668_v52  ;;  %vm7953_vm4 = vcmp.lt.s32.totalorder %v7952_v8, 0  ;;  %vm6113_vm12 = vcmp.lt.s32.totalorder %v10553_v63, 2 }
 0x266   :  { %v10673_v17 = vmul.u32.u64.low %v10659_v50, %v2462_v5  ;;  %v10674_v1 = vmul.u32.u64.high %v10659_v50, %v2462_v5, %v10673_v17  ;;  %v2386_v33 = vor.u32 %v2385_v62, %v2384_v2  ;;  %v2390_v16 = vor.u32 4788187, %v2389_v48 }
 0x267   :  { %v6194_v32 = vsub.s32 32, %v10624_v31  ;;  %v5475_v59 = vadd.s32 1, %v7998_v41  ;;  %8565 = vsinq.f32 %v4201_v28  ;;  %vm6117_vm1 = vcmp.eq.s32.totalorder %v10553_v63, 2 }
 0x268   :  { %v6178_v12 = vadd.s32 %v10362_v44, %v10374_v22  ;;  %v3877_v18 = vmul.f32 %v10681_v57, %v3827_v26  ;;  %v8562_v60 = vpop.eup %8561  ;;  %v10684_v54 = vsel %vm7953_vm4, 0, %v7952_v8  ;;  %v6200_v5 = vshll.u32 %v6199_v6, 23 }
 0x269   :  { %v5216_v2 = vshll.u32 %v10665_v13, 30  ;;  %v2452_v62 = vsel %vm2450_vm14, %v10610_v45, 2102212464  ;;  %v6116_v28 = vsel %vm6114_vm3, %v8556_v39, %v6115_v11  ;;  %v6119_v48 = vsel %vm6117_vm1, %v6118_v21, %v8558_v58 }
 0x26a   :  { %vm531_vm7 = vcmp.eq.s32.totalorder %v10661_v20, 0  ;;  %vm534_vm13 = vcmp.eq.s32.totalorder %v10661_v20, 2  ;;  %v2431_v44 = vshrl.u32 %v17463_v61, %v10560_v25  ;;  %v2391_v22 = vand.u32 2147483647, %v2390_v16  ;;  %v17561_v25 = vld [vmem:[#allocation50_spill] sm:$0xff] }
 0x26b   :  { %v2393_v8 = vcvt.s32.f32 %v2386_v33  ;;  %v6196_v6 = vshrl.u32 %v6178_v12, %v6194_v32  ;;  %vm5476_vm4 = vcmp.gt.s32.totalorder %v5475_v59, 0  ;;  %v4293_v41 = vsub.s32 4294967266, %v10684_v54 }
 0x26c   :  { %v2451_v45 = vsel %vm2447_vm2, %v2431_v44, %v10606_v23  ;;  %v2453_v21 = vsel %vm2449_vm10, %v10608_v27, %v2452_v62  ;;  %v10704_v39 = vadd.f32 %v10565_v56, %v3877_v18  ;;  %vm6110_vm14 = vweird.f32 %v17542_v15  ;;  %v17562_v27 = vld [vmem:[#allocation53_spill] sm:$0xff] }
 0x26d   :  { %vm2313_vm3 = vcmp.lt.s32.totalorder %v17561_v25, 0  ;;  %v6195_v58 = vshll.u32 %v10474_v4, %v10624_v31  ;;  %v6201_v26 = vor.u32 4788187, %v6200_v5  ;;  %v10711_v11 = vsub.s32 %v10619_v43, %v5216_v2 }
 0x26e   :  { %17560 = vst [vmem:[#allocation46_spill] sm:$0xff] %v10704_v39  ;;  %v2473_v23 = vadd.s32 1, %v10669_v42  ;;  %v532_v17 = vxor.u32 2147483648, %v8562_v60  ;;  %v535_v33 = vxor.u32 2147483648, %v10645_v35  ;;  %vm4219_vm2 = vcmp.lt.s32.totalorder %v17562_v27, 0 }
 0x26f   :  { %vm2472_vm10 = vc.u32 %v10674_v1, %v10668_v52  ;;  %v5477_v16 = vsel %vm5476_vm4, %v5475_v59, 0  ;;  %v2394_v32 = vmul.f32 %v2393_v8, %v2391_v22  ;;  %v4289_v12 = vsub.s32 32, %v10684_v54 }
 0x270   :  { %v6197_v18 = vor.u32 %v6196_v6, %v6195_v58  ;;  %v2454_v4 = vsel %vm2448_vm15, %v2451_v45, %v2453_v21  ;;  %v6120_v43 = vsel %vm6113_vm12, %v6116_v28, %v6119_v48  ;;  %v4273_v31 = vadd.s32 %v10347_v19, %v10353_v37  ;;  %v10726_v62 = vpop.eup %8563 }
 0x271   :  { %v4294_v5 = vadd.s32 127, %v4293_v41  ;;  %v4324_v2 = vand.u32 2139095040, %v10704_v39  ;;  %17563 = vst [vmem:[#allocation75_spill] sm:$0xff] %v10726_v62  ;;  %v6202_v44 = vand.u32 2147483647, %v6201_v26  ;;  %v5219_v59 = vsub.s32 0, %v10711_v11 }
 0x272   :  { %v2474_v22 = vsel %vm2472_vm10, %v2473_v23, %v10669_v42  ;;  %v5479_v8 = vand.u32 31, %v5477_v16  ;;  %v536_v40 = vsel %vm534_vm13, %v535_v33, %v8562_v60  ;;  %v2397_v63 = vsub.s32 4, %v10355_v47  ;;  %v5752_v60 = vpop.permute.xlu0 %5751 }
 0x273   :  { %v4303_v28 = vsub.s32 4, %v10487_v14  ;;  %v2470_v19 = vmul.u32 %v10659_v50, %v2454_v4  ;;  %v533_v37 = vsel %vm531_vm7, %v10645_v35, %v532_v17  ;;  %v2395_v48 = vxor.u32 2147483648, %v2394_v32 }
 0x274   :  { %v4291_v6 = vshrl.u32 %v4273_v31, %v4289_v12  ;;  %v6204_v41 = vcvt.s32.f32 %v6197_v18  ;;  %vm530_vm15 = vcmp.lt.s32.totalorder %v10661_v20, 2  ;;  %v4295_v42 = vshll.u32 %v4294_v5, 23  ;;  %v10741_v58 = vpop.eup %8565  ;;  %v17567_v12 = vld [vmem:[#allocation64_spill] sm:$0xff] }
 0x275   :  { %v10739_v45 = vadd.s32 %v2474_v22, %v2470_v19  ;;  %v4325_v21 = vshrl.u32 %v4324_v2, 23  ;;  %17564 = vst [vmem:[#allocation76_spill] sm:$0xff] %v10741_v58  ;;  %v4290_v26 = vshll.u32 %v10540_v53, %v10684_v54  ;;  %v7987_v23 = vmin.u32 %v5219_v59, %v10711_v11 }
 0x276   :  { %v6205_v50 = vmul.f32 %v6204_v41, %v6202_v44  ;;  %v10746_v33 = vsub.s32 32, %v5479_v8  ;;  %v10750_v35 = vsel %vm6110_vm14, nan, %v6120_v43  ;;  %v10752_v20 = vsel %vm530_vm15, %v533_v37, %v536_v40 }
 0x277   :  { %17565 = vst [vmem:[#allocation77_spill] sm:$0xff] %v10750_v35  ;;  %v10757_v17 = vsel %vm2313_vm3, %v2397_v63, %v10355_v47  ;;  %vm6124_vm13 = vcmp.lt.s32.totalorder %v17567_v12, 0  ;;  %v2396_v53 = vsel %vm2313_vm3, %v2395_v48, %v2394_v32  ;;  %v4292_v54 = vor.u32 %v4291_v6, %v4290_v26 }
 0x278   :  { %17566 = vst [vmem:[#allocation78_spill] sm:$0xff] %v10757_v17  ;;  %v10765_v18 = vsel %vm4219_vm2, %v4303_v28, %v10487_v14  ;;  %v5787_v15 = vmul.f32 %v10681_v57, %v5752_v60  ;;  %v4296_v4 = vor.u32 4788187, %v4295_v42  ;;  %v2476_v43 = vadd.s32 536870912, %v10739_v45 }
 0x279   :  { %17568 = vst [vmem:[#allocation64_spill] sm:$0xff] %v10765_v18  ;;  %v17112_v31 = vand.u32 2147483647, %v10568_v9  ;;  %v7954_v47 = vadd.s32 4294967169, %v4325_v21  ;;  %v17569_v5 = vand.u32 2147483647, %v17561_v25  ;;  %v5221_v44 = vclz %v7987_v23 }
 0x27a   :  { %v17570_v2 = vmov 0  ;;  %v6206_v32 = vxor.u32 2147483648, %v6205_v50  ;;  %v5491_v59 = vshll.u32 %v17510_v30, %v5479_v8  ;;  %v5492_v14 = vshrl.u32 %v17472_v10, %v10746_v33 }
 0x27b   :  { %vm10772_vm12 = vcmp.le.f32.partialorder %v17569_v5, 0.7853982  ;;  %v17573_v22 = vand.u32 2147483647, %v17567_v12  ;;  %v10785_v63 = vshrl.u32 %v5477_v16, 5  ;;  %v5494_v28 = vshll.u32 %v17472_v10, %v5479_v8 }
 0x27c   :  { %v17571_v2 = vsel %vm10772_vm12, 4294967295, %v17570_v2  ;;  %v5495_v19 = vshrl.u32 %v17473_v55, %v10746_v33  ;;  %v4331_v37 = vadd.s32 1, %v7954_v47  ;;  %v5482_v48 = vshll.u32 %v17463_v61, %v5479_v8 }
 0x27d   :  { %17572 = vst [vmem:[#allocation79_spill] sm:$0xff] %v17571_v2  ;;  %vm10781_vm1 = vcmp.le.f32.partialorder %v17573_v22, 0.7853982  ;;  %v5483_v6 = vshrl.u32 %v17511_v34, %v10746_v33  ;;  %v5485_v41 = vshll.u32 %v17511_v34, %v5479_v8  ;;  %v5486_v42 = vshrl.u32 %v17475_v29, %v10746_v33 }
 0x27e   :  { %v10796_v21 = vshrl.u32 %v2476_v43, 30  ;;  %v5488_v16 = vshll.u32 %v17475_v29, %v5479_v8  ;;  %v5489_v60 = vshrl.u32 %v17510_v30, %v10746_v33  ;;  %vm4332_vm7 = vcmp.gt.s32.totalorder %v4331_v37, 0 }
 0x27f   :  { %vm527_vm4 = vweird.f32 %v17548_v36  ;;  %v4299_v26 = vcvt.s32.f32 %v4292_v54  ;;  %v6208_v23 = vsub.s32 4, %v10441_v46  ;;  %v5493_v47 = vor.u32 %v5492_v14, %v5491_v59 }
 0x280   :  { %v10804_v5 = vadd.f32 %v10565_v56, %v5787_v15  ;;  %v5472_v22 = vand.u32 8388607, %v17112_v31  ;;  %v5496_v43 = vor.u32 %v5495_v19, %v5494_v28  ;;  %vm5500_vm14 = vcmp.lt.s32.totalorder %v10785_v63, 4 }
 0x281   :  { %v4333_v8 = vsel %vm4332_vm7, %v4331_v37, 0  ;;  %v4297_v62 = vand.u32 2147483647, %v4296_v4  ;;  %v6207_v58 = vsel %vm6124_vm13, %v6206_v32, %v6205_v50  ;;  %v7988_v18 = vadd.s32 4294967294, %v5221_v44 }
 0x282   :  { %17576 = vst [vmem:[#allocation80_spill] sm:$0xff] %v10804_v5  ;;  %v10811_v17 = vor.u32 %v5483_v6, %v5482_v48  ;;  %v2478_v54 = vshll.u32 %v10796_v21, 30  ;;  %v5487_v59 = vor.u32 %v5486_v42, %v5485_v41  ;;  %v5490_v14 = vor.u32 %v5489_v60, %v5488_v16 }
 0x283   :  { %vm5497_vm3 = vcmp.lt.s32.totalorder %v10785_v63, 1  ;;  %vm5499_vm10 = vcmp.lt.s32.totalorder %v10785_v63, 3  ;;  %v5506_v15 = vsel %vm5500_vm14, %v5493_v47, 920167782  ;;  %v4335_v28 = vand.u32 31, %v4333_v8 }
 0x284   :  { %v6749_v4 = vand.u32 2139095040, %v10804_v5  ;;  %v10822_v50 = vsel %vm10772_vm12, %v17561_v25, %v2396_v53  ;;  %v10827_v32 = vsel %vm6124_vm13, %v6208_v23, %v10441_v46  ;;  %v5473_v44 = vor.u32 8388608, %v5472_v22 }
 0x285   :  { %v5510_v19 = vsel %vm5500_vm14, %v5496_v43, 1326507024  ;;  %v10831_v37 = vmul.f32 %v4299_v26, %v4297_v62  ;;  %v10836_v48 = vsel %vm10781_vm1, %v17567_v12, %v6207_v58  ;;  %vm7989_vm15 = vcmp.lt.s32.totalorder %v7988_v18, 0 }
 0x286   :  { %v17111_v53 = vand.u32 2147483647, %v10704_v39  ;;  %v10840_v6 = vsub.s32 %v10739_v45, %v2478_v54  ;;  %vm5498_vm13 = vcmp.lt.s32.totalorder %v10785_v63, 2  ;;  %v5505_v46 = vsel %vm5497_vm3, %v10811_v17, %v5487_v59  ;;  %v5768_v45 = vpop.permute.xlu0 %5767 }
 0x287   :  { %v5507_v62 = vsel %vm5499_vm10, %v5490_v14, %v5506_v15  ;;  %v5509_v41 = vsel %vm5497_vm3, %v5487_v59, %v5490_v14  ;;  %v5511_v58 = vsel %vm5499_vm10, %v5493_v47, %v5510_v19  ;;  %v10852_v42 = vsub.s32 32, %v4335_v28 }
 0x288   :  { %v6750_v16 = vshrl.u32 %v6749_v4, 23  ;;  %v10857_v60 = vsel %vm527_vm4, nan, %v10752_v20  ;;  %8567 = vcosq.f32 %v10822_v50  ;;  %v6211_v26 = vsel %vm10781_vm1, 0, %v10827_v32 }
 0x289   :  { %17577 = vst [vmem:[#allocation81_spill] sm:$0xff] %v10857_v60  ;;  %v10863_v23 = vshll.u32 %v5473_v44, 8  ;;  %8569 = vcosq.f32 %v10836_v48  ;;  %v5209_v47 = vadd.s32 %v10519_v0, %v10527_v49  ;;  %v5508_v36 = vsel %vm5498_vm13, %v5505_v46, %v5507_v62 }
 0x28a   :  { %v10872_v20 = vsel %vm7989_vm15, 0, %v7988_v18  ;;  %v5512_v43 = vsel %vm5498_vm13, %v5509_v41, %v5511_v58  ;;  %v10878_v40 = vand.u32 8388607, %v17111_v53  ;;  %v10881_v54 = vmul.f32 %v10681_v57, %v5768_v45 }
 0x28b   :  { %v2481_v15 = vsub.s32 0, %v10840_v6  ;;  %v5481_v0 = vshrl.u32 %v17463_v61, %v10746_v33  ;;  %v4348_v49 = vshrl.u32 %v17472_v10, %v10852_v42  ;;  %v8046_v18 = vadd.s32 4294967169, %v6750_v16 }
 0x28c   :  { %v5502_v4 = vsel %vm5500_vm14, %v5490_v14, 2102212464  ;;  %v10891_v32 = vmul.u32.u64.low %v10863_v23, %v5508_v36  ;;  %v10892_v44 = vmul.u32.u64.high %v10863_v23, %v5508_v36, %v10891_v32  ;;  %v4351_v19 = vshrl.u32 %v17473_v55, %v10852_v42 }
 0x28d   :  { %v10898_v46 = vmul.u32.u64.low %v10863_v23, %v5512_v43  ;;  %v10899_v62 = vmul.u32.u64.high %v10863_v23, %v5512_v43, %v10898_v46  ;;  %v10901_v33 = vshrl.u32 %v4333_v8, 5  ;;  %v4347_v41 = vshll.u32 %v17510_v30, %v4335_v28 }
 0x28e   :  { %v4339_v58 = vshrl.u32 %v17511_v34, %v10852_v42  ;;  %v4342_v14 = vshrl.u32 %v17475_v29, %v10852_v42  ;;  %v4345_v16 = vshrl.u32 %v17510_v30, %v10852_v42  ;;  %v4350_v45 = vshll.u32 %v17472_v10, %v4335_v28 }
 0x28f   :  { %v5225_v36 = vsub.s32 32, %v10872_v20  ;;  %v5229_v43 = vsub.s32 4294967266, %v10872_v20  ;;  %v4349_v46 = vor.u32 %v4348_v49, %v4347_v41  ;;  %v6756_v8 = vadd.s32 1, %v8046_v18 }
 0x290   :  { %v4338_v53 = vshll.u32 %v17463_v61, %v4335_v28  ;;  %v4341_v31 = vshll.u32 %v17511_v34, %v4335_v28  ;;  %v4344_v22 = vshll.u32 %v17475_v29, %v4335_v28  ;;  %v4352_v25 = vor.u32 %v4351_v19, %v4350_v45 }
 0x291   :  { %v7881_v2 = vmin.u32 %v2481_v15, %v10840_v6  ;;  %v5501_v38 = vsel %vm5497_vm3, %v5481_v0, %v10811_v17  ;;  %v5503_v24 = vsel %vm5499_vm10, %v5487_v59, %v5502_v4  ;;  %vm6757_vm1 = vcmp.gt.s32.totalorder %v6756_v8, 0 }
 0x292   :  { %v17578_v49 = vand.u32 2147483647, %v17562_v27  ;;  %v17579_v18 = vmov 0  ;;  %v10928_v41 = vor.u32 %v4339_v58, %v4338_v53  ;;  %v10930_v28 = vor.u32 %v4342_v14, %v4341_v31 }
 0x293   :  { %v4346_v19 = vor.u32 %v4345_v16, %v4344_v22  ;;  %vm4356_vm4 = vcmp.lt.s32.totalorder %v10901_v33, 4  ;;  %v5226_v17 = vshll.u32 %v10711_v11, %v10872_v20  ;;  %v5227_v15 = vshrl.u32 %v5209_v47, %v5225_v36 }
 0x294   :  { %vm10924_vm7 = vcmp.le.f32.partialorder %v17578_v49, 0.7853982  ;;  %v4362_v59 = vsel %vm4356_vm4, %v4349_v46, 920167782  ;;  %v6758_v0 = vsel %vm6757_vm1, %v6756_v8, 0  ;;  %v5230_v4 = vadd.s32 127, %v5229_v43 }
 0x295   :  { %v17580_v18 = vsel %vm10924_vm7, 4294967295, %v17579_v18  ;;  %v5504_v45 = vsel %vm5498_vm13, %v5501_v38, %v5503_v24  ;;  %v5523_v53 = vadd.s32 1, %v10892_v44  ;;  %v4366_v31 = vsel %vm4356_vm4, %v4352_v25, 1326507024  ;;  %v10942_v22 = vpop.eup %8567 }
 0x296   :  { %17581 = vst [vmem:[#allocation82_spill] sm:$0xff] %v17580_v18  ;;  %17582 = vst [vmem:[#allocation83_spill] sm:$0xff] %v10942_v22  ;;  %v2483_v58 = vclz %v7881_v2  ;;  %vm5522_vm14 = vc.u32 %v10899_v62, %v10891_v32  ;;  %vm4353_vm3 = vcmp.lt.s32.totalorder %v10901_v33, 1  ;;  %vm4355_vm10 = vcmp.lt.s32.totalorder %v10901_v33, 3  ;;  %v10948_v11 = vpop.eup %8569 }
 0x297   :  { %v4329_v63 = vor.u32 8388608, %v10878_v40  ;;  %v4361_v38 = vsel %vm4353_vm3, %v10928_v41, %v10930_v28  ;;  %v4363_v24 = vsel %vm4355_vm10, %v4346_v19, %v4362_v59  ;;  %v6760_v25 = vand.u32 31, %v6758_v0 }
 0x298   :  { %v6215_v2 = vadd.s32 3, %v6211_v26  ;;  %v5520_v47 = vmul.u32 %v10863_v23, %v5504_v45  ;;  %v4365_v20 = vsel %vm4353_vm3, %v10930_v28, %v4346_v19  ;;  %v4367_v14 = vsel %vm4355_vm10, %v4349_v46, %v4366_v31 }
 0x299   :  { %v17583_v40 = vxor.u32 2147483648, %v10831_v37  ;;  %v5231_v36 = vshll.u32 %v5230_v4, 23  ;;  %v5524_v43 = vsel %vm5522_vm14, %v5523_v53, %v10892_v44  ;;  %vm4354_vm15 = vcmp.lt.s32.totalorder %v10901_v33, 2 }
 0x29a   :  { %8571 = vsinq.f32 %v10822_v50  ;;  %v10971_v26 = vor.u32 %v5227_v15, %v5226_v17  ;;  %v7882_v23 = vadd.s32 4294967294, %v2483_v58  ;;  %v4364_v8 = vsel %vm4354_vm15, %v4361_v38, %v4363_v24 }
 0x29b   :  { %v4302_v16 = vsel %vm4219_vm2, %v17583_v40, %v10831_v37  ;;  %v4368_v46 = vsel %vm4354_vm15, %v4365_v20, %v4367_v14  ;;  %v10977_v49 = vshll.u32 %v4329_v63, 8  ;;  %v10979_v59 = vsub.s32 32, %v6760_v25 }
 0x29c   :  { %v10983_v37 = vadd.f32 %v10565_v56, %v10881_v54  ;;  %v10988_v50 = vsel %vm10924_vm7, %v17562_v27, %v4302_v16  ;;  %8573 = vsinq.f32 %v10836_v48  ;;  %v10991_v44 = vand.u32 3, %v6215_v2 }
 0x29d   :  { %v10993_v17 = vadd.s32 %v5524_v43, %v5520_v47  ;;  %v10996_v4 = vor.u32 4788187, %v5231_v36  ;;  %v10999_v45 = vmul.u32.u64.low %v10977_v49, %v4364_v8  ;;  %v11000_v53 = vmul.u32.u64.high %v10977_v49, %v4364_v8, %v10999_v45 }
 0x29e   :  { %17584 = vst [vmem:[#allocation84_spill] sm:$0xff] %v10983_v37  ;;  %v11005_v31 = vmul.u32.u64.low %v10977_v49, %v4368_v46  ;;  %v11006_v58 = vmul.u32.u64.high %v10977_v49, %v4368_v46, %v11005_v31  ;;  %vm7883_vm2 = vcmp.lt.s32.totalorder %v7882_v23, 0  ;;  %v6772_v63 = vshll.u32 %v17510_v30, %v6760_v25 }
 0x29f   :  { %v6773_v38 = vshrl.u32 %v17472_v10, %v10979_v59  ;;  %v7165_v24 = vand.u32 2139095040, %v10983_v37  ;;  %v5526_v2 = vadd.s32 536870912, %v10993_v17  ;;  %v11014_v47 = vshrl.u32 %v6758_v0, 5 }
 0x2a0   :  { %v6775_v20 = vshll.u32 %v17472_v10, %v6760_v25  ;;  %v6776_v14 = vshrl.u32 %v17473_v55, %v10979_v59  ;;  %v5233_v40 = vand.u32 2147483647, %v10996_v4  ;;  %v4358_v16 = vsel %vm4356_vm4, %v4346_v19, 2102212464 }
 0x2a1   :  { %v6763_v36 = vshll.u32 %v17463_v61, %v6760_v25  ;;  %v6766_v43 = vshll.u32 %v17511_v34, %v6760_v25  ;;  %v6764_v8 = vshrl.u32 %v17511_v34, %v10979_v59  ;;  %v6767_v0 = vshrl.u32 %v17475_v29, %v10979_v59 }
 0x2a2   :  { %v6769_v46 = vshll.u32 %v17475_v29, %v6760_v25  ;;  %v6770_v31 = vshrl.u32 %v17510_v30, %v10979_v59  ;;  %v11032_v4 = vsel %vm7883_vm2, 0, %v7882_v23  ;;  %v4337_v19 = vshrl.u32 %v17463_v61, %v10852_v42 }
 0x2a3   :  { %v6774_v15 = vor.u32 %v6773_v38, %v6772_v63  ;;  %v7166_v54 = vshrl.u32 %v7165_v24, 23  ;;  %v11036_v48 = vshrl.u32 %v5526_v2, 30  ;;  %v17585_v27 = vand.u32 2147483647, %v10804_v5  ;;  %v1925_v38 = vpop.permute.xlu1 %1924 }
 0x2a4   :  { %v6777_v22 = vor.u32 %v6776_v14, %v6775_v20  ;;  %vm6781_vm13 = vcmp.lt.s32.totalorder %v11014_v47, 4  ;;  %v4357_v25 = vsel %vm4353_vm3, %v4337_v19, %v10928_v41  ;;  %v4359_v23 = vsel %vm4355_vm10, %v10930_v28, %v4358_v16 }
 0x2a5   :  { %v6753_v18 = vand.u32 8388607, %v17585_v27  ;;  %v4379_v42 = vadd.s32 1, %v11000_v53  ;;  %v8062_v63 = vadd.s32 4294967169, %v7166_v54  ;;  %vm4378_vm1 = vc.u32 %v11006_v58, %v10999_v45 }
 0x2a6   :  { %v6765_v24 = vor.u32 %v6764_v8, %v6763_v36  ;;  %v6768_v27 = vor.u32 %v6767_v0, %v6766_v43  ;;  %v6771_v2 = vor.u32 %v6770_v31, %v6769_v46  ;;  %vm6778_vm4 = vcmp.lt.s32.totalorder %v11014_v47, 1 }
 0x2a7   :  { %v11050_v20 = vpop.eup %8571  ;;  %vm6780_vm14 = vcmp.lt.s32.totalorder %v11014_v47, 3  ;;  %v6787_v41 = vsel %vm6781_vm13, %v6774_v15, 920167782  ;;  %v7172_v28 = vadd.s32 1, %v8062_v63  ;;  %v4360_v54 = vsel %vm4354_vm15, %v4357_v25, %v4359_v23 }
 0x2a8   :  { %17586 = vst [vmem:[#allocation85_spill] sm:$0xff] %v11050_v20  ;;  %v6754_v14 = vor.u32 8388608, %v6753_v18  ;;  %v6791_v16 = vsel %vm6781_vm13, %v6777_v22, 1326507024  ;;  %v1972_v36 = vmul.f32 %v10681_v57, %v1925_v38  ;;  %vm6218_vm3 = vcmp.eq.s32.totalorder %v10991_v44, 0 }
 0x2a9   :  { %v8574_v43 = vpop.eup %8573  ;;  %v2491_v8 = vsub.s32 4294967266, %v11032_v4  ;;  %v5528_v0 = vshll.u32 %v11036_v48, 30  ;;  %v4380_v46 = vsel %vm4378_vm1, %v4379_v42, %v11000_v53  ;;  %vm7173_vm10 = vcmp.gt.s32.totalorder %v7172_v28, 0 }
 0x2aa   :  { %vm6779_vm15 = vcmp.lt.s32.totalorder %v11014_v47, 2  ;;  %v6786_v33 = vsel %vm6778_vm4, %v6765_v24, %v6768_v27  ;;  %v6788_v18 = vsel %vm6780_vm14, %v6771_v2, %v6787_v41  ;;  %v7174_v22 = vsel %vm7173_vm10, %v7172_v28, 0 }
 0x2ab   :  { %v4376_v31 = vmul.u32 %v10977_v49, %v4360_v54  ;;  %v6790_v19 = vsel %vm6778_vm4, %v6768_v27, %v6771_v2  ;;  %v6792_v25 = vsel %vm6780_vm14, %v6774_v15, %v6791_v16  ;;  %v7176_v23 = vand.u32 31, %v7174_v22 }
 0x2ac   :  { %8575 = vcosq.f32 %v10988_v50  ;;  %vm6221_vm2 = vcmp.eq.s32.totalorder %v10991_v44, 2  ;;  %v11080_v53 = vshll.u32 %v6754_v14, 8  ;;  %v11083_v42 = vadd.f32 %v10565_v56, %v1972_v36 }
 0x2ad   :  { %8577 = vsinq.f32 %v10988_v50  ;;  %v2471_v49 = vadd.s32 %v10668_v52, %v10674_v1  ;;  %v11088_v63 = vadd.s32 %v4380_v46, %v4376_v31  ;;  %v6789_v15 = vsel %vm6779_vm15, %v6786_v33, %v6788_v18 }
 0x2ae   :  { %17587 = vst [vmem:[#allocation86_spill] sm:$0xff] %v11083_v42  ;;  %v6219_v38 = vxor.u32 2147483648, %v8574_v43  ;;  %v17588_v41 = vcvt.s32.f32 %v10971_v26  ;;  %v2487_v54 = vsub.s32 32, %v11032_v4  ;;  %v6793_v14 = vsel %vm6779_vm15, %v6790_v19, %v6792_v25 }
 0x2af   :  { %v17589_v50 = vxor.u32 2147483648, %v10948_v11  ;;  %v2492_v52 = vadd.s32 127, %v2491_v8  ;;  %v11104_v1 = vsub.s32 %v10993_v17, %v5528_v0  ;;  %v11106_v36 = vsub.s32 32, %v7176_v23 }
 0x2b0   :  { %v11094_v28 = vmul.f32 %v17588_v41, %v5233_v40  ;;  %v6762_v26 = vshrl.u32 %v17463_v61, %v10979_v59  ;;  %v11111_v40 = vmul.u32.u64.low %v11080_v53, %v6789_v15  ;;  %v11112_v46 = vmul.u32.u64.high %v11080_v53, %v6789_v15, %v11111_v40 }
 0x2b1   :  { %v11101_v16 = vsel %vm6221_vm2, %v17589_v50, %v8574_v43  ;;  %v2522_v33 = vand.u32 2139095040, %v11083_v42  ;;  %v4382_v18 = vadd.s32 536870912, %v11088_v63  ;;  %v6783_v43 = vsel %vm6781_vm13, %v6771_v2, 2102212464 }
 0x2b2   :  { %v11120_v17 = vmul.u32.u64.low %v11080_v53, %v6793_v14  ;;  %v11121_v8 = vmul.u32.u64.high %v11080_v53, %v6793_v14, %v11120_v17  ;;  %v6220_v59 = vsel %vm6218_vm3, %v10948_v11, %v6219_v38  ;;  %vm5155_vm1 = vcmp.lt.s32.totalorder %v10343_v3, 0 }
 0x2b3   :  { %v5237_v0 = vxor.u32 2147483648, %v11094_v28  ;;  %v2488_v31 = vshll.u32 %v10840_v6, %v11032_v4  ;;  %v2489_v19 = vshrl.u32 %v2471_v49, %v2487_v54  ;;  %v2493_v25 = vshll.u32 %v2492_v52, 23 }
 0x2b4   :  { %v7188_v2 = vshll.u32 %v17510_v30, %v7176_v23  ;;  %v7189_v41 = vshrl.u32 %v17472_v10, %v11106_v36  ;;  %vm6217_vm13 = vcmp.lt.s32.totalorder %v10991_v44, 2  ;;  %v6782_v11 = vsel %vm6778_vm4, %v6762_v26, %v6765_v24 }
 0x2b5   :  { %v6784_v38 = vsel %vm6780_vm14, %v6768_v27, %v6783_v43  ;;  %v11139_v14 = vshrl.u32 %v7174_v22, 5  ;;  %v2523_v6 = vshrl.u32 %v2522_v33, 23  ;;  %v5531_v4 = vsub.s32 0, %v11104_v1 }
 0x2b6   :  { %v11142_v49 = vshrl.u32 %v4382_v18, 30  ;;  %v7179_v54 = vshll.u32 %v17463_v61, %v7176_v23  ;;  %v7182_v50 = vshll.u32 %v17511_v34, %v7176_v23  ;;  %v17591_v52 = vand.u32 2147483647, %v10343_v3 }
 0x2b7   :  { %v17592_v17 = vmov 0  ;;  %v7180_v24 = vshrl.u32 %v17511_v34, %v11106_v36  ;;  %v7183_v27 = vshrl.u32 %v17475_v29, %v11106_v36  ;;  %v7185_v22 = vshll.u32 %v17475_v29, %v7176_v23 }
 0x2b8   :  { %17590 = vst [vmem:[#allocation87_spill] sm:$0xff] %v11142_v49  ;;  %vm11148_vm3 = vcmp.le.f32.partialorder %v17591_v52, 0.7853982  ;;  %v7186_v26 = vshrl.u32 %v17510_v30, %v11106_v36  ;;  %v6785_v33 = vsel %vm6779_vm15, %v6782_v11, %v6784_v38  ;;  %v7190_v18 = vor.u32 %v7189_v41, %v7188_v2 }
 0x2b9   :  { %v17593_v17 = vsel %vm11148_vm3, 4294967295, %v17592_v17  ;;  %v7191_v43 = vshll.u32 %v17472_v10, %v7176_v23  ;;  %v7192_v52 = vshrl.u32 %v17473_v55, %v11106_v36  ;;  %v6804_v15 = vadd.s32 1, %v11112_v46  ;;  %v11169_v5 = vpop.eup %8575 }
 0x2ba   :  { %17594 = vst [vmem:[#allocation88_spill] sm:$0xff] %v17593_v17  ;;  %v17595_v20 = vand.u32 2147483647, %v10983_v37  ;;  %vm7197_vm14 = vcmp.lt.s32.totalorder %v11139_v14, 4  ;;  %v7884_v60 = vadd.s32 4294967169, %v2523_v6  ;;  %17596 = vst [vmem:[#allocation89_spill] sm:$0xff] %v11169_v5  ;;  %v7999_v2 = vmin.u32 %v5531_v4, %v11104_v1  ;;  %v11175_v41 = vpop.eup %8577 }
 0x2bb   :  { %v2494_v47 = vor.u32 4788187, %v2493_v25  ;;  %v4384_v23 = vshll.u32 %v11142_v49, 30  ;;  %vm6803_vm10 = vc.u32 %v11121_v8, %v11111_v40  ;;  %17597 = vst [vmem:[#allocation90_spill] sm:$0xff] %v11175_v41  ;;  %v6801_v11 = vmul.u32 %v11080_v53, %v6785_v33 }
 0x2bc   :  { %v7169_v7 = vand.u32 8388607, %v17595_v20  ;;  %v11178_v38 = vor.u32 %v7180_v24, %v7179_v54  ;;  %v11180_v20 = vor.u32 %v7183_v27, %v7182_v50  ;;  %v7187_v37 = vor.u32 %v7186_v26, %v7185_v22 }
 0x2bd   :  { %v7193_v6 = vor.u32 %v7192_v52, %v7191_v43  ;;  %vm7194_vm15 = vcmp.lt.s32.totalorder %v11139_v14, 1  ;;  %vm7196_vm2 = vcmp.lt.s32.totalorder %v11139_v14, 3  ;;  %v7203_v25 = vsel %vm7197_vm14, %v7190_v18, 920167782 }
 0x2be   :  { %v2490_v4 = vor.u32 %v2489_v19, %v2488_v31  ;;  %v6805_v5 = vsel %vm6803_vm10, %v6804_v15, %v11112_v46  ;;  %v7170_v49 = vor.u32 8388608, %v7169_v7  ;;  %v2529_v41 = vadd.s32 1, %v7884_v60  ;;  %v110_v15 = vpop.permute.xlu0 %109 }
 0x2bf   :  { %v6224_v53 = vsel %vm6217_vm13, %v6220_v59, %v11101_v16  ;;  %v5238_v54 = vsel %vm5155_vm1, %v5237_v0, %v11094_v28  ;;  %v2495_v50 = vand.u32 2147483647, %v2494_v47  ;;  %v17131_v24 = vand.u32 2147483647, %v11083_v42 }
 0x2c0   :  { %vm7195_vm4 = vcmp.lt.s32.totalorder %v11139_v14, 2  ;;  %v7202_v46 = vsel %vm7194_vm15, %v11178_v38, %v11180_v20  ;;  %v7204_v7 = vsel %vm7196_vm2, %v7187_v37, %v7203_v25  ;;  %vm2530_vm10 = vcmp.gt.s32.totalorder %v2529_v41, 0 }
 0x2c1   :  { %v5533_v60 = vclz %v7999_v2  ;;  %v11202_v44 = vsub.s32 %v11088_v63, %v4384_v23  ;;  %v11204_v16 = vadd.s32 %v6805_v5, %v6801_v11  ;;  %v7207_v28 = vsel %vm7197_vm14, %v7193_v6, 1326507024 }
 0x2c2   :  { %v2497_v0 = vcvt.s32.f32 %v2490_v4  ;;  %v11209_v31 = vshll.u32 %v7170_v49, 8  ;;  %v2531_v19 = vsel %vm2530_vm10, %v2529_v41, 0  ;;  %vm17598_vm13 = vweird.f32 %v17567_v12 }
 0x2c3   :  { %v11213_v27 = vsel %vm17598_vm13, nan, %v6224_v53  ;;  %v11218_v63 = vsel %vm11148_vm3, %v10343_v3, %v5238_v54  ;;  %v7205_v5 = vsel %vm7195_vm4, %v7202_v46, %v7204_v7  ;;  %v2526_v22 = vand.u32 8388607, %v17131_v24 }
 0x2c4   :  { %17599 = vst [vmem:[#allocation91_spill] sm:$0xff] %v11213_v27  ;;  %v11224_v26 = vmul.f32 %v2497_v0, %v2495_v50  ;;  %v7206_v49 = vsel %vm7194_vm15, %v11180_v20, %v7187_v37  ;;  %v7208_v12 = vsel %vm7196_vm2, %v7190_v18, %v7207_v28  ;;  %v2533_v33 = vand.u32 31, %v2531_v19 }
 0x2c5   :  { %v11231_v43 = vadd.s32 4294967294, %v5533_v60  ;;  %v4387_v52 = vsub.s32 0, %v11202_v44  ;;  %v6807_v47 = vadd.s32 536870912, %v11204_v16  ;;  %v191_v2 = vmul.f32 %v10681_v57, %v110_v15 }
 0x2c6   :  { %v7178_v23 = vshrl.u32 %v17463_v61, %v11106_v36  ;;  %v11239_v41 = vmul.u32.u64.low %v11209_v31, %v7205_v5  ;;  %v11240_v11 = vmul.u32.u64.high %v11209_v31, %v7205_v5, %v11239_v41  ;;  %v2534_v6 = vsub.s32 32, %v2533_v33 }
 0x2c7   :  { %v7199_v18 = vsel %vm7197_vm14, %v7187_v37, 2102212464  ;;  %v7209_v25 = vsel %vm7195_vm4, %v7206_v49, %v7208_v12  ;;  %v2527_v4 = vor.u32 8388608, %v2526_v22  ;;  %v2532_v53 = vshrl.u32 %v2531_v19, 5 }
 0x2c8   :  { %v2536_v54 = vshll.u32 %v17463_v61, %v2533_v33  ;;  %v2537_v50 = vshrl.u32 %v17511_v34, %v2534_v6  ;;  %v2539_v36 = vshll.u32 %v17511_v34, %v2533_v33  ;;  %v2540_v46 = vshrl.u32 %v17475_v29, %v2534_v6 }
 0x2c9   :  { %v2542_v7 = vshll.u32 %v17475_v29, %v2533_v33  ;;  %v2543_v60 = vshrl.u32 %v17510_v30, %v2534_v6  ;;  %v2545_v28 = vshll.u32 %v17510_v30, %v2533_v33  ;;  %v2546_v37 = vshrl.u32 %v17472_v10, %v2534_v6 }
 0x2ca   :  { %v11255_v0 = vshrl.u32 %v6807_v47, 30  ;;  %v2538_v15 = vor.u32 %v2537_v50, %v2536_v54  ;;  %v2541_v19 = vor.u32 %v2540_v46, %v2539_v36  ;;  %v11258_v5 = vadd.f32 %v10565_v56, %v191_v2 }
 0x2cb   :  { %v2544_v22 = vor.u32 %v2543_v60, %v2542_v7  ;;  %v2547_v49 = vor.u32 %v2546_v37, %v2545_v28  ;;  %v2548_v12 = vshll.u32 %v17472_v10, %v2533_v33  ;;  %v2549_v24 = vshrl.u32 %v17473_v55, %v2534_v6 }
 0x2cc   :  { %17600 = vst [vmem:[#allocation92_spill] sm:$0xff] %v11258_v5  ;;  %v7198_v59 = vsel %vm7194_vm15, %v7178_v23, %v11178_v38  ;;  %v7200_v47 = vsel %vm7196_vm2, %v11180_v20, %v7199_v18  ;;  %v11269_v54 = vmul.u32.u64.low %v11209_v31, %v7209_v25  ;;  %v11270_v50 = vmul.u32.u64.high %v11209_v31, %v7209_v25, %v11269_v54  ;;  %v3831_v38 = vpop.permute.xlu1 %3830 }
 0x2cd   :  { %v2550_v56 = vor.u32 %v2549_v24, %v2548_v12  ;;  %vm2551_vm14 = vcmp.lt.s32.totalorder %v2532_v53, 1  ;;  %vm2554_vm10 = vcmp.lt.s32.totalorder %v2532_v53, 4  ;;  %v2567_v2 = vshll.u32 %v2527_v4, 8 }
 0x2ce   :  { %vm2553_vm13 = vcmp.lt.s32.totalorder %v2532_v53, 3  ;;  %v2559_v33 = vsel %vm2551_vm14, %v2538_v15, %v2541_v19  ;;  %v2560_v36 = vsel %vm2554_vm10, %v2547_v49, 920167782  ;;  %v230_v46 = vand.u32 2139095040, %v11258_v5 }
 0x2cf   :  { %vm2552_vm15 = vcmp.lt.s32.totalorder %v2532_v53, 2  ;;  %v2556_v23 = vsel %vm2554_vm10, %v2544_v22, 2102212464  ;;  %v2561_v20 = vsel %vm2553_vm13, %v2544_v22, %v2560_v36  ;;  %v2563_v18 = vsel %vm2551_vm14, %v2541_v19, %v2544_v22 }
 0x2d0   :  { %v6809_v24 = vshll.u32 %v11255_v0, 30  ;;  %v2535_v25 = vshrl.u32 %v17463_v61, %v2534_v6  ;;  %v2562_v4 = vsel %vm2552_vm15, %v2559_v33, %v2561_v20  ;;  %v2564_v7 = vsel %vm2554_vm10, %v2550_v56, 1326507024 }
 0x2d1   :  { %v2565_v60 = vsel %vm2553_vm13, %v2547_v49, %v2564_v7  ;;  %v11283_v28 = vmul.u32.u64.low %v2567_v2, %v2562_v4  ;;  %v11284_v37 = vmul.u32.u64.high %v2567_v2, %v2562_v4, %v11283_v28  ;;  %v3878_v12 = vmul.f32 %v10681_v57, %v3831_v38 }
 0x2d2   :  { %vm2417_vm2 = vcmp.lt.s32.totalorder %v10460_v51, 0  ;;  %v7201_v22 = vsel %vm7195_vm4, %v7198_v59, %v7200_v47  ;;  %v2555_v54 = vsel %vm2551_vm14, %v2535_v25, %v2538_v15  ;;  %v2557_v6 = vsel %vm2553_vm13, %v2541_v19, %v2556_v23  ;;  %v11307_v19 = vld [vmem:[#allocation4 + $0x1] ss:$0 sm:$0xff] }
 0x2d3   :  { %v2566_v33 = vsel %vm2552_vm15, %v2563_v18, %v2565_v60  ;;  %v7220_v56 = vadd.s32 1, %v11240_v11  ;;  %v231_v20 = vshrl.u32 %v230_v46, 23  ;;  %vm8001_vm10 = vcmp.lt.s32.totalorder %v11231_v43, 0 }
 0x2d4   :  { %v11295_v49 = vmul.u32.u64.low %v2567_v2, %v2566_v33  ;;  %v11296_v36 = vmul.u32.u64.high %v2567_v2, %v2566_v33, %v11295_v49  ;;  %v7955_v57 = vmin.u32 %v4387_v52, %v11202_v44  ;;  %v11301_v38 = vsub.s32 %v11204_v16, %v6809_v24 }
 0x2d5   :  { %vm7219_vm4 = vc.u32 %v11270_v50, %v11239_v41  ;;  %v2558_v14 = vsel %vm2552_vm15, %v2555_v54, %v2557_v6  ;;  %v2577_v59 = vadd.s32 1, %v11284_v37  ;;  %v7800_v15 = vadd.s32 4294967169, %v231_v20 }
 0x2d6   :  { %v11310_v47 = vadd.f32 %v11307_v19, %v3878_v12  ;;  %v17602_v16 = vsub.s32 4, %v10665_v13  ;;  %v2501_v53 = vsub.s32 4, %v10796_v21  ;;  %v7217_v23 = vmul.u32 %v11209_v31, %v7201_v22 }
 0x2d7   :  { %8579 = vcosq.f32 %v11218_v63  ;;  %v7221_v18 = vsel %vm7219_vm4, %v7220_v56, %v11240_v11  ;;  %vm2576_vm14 = vc.u32 %v11296_v36, %v11283_v28  ;;  %v237_v24 = vadd.s32 1, %v7800_v15 }
 0x2d8   :  { %17601 = vst [vmem:[#allocation93_spill] sm:$0xff] %v11310_v47  ;;  %v11319_v52 = vsel %vm5155_vm1, %v17602_v16, %v10665_v13  ;;  %v2499_v25 = vxor.u32 2147483648, %v11224_v26  ;;  %v11331_v4 = vsel %vm8001_vm10, 0, %v11231_v43  ;;  %v2574_v13 = vmul.u32 %v2567_v2, %v2558_v14 }
 0x2d9   :  { %17603 = vst [vmem:[#allocation94_spill] sm:$0xff] %v11319_v52  ;;  %v2578_v7 = vsel %vm2576_vm14, %v2577_v59, %v11284_v37  ;;  %v4389_v60 = vclz %v7955_v57  ;;  %v6812_v31 = vsub.s32 0, %v11301_v38  ;;  %vm238_vm1 = vcmp.gt.s32.totalorder %v237_v24, 0 }
 0x2da   :  { %v4428_v11 = vand.u32 2139095040, %v11310_v47  ;;  %v11336_v12 = vadd.s32 %v7221_v18, %v7217_v23  ;;  %v11338_v22 = vadd.s32 %v2578_v7, %v2574_v13  ;;  %v17132_v54 = vand.u32 2147483647, %v11258_v5 }
 0x2db   :  { %v239_v6 = vsel %vm238_vm1, %v237_v24, 0  ;;  %8581 = vsinq.f32 %v11218_v63  ;;  %v11345_v43 = vsel %vm2417_vm2, %v2501_v53, %v10796_v21  ;;  %v5521_v2 = vadd.s32 %v10891_v32, %v10899_v62 }
 0x2dc   :  { %17604 = vst [vmem:[#allocation95_spill] sm:$0xff] %v11345_v43  ;;  %v241_v37 = vand.u32 31, %v239_v6  ;;  %v11352_v33 = vsel %vm2417_vm2, %v2499_v25, %v11224_v26  ;;  %v5537_v56 = vsub.s32 32, %v11331_v4  ;;  %v5541_v49 = vsub.s32 4294967266, %v11331_v4 }
 0x2dd   :  { %v7956_v20 = vadd.s32 4294967294, %v4389_v60  ;;  %v8047_v57 = vmin.u32 %v6812_v31, %v11301_v38  ;;  %v4429_v14 = vshrl.u32 %v4428_v11, 23  ;;  %v7223_v59 = vadd.s32 536870912, %v11336_v12 }
 0x2de   :  { %v242_v21 = vsub.s32 32, %v241_v37  ;;  %v2580_v32 = vadd.s32 536870912, %v11338_v22  ;;  %v234_v62 = vand.u32 8388607, %v17132_v54  ;;  %v240_v26 = vshrl.u32 %v239_v6, 5 }
 0x2df   :  { %v244_v15 = vshll.u32 %v17463_v61, %v241_v37  ;;  %v247_v53 = vshll.u32 %v17511_v34, %v241_v37  ;;  %v250_v23 = vshll.u32 %v17475_v29, %v241_v37  ;;  %v253_v25 = vshll.u32 %v17510_v30, %v241_v37 }
 0x2e0   :  { %v245_v16 = vshrl.u32 %v17511_v34, %v242_v21  ;;  %v248_v18 = vshrl.u32 %v17475_v29, %v242_v21  ;;  %v251_v24 = vshrl.u32 %v17510_v30, %v242_v21  ;;  %v254_v13 = vshrl.u32 %v17472_v10, %v242_v21 }
 0x2e1   :  { %v5538_v7 = vshll.u32 %v11104_v1, %v11331_v4  ;;  %v5539_v60 = vshrl.u32 %v5521_v2, %v5537_v56  ;;  %v7958_v11 = vadd.s32 4294967169, %v4429_v14  ;;  %v11372_v6 = vshrl.u32 %v7223_v59, 30 }
 0x2e2   :  { %v246_v31 = vor.u32 %v245_v16, %v244_v15  ;;  %v249_v46 = vor.u32 %v248_v18, %v247_v53  ;;  %v252_v54 = vor.u32 %v251_v24, %v250_v23  ;;  %v255_v63 = vor.u32 %v254_v13, %v253_v25 }
 0x2e3   :  { %v5542_v35 = vadd.s32 127, %v5541_v49  ;;  %vm7957_vm13 = vcmp.lt.s32.totalorder %v7956_v20, 0  ;;  %v256_v27 = vshll.u32 %v17472_v10, %v241_v37  ;;  %v257_v3 = vshrl.u32 %v17473_v55, %v242_v21 }
 0x2e4   :  { %v11376_v17 = vpop.eup %8579  ;;  %v17606_v52 = vand.u32 2147483647, %v10460_v51  ;;  %v17607_v1 = vmov 0  ;;  %v6814_v4 = vclz %v8047_v57  ;;  %v11385_v2 = vshrl.u32 %v2580_v32, 30 }
 0x2e5   :  { %17605 = vst [vmem:[#allocation96_spill] sm:$0xff] %v11376_v17  ;;  %v235_v56 = vor.u32 8388608, %v234_v62  ;;  %vm259_vm10 = vcmp.lt.s32.totalorder %v240_v26, 1  ;;  %v258_v49 = vor.u32 %v257_v3, %v256_v27  ;;  %vm262_vm4 = vcmp.lt.s32.totalorder %v240_v26, 4 }
 0x2e6   :  { %vm11380_vm15 = vcmp.le.f32.partialorder %v17606_v52, 0.7853982  ;;  %v267_v37 = vsel %vm259_vm10, %v246_v31, %v249_v46  ;;  %v4435_v14 = vadd.s32 1, %v7958_v11  ;;  %v7225_v59 = vshll.u32 %v11372_v6, 30 }
 0x2e7   :  { %v17608_v1 = vsel %vm11380_vm15, 4294967295, %v17607_v1  ;;  %vm261_vm14 = vcmp.lt.s32.totalorder %v240_v26, 3  ;;  %v264_v15 = vsel %vm262_vm4, %v252_v54, 2102212464  ;;  %v268_v52 = vsel %vm262_vm4, %v255_v63, 920167782 }
 0x2e8   :  { %17609 = vst [vmem:[#allocation97_spill] sm:$0xff] %v17608_v1  ;;  %v243_v16 = vshrl.u32 %v17463_v61, %v242_v21  ;;  %vm260_vm1 = vcmp.lt.s32.totalorder %v240_v26, 2  ;;  %v269_v53 = vsel %vm261_vm14, %v252_v54, %v268_v52  ;;  %v271_v57 = vsel %vm259_vm10, %v249_v46, %v252_v54  ;;  %v11391_v32 = vpop.eup %8581  ;;  %v125_v52 = vpop.permute.xlu0 %124 }
 0x2e9   :  { %17610 = vst [vmem:[#allocation98_spill] sm:$0xff] %v11391_v32  ;;  %v2582_v62 = vshll.u32 %v11385_v2, 30  ;;  %v270_v3 = vsel %vm260_vm1, %v267_v37, %v269_v53  ;;  %v272_v27 = vsel %vm262_vm4, %v258_v49, 1326507024  ;;  %v275_v23 = vshll.u32 %v235_v56, 8 }
 0x2ea   :  { %v263_v18 = vsel %vm259_vm10, %v243_v16, %v246_v31  ;;  %v265_v24 = vsel %vm261_vm14, %v249_v46, %v264_v15  ;;  %v273_v25 = vsel %vm261_vm14, %v255_v63, %v272_v27  ;;  %vm4436_vm2 = vcmp.gt.s32.totalorder %v4435_v14, 0 }
 0x2eb   :  { %v274_v13 = vsel %vm260_vm1, %v271_v57, %v273_v25  ;;  %v11397_v21 = vmul.u32.u64.low %v275_v23, %v270_v3  ;;  %v11398_v11 = vmul.u32.u64.high %v275_v23, %v270_v3, %v11397_v21  ;;  %v4437_v54 = vsel %vm4436_vm2, %v4435_v14, 0 }
 0x2ec   :  { %v5543_v17 = vshll.u32 %v5542_v35, 23  ;;  %v11402_v32 = vsel %vm7957_vm13, 0, %v7956_v20  ;;  %v11404_v37 = vmul.u32.u64.low %v275_v23, %v274_v13  ;;  %v11405_v49 = vmul.u32.u64.high %v275_v23, %v274_v13, %v11404_v37 }
 0x2ed   :  { %v8048_v56 = vadd.s32 4294967294, %v6814_v4  ;;  %v11408_v46 = vsub.s32 %v11336_v12, %v7225_v59  ;;  %v266_v63 = vsel %vm260_vm1, %v263_v18, %v265_v24  ;;  %v4439_v31 = vand.u32 31, %v4437_v54  ;;  %v11426_v4 = vld [vmem:[#allocation4] ss:$0 sm:$0xff] }
 0x2ee   :  { %v11415_v14 = vsel %vm11380_vm15, %v10460_v51, %v11352_v33  ;;  %v17611_v35 = vsub.s32 4, %v11036_v48  ;;  %vm17612_vm13 = vcmp.lt.s32.totalorder %v10568_v9, 0  ;;  %v4377_v12 = vadd.s32 %v10999_v45, %v11006_v58 }
 0x2ef   :  { %v194_v26 = vmul.f32 %v11426_v4, %v125_v52  ;;  %v11429_v59 = vor.u32 %v5539_v60, %v5538_v7  ;;  %v11432_v15 = vsub.s32 %v11338_v22, %v2582_v62  ;;  %v285_v33 = vadd.s32 1, %v11398_v11 }
 0x2f0   :  { %v11422_v20 = vsel %vm17612_vm13, %v17611_v35, %v11036_v48  ;;  %v11435_v16 = vsub.s32 32, %v4439_v31  ;;  %v11437_v53 = vor.u32 4788187, %v5543_v17  ;;  %v4397_v48 = vsub.s32 4294967266, %v11402_v32 }
 0x2f1   :  { %17613 = vst [vmem:[#allocation99_spill] sm:$0xff] %v11422_v20  ;;  %v282_v57 = vmul.u32 %v275_v23, %v266_v63  ;;  %vm284_vm2 = vc.u32 %v11405_v49, %v11397_v21  ;;  %vm8049_vm10 = vcmp.lt.s32.totalorder %v8048_v56, 0  ;;  %v7228_v45 = vsub.s32 0, %v11408_v46 }
 0x2f2   :  { %v286_v58 = vsel %vm284_vm2, %v285_v33, %v11398_v11  ;;  %v17146_v22 = vand.u32 2147483647, %v11310_v47  ;;  %v4443_v60 = vshrl.u32 %v17511_v34, %v11435_v16  ;;  %v4446_v17 = vshrl.u32 %v17475_v29, %v11435_v16 }
 0x2f3   :  { %v287_v7 = vadd.s32 %v286_v58, %v282_v57  ;;  %v11450_v62 = vadd.f32 %v11307_v19, %v194_v26  ;;  %v2585_v3 = vsub.s32 0, %v11432_v15  ;;  %v11453_v27 = vshrl.u32 %v4437_v54, 5 }
 0x2f4   :  { %v4442_v23 = vshll.u32 %v17463_v61, %v4439_v31  ;;  %v4449_v18 = vshrl.u32 %v17510_v30, %v11435_v16  ;;  %v4445_v25 = vshll.u32 %v17511_v34, %v4439_v31  ;;  %v4451_v13 = vshll.u32 %v17510_v30, %v4439_v31 }
 0x2f5   :  { %17614 = vst [vmem:[#allocation100_spill] sm:$0xff] %v11450_v62  ;;  %v288_v24 = vadd.s32 536870912, %v287_v7  ;;  %v4452_v11 = vshrl.u32 %v17472_v10, %v11435_v16  ;;  %v8063_v52 = vmin.u32 %v7228_v45, %v11408_v46  ;;  %v4448_v37 = vshll.u32 %v17475_v29, %v4439_v31 }
 0x2f6   :  { %v4454_v54 = vshll.u32 %v17472_v10, %v4439_v31  ;;  %v4455_v63 = vshrl.u32 %v17473_v55, %v11435_v16  ;;  %v4432_v35 = vand.u32 8388607, %v17146_v22  ;;  %v4444_v26 = vor.u32 %v4443_v60, %v4442_v23 }
 0x2f7   :  { %v4447_v33 = vor.u32 %v4446_v17, %v4445_v25  ;;  %v4453_v57 = vor.u32 %v4452_v11, %v4451_v13  ;;  %v4393_v58 = vsub.s32 32, %v11402_v32  ;;  %v4450_v20 = vor.u32 %v4449_v18, %v4448_v37 }
 0x2f8   :  { %v4456_v51 = vor.u32 %v4455_v63, %v4454_v54  ;;  %v542_v1 = vand.u32 2139095040, %v11450_v62  ;;  %v4398_v45 = vadd.s32 127, %v4397_v48  ;;  %v7885_v43 = vmin.u32 %v2585_v3, %v11432_v15 }
 0x2f9   :  { %v11472_v5 = vshrl.u32 %v288_v24, 30  ;;  %vm4460_vm4 = vcmp.lt.s32.totalorder %v11453_v27, 4  ;;  %v11476_v31 = vsel %vm8049_vm10, 0, %v8048_v56  ;;  %vm4457_vm14 = vcmp.lt.s32.totalorder %v11453_v27, 1 }
 0x2fa   :  { %v4466_v60 = vsel %vm4460_vm4, %v4453_v57, 920167782  ;;  %v4470_v17 = vsel %vm4460_vm4, %v4456_v51, 1326507024  ;;  %v7230_v23 = vclz %v8063_v52  ;;  %v4433_v18 = vor.u32 8388608, %v4432_v35 }
 0x2fb   :  { %vm4459_vm1 = vcmp.lt.s32.totalorder %v11453_v27, 3  ;;  %v4465_v48 = vsel %vm4457_vm14, %v4444_v26, %v4447_v33  ;;  %v4469_v56 = vsel %vm4457_vm14, %v4447_v33, %v4450_v20  ;;  %v543_v25 = vshrl.u32 %v542_v1, 23 }
 0x2fc   :  { %v4467_v3 = vsel %vm4459_vm1, %v4450_v20, %v4466_v60  ;;  %v4471_v24 = vsel %vm4459_vm1, %v4453_v57, %v4470_v17  ;;  %v5547_v13 = vcvt.s32.f32 %v11429_v59  ;;  %v2587_v51 = vclz %v7885_v43 }
 0x2fd   :  { %v290_v11 = vshll.u32 %v11472_v5, 30  ;;  %vm17145_vm13 = vcmp.lt.s32.totalorder %v11453_v27, 2  ;;  %v5545_v52 = vand.u32 2147483647, %v11437_v53  ;;  %v4395_v37 = vshrl.u32 %v4377_v12, %v4393_v58 }
 0x2fe   :  { %v4468_v54 = vsel %vm17145_vm13, %v4465_v48, %v4467_v3  ;;  %v7812_v63 = vadd.s32 4294967169, %v543_v25  ;;  %v6802_v35 = vadd.s32 %v11111_v40, %v11121_v8  ;;  %v6822_v57 = vsub.s32 4294967266, %v11476_v31 }
 0x2ff   :  { %v4472_v1 = vsel %vm17145_vm13, %v4469_v56, %v4471_v24  ;;  %v11503_v43 = vshll.u32 %v4433_v18, 8  ;;  %v4394_v59 = vshll.u32 %v11202_v44, %v11402_v32  ;;  %v4399_v60 = vshll.u32 %v4398_v45, 23 }
 0x300   :  { %v8064_v53 = vadd.s32 4294967294, %v7230_v23  ;;  %v549_v12 = vadd.s32 1, %v7812_v63  ;;  %v7886_v58 = vadd.s32 4294967294, %v2587_v51  ;;  %v11507_v17 = vsub.s32 %v287_v7, %v290_v11 }
 0x301   :  { %v11510_v48 = vmul.u32.u64.low %v11503_v43, %v4468_v54  ;;  %v11511_v3 = vmul.u32.u64.high %v11503_v43, %v4468_v54, %v11510_v48  ;;  %v11514_v40 = vor.u32 %v4395_v37, %v4394_v59  ;;  %v6818_v44 = vsub.s32 32, %v11476_v31 }
 0x302   :  { %v11517_v8 = vmul.u32.u64.low %v11503_v43, %v4472_v1  ;;  %v11518_v18 = vmul.u32.u64.high %v11503_v43, %v4472_v1, %v11517_v8  ;;  %vm550_vm2 = vcmp.gt.s32.totalorder %v549_v12, 0  ;;  %v11521_v32 = vadd.s32 127, %v6822_v57 }
 0x303   :  { %17615 = vst [vmem:[#allocation101_spill] sm:$0xff] %v11510_v48  ;;  %v4462_v7 = vsel %vm4460_vm4, %v4450_v20, 2102212464  ;;  %v551_v45 = vsel %vm550_vm2, %v549_v12, 0  ;;  %8583 = vcosq.f32 %v11415_v14  ;;  %v11526_v23 = vmul.f32 %v5547_v13, %v5545_v52 }
 0x304   :  { %v4441_v56 = vshrl.u32 %v17463_v61, %v11435_v16  ;;  %v553_v24 = vand.u32 31, %v551_v45  ;;  %v11530_v25 = vor.u32 4788187, %v4399_v60  ;;  %vm8065_vm10 = vcmp.lt.s32.totalorder %v8064_v53, 0 }
 0x305   :  { %vm7887_vm13 = vcmp.lt.s32.totalorder %v7886_v58, 0  ;;  %v293_v51 = vsub.s32 0, %v11507_v17  ;;  %v4463_v20 = vsel %vm4459_vm1, %v4447_v33, %v4462_v7  ;;  %v17147_v37 = vand.u32 2147483647, %v11450_v62 }
 0x306   :  { %v4461_v11 = vsel %vm4457_vm14, %v4441_v56, %v4444_v26  ;;  %v11538_v13 = vsub.s32 32, %v553_v24  ;;  %v6819_v16 = vshll.u32 %v11301_v38, %v11476_v31  ;;  %v6820_v54 = vshrl.u32 %v6802_v35, %v6818_v44 }
 0x307   :  { %v6824_v63 = vshll.u32 %v11521_v32, 23  ;;  %v11544_v57 = vsel %vm8065_vm10, 0, %v8064_v53  ;;  %v11546_v1 = vsel %vm7887_vm13, 0, %v7886_v58  ;;  %v7801_v59 = vmin.u32 %v293_v51, %v11507_v17  ;;  %v1929_v58 = vpop.permute.xlu1 %1928 }
 0x308   :  { %v557_v26 = vshrl.u32 %v17511_v34, %v11538_v13  ;;  %v560_v33 = vshrl.u32 %v17475_v29, %v11538_v13  ;;  %vm17616_vm4 = vcmp.lt.s32.totalorder %v11453_v27, 2  ;;  %v4483_v38 = vadd.s32 1, %v11511_v3 }
 0x309   :  { %v4464_v60 = vsel %vm17616_vm4, %v4461_v11, %v4463_v20  ;;  %v563_v31 = vshrl.u32 %v17510_v30, %v11538_v13  ;;  %vm4482_vm14 = vc.u32 %v11518_v18, %v11510_v48  ;;  %v546_v35 = vand.u32 8388607, %v17147_v37 }
 0x30a   :  { %v556_v53 = vshll.u32 %v17463_v61, %v553_v24  ;;  %v559_v12 = vshll.u32 %v17511_v34, %v553_v24  ;;  %v11564_v8 = vshrl.u32 %v551_v45, 5  ;;  %v562_v27 = vshll.u32 %v17475_v29, %v553_v24 }
 0x30b   :  { %v565_v44 = vshll.u32 %v17510_v30, %v553_v24  ;;  %v566_v32 = vshrl.u32 %v17472_v10, %v11538_v13  ;;  %v568_v51 = vshll.u32 %v17472_v10, %v553_v24  ;;  %v569_v11 = vshrl.u32 %v17473_v55, %v11538_v13 }
 0x30c   :  { %v11570_v7 = vor.u32 %v557_v26, %v556_v53  ;;  %v11572_v56 = vor.u32 %v560_v33, %v559_v12  ;;  %v4484_v20 = vsel %vm4482_vm14, %v4483_v38, %v11511_v3  ;;  %v564_v45 = vor.u32 %v563_v31, %v562_v27 }
 0x30d   :  { %v567_v22 = vor.u32 %v566_v32, %v565_v44  ;;  %v1973_v37 = vmul.f32 %v11426_v4, %v1929_v58  ;;  %v295_v52 = vclz %v7801_v59  ;;  %v4480_v47 = vmul.u32 %v11503_v43, %v4464_v60 }
 0x30e   :  { %v547_v62 = vor.u32 8388608, %v546_v35  ;;  %v570_v48 = vor.u32 %v569_v11, %v568_v51  ;;  %v7238_v26 = vsub.s32 4294967266, %v11544_v57  ;;  %v2595_v33 = vsub.s32 4294967266, %v11546_v1 }
 0x30f   :  { %vm571_vm1 = vcmp.lt.s32.totalorder %v11564_v8, 1  ;;  %vm574_vm13 = vcmp.lt.s32.totalorder %v11564_v8, 4  ;;  %v11584_v24 = vadd.s32 %v4484_v20, %v4480_v47  ;;  %vm573_vm2 = vcmp.lt.s32.totalorder %v11564_v8, 3 }
 0x310   :  { %v579_v3 = vsel %vm571_vm1, %v11570_v7, %v11572_v56  ;;  %v580_v43 = vsel %vm574_vm13, %v567_v22, 920167782  ;;  %v11593_v59 = vpop.eup %8583  ;;  %vm17153_vm10 = vcmp.lt.s32.totalorder %v11564_v8, 2  ;;  %v583_v47 = vsel %vm571_vm1, %v11572_v56, %v564_v45 }
 0x311   :  { %17617 = vst [vmem:[#allocation102_spill] sm:$0xff] %v11593_v59  ;;  %v581_v60 = vsel %vm573_vm2, %v564_v45, %v580_v43  ;;  %v11602_v38 = vadd.f32 %v11307_v19, %v1973_v37  ;;  %v7802_v31 = vadd.s32 4294967294, %v295_v52  ;;  %v584_v53 = vsel %vm574_vm13, %v570_v48, 1326507024 }
 0x312   :  { %v582_v35 = vsel %vm17153_vm10, %v579_v3, %v581_v60  ;;  %v11608_v12 = vshll.u32 %v547_v62, 8  ;;  %v7218_v58 = vadd.s32 %v11239_v41, %v11270_v50  ;;  %v7234_v27 = vsub.s32 32, %v11544_v57 }
 0x313   :  { %17618 = vst [vmem:[#allocation103_spill] sm:$0xff] %v11602_v38  ;;  %v7239_v44 = vadd.s32 127, %v7238_v26  ;;  %v585_v32 = vsel %vm573_vm2, %v567_v22, %v584_v53  ;;  %v4486_v37 = vadd.s32 536870912, %v11584_v24  ;;  %v4401_v62 = vand.u32 2147483647, %v11530_v25 }
 0x314   :  { %v586_v52 = vsel %vm17153_vm10, %v583_v47, %v585_v32  ;;  %v11619_v51 = vmul.u32.u64.low %v11608_v12, %v582_v35  ;;  %v11620_v11 = vmul.u32.u64.high %v11608_v12, %v582_v35, %v11619_v51  ;;  %v2626_v48 = vand.u32 2139095040, %v11602_v38 }
 0x315   :  { %v11625_v41 = vmul.u32.u64.low %v11608_v12, %v586_v52  ;;  %v11626_v50 = vmul.u32.u64.high %v11608_v12, %v586_v52, %v11625_v41  ;;  %v6821_v20 = vor.u32 %v6820_v54, %v6819_v16  ;;  %v6825_v22 = vor.u32 4788187, %v6824_v63 }
 0x316   :  { %v2596_v26 = vadd.s32 127, %v2595_v33  ;;  %vm7803_vm4 = vcmp.lt.s32.totalorder %v7802_v31, 0  ;;  %v17619_v3 = vand.u32 2147483647, %v10568_v9  ;;  %v17620_v43 = vmov 0  ;;  %v130_v41 = vpop.permute.xlu0 %129 }
 0x317   :  { %v7235_v60 = vshll.u32 %v11408_v46, %v11544_v57  ;;  %v7236_v25 = vshrl.u32 %v7218_v58, %v7234_v27  ;;  %v7240_v47 = vshll.u32 %v7239_v44, 23  ;;  %v2627_v35 = vshrl.u32 %v2626_v48, 23 }
 0x318   :  { %vm11631_vm14 = vcmp.le.f32.partialorder %v17619_v3, 0.7853982  ;;  %v5549_v53 = vxor.u32 2147483648, %v11526_v23  ;;  %v2591_v32 = vsub.s32 32, %v11546_v1  ;;  %v11639_v16 = vshrl.u32 %v4486_v37, 30 }
 0x319   :  { %v17621_v43 = vsel %vm11631_vm14, 4294967295, %v17620_v43  ;;  %v576_v54 = vsel %vm574_vm13, %v564_v45, 2102212464  ;;  %v17623_v63 = vcvt.s32.f32 %v11514_v40  ;;  %v11645_v52 = vsel %vm7803_vm4, 0, %v7802_v31 }
 0x31a   :  { %17622 = vst [vmem:[#allocation104_spill] sm:$0xff] %v17621_v43  ;;  %v555_v46 = vshrl.u32 %v17463_v61, %v11538_v13  ;;  %v7888_v57 = vadd.s32 4294967169, %v2627_v35  ;;  %v6826_v58 = vand.u32 2147483647, %v6825_v22  ;;  %v6828_v27 = vcvt.s32.f32 %v6821_v20 }
 0x31b   :  { %v4404_v33 = vmul.f32 %v17623_v63, %v4401_v62  ;;  %v2575_v44 = vadd.s32 %v11283_v28, %v11296_v36  ;;  %v2597_v37 = vshll.u32 %v2596_v26, 23  ;;  %v7237_v48 = vor.u32 %v7236_v25, %v7235_v60  ;;  %v17624_v28 = vld [vmem:[#allocation80_spill] sm:$0xff] }
 0x31c   :  { %v7241_v45 = vor.u32 4788187, %v7240_v47  ;;  %v575_v40 = vsel %vm571_vm1, %v555_v46, %v11570_v7  ;;  %v577_v13 = vsel %vm573_vm2, %v11572_v56, %v576_v54  ;;  %v303_v62 = vsub.s32 4294967266, %v11645_v52 }
 0x31d   :  { %v2593_v31 = vshrl.u32 %v2575_v44, %v2591_v32  ;;  %v4488_v20 = vshll.u32 %v11639_v16, 30  ;;  %v597_v22 = vadd.s32 1, %v11620_v11  ;;  %8585 = vsinq.f32 %v11415_v14 }
 0x31e   :  { %vm596_vm4 = vc.u32 %v11626_v50, %v11619_v51  ;;  %v2633_v36 = vadd.s32 1, %v7888_v57  ;;  %v195_v7 = vmul.f32 %v11426_v4, %v130_v41  ;;  %v17625_v26 = vand.u32 2147483647, %v10704_v39 }
 0x31f   :  { %v17626_v56 = vmov 0  ;;  %v6829_v3 = vmul.f32 %v6828_v27, %v6826_v58  ;;  %v2592_v60 = vshll.u32 %v11432_v15, %v11546_v1  ;;  %v2598_v25 = vor.u32 4788187, %v2597_v37 }
 0x320   :  { %vm11668_vm1 = vcmp.le.f32.partialorder %v17625_v26, 0.7853982  ;;  %vm17629_vm2 = vcmp.lt.s32.totalorder %v11564_v8, 2  ;;  %vm17630_vm13 = vcmp.lt.s32.totalorder %v10568_v9, 0  ;;  %v4405_v35 = vxor.u32 2147483648, %v4404_v33 }
 0x321   :  { %v17627_v56 = vsel %vm11668_vm1, 4294967295, %v17626_v56  ;;  %v578_v14 = vsel %vm17629_vm2, %v575_v40, %v577_v13  ;;  %v5550_v47 = vsel %vm17630_vm13, %v5549_v53, %v11526_v23  ;;  %v7242_v32 = vand.u32 2147483647, %v7241_v45  ;;  %v17635_v23 = vld [vmem:[#allocation87_spill] sm:$0xff] }
 0x322   :  { %17628 = vst [vmem:[#allocation105_spill] sm:$0xff] %v17627_v56  ;;  %v7244_v54 = vcvt.s32.f32 %v7237_v48  ;;  %v17631_v63 = vand.u32 2147483647, %v17624_v28  ;;  %v17632_v46 = vmov 0  ;;  %v2594_v57 = vor.u32 %v2593_v31, %v2592_v60 }
 0x323   :  { %v304_v58 = vadd.s32 127, %v303_v62  ;;  %v11686_v15 = vsub.s32 %v11584_v24, %v4488_v20  ;;  %v598_v1 = vsel %vm596_vm4, %v597_v22, %v11620_v11  ;;  %v4407_v8 = vsub.s32 4, %v17635_v23  ;;  %v17640_v22 = vld [vmem:[#allocation84_spill] sm:$0xff] }
 0x324   :  { %vm11681_vm10 = vcmp.le.f32.partialorder %v17631_v63, 0.7853982  ;;  %v594_v53 = vmul.u32 %v11608_v12, %v578_v14  ;;  %vm2634_vm13 = vcmp.gt.s32.totalorder %v2633_v36, 0  ;;  %v11695_v27 = vadd.f32 %v11307_v19, %v195_v7 }
 0x325   :  { %v17633_v46 = vsel %vm11681_vm10, 4294967295, %v17632_v46  ;;  %v5553_v44 = vsel %vm11631_vm14, %v10568_v9, %v5550_v47  ;;  %v6830_v37 = vxor.u32 2147483648, %v6829_v3  ;;  %v2599_v24 = vand.u32 2147483647, %v2598_v25 }
 0x326   :  { %17634 = vst [vmem:[#allocation106_spill] sm:$0xff] %v17633_v46  ;;  %17636 = vst [vmem:[#allocation87_spill] sm:$0xff] %v11695_v27  ;;  %v299_v41 = vsub.s32 32, %v11645_v52  ;;  %vm17637_vm2 = vcmp.lt.s32.totalorder %v10704_v39, 0  ;;  %v7245_v11 = vmul.f32 %v7244_v54, %v7242_v32  ;;  %v283_v45 = vadd.s32 %v11397_v21, %v11405_v49 }
 0x327   :  { %v4406_v48 = vsel %vm17637_vm2, %v4405_v35, %v4404_v33  ;;  %v11705_v12 = vadd.s32 %v598_v1, %v594_v53  ;;  %v2601_v40 = vcvt.s32.f32 %v2594_v57  ;;  %v305_v13 = vshll.u32 %v304_v58, 23  ;;  %vm17638_vm4 = vmmov %vm17637_vm2 }
 0x328   :  { %v4491_v31 = vsub.s32 0, %v11686_v15  ;;  %v2635_v62 = vsel %vm2634_vm13, %v2633_v36, 0  ;;  %v11711_v20 = vsel %vm17638_vm4, %v4407_v8, %v17635_v23  ;;  %v17641_v7 = vand.u32 2147483647, %v17640_v22 }
 0x329   :  { %17639 = vst [vmem:[#allocation107_spill] sm:$0xff] %v11711_v20  ;;  %v17642_v33 = vmov 0  ;;  %vm7164_vm2 = vcmp.lt.s32.totalorder %v17640_v22, 0  ;;  %v646_v21 = vand.u32 2139095040, %v11695_v27  ;;  %8587 = vcosq.f32 %v5553_v44 }
 0x32a   :  { %vm11715_vm0 = vcmp.le.f32.partialorder %v17641_v7, 0.7853982  ;;  %vm17645_vm6 = vcmp.lt.s32.totalorder %v17624_v28, 0  ;;  %v2602_v36 = vmul.f32 %v2601_v40, %v2599_v24  ;;  %v301_v26 = vshrl.u32 %v283_v45, %v299_v41  ;;  %v11735_v1 = vpop.eup %8585 }
 0x32b   :  { %v17643_v33 = vsel %vm11715_vm0, 4294967295, %v17642_v33  ;;  %v6831_v49 = vsel %vm17645_vm6, %v6830_v37, %v6829_v3  ;;  %v4409_v60 = vsel %vm11668_vm1, %v10704_v39, %v4406_v48  ;;  %v7246_v25 = vxor.u32 2147483648, %v7245_v11  ;;  %17646 = vst [vmem:[#allocation109_spill] sm:$0xff] %v11735_v1  ;;  %v3835_v48 = vpop.permute.xlu1 %3834 }
 0x32c   :  { %17644 = vst [vmem:[#allocation108_spill] sm:$0xff] %v17643_v33  ;;  %v600_v14 = vadd.s32 536870912, %v11705_v12  ;;  %v2637_v47 = vand.u32 31, %v2635_v62  ;;  %8589 = vsinq.f32 %v5553_v44  ;;  %v300_v35 = vshll.u32 %v11507_v17, %v11645_v52 }
 0x32d   :  { %v306_v32 = vor.u32 4788187, %v305_v13  ;;  %v7959_v54 = vmin.u32 %v4491_v31, %v11686_v15  ;;  %v6832_v63 = vsub.s32 4, %v11255_v0  ;;  %v6834_v3 = vsel %vm11681_vm10, %v17624_v28, %v6831_v49 }
 0x32e   :  { %v7248_v57 = vsub.s32 4, %v11372_v6  ;;  %v647_v58 = vshrl.u32 %v646_v21, 23  ;;  %8591 = vcosq.f32 %v4409_v60  ;;  %vm17156_vm6 = vcmp.lt.s32.totalorder %v11083_v42, 0 }
 0x32f   :  { %v2603_v23 = vxor.u32 2147483648, %v2602_v36  ;;  %v302_v8 = vor.u32 %v301_v26, %v300_v35  ;;  %8593 = vsinq.f32 %v4409_v60  ;;  %v7247_v17 = vsel %vm7164_vm2, %v7246_v25, %v7245_v11 }
 0x330   :  { %v11740_v52 = vshrl.u32 %v600_v14, 30  ;;  %v11742_v53 = vsub.s32 32, %v2637_v47  ;;  %8595 = vcosq.f32 %v6834_v3  ;;  %v17647_v44 = vand.u32 2147483647, %v11083_v42 }
 0x331   :  { %v17648_v37 = vmov 0  ;;  %v307_v24 = vand.u32 2147483647, %v306_v32  ;;  %v4493_v41 = vclz %v7959_v54  ;;  %vm17651_vm4 = vcmp.lt.s32.totalorder %v17624_v28, 0 }
 0x332   :  { %vm11746_vm13 = vcmp.le.f32.partialorder %v17647_v44, 0.7853982  ;;  %v11753_v45 = vsel %vm17651_vm4, %v6832_v63, %v11255_v0  ;;  %8597 = vsinq.f32 %v6834_v3  ;;  %v11758_v11 = vsel %vm7164_vm2, %v7248_v57, %v11372_v6  ;;  %v17654_v3 = vld [vmem:[#allocation92_spill] sm:$0xff] }
 0x333   :  { %v17649_v37 = vsel %vm11746_vm13, 4294967295, %v17648_v37  ;;  %17652 = vst [vmem:[#allocation111_spill] sm:$0xff] %v11753_v45  ;;  %17653 = vst [vmem:[#allocation112_spill] sm:$0xff] %v11758_v11  ;;  %v7816_v40 = vadd.s32 4294967169, %v647_v58  ;;  %v7250_v13 = vsel %vm11715_vm0, %v17640_v22, %v7247_v17  ;;  %v2604_v31 = vsel %vm17156_vm6, %v2603_v23, %v2602_v36  ;;  %v145_v45 = vpop.permute.xlu0 %144 }
 0x334   :  { %17650 = vst [vmem:[#allocation110_spill] sm:$0xff] %v17649_v37  ;;  %v309_v21 = vcvt.s32.f32 %v302_v8  ;;  %v602_v0 = vshll.u32 %v11740_v52, 30  ;;  %v2650_v49 = vshrl.u32 %v17472_v10, %v11742_v53  ;;  %v2653_v6 = vshrl.u32 %v17473_v55, %v11742_v53 }
 0x335   :  { %v3879_v26 = vmul.f32 %v11426_v4, %v3835_v48  ;;  %v7960_v25 = vadd.s32 4294967294, %v4493_v41  ;;  %v2649_v35 = vshll.u32 %v17510_v30, %v2637_v47  ;;  %v2641_v36 = vshrl.u32 %v17511_v34, %v11742_v53 }
 0x336   :  { %v310_v60 = vmul.f32 %v309_v21, %v307_v24  ;;  %v2644_v32 = vshrl.u32 %v17475_v29, %v11742_v53  ;;  %v2652_v54 = vshll.u32 %v17472_v10, %v2637_v47  ;;  %v653_v63 = vadd.s32 1, %v7816_v40  ;;  %v11786_v17 = vpop.eup %8587 }
 0x337   :  { %v11780_v57 = vshrl.u32 %v2635_v62, 5  ;;  %v2640_v58 = vshll.u32 %v17463_v61, %v2637_v47  ;;  %v2643_v23 = vshll.u32 %v17511_v34, %v2637_v47  ;;  %v2647_v8 = vshrl.u32 %v17510_v30, %v11742_v53  ;;  %17655 = vst [vmem:[#allocation113_spill] sm:$0xff] %v11786_v17 }
 0x338   :  { %v11789_v44 = vsub.s32 %v11705_v12, %v602_v0  ;;  %v2651_v24 = vor.u32 %v2650_v49, %v2649_v35  ;;  %v2654_v41 = vor.u32 %v2653_v6, %v2652_v54  ;;  %vm654_vm4 = vcmp.gt.s32.totalorder %v653_v63, 0 }
 0x339   :  { %8599 = vcosq.f32 %v7250_v13  ;;  %v2607_v62 = vsel %vm11746_vm13, %v11083_v42, %v2604_v31  ;;  %v2646_v48 = vshll.u32 %v17475_v29, %v2637_v47  ;;  %v655_v40 = vsel %vm654_vm4, %v653_v63, 0  ;;  %v11795_v21 = vpop.eup %8589 }
 0x33a   :  { %17656 = vst [vmem:[#allocation114_spill] sm:$0xff] %v11795_v21  ;;  %v17657_v7 = vand.u32 2147483647, %v17654_v3  ;;  %v17658_v14 = vmov 0  ;;  %vm7961_vm2 = vcmp.lt.s32.totalorder %v7960_v25, 0  ;;  %v11805_v49 = vor.u32 %v2641_v36, %v2640_v58 }
 0x33b   :  { %v17661_v12 = vand.u32 2147483647, %v11602_v38  ;;  %v11807_v6 = vor.u32 %v2644_v32, %v2643_v23  ;;  %v311_v31 = vxor.u32 2147483648, %v310_v60  ;;  %v2648_v35 = vor.u32 %v2647_v8, %v2646_v48  ;;  %v11813_v54 = vpop.eup %8591 }
 0x33c   :  { %vm11799_vm6 = vcmp.le.f32.partialorder %v17657_v7, 0.7853982  ;;  %vm17163_vm4 = vcmp.lt.s32.totalorder %v11780_v57, 4  ;;  %v11811_v47 = vadd.f32 %v11307_v19, %v3879_v26  ;;  %17663 = vst [vmem:[#allocation117_spill] sm:$0xff] %v11813_v54  ;;  %v605_v7 = vsub.s32 0, %v11789_v44  ;;  %v11820_v32 = vpop.eup %8593 }
 0x33d   :  { %v17659_v14 = vsel %vm11799_vm6, 4294967295, %v17658_v14  ;;  %v2630_v0 = vand.u32 8388607, %v17661_v12  ;;  %v2664_v63 = vsel %vm17163_vm4, %v2651_v24, 920167782  ;;  %v657_v58 = vand.u32 31, %v655_v40  ;;  %v11827_v26 = vpop.eup %8595 }
 0x33e   :  { %17660 = vst [vmem:[#allocation115_spill] sm:$0xff] %v17659_v14  ;;  %17662 = vst [vmem:[#allocation116_spill] sm:$0xff] %v11811_v47  ;;  %v2668_v36 = vsel %vm17163_vm4, %v2654_v41, 1326507024  ;;  %8601 = vsinq.f32 %v7250_v13  ;;  %v313_v23 = vsub.s32 4, %v11472_v5  ;;  %v11824_v8 = vsel %vm7961_vm2, 0, %v7960_v25 }
 0x33f   :  { %17664 = vst [vmem:[#allocation118_spill] sm:$0xff] %v11820_v32  ;;  %vm2655_vm0 = vcmp.lt.s32.totalorder %v11780_v57, 1  ;;  %17665 = vst [vmem:[#allocation119_spill] sm:$0xff] %v11827_v26  ;;  %8603 = vcosq.f32 %v2607_v62  ;;  %v2631_v48 = vor.u32 8388608, %v2630_v0  ;;  %vm17165_vm10 = vcmp.lt.s32.totalorder %v11780_v57, 3  ;;  %v11834_v12 = vpop.eup %8597 }
 0x340   :  { %v2663_v41 = vsel %vm2655_vm0, %v11805_v49, %v11807_v6  ;;  %17666 = vst [vmem:[#allocation120_spill] sm:$0xff] %v11834_v12  ;;  %v2665_v13 = vsel %vm17165_vm10, %v2648_v35, %v2664_v63  ;;  %v2667_v25 = vsel %vm2655_vm0, %v11807_v6, %v2648_v35  ;;  %v2669_v22 = vsel %vm17165_vm10, %v2651_v24, %v2668_v36 }
 0x341   :  { %v4532_v0 = vand.u32 2139095040, %v11811_v47  ;;  %vm17667_vm2 = vcmp.lt.s32.totalorder %v17654_v3, 0  ;;  %v4501_v11 = vsub.s32 4294967266, %v11824_v8  ;;  %v7813_v26 = vmin.u32 %v605_v7, %v11789_v44 }
 0x342   :  { %v312_v33 = vsel %vm17667_vm2, %v311_v31, %v310_v60  ;;  %v11848_v12 = vsub.s32 32, %v657_v58  ;;  %v17668_v63 = vsub.s32 4, %v11385_v2  ;;  %vm17669_vm4 = vcmp.lt.s32.totalorder %v11083_v42, 0  ;;  %vm17671_vm10 = vmmov %vm17667_vm2  ;;  %v17673_v60 = vld [vmem:[#allocation101_spill] sm:$0xff] }
 0x343   :  { %8605 = vsinq.f32 %v2607_v62  ;;  %v11860_v24 = vsel %vm17671_vm10, %v313_v23, %v11472_v5  ;;  %vm17178_vm2 = vcmp.lt.s32.totalorder %v11780_v57, 2  ;;  %v11865_v31 = vadd.s32 %v17673_v60, %v11518_v18 }
 0x344   :  { %v11855_v28 = vsel %vm17669_vm4, %v17668_v63, %v11385_v2  ;;  %17672 = vst [vmem:[#allocation122_spill] sm:$0xff] %v11860_v24  ;;  %v2666_v7 = vsel %vm17178_vm2, %v2663_v41, %v2665_v13  ;;  %v2670_v36 = vsel %vm17178_vm2, %v2667_v25, %v2669_v22  ;;  %v11875_v62 = vsel %vm11799_vm6, %v17654_v3, %v312_v33 }
 0x345   :  { %17670 = vst [vmem:[#allocation121_spill] sm:$0xff] %v11855_v28  ;;  %v11878_v23 = vshll.u32 %v2631_v48, 8  ;;  %v4533_v63 = vshrl.u32 %v4532_v0, 23  ;;  %v4497_v18 = vsub.s32 32, %v11824_v8  ;;  %v11881_v60 = vadd.s32 127, %v4501_v11 }
 0x346   :  { %v607_v41 = vclz %v7813_v26  ;;  %v670_v22 = vshrl.u32 %v17472_v10, %v11848_v12  ;;  %v11894_v48 = vpop.eup %8599  ;;  %v17675_v0 = vand.u32 2147483647, %v11695_v27  ;;  %v661_v11 = vshrl.u32 %v17511_v34, %v11848_v12 }
 0x347   :  { %v11886_v13 = vmul.u32.u64.low %v11878_v23, %v2670_v36  ;;  %v11887_v25 = vmul.u32.u64.high %v11878_v23, %v2670_v36, %v11886_v13  ;;  %v11890_v33 = vmul.u32.u64.low %v11878_v23, %v2666_v7  ;;  %v11891_v2 = vmul.u32.u64.high %v11878_v23, %v2666_v7, %v11890_v33  ;;  %17674 = vst [vmem:[#allocation101_spill] sm:$0xff] %v11894_v48 }
 0x348   :  { %v650_v5 = vand.u32 8388607, %v17675_v0  ;;  %v669_v26 = vshll.u32 %v17510_v30, %v657_v58  ;;  %v673_v46 = vshrl.u32 %v17473_v55, %v11848_v12  ;;  %v11903_v36 = vshrl.u32 %v655_v40, 5 }
 0x349   :  { %v664_v7 = vshrl.u32 %v17475_v29, %v11848_v12  ;;  %v667_v13 = vshrl.u32 %v17510_v30, %v11848_v12  ;;  %v7962_v48 = vadd.s32 4294967169, %v4533_v63  ;;  %v7814_v3 = vadd.s32 4294967294, %v607_v41 }
 0x34a   :  { %v660_v0 = vshll.u32 %v17463_v61, %v657_v58  ;;  %v671_v9 = vor.u32 %v670_v22, %v669_v26  ;;  %v672_v14 = vshll.u32 %v17472_v10, %v657_v58  ;;  %vm17676_vm10 = vcmp.lt.s32.totalorder %v11780_v57, 4 }
 0x34b   :  { %v2660_v24 = vsel %vm17676_vm10, %v2648_v35, 2102212464  ;;  %v663_v40 = vshll.u32 %v17511_v34, %v657_v58  ;;  %v666_v17 = vshll.u32 %v17475_v29, %v657_v58  ;;  %v4539_v21 = vadd.s32 1, %v7962_v48  ;;  %v11915_v43 = vpop.eup %8601 }
 0x34c   :  { %17677 = vst [vmem:[#allocation123_spill] sm:$0xff] %v11915_v43  ;;  %v2639_v63 = vshrl.u32 %v17463_v61, %v11742_v53  ;;  %v11919_v39 = vor.u32 %v661_v11, %v660_v0  ;;  %v674_v41 = vor.u32 %v673_v46, %v672_v14  ;;  %v198_v22 = vmul.f32 %v11426_v4, %v145_v45  ;;  %v11922_v26 = vpop.eup %8603 }
 0x34d   :  { %17678 = vst [vmem:[#allocation124_spill] sm:$0xff] %v11922_v26  ;;  %v11924_v54 = vor.u32 %v664_v7, %v663_v40  ;;  %v668_v35 = vor.u32 %v667_v13, %v666_v17  ;;  %vm678_vm4 = vcmp.lt.s32.totalorder %v11903_v36, 4  ;;  %vm4540_vm10 = vcmp.gt.s32.totalorder %v4539_v21, 0 }
 0x34e   :  { %v2659_v58 = vsel %vm2655_vm0, %v2639_v63, %v11805_v49  ;;  %vm17679_vm2 = vcmp.lt.s32.totalorder %v11780_v57, 3  ;;  %v684_v46 = vsel %vm678_vm4, %v671_v9, 920167782  ;;  %v4541_v45 = vsel %vm4540_vm10, %v4539_v21, 0 }
 0x34f   :  { %v2661_v53 = vsel %vm17679_vm2, %v11807_v6, %v2660_v24  ;;  %v4503_v14 = vshll.u32 %v11881_v60, 23  ;;  %vm7815_vm5 = vcmp.lt.s32.totalorder %v7814_v3, 0  ;;  %v2681_v17 = vadd.s32 1, %v11891_v2 }
 0x350   :  { %v4543_v48 = vand.u32 31, %v4541_v45  ;;  %v11937_v11 = vpop.eup %8605  ;;  %vm2680_vm8 = vc.u32 %v11887_v25, %v11890_v33  ;;  %vm675_vm0 = vcmp.lt.s32.totalorder %v11903_v36, 1  ;;  %vm677_vm6 = vcmp.lt.s32.totalorder %v11903_v36, 3 }
 0x351   :  { %17680 = vst [vmem:[#allocation125_spill] sm:$0xff] %v11937_v11  ;;  %v688_v49 = vsel %vm678_vm4, %v674_v41, 1326507024  ;;  %vm17681_vm2 = vcmp.lt.s32.totalorder %v11780_v57, 2  ;;  %v651_v6 = vor.u32 8388608, %v650_v5  ;;  %v683_v24 = vsel %vm675_vm0, %v11919_v39, %v11924_v54 }
 0x352   :  { %v2662_v21 = vsel %vm17681_vm2, %v2659_v58, %v2661_v53  ;;  %v685_v60 = vsel %vm677_vm6, %v668_v35, %v684_v46  ;;  %v4498_v7 = vshll.u32 %v11686_v15, %v11824_v8  ;;  %v11957_v13 = vadd.s32 %v11619_v51, %v11626_v50 }
 0x353   :  { %v11959_v0 = vsel %vm7815_vm5, 0, %v7814_v3  ;;  %v11961_v57 = vsub.s32 32, %v4543_v48  ;;  %v2682_v5 = vsel %vm2680_vm8, %v2681_v17, %v11891_v2  ;;  %vm17186_vm10 = vcmp.lt.s32.totalorder %v11903_v36, 2 }
 0x354   :  { %v687_v40 = vsel %vm675_vm0, %v11924_v54, %v668_v35  ;;  %v689_v63 = vsel %vm677_vm6, %v671_v9, %v688_v49  ;;  %v4499_v15 = vshrl.u32 %v11865_v31, %v4497_v18  ;;  %v2678_v51 = vmul.u32 %v11878_v23, %v2662_v21 }
 0x355   :  { %v686_v50 = vsel %vm17186_vm10, %v683_v24, %v685_v60  ;;  %v17182_v3 = vand.u32 2147483647, %v11811_v47  ;;  %v11975_v8 = vor.u32 4788187, %v4503_v14  ;;  %v615_v2 = vsub.s32 4294967266, %v11959_v0 }
 0x356   :  { %v11978_v41 = vshll.u32 %v651_v6, 8  ;;  %v11981_v58 = vadd.f32 %v11307_v19, %v198_v22  ;;  %v11983_v53 = vadd.s32 %v2682_v5, %v2678_v51  ;;  %v690_v9 = vsel %vm17186_vm10, %v687_v40, %v689_v63 }
 0x357   :  { %v4547_v31 = vshrl.u32 %v17511_v34, %v11961_v57  ;;  %v4550_v23 = vshrl.u32 %v17475_v29, %v11961_v57  ;;  %v4553_v19 = vshrl.u32 %v17510_v30, %v11961_v57  ;;  %v4556_v22 = vshrl.u32 %v17472_v10, %v11961_v57 }
 0x358   :  { %17682 = vst [vmem:[#allocation126_spill] sm:$0xff] %v11981_v58  ;;  %v11992_v18 = vmul.u32.u64.low %v11978_v41, %v686_v50  ;;  %v11993_v46 = vmul.u32.u64.high %v11978_v41, %v686_v50, %v11992_v18  ;;  %v4536_v14 = vand.u32 8388607, %v17182_v3  ;;  %v4546_v17 = vshll.u32 %v17463_v61, %v4543_v48 }
 0x359   :  { %v4549_v49 = vshll.u32 %v17511_v34, %v4543_v48  ;;  %v4555_v21 = vshll.u32 %v17510_v30, %v4543_v48  ;;  %v12006_v6 = vmul.u32.u64.low %v11978_v41, %v690_v9  ;;  %v12007_v24 = vmul.u32.u64.high %v11978_v41, %v690_v9, %v12006_v6 }
 0x35a   :  { %v12009_v60 = vshrl.u32 %v4541_v45, 5  ;;  %v4552_v5 = vshll.u32 %v17475_v29, %v4543_v48  ;;  %v2684_v40 = vadd.s32 536870912, %v11983_v53  ;;  %v12013_v63 = vor.u32 %v4547_v31, %v4546_v17 }
 0x35b   :  { %v12015_v51 = vor.u32 %v4550_v23, %v4549_v49  ;;  %v4557_v50 = vor.u32 %v4556_v22, %v4555_v21  ;;  %v4558_v43 = vshll.u32 %v17472_v10, %v4543_v48  ;;  %v4559_v32 = vshrl.u32 %v17473_v55, %v11961_v57  ;;  %v1933_v21 = vpop.permute.xlu1 %1932 }
 0x35c   :  { %v4554_v3 = vor.u32 %v4553_v19, %v4552_v5  ;;  %v958_v9 = vand.u32 2139095040, %v11981_v58  ;;  %v611_v45 = vsub.s32 32, %v11959_v0  ;;  %v616_v6 = vadd.s32 127, %v615_v2  ;;  %v17683_v19 = vld [vmem:[#allocation100_spill] sm:$0xff] }
 0x35d   :  { %v659_v56 = vshrl.u32 %v17463_v61, %v11848_v12  ;;  %v4537_v20 = vor.u32 8388608, %v4536_v14  ;;  %v680_v31 = vsel %vm678_vm4, %v668_v35, 2102212464  ;;  %v4560_v23 = vor.u32 %v4559_v32, %v4558_v43 }
 0x35e   :  { %vm4561_vm5 = vcmp.lt.s32.totalorder %v12009_v60, 1  ;;  %vm4564_vm8 = vcmp.lt.s32.totalorder %v12009_v60, 4  ;;  %v12028_v48 = vshrl.u32 %v2684_v40, 30  ;;  %vm4563_vm2 = vcmp.lt.s32.totalorder %v12009_v60, 3 }
 0x35f   :  { %v4569_v2 = vsel %vm4561_vm5, %v12013_v63, %v12015_v51  ;;  %v4570_v12 = vsel %vm4564_vm8, %v4557_v50, 920167782  ;;  %vm17191_vm10 = vcmp.lt.s32.totalorder %v17683_v19, 0  ;;  %v4573_v32 = vsel %vm4561_vm5, %v12015_v51, %v4554_v3 }
 0x360   :  { %v4571_v43 = vsel %vm4563_vm2, %v4554_v3, %v4570_v12  ;;  %v4574_v35 = vsel %vm4564_vm8, %v4560_v23, 1326507024  ;;  %v959_v22 = vshrl.u32 %v958_v9, 23  ;;  %v679_v14 = vsel %vm675_vm0, %v659_v56, %v11919_v39 }
 0x361   :  { %v681_v17 = vsel %vm677_vm6, %v11924_v54, %v680_v31  ;;  %vm4562_vm4 = vcmp.lt.s32.totalorder %v12009_v60, 2  ;;  %v4575_v49 = vsel %vm4563_vm2, %v4557_v50, %v4574_v35  ;;  %v4500_v5 = vor.u32 %v4499_v15, %v4498_v7 }
 0x362   :  { %v625_v40 = vsub.s32 4, %v11740_v52  ;;  %v701_v23 = vadd.s32 1, %v11993_v46  ;;  %v4572_v9 = vsel %vm4562_vm4, %v4569_v2, %v4571_v43  ;;  %v2686_v39 = vshll.u32 %v12028_v48, 30 }
 0x363   :  { %vm700_vm0 = vc.u32 %v12007_v24, %v11992_v18  ;;  %v4576_v56 = vsel %vm4562_vm4, %v4573_v32, %v4575_v49  ;;  %v12063_v54 = vshll.u32 %v4537_v20, 8  ;;  %v4505_v50 = vand.u32 2147483647, %v11975_v8 }
 0x364   :  { %vm17684_vm6 = vcmp.lt.s32.totalorder %v11903_v36, 2  ;;  %v7828_v15 = vadd.s32 4294967169, %v959_v22  ;;  %v1974_v31 = vmul.f32 %v11426_v4, %v1933_v21  ;;  %v613_v2 = vshrl.u32 %v11957_v13, %v611_v45 }
 0x365   :  { %v682_v7 = vsel %vm17684_vm6, %v679_v14, %v681_v17  ;;  %v617_v12 = vshll.u32 %v616_v6, 23  ;;  %v12071_v43 = vmul.u32.u64.low %v12063_v54, %v4572_v9  ;;  %v12072_v35 = vmul.u32.u64.high %v12063_v54, %v4572_v9, %v12071_v43 }
 0x366   :  { %v702_v32 = vsel %vm700_vm0, %v701_v23, %v11993_v46  ;;  %v12077_v20 = vmul.u32.u64.low %v12063_v54, %v4576_v56  ;;  %v12078_v49 = vmul.u32.u64.high %v12063_v54, %v4576_v56, %v12077_v20  ;;  %v965_v8 = vadd.s32 1, %v7828_v15  ;;  %v12089_v46 = vld [vmem:[#allocation4 + $0x1] ss:$0 sm:$0xff] }
 0x367   :  { %v12081_v36 = vsub.s32 %v11983_v53, %v2686_v39  ;;  %v698_v4 = vmul.u32 %v11978_v41, %v682_v7  ;;  %v4566_v13 = vsel %vm4564_vm8, %v4554_v3, 2102212464  ;;  %v17187_v45 = vand.u32 2147483647, %v11981_v58 }
 0x368   :  { %v4507_v6 = vcvt.s32.f32 %v4500_v5  ;;  %v4545_v22 = vshrl.u32 %v17463_v61, %v11961_v57  ;;  %vm966_vm0 = vcmp.gt.s32.totalorder %v965_v8, 0  ;;  %v12092_v14 = vadd.f32 %v12089_v46, %v1974_v31 }
 0x369   :  { %v612_v53 = vshll.u32 %v11789_v44, %v11959_v0  ;;  %v12099_v41 = vsel %vm17191_vm10, %v625_v40, %v11740_v52  ;;  %v12101_v3 = vadd.s32 %v702_v32, %v698_v4  ;;  %v967_v17 = vsel %vm966_vm0, %v965_v8, 0 }
 0x36a   :  { %17685 = vst [vmem:[#allocation100_spill] sm:$0xff] %v12092_v14  ;;  %v12103_v21 = vmul.f32 %v4507_v6, %v4505_v50  ;;  %v4565_v57 = vsel %vm4561_vm5, %v4545_v22, %v12013_v63  ;;  %v4567_v5 = vsel %vm4563_vm2, %v12015_v51, %v4566_v13  ;;  %v969_v23 = vand.u32 31, %v967_v17 }
 0x36b   :  { %v12111_v44 = vor.u32 %v613_v2, %v612_v53  ;;  %v12113_v0 = vor.u32 4788187, %v617_v12  ;;  %v2689_v52 = vsub.s32 0, %v12081_v36  ;;  %v962_v40 = vand.u32 8388607, %v17187_v45 }
 0x36c   :  { %v970_v9 = vsub.s32 32, %v969_v23  ;;  %v972_v39 = vshll.u32 %v17463_v61, %v969_v23  ;;  %v975_v56 = vshll.u32 %v17511_v34, %v969_v23  ;;  %v2730_v63 = vand.u32 2139095040, %v12092_v14 }
 0x36d   :  { %v704_v50 = vadd.s32 536870912, %v12101_v3  ;;  %v4568_v51 = vsel %vm4562_vm4, %v4565_v57, %v4567_v5  ;;  %v4587_v7 = vadd.s32 1, %v12072_v35  ;;  %v981_v15 = vshll.u32 %v17510_v30, %v969_v23 }
 0x36e   :  { %vm4586_vm5 = vc.u32 %v12078_v49, %v12071_v43  ;;  %v973_v31 = vshrl.u32 %v17511_v34, %v970_v9  ;;  %v976_v2 = vshrl.u32 %v17475_v29, %v970_v9  ;;  %v978_v12 = vshll.u32 %v17475_v29, %v969_v23 }
 0x36f   :  { %v12131_v32 = vshrl.u32 %v967_v17, 5  ;;  %v979_v20 = vshrl.u32 %v17510_v30, %v970_v9  ;;  %v982_v60 = vshrl.u32 %v17472_v10, %v970_v9  ;;  %v984_v8 = vshll.u32 %v17472_v10, %v969_v23 }
 0x370   :  { %v974_v13 = vor.u32 %v973_v31, %v972_v39  ;;  %v977_v6 = vor.u32 %v976_v2, %v975_v56  ;;  %v2731_v22 = vshrl.u32 %v2730_v63, 23  ;;  %v7889_v53 = vmin.u32 %v2689_v52, %v12081_v36  ;;  %v17686_v56 = vld [vmem:[#allocation93_spill] sm:$0xff] }
 0x371   :  { %v4588_v57 = vsel %vm4586_vm5, %v4587_v7, %v12072_v35  ;;  %v983_v5 = vor.u32 %v982_v60, %v981_v15  ;;  %v985_v45 = vshrl.u32 %v17473_v55, %v970_v9  ;;  %v621_v17 = vcvt.s32.f32 %v12111_v44 }
 0x372   :  { %v12141_v42 = vshrl.u32 %v704_v50, 30  ;;  %v4584_v26 = vmul.u32 %v12063_v54, %v4568_v51  ;;  %v980_v11 = vor.u32 %v979_v20, %v978_v12  ;;  %v619_v23 = vand.u32 2147483647, %v12113_v0  ;;  %v150_v12 = vpop.permute.xlu0 %149 }
 0x373   :  { %v963_v4 = vor.u32 8388608, %v962_v40  ;;  %v986_v39 = vor.u32 %v985_v45, %v984_v8  ;;  %vm987_vm8 = vcmp.lt.s32.totalorder %v12131_v32, 1  ;;  %vm4427_vm2 = vcmp.lt.s32.totalorder %v17686_v56, 0 }
 0x374   :  { %v12147_v52 = vadd.s32 %v4588_v57, %v4584_v26  ;;  %vm990_vm4 = vcmp.lt.s32.totalorder %v12131_v32, 4  ;;  %v995_v35 = vsel %vm987_vm8, %v974_v13, %v977_v6  ;;  %v7892_v44 = vadd.s32 4294967169, %v2731_v22 }
 0x375   :  { %v17687_v63 = vand.u32 2147483647, %v17683_v19  ;;  %v2691_v0 = vclz %v7889_v53  ;;  %vm989_vm0 = vcmp.lt.s32.totalorder %v12131_v32, 3  ;;  %v996_v45 = vsel %vm990_vm4, %v983_v5, 920167782 }
 0x376   :  { %v17192_v26 = vand.u32 2147483647, %v12092_v14  ;;  %v706_v40 = vshll.u32 %v12141_v42, 30  ;;  %vm988_vm5 = vcmp.lt.s32.totalorder %v12131_v32, 2  ;;  %v997_v50 = vsel %vm989_vm0, %v980_v11, %v996_v45 }
 0x377   :  { %vm12154_vm6 = vcmp.le.f32.partialorder %v17687_v63, 0.7853982  ;;  %v999_v51 = vsel %vm987_vm8, %v977_v6, %v980_v11  ;;  %v971_v7 = vshrl.u32 %v17463_v61, %v970_v9  ;;  %v998_v15 = vsel %vm988_vm5, %v995_v35, %v997_v50  ;;  %v12187_v63 = vld [vmem:[#allocation4] ss:$0 sm:$0xff] }
 0x378   :  { %v1000_v31 = vsel %vm990_vm4, %v986_v39, 1326507024  ;;  %v1003_v2 = vshll.u32 %v963_v4, 8  ;;  %v4590_v20 = vadd.s32 536870912, %v12147_v52  ;;  %v992_v60 = vsel %vm990_vm4, %v980_v11, 2102212464 }
 0x379   :  { %v1001_v8 = vsel %vm989_vm0, %v983_v5, %v1000_v31  ;;  %v2737_v22 = vadd.s32 1, %v7892_v44  ;;  %v7890_v53 = vadd.s32 4294967294, %v2691_v0  ;;  %v199_v11 = vmul.f32 %v12187_v63, %v150_v12 }
 0x37a   :  { %v1002_v9 = vsel %vm988_vm5, %v999_v51, %v1001_v8  ;;  %v12180_v57 = vmul.u32.u64.low %v1003_v2, %v998_v15  ;;  %v12181_v35 = vmul.u32.u64.high %v1003_v2, %v998_v15, %v12180_v57  ;;  %v622_v45 = vmul.f32 %v621_v17, %v619_v23 }
 0x37b   :  { %v12184_v39 = vmul.u32.u64.low %v1003_v2, %v1002_v9  ;;  %v12185_v4 = vmul.u32.u64.high %v1003_v2, %v1002_v9, %v12184_v39  ;;  %vm2738_vm10 = vcmp.gt.s32.totalorder %v2737_v22, 0  ;;  %v991_v5 = vsel %vm987_vm8, %v971_v7, %v974_v13 }
 0x37c   :  { %v993_v44 = vsel %vm989_vm0, %v977_v6, %v992_v60  ;;  %v2739_v0 = vsel %vm2738_vm10, %v2737_v22, 0  ;;  %v12195_v50 = vsub.s32 %v12101_v3, %v706_v40  ;;  %v12197_v51 = vshrl.u32 %v4590_v20, 30 }
 0x37d   :  { %v2734_v15 = vand.u32 8388607, %v17192_v26  ;;  %v2741_v31 = vand.u32 31, %v2739_v0  ;;  %8607 = vcosq.f32 %v11875_v62  ;;  %v17690_v17 = vsub.s32 4, %v11639_v16 }
 0x37e   :  { %vm7891_vm8 = vcmp.lt.s32.totalorder %v7890_v53, 0  ;;  %v1013_v6 = vadd.s32 1, %v12181_v35  ;;  %8609 = vsinq.f32 %v11875_v62  ;;  %v628_v3 = vsel %vm12154_vm6, 0, %v12099_v41 }
 0x37f   :  { %v12207_v13 = vsel %vm4427_vm2, %v17690_v17, %v11639_v16  ;;  %v994_v23 = vsel %vm988_vm5, %v991_v5, %v993_v44  ;;  %v12217_v40 = vadd.f32 %v12089_v46, %v199_v11  ;;  %v17693_v7 = vxor.u32 2147483648, %v12103_v21 }
 0x380   :  { %17691 = vst [vmem:[#allocation127_spill] sm:$0xff] %v12207_v13  ;;  %v623_v12 = vxor.u32 2147483648, %v622_v45  ;;  %vm1012_vm10 = vc.u32 %v12185_v4, %v12180_v57  ;;  %v12228_v62 = vsub.s32 32, %v2741_v31  ;;  %v12230_v41 = vsel %vm7891_vm8, 0, %v7890_v53 }
 0x381   :  { %17692 = vst [vmem:[#allocation128_spill] sm:$0xff] %v12217_v40  ;;  %v12224_v16 = vsel %vm4427_vm2, %v17693_v7, %v12103_v21  ;;  %v709_v32 = vsub.s32 0, %v12195_v50  ;;  %v4592_v20 = vshll.u32 %v12197_v51, 30  ;;  %v2735_v60 = vor.u32 8388608, %v2734_v15 }
 0x382   :  { %v1010_v8 = vmul.u32 %v1003_v2, %v994_v23  ;;  %v1014_v22 = vsel %vm1012_vm10, %v1013_v6, %v12181_v35  ;;  %v2745_v21 = vshrl.u32 %v17511_v34, %v12228_v62  ;;  %v2748_v9 = vshrl.u32 %v17475_v29, %v12228_v62 }
 0x383   :  { %v2744_v39 = vshll.u32 %v17463_v61, %v2741_v31  ;;  %v2747_v11 = vshll.u32 %v17511_v34, %v2741_v31  ;;  %v2751_v53 = vshrl.u32 %v17510_v30, %v12228_v62  ;;  %v1062_v5 = vand.u32 2139095040, %v12217_v40 }
 0x384   :  { %v12244_v44 = vshrl.u32 %v2739_v0, 5  ;;  %v2750_v2 = vshll.u32 %v17475_v29, %v2741_v31  ;;  %v2753_v35 = vshll.u32 %v17510_v30, %v2741_v31  ;;  %v2754_v15 = vshrl.u32 %v17472_v10, %v12228_v62 }
 0x385   :  { %v12251_v17 = vsub.s32 %v12147_v52, %v4592_v20  ;;  %v12253_v6 = vadd.s32 %v1014_v22, %v1010_v8  ;;  %v2746_v23 = vor.u32 %v2745_v21, %v2744_v39  ;;  %v2749_v7 = vor.u32 %v2748_v9, %v2747_v11 }
 0x386   :  { %v17694_v26 = vand.u32 2147483647, %v17686_v56  ;;  %v17695_v13 = vmov 0  ;;  %v2752_v0 = vor.u32 %v2751_v53, %v2750_v2  ;;  %v2755_v37 = vor.u32 %v2754_v15, %v2753_v35 }
 0x387   :  { %v2756_v28 = vshll.u32 %v17472_v10, %v2741_v31  ;;  %v2757_v59 = vshrl.u32 %v17473_v55, %v12228_v62  ;;  %vm17698_vm4 = vcmp.lt.s32.totalorder %v17683_v19, 0  ;;  %v2695_v20 = vsub.s32 32, %v12230_v41 }
 0x388   :  { %vm12257_vm2 = vcmp.le.f32.partialorder %v17694_v26, 0.7853982  ;;  %v624_v52 = vsel %vm17698_vm4, %v623_v12, %v622_v45  ;;  %v2699_v8 = vsub.s32 4294967266, %v12230_v41  ;;  %v7817_v22 = vmin.u32 %v709_v32, %v12195_v50 }
 0x389   :  { %v17696_v13 = vsel %vm12257_vm2, 4294967295, %v17695_v13  ;;  %v2758_v26 = vor.u32 %v2757_v59, %v2756_v28  ;;  %vm2759_vm0 = vcmp.lt.s32.totalorder %v12244_v44, 1  ;;  %vm2762_vm5 = vcmp.lt.s32.totalorder %v12244_v44, 4 }
 0x38a   :  { %17697 = vst [vmem:[#allocation129_spill] sm:$0xff] %v17696_v13  ;;  %v1063_v21 = vshrl.u32 %v1062_v5, 23  ;;  %v1016_v31 = vadd.s32 536870912, %v12253_v6  ;;  %vm2761_vm8 = vcmp.lt.s32.totalorder %v12244_v44, 3  ;;  %v2767_v9 = vsel %vm2759_vm0, %v2746_v23, %v2749_v7  ;;  %v12283_v32 = vpop.eup %8607 }
 0x38b   :  { %v2768_v45 = vsel %vm2762_vm5, %v2755_v37, 920167782  ;;  %v4595_v12 = vsub.s32 0, %v12251_v17  ;;  %vm2760_vm10 = vcmp.lt.s32.totalorder %v12244_v44, 2  ;;  %v12281_v28 = vshll.u32 %v2735_v60, 8  ;;  %17699 = vst [vmem:[#allocation130_spill] sm:$0xff] %v12283_v32  ;;  %v12294_v2 = vpop.eup %8609 }
 0x38c   :  { %v2769_v59 = vsel %vm2761_vm8, %v2752_v0, %v2768_v45  ;;  %v627_v39 = vsel %vm12154_vm6, %v17683_v19, %v624_v52  ;;  %v2679_v11 = vadd.s32 %v11890_v33, %v11887_v25  ;;  %v2771_v5 = vsel %vm2759_vm0, %v2749_v7, %v2752_v0  ;;  %17700 = vst [vmem:[#allocation131_spill] sm:$0xff] %v12294_v2 }
 0x38d   :  { %v2770_v53 = vsel %vm2760_vm10, %v2767_v9, %v2769_v59  ;;  %v711_v35 = vclz %v7817_v22  ;;  %v2772_v60 = vsel %vm2762_vm5, %v2758_v26, 1326507024  ;;  %v2700_v54 = vadd.s32 127, %v2699_v8 }
 0x38e   :  { %v12299_v15 = vmul.u32.u64.low %v12281_v28, %v2770_v53  ;;  %v12300_v45 = vmul.u32.u64.high %v12281_v28, %v2770_v53, %v12299_v15  ;;  %v12303_v52 = vshrl.u32 %v1016_v31, 30  ;;  %v2773_v25 = vsel %vm2761_vm8, %v2755_v37, %v2772_v60 }
 0x38f   :  { %v7832_v33 = vadd.s32 4294967169, %v1063_v21  ;;  %v632_v9 = vadd.s32 3, %v628_v3  ;;  %v2697_v59 = vshrl.u32 %v2679_v11, %v2695_v20  ;;  %v7963_v32 = vmin.u32 %v4595_v12, %v12251_v17 }
 0x390   :  { %17701 = vst [vmem:[#allocation132_spill] sm:$0xff] %v12299_v15  ;;  %v2774_v22 = vsel %vm2760_vm10, %v2771_v5, %v2773_v25  ;;  %v12314_v26 = vsel %vm12257_vm2, %v17686_v56, %v12224_v16  ;;  %8611 = vcosq.f32 %v627_v39  ;;  %v2696_v37 = vshll.u32 %v12081_v36, %v12230_v41 }
 0x391   :  { %v12317_v8 = vmul.u32.u64.low %v12281_v28, %v2774_v22  ;;  %v12318_v31 = vmul.u32.u64.high %v12281_v28, %v2774_v22, %v12317_v8  ;;  %v1069_v53 = vadd.s32 1, %v7832_v33  ;;  %v7818_v3 = vadd.s32 4294967294, %v711_v35 }
 0x392   :  { %v2764_v20 = vsel %vm2762_vm5, %v2752_v0, 2102212464  ;;  %v2701_v21 = vshll.u32 %v2700_v54, 23  ;;  %v1018_v12 = vshll.u32 %v12303_v52, 30  ;;  %v2743_v16 = vshrl.u32 %v17463_v61, %v12228_v62 }
 0x393   :  { %vm1070_vm6 = vcmp.gt.s32.totalorder %v1069_v53, 0  ;;  %8613 = vsinq.f32 %v627_v39  ;;  %v12327_v11 = vor.u32 %v2697_v59, %v2696_v37  ;;  %v4597_v5 = vclz %v7963_v32  ;;  %v165_v37 = vpop.permute.xlu0 %164 }
 0x394   :  { %v1071_v60 = vsel %vm1070_vm6, %v1069_v53, 0  ;;  %v2763_v25 = vsel %vm2759_vm0, %v2743_v16, %v2746_v23  ;;  %v2765_v36 = vsel %vm2761_vm8, %v2749_v7, %v2764_v20  ;;  %v2785_v41 = vadd.s32 1, %v12300_v45 }
 0x395   :  { %v1073_v0 = vand.u32 31, %v1071_v60  ;;  %8615 = vcosq.f32 %v12314_v26  ;;  %v12335_v35 = vand.u32 3, %v632_v9  ;;  %vm7819_vm4 = vcmp.lt.s32.totalorder %v7818_v3, 0 }
 0x396   :  { %vm2784_vm5 = vc.u32 %v12318_v31, %v12299_v15  ;;  %v12339_v62 = vor.u32 4788187, %v2701_v21  ;;  %v12343_v32 = vadd.s32 %v11992_v18, %v12007_v24  ;;  %v12346_v23 = vsub.s32 %v12253_v6, %v1018_v12 }
 0x397   :  { %v12348_v7 = vsub.s32 32, %v1073_v0  ;;  %v2705_v39 = vcvt.s32.f32 %v12327_v11  ;;  %v7964_v54 = vadd.s32 4294967294, %v4597_v5  ;;  %v2766_v33 = vsel %vm2760_vm10, %v2763_v25, %v2765_v36 }
 0x398   :  { %v17199_v9 = vand.u32 2147483647, %v12217_v40  ;;  %v12354_v59 = vsel %vm7819_vm4, 0, %v7818_v3  ;;  %v2786_v22 = vsel %vm2784_vm5, %v2785_v41, %v12300_v45  ;;  %v1076_v18 = vshll.u32 %v17463_v61, %v1073_v0 }
 0x399   :  { %v1079_v24 = vshll.u32 %v17511_v34, %v1073_v0  ;;  %v1077_v6 = vshrl.u32 %v17511_v34, %v12348_v7  ;;  %v1080_v8 = vshrl.u32 %v17475_v29, %v12348_v7  ;;  %v1082_v53 = vshll.u32 %v17475_v29, %v1073_v0 }
 0x39a   :  { %v1083_v44 = vshrl.u32 %v17510_v30, %v12348_v7  ;;  %v1021_v3 = vsub.s32 0, %v12346_v23  ;;  %v2782_v45 = vmul.u32 %v12281_v28, %v2766_v33  ;;  %v12368_v20 = vshrl.u32 %v1071_v60, 5 }
 0x39b   :  { %v1085_v21 = vshll.u32 %v17510_v30, %v1073_v0  ;;  %v719_v12 = vsub.s32 4294967266, %v12354_v59  ;;  %vm7965_vm0 = vcmp.lt.s32.totalorder %v7964_v54, 0  ;;  %v1066_v16 = vand.u32 8388607, %v17199_v9 }
 0x39c   :  { %v1086_v11 = vshrl.u32 %v17472_v10, %v12348_v7  ;;  %v12376_v5 = vadd.s32 %v2786_v22, %v2782_v45  ;;  %v1088_v25 = vshll.u32 %v17472_v10, %v1073_v0  ;;  %v1089_v28 = vshrl.u32 %v17473_v55, %v12348_v7 }
 0x39d   :  { %v202_v60 = vmul.f32 %v12187_v63, %v165_v37  ;;  %v1078_v36 = vor.u32 %v1077_v6, %v1076_v18  ;;  %v1081_v41 = vor.u32 %v1080_v8, %v1079_v24  ;;  %v1084_v33 = vor.u32 %v1083_v44, %v1082_v53  ;;  %v8612_v56 = vpop.eup %8611 }
 0x39e   :  { %v1087_v2 = vor.u32 %v1086_v11, %v1085_v21  ;;  %v2703_v13 = vand.u32 2147483647, %v12339_v62  ;;  %v7829_v9 = vmin.u32 %v1021_v3, %v12346_v23  ;;  %v1090_v1 = vor.u32 %v1089_v28, %v1088_v25 }
 0x39f   :  { %vm17201_vm8 = vcmp.lt.s32.totalorder %v12368_v20, 1  ;;  %v715_v22 = vsub.s32 32, %v12354_v59  ;;  %v12387_v0 = vsel %vm7965_vm0, 0, %v7964_v54  ;;  %vm1093_vm10 = vcmp.lt.s32.totalorder %v12368_v20, 3 }
 0x3a0   :  { %vm1094_vm6 = vcmp.lt.s32.totalorder %v12368_v20, 4  ;;  %v8614_v18 = vpop.eup %8613  ;;  %v720_v24 = vadd.s32 127, %v719_v12  ;;  %v1067_v6 = vor.u32 8388608, %v1066_v16  ;;  %v12394_v8 = vadd.f32 %v12089_v46, %v202_v60 }
 0x3a1   :  { %v1100_v62 = vsel %vm1094_vm6, %v1087_v2, 920167782  ;;  %v2788_v53 = vadd.s32 536870912, %v12376_v5  ;;  %v1099_v54 = vsel %vm17201_vm8, %v1078_v36, %v1081_v41  ;;  %v4605_v3 = vsub.s32 4294967266, %v12387_v0 }
 0x3a2   :  { %17702 = vst [vmem:[#allocation133_spill] sm:$0xff] %v12394_v8  ;;  %v1101_v44 = vsel %vm1093_vm10, %v1084_v33, %v1100_v62  ;;  %v12402_v37 = vpop.eup %8615  ;;  %v1023_v45 = vclz %v7829_v9  ;;  %v1103_v21 = vsel %vm17201_vm8, %v1081_v41, %v1084_v33  ;;  %v1104_v12 = vsel %vm1094_vm6, %v1090_v1, 1326507024 }
 0x3a3   :  { %17703 = vst [vmem:[#allocation134_spill] sm:$0xff] %v12402_v37  ;;  %v636_v16 = vxor.u32 2147483648, %v8614_v18  ;;  %vm638_vm0 = vcmp.eq.s32.totalorder %v12335_v35, 2  ;;  %v639_v11 = vxor.u32 2147483648, %v8612_v56  ;;  %v1105_v25 = vsel %vm1093_vm10, %v1087_v2, %v1104_v12  ;;  %v3839_v12 = vpop.permute.xlu1 %3838 }
 0x3a4   :  { %vm17211_vm4 = vcmp.lt.s32.totalorder %v11602_v38, 0  ;;  %v2706_v28 = vmul.f32 %v2705_v39, %v2703_v13  ;;  %v716_v9 = vshll.u32 %v12195_v50, %v12354_v59  ;;  %v717_v60 = vshrl.u32 %v12343_v32, %v715_v22 }
 0x3a5   :  { %vm17704_vm8 = vcmp.lt.s32.totalorder %v12368_v20, 2  ;;  %v12419_v62 = vshrl.u32 %v2788_v53, 30  ;;  %v12423_v40 = vshll.u32 %v1067_v6, 8  ;;  %v1374_v2 = vand.u32 2139095040, %v12394_v8 }
 0x3a6   :  { %v1102_v1 = vsel %vm17704_vm8, %v1099_v54, %v1101_v44  ;;  %vm17705_vm5 = vmmov %vm17704_vm8  ;;  %v721_v15 = vshll.u32 %v720_v24, 23  ;;  %v4601_v13 = vsub.s32 32, %v12387_v0  ;;  %v4606_v39 = vadd.s32 127, %v4605_v3 }
 0x3a7   :  { %v1106_v37 = vsel %vm17705_vm5, %v1103_v21, %v1105_v25  ;;  %v7830_v50 = vadd.s32 4294967294, %v1023_v45  ;;  %v1075_v32 = vshrl.u32 %v17463_v61, %v12348_v7  ;;  %v1375_v53 = vshrl.u32 %v1374_v2, 23 }
 0x3a8   :  { %v12430_v59 = vmul.u32.u64.low %v12423_v40, %v1102_v1  ;;  %v12431_v22 = vmul.u32.u64.high %v12423_v40, %v1102_v1, %v12430_v59  ;;  %v1096_v6 = vsel %vm1094_vm6, %v1084_v33, 2102212464  ;;  %v3880_v24 = vmul.f32 %v12187_v63, %v3839_v12 }
 0x3a9   :  { %v12437_v54 = vmul.u32.u64.low %v12423_v40, %v1106_v37  ;;  %v12438_v44 = vmul.u32.u64.high %v12423_v40, %v1106_v37, %v12437_v54  ;;  %8617 = vsinq.f32 %v12314_v26  ;;  %v2707_v3 = vxor.u32 2147483648, %v2706_v28 }
 0x3aa   :  { %17706 = vst [vmem:[#allocation135_spill] sm:$0xff] %v12430_v59  ;;  %v2790_v7 = vshll.u32 %v12419_v62, 30  ;;  %v7844_v45 = vadd.s32 4294967169, %v1375_v53  ;;  %v12445_v21 = vsel %vm638_vm0, %v639_v11, %v8614_v18  ;;  %v12447_v25 = vor.u32 %v717_v60, %v716_v9 }
 0x3ab   :  { %v12449_v1 = vor.u32 4788187, %v721_v15  ;;  %v4585_v33 = vadd.s32 %v12071_v43, %v12078_v49  ;;  %vm7831_vm8 = vcmp.lt.s32.totalorder %v7830_v50, 0  ;;  %vm17707_vm6 = vcmp.lt.s32.totalorder %v12368_v20, 1 }
 0x3ac   :  { %v1095_v37 = vsel %vm17707_vm6, %v1075_v32, %v1078_v36  ;;  %v1097_v26 = vsel %vm1093_vm10, %v1081_v41, %v1096_v6  ;;  %v1381_v2 = vadd.s32 1, %v7844_v45  ;;  %vm17708_vm5 = vcmp.eq.s32.totalorder %v12335_v35, 0 }
 0x3ad   :  { %v12459_v12 = vsel %vm17708_vm5, %v8612_v56, %v636_v16  ;;  %v4603_v18 = vshrl.u32 %v4585_v33, %v4601_v13  ;;  %v4607_v11 = vshll.u32 %v4606_v39, 23  ;;  %v12462_v15 = vadd.f32 %v12089_v46, %v3880_v24 }
 0x3ae   :  { %v12466_v43 = vsel %vm17211_vm4, %v2707_v3, %v2706_v28  ;;  %v4602_v49 = vshll.u32 %v12251_v17, %v12387_v0  ;;  %v12471_v36 = vsub.s32 %v12376_v5, %v2790_v7  ;;  %vm1382_vm10 = vcmp.gt.s32.totalorder %v1381_v2, 0 }
 0x3af   :  { %17709 = vst [vmem:[#allocation136_spill] sm:$0xff] %v12462_v15  ;;  %v12473_v41 = vsel %vm7831_vm8, 0, %v7830_v50  ;;  %vm17710_vm0 = vcmp.lt.s32.totalorder %v12368_v20, 2  ;;  %v17206_v16 = vand.u32 2147483647, %v12394_v8  ;;  %v1383_v9 = vsel %vm1382_vm10, %v1381_v2, 0 }
 0x3b0   :  { %v1098_v56 = vsel %vm17710_vm0, %v1095_v37, %v1097_v26  ;;  %v723_v60 = vand.u32 2147483647, %v12449_v1  ;;  %v725_v28 = vcvt.s32.f32 %v12447_v25  ;;  %v1117_v13 = vadd.s32 1, %v12431_v22 }
 0x3b1   :  { %v1385_v39 = vand.u32 31, %v1383_v9  ;;  %v4604_v17 = vor.u32 %v4603_v18, %v4602_v49  ;;  %v4608_v0 = vor.u32 4788187, %v4607_v11  ;;  %vm1116_vm6 = vc.u32 %v12438_v44, %v12430_v59 }
 0x3b2   :  { %v4636_v5 = vand.u32 2139095040, %v12462_v15  ;;  %v1031_v20 = vsub.s32 4294967266, %v12473_v41  ;;  %v2793_v50 = vsub.s32 0, %v12471_v36  ;;  %v1114_v32 = vmul.u32 %v12423_v40, %v1098_v56 }
 0x3b3   :  { %v12487_v53 = vsub.s32 32, %v1385_v39  ;;  %v1378_v6 = vand.u32 8388607, %v17206_v16  ;;  %v1388_v54 = vshll.u32 %v17463_v61, %v1385_v39  ;;  %v1391_v24 = vshll.u32 %v17511_v34, %v1385_v39 }
 0x3b4   :  { %v1397_v3 = vshll.u32 %v17510_v30, %v1385_v39  ;;  %v1118_v7 = vsel %vm1116_vm6, %v1117_v13, %v12431_v22  ;;  %v12495_v45 = vshrl.u32 %v1383_v9, 5  ;;  %v1394_v40 = vshll.u32 %v17475_v29, %v1385_v39 }
 0x3b5   :  { %v1389_v25 = vshrl.u32 %v17511_v34, %v12487_v53  ;;  %v1392_v1 = vshrl.u32 %v17475_v29, %v12487_v53  ;;  %v1395_v33 = vshrl.u32 %v17510_v30, %v12487_v53  ;;  %v1398_v37 = vshrl.u32 %v17472_v10, %v12487_v53 }
 0x3b6   :  { %v4637_v26 = vshrl.u32 %v4636_v5, 23  ;;  %v1032_v2 = vadd.s32 127, %v1031_v20  ;;  %v7893_v22 = vmin.u32 %v2793_v50, %v12471_v36  ;;  %v1400_v18 = vshll.u32 %v17472_v10, %v1385_v39  ;;  %v12510_v49 = vpop.eup %8617 }
 0x3b7   :  { %v1401_v11 = vshrl.u32 %v17473_v55, %v12487_v53  ;;  %17711 = vst [vmem:[#allocation137_spill] sm:$0xff] %v12510_v49  ;;  %v17712_v56 = vand.u32 2147483647, %v11602_v38  ;;  %v17713_v9 = vmov 0  ;;  %v12519_v13 = vadd.s32 %v1118_v7, %v1114_v32 }
 0x3b8   :  { %v12521_v5 = vor.u32 %v1389_v25, %v1388_v54  ;;  %v12523_v20 = vor.u32 %v1392_v1, %v1391_v24  ;;  %v1399_v39 = vor.u32 %v1398_v37, %v1397_v3  ;;  %v1027_v50 = vsub.s32 32, %v12473_v41 }
 0x3b9   :  { %vm12515_vm5 = vcmp.le.f32.partialorder %v17712_v56, 0.7853982  ;;  %v1379_v16 = vor.u32 8388608, %v1378_v6  ;;  %v1396_v8 = vor.u32 %v1395_v33, %v1394_v40  ;;  %vm17213_vm10 = vcmp.lt.s32.totalorder %v12495_v45, 1 }
 0x3ba   :  { %v17714_v9 = vsel %vm12515_vm5, 4294967295, %v17713_v9  ;;  %v1402_v49 = vor.u32 %v1401_v11, %v1400_v18  ;;  %vm1406_vm6 = vcmp.lt.s32.totalorder %v12495_v45, 4  ;;  %v7966_v56 = vadd.s32 4294967169, %v4637_v26 }
 0x3bb   :  { %17715 = vst [vmem:[#allocation138_spill] sm:$0xff] %v17714_v9  ;;  %v4609_v59 = vand.u32 2147483647, %v4608_v0  ;;  %v1011_v32 = vadd.s32 %v12180_v57, %v12185_v4  ;;  %v1033_v54 = vshll.u32 %v1032_v2, 23  ;;  %v2795_v24 = vclz %v7893_v22 }
 0x3bc   :  { %v1120_v3 = vadd.s32 536870912, %v12519_v13  ;;  %vm17214_vm8 = vcmp.lt.s32.totalorder %v12495_v45, 2  ;;  %v1411_v6 = vsel %vm17213_vm10, %v12521_v5, %v12523_v20  ;;  %v1412_v7 = vsel %vm1406_vm6, %v1399_v39, 920167782 }
 0x3bd   :  { %v726_v0 = vmul.f32 %v725_v28, %v723_v60  ;;  %v4611_v57 = vcvt.s32.f32 %v4604_v17  ;;  %vm17716_vm14 = vcmp.lt.s32.totalorder %v12495_v45, 3  ;;  %v1415_v25 = vsel %vm17213_vm10, %v12523_v20, %v1396_v8 }
 0x3be   :  { %v1413_v4 = vsel %vm17716_vm14, %v1396_v8, %v1412_v7  ;;  %v1029_v40 = vshrl.u32 %v1011_v32, %v1027_v50  ;;  %v1416_v1 = vsel %vm1406_vm6, %v1402_v49, 1326507024  ;;  %v12549_v33 = vshll.u32 %v1379_v16, 8 }
 0x3bf   :  { %v4643_v37 = vadd.s32 1, %v7966_v56  ;;  %v17717_v26 = vand.u32 2147483647, %v11695_v27  ;;  %v17718_v60 = vmov 0  ;;  %v4612_v28 = vmul.f32 %v4611_v57, %v4609_v59 }
 0x3c0   :  { %v1028_v17 = vshll.u32 %v12346_v23, %v12473_v41  ;;  %v1414_v2 = vsel %vm17214_vm8, %v1411_v6, %v1413_v4  ;;  %v1417_v22 = vsel %vm17716_vm14, %v1399_v39, %v1416_v1  ;;  %v1034_v18 = vor.u32 4788187, %v1033_v54 }
 0x3c1   :  { %vm12553_vm0 = vcmp.le.f32.partialorder %v17717_v26, 0.7853982  ;;  %v7894_v16 = vadd.s32 4294967294, %v2795_v24  ;;  %v12563_v11 = vshrl.u32 %v1120_v3, 30  ;;  %v1418_v49 = vsel %vm17214_vm8, %v1415_v25, %v1417_v22 }
 0x3c2   :  { %v17719_v60 = vsel %vm12553_vm0, 4294967295, %v17718_v60  ;;  %vm17721_vm10 = vcmp.lt.s32.totalorder %v12335_v35, 2  ;;  %v2709_v23 = vsub.s32 4, %v12028_v48  ;;  %v2711_v41 = vsel %vm12515_vm5, %v11602_v38, %v12466_v43 }
 0x3c3   :  { %17720 = vst [vmem:[#allocation139_spill] sm:$0xff] %v17719_v60  ;;  %v641_v59 = vsel %vm17721_vm10, %v12459_v12, %v12445_v21  ;;  %v727_v39 = vxor.u32 2147483648, %v726_v0  ;;  %v17722_v50 = vand.u32 2147483647, %v11811_v47  ;;  %v17723_v56 = vmov 0 }
 0x3c4   :  { %v1030_v32 = vor.u32 %v1029_v40, %v1028_v17  ;;  %v12583_v54 = vmul.u32.u64.low %v12549_v33, %v1414_v2  ;;  %v12584_v24 = vmul.u32.u64.high %v12549_v33, %v1414_v2, %v12583_v54  ;;  %vm4644_vm10 = vcmp.gt.s32.totalorder %v4643_v37, 0 }
 0x3c5   :  { %vm12578_vm14 = vcmp.le.f32.partialorder %v17722_v50, 0.7853982  ;;  %v4613_v35 = vxor.u32 2147483648, %v4612_v28  ;;  %v1387_v21 = vshrl.u32 %v17463_v61, %v12487_v53  ;;  %v1035_v3 = vand.u32 2147483647, %v1034_v18 }
 0x3c6   :  { %v17724_v56 = vsel %vm12578_vm14, 4294967295, %v17723_v56  ;;  %v12590_v12 = vmul.u32.u64.low %v12549_v33, %v1418_v49  ;;  %v12591_v43 = vmul.u32.u64.high %v12549_v33, %v1418_v49, %v12590_v12  ;;  %vm7895_vm8 = vcmp.lt.s32.totalorder %v7894_v16, 0 }
 0x3c7   :  { %17725 = vst [vmem:[#allocation140_spill] sm:$0xff] %v17724_v56  ;;  %v1122_v6 = vshll.u32 %v12563_v11, 30  ;;  %v1408_v7 = vsel %vm1406_vm6, %v1396_v8, 2102212464  ;;  %vm17726_vm4 = vcmp.lt.s32.totalorder %v11602_v38, 0  ;;  %vm17728_vm3 = vcmp.lt.s32.totalorder %v11695_v27, 0 }
 0x3c8   :  { %v12599_v57 = vsel %vm17726_vm4, %v2709_v23, %v12028_v48  ;;  %v728_v4 = vsel %vm17728_vm3, %v727_v39, %v726_v0  ;;  %vm957_vm5 = vcmp.lt.s32.totalorder %v11981_v58, 0  ;;  %v4645_v53 = vsel %vm4644_vm10, %v4643_v37, 0 }
 0x3c9   :  { %17727 = vst [vmem:[#allocation141_spill] sm:$0xff] %v12599_v57  ;;  %vm17729_vm2 = vweird.f32 %v17683_v19  ;;  %8619 = vcosq.f32 %v2711_v41  ;;  %v729_v40 = vsub.s32 4, %v12141_v42  ;;  %v1037_v1 = vcvt.s32.f32 %v1030_v32 }
 0x3ca   :  { %v12606_v25 = vsel %vm17729_vm2, nan, %v641_v59  ;;  %vm17731_vm6 = vcmp.lt.s32.totalorder %v11811_v47, 0  ;;  %v12611_v26 = vsel %vm7895_vm8, 0, %v7894_v16  ;;  %vm17732_vm4 = vcmp.lt.s32.totalorder %v12495_v45, 1 }
 0x3cb   :  { %17730 = vst [vmem:[#allocation142_spill] sm:$0xff] %v12606_v25  ;;  %v4614_v8 = vsel %vm17731_vm6, %v4613_v35, %v4612_v28  ;;  %v1407_v48 = vsel %vm17732_vm4, %v1387_v21, %v12521_v5  ;;  %vm17733_vm3 = vcmp.lt.s32.totalorder %v12495_v45, 3  ;;  %v731_v19 = vsel %vm12553_vm0, %v11695_v27, %v728_v4  ;;  %v170_v28 = vpop.permute.xlu0 %169 }
 0x3cc   :  { %v1409_v0 = vsel %vm17733_vm3, %v12523_v20, %v1408_v7  ;;  %v1038_v37 = vmul.f32 %v1037_v1, %v1035_v3  ;;  %v12623_v17 = vsub.s32 %v12519_v13, %v1122_v6  ;;  %v4647_v2 = vand.u32 31, %v4645_v53  ;;  %v17746_v1 = vld [vmem:[#allocation16_spill] sm:$0xff] }
 0x3cd   :  { %8621 = vsinq.f32 %v2711_v41  ;;  %v4615_v5 = vsub.s32 4, %v12197_v51  ;;  %v1041_v16 = vsub.s32 4, %v12303_v52  ;;  %v4617_v20 = vsel %vm12578_vm14, %v11811_v47, %v4614_v8 }
 0x3ce   :  { %v2803_v49 = vsub.s32 4294967266, %v12611_v26  ;;  %vm17735_vm2 = vcmp.lt.s32.totalorder %v12495_v45, 2  ;;  %v1429_v59 = vadd.s32 1, %v12584_v24  ;;  %vm17736_vm8 = vcmp.lt.s32.totalorder %v11695_v27, 0  ;;  %v1937_v45 = vpop.permute.xlu1 %1936 }
 0x3cf   :  { %v1410_v13 = vsel %vm17735_vm2, %v1407_v48, %v1409_v0  ;;  %v12639_v23 = vsel %vm17736_vm8, %v729_v40, %v12141_v42  ;;  %8623 = vcosq.f32 %v731_v19  ;;  %vm1428_vm10 = vc.u32 %v12591_v43, %v12583_v54 }
 0x3d0   :  { %17737 = vst [vmem:[#allocation143_spill] sm:$0xff] %v12639_v23  ;;  %v203_v41 = vmul.f32 %v12187_v63, %v170_v28  ;;  %8625 = vsinq.f32 %v731_v19  ;;  %v1039_v39 = vxor.u32 2147483648, %v1038_v37  ;;  %v1125_v50 = vsub.s32 0, %v12623_v17 }
 0x3d1   :  { %v12645_v32 = vsub.s32 32, %v4647_v2  ;;  %v12650_v35 = vsel %vm17731_vm6, %v4615_v5, %v12197_v51  ;;  %8627 = vcosq.f32 %v4617_v20  ;;  %v2799_v42 = vsub.s32 32, %v12611_v26  ;;  %v17744_v51 = vld [vmem:[#allocation132_spill] sm:$0xff] }
 0x3d2   :  { %17738 = vst [vmem:[#allocation144_spill] sm:$0xff] %v12650_v35  ;;  %v1426_v21 = vmul.u32 %v12549_v33, %v1410_v13  ;;  %8629 = vsinq.f32 %v4617_v20  ;;  %v12657_v12 = vsel %vm957_vm5, %v1041_v16, %v12303_v52  ;;  %v2804_v3 = vadd.s32 127, %v2803_v49 }
 0x3d3   :  { %17739 = vst [vmem:[#allocation145_spill] sm:$0xff] %v12657_v12  ;;  %v1430_v6 = vsel %vm1428_vm10, %v1429_v59, %v12584_v24  ;;  %v17740_v7 = vand.u32 2147483647, %v11981_v58  ;;  %v17741_v4 = vmov 0  ;;  %vm17221_vm3 = vcmp.lt.s32.totalorder %v12092_v14, 0 }
 0x3d4   :  { %v2783_v33 = vadd.s32 %v17744_v51, %v12318_v31  ;;  %v12670_v40 = vadd.f32 %v12089_v46, %v203_v41  ;;  %v1975_v52 = vmul.f32 %v12187_v63, %v1937_v45  ;;  %v1040_v24 = vsel %vm957_vm5, %v1039_v39, %v1038_v37 }
 0x3d5   :  { %vm12662_vm4 = vcmp.le.f32.partialorder %v17740_v7, 0.7853982  ;;  %v2813_v48 = vsub.s32 4, %v12419_v62  ;;  %v7833_v0 = vmin.u32 %v1125_v50, %v12623_v17  ;;  %v4660_v19 = vshrl.u32 %v17472_v10, %v12645_v32 }
 0x3d6   :  { %v17742_v4 = vsel %vm12662_vm4, 4294967295, %v17741_v4  ;;  %17745 = vst [vmem:[#allocation132_spill] sm:$0xff] %v12670_v40  ;;  %v2801_v28 = vshrl.u32 %v2783_v33, %v2799_v42  ;;  %v12680_v5 = vadd.s32 %v1430_v6, %v1426_v21  ;;  %v17223_v31 = vand.u32 2147483647, %v12462_v15  ;;  %v12690_v13 = vpop.eup %8619 }
 0x3d7   :  { %17743 = vst [vmem:[#allocation146_spill] sm:$0xff] %v17742_v4  ;;  %v4663_v63 = vshrl.u32 %v17473_v55, %v12645_v32  ;;  %v2805_v16 = vshll.u32 %v2804_v3, 23  ;;  %v12685_v20 = vshrl.u32 %v4645_v53, 5  ;;  %v4651_v37 = vshrl.u32 %v17511_v34, %v12645_v32  ;;  %17747 = vst [vmem:[#allocation16_spill] sm:$0xff] %v12690_v13 }
 0x3d8   :  { %v4659_v49 = vshll.u32 %v17510_v30, %v4647_v2  ;;  %v4654_v59 = vshrl.u32 %v17475_v29, %v12645_v32  ;;  %v4657_v41 = vshrl.u32 %v17510_v30, %v12645_v32  ;;  %v4662_v39 = vshll.u32 %v17472_v10, %v4647_v2 }
 0x3d9   :  { %v1478_v50 = vand.u32 2139095040, %v12670_v40  ;;  %v1127_v45 = vclz %v7833_v0  ;;  %v4650_v53 = vshll.u32 %v17463_v61, %v4647_v2  ;;  %v4653_v42 = vshll.u32 %v17511_v34, %v4647_v2 }
 0x3da   :  { %v4661_v21 = vor.u32 %v4660_v19, %v4659_v49  ;;  %v1432_v3 = vadd.s32 536870912, %v12680_v5  ;;  %v4656_v6 = vshll.u32 %v17475_v29, %v4647_v2  ;;  %v4664_v7 = vor.u32 %v4663_v63, %v4662_v39  ;;  %v12702_v33 = vpop.eup %8621 }
 0x3db   :  { %v1479_v51 = vshrl.u32 %v1478_v50, 23  ;;  %17748 = vst [vmem:[#allocation147_spill] sm:$0xff] %v12702_v33  ;;  %v2800_v18 = vshll.u32 %v12471_v36, %v12611_v26  ;;  %v2806_v8 = vor.u32 4788187, %v2805_v16  ;;  %v4640_v0 = vand.u32 8388607, %v17223_v31 }
 0x3dc   :  { %v4652_v12 = vor.u32 %v4651_v37, %v4650_v53  ;;  %v4655_v27 = vor.u32 %v4654_v59, %v4653_v42  ;;  %v4658_v60 = vor.u32 %v4657_v41, %v4656_v6  ;;  %vm17222_vm5 = vcmp.lt.s32.totalorder %v12685_v20, 4  ;;  %v12709_v49 = vpop.eup %8623 }
 0x3dd   :  { %v7848_v19 = vadd.s32 4294967169, %v1479_v51  ;;  %17749 = vst [vmem:[#allocation148_spill] sm:$0xff] %v12709_v49  ;;  %v1043_v2 = vsel %vm12662_vm4, %v11981_v58, %v1040_v24  ;;  %v2802_v63 = vor.u32 %v2801_v28, %v2800_v18  ;;  %v12717_v36 = vsel %vm17221_vm3, %v2813_v48, %v12419_v62  ;;  %v12721_v16 = vpop.eup %8625  ;;  %v17755_v51 = vld [vmem:[#allocation128_spill] sm:$0xff] }
 0x3de   :  { %17750 = vst [vmem:[#allocation149_spill] sm:$0xff] %v12717_v36  ;;  %v4674_v26 = vsel %vm17222_vm5, %v4661_v21, 920167782  ;;  %17751 = vst [vmem:[#allocation150_spill] sm:$0xff] %v12721_v16  ;;  %v7834_v37 = vadd.s32 4294967294, %v1127_v45  ;;  %v12723_v59 = vshrl.u32 %v1432_v3, 30  ;;  %v12727_v50 = vpop.eup %8627  ;;  %v12738_v45 = vadd.f32 %v12089_v46, %v1975_v52 }
 0x3df   :  { %v4678_v41 = vsel %vm17222_vm5, %v4664_v7, 1326507024  ;;  %v1485_v39 = vadd.s32 1, %v7848_v19  ;;  %17752 = vst [vmem:[#allocation151_spill] sm:$0xff] %v12727_v50  ;;  %v2807_v18 = vand.u32 2147483647, %v2806_v8  ;;  %v12731_v62 = vpop.eup %8629  ;;  %8631 = vcosq.f32 %v1043_v2 }
 0x3e0   :  { %v4641_v24 = vor.u32 8388608, %v4640_v0  ;;  %vm4665_vm2 = vcmp.lt.s32.totalorder %v12685_v20, 1  ;;  %vm4667_vm8 = vcmp.lt.s32.totalorder %v12685_v20, 3  ;;  %17753 = vst [vmem:[#allocation152_spill] sm:$0xff] %v12731_v62  ;;  %17754 = vst [vmem:[#allocation153_spill] sm:$0xff] %v12738_v45  ;;  %v2809_v53 = vcvt.s32.f32 %v2802_v63  ;;  %v17756_v46 = vld [vmem:[#allocation135_spill] sm:$0xff] }
 0x3e1   :  { %v4673_v48 = vsel %vm4665_vm2, %v4652_v12, %v4655_v27  ;;  %v4675_v28 = vsel %vm4667_vm8, %v4658_v60, %v4674_v26  ;;  %vm1486_vm10 = vcmp.gt.s32.totalorder %v1485_v39, 0  ;;  %v4677_v8 = vsel %vm4665_vm2, %v4655_v27, %v4658_v60 }
 0x3e2   :  { %v4679_v42 = vsel %vm4667_vm8, %v4661_v21, %v4678_v41  ;;  %vm7835_vm6 = vcmp.lt.s32.totalorder %v7834_v37, 0  ;;  %v1434_v3 = vshll.u32 %v12723_v59, 30  ;;  %vm4666_vm3 = vcmp.lt.s32.totalorder %v12685_v20, 2 }
 0x3e3   :  { %v1487_v6 = vsel %vm1486_vm10, %v1485_v39, 0  ;;  %8633 = vsinq.f32 %v1043_v2  ;;  %v2810_v7 = vmul.f32 %v2809_v53, %v2807_v18  ;;  %vm17234_vm5 = vcmp.lt.s32.totalorder %v17755_v51, 0 }
 0x3e4   :  { %v1115_v52 = vadd.s32 %v17756_v46, %v12438_v44  ;;  %v4676_v0 = vsel %vm4666_vm3, %v4673_v48, %v4675_v28  ;;  %v4680_v19 = vsel %vm4666_vm3, %v4677_v8, %v4679_v42  ;;  %v12753_v21 = vshll.u32 %v4641_v24, 8 }
 0x3e5   :  { %v1489_v63 = vand.u32 31, %v1487_v6  ;;  %v2834_v26 = vand.u32 2139095040, %v12738_v45  ;;  %v12756_v41 = vsel %vm7835_vm6, 0, %v7834_v37  ;;  %v4649_v2 = vshrl.u32 %v17463_v61, %v12645_v32 }
 0x3e6   :  { %vm17757_vm10 = vcmp.lt.s32.totalorder %v12685_v20, 4  ;;  %v12764_v18 = vsub.s32 %v12680_v5, %v1434_v3  ;;  %v12767_v48 = vmul.u32.u64.low %v12753_v21, %v4676_v0  ;;  %v12768_v24 = vmul.u32.u64.high %v12753_v21, %v4676_v0, %v12767_v48 }
 0x3e7   :  { %v4670_v39 = vsel %vm17757_vm10, %v4658_v60, 2102212464  ;;  %v12771_v28 = vsub.s32 32, %v1489_v63  ;;  %v2811_v37 = vxor.u32 2147483648, %v2810_v7  ;;  %v1145_v53 = vsub.s32 4, %v12563_v11 }
 0x3e8   :  { %v12775_v32 = vmul.u32.u64.low %v12753_v21, %v4680_v19  ;;  %v12776_v8 = vmul.u32.u64.high %v12753_v21, %v4680_v19, %v12775_v32  ;;  %v1135_v60 = vsub.s32 4294967266, %v12756_v41  ;;  %v4669_v5 = vsel %vm4665_vm2, %v4649_v2, %v4652_v12 }
 0x3e9   :  { %v1501_v42 = vshll.u32 %v17510_v30, %v1489_v63  ;;  %v2835_v3 = vshrl.u32 %v2834_v26, 23  ;;  %v4671_v46 = vsel %vm4667_vm8, %v4655_v27, %v4670_v39  ;;  %v12784_v0 = vshrl.u32 %v1487_v6, 5 }
 0x3ea   :  { %v1502_v31 = vshrl.u32 %v17472_v10, %v12771_v28  ;;  %v1504_v44 = vshll.u32 %v17472_v10, %v1489_v63  ;;  %v1437_v19 = vsub.s32 0, %v12764_v18  ;;  %v1492_v32 = vshll.u32 %v17463_v61, %v1489_v63 }
 0x3eb   :  { %v1495_v58 = vshll.u32 %v17511_v34, %v1489_v63  ;;  %v1505_v12 = vshrl.u32 %v17473_v55, %v12771_v28  ;;  %v1493_v26 = vshrl.u32 %v17511_v34, %v12771_v28  ;;  %v1496_v27 = vshrl.u32 %v17475_v29, %v12771_v28 }
 0x3ec   :  { %v1498_v6 = vshll.u32 %v17475_v29, %v1489_v63  ;;  %v1499_v2 = vshrl.u32 %v17510_v30, %v12771_v28  ;;  %v17758_v39 = vand.u32 2147483647, %v12092_v14  ;;  %v17759_v4 = vmov 0 }
 0x3ed   :  { %vm17762_vm8 = vcmp.lt.s32.totalorder %v12092_v14, 0  ;;  %v12812_v16 = vsel %vm17234_vm5, %v1145_v53, %v12563_v11  ;;  %v1503_v23 = vor.u32 %v1502_v31, %v1501_v42  ;;  %v7896_v22 = vadd.s32 4294967169, %v2835_v3 }
 0x3ee   :  { %vm12803_vm2 = vcmp.le.f32.partialorder %v17758_v39, 0.7853982  ;;  %v2812_v49 = vsel %vm17762_vm8, %v2811_v37, %v2810_v7  ;;  %17763 = vst [vmem:[#allocation154_spill] sm:$0xff] %v12812_v16  ;;  %v1131_v63 = vsub.s32 32, %v12756_v41  ;;  %v17764_v25 = vand.u32 2147483647, %v12670_v40  ;;  %v12818_v39 = vpop.eup %8631 }
 0x3ef   :  { %v17760_v4 = vsel %vm12803_vm2, 4294967295, %v17759_v4  ;;  %v1506_v50 = vor.u32 %v1505_v12, %v1504_v44  ;;  %vm17235_vm6 = vcmp.lt.s32.totalorder %v12784_v0, 4  ;;  %17765 = vst [vmem:[#allocation155_spill] sm:$0xff] %v12818_v39  ;;  %v1136_v62 = vadd.s32 127, %v1135_v60 }
 0x3f0   :  { %17761 = vst [vmem:[#allocation135_spill] sm:$0xff] %v17760_v4  ;;  %v1482_v47 = vand.u32 8388607, %v17764_v25  ;;  %v7845_v7 = vmin.u32 %v1437_v19, %v12764_v18  ;;  %v4672_v37 = vsel %vm4666_vm3, %v4669_v5, %v4671_v46  ;;  %v4691_v11 = vadd.s32 1, %v12768_v24  ;;  %v12826_v25 = vpop.eup %8633  ;;  %v17791_v4 = vld [vmem:[#allocation133_spill] sm:$0xff] }
 0x3f1   :  { %vm4690_vm10 = vc.u32 %v12776_v8, %v12767_v48  ;;  %v1494_v31 = vor.u32 %v1493_v26, %v1492_v32  ;;  %v1497_v53 = vor.u32 %v1496_v27, %v1495_v58  ;;  %v1500_v42 = vor.u32 %v1499_v2, %v1498_v6  ;;  %17766 = vst [vmem:[#allocation156_spill] sm:$0xff] %v12826_v25 }
 0x3f2   :  { %vm1507_vm8 = vcmp.lt.s32.totalorder %v12784_v0, 1  ;;  %vm1509_vm5 = vcmp.lt.s32.totalorder %v12784_v0, 3  ;;  %v1516_v44 = vsel %vm17235_vm6, %v1503_v23, 920167782  ;;  %v2841_v60 = vadd.s32 1, %v7896_v22 }
 0x3f3   :  { %v1132_v20 = vshll.u32 %v12623_v17, %v12756_v41  ;;  %v1133_v5 = vshrl.u32 %v1115_v52, %v1131_v63  ;;  %v1483_v3 = vor.u32 8388608, %v1482_v47  ;;  %v1520_v46 = vsel %vm17235_vm6, %v1506_v50, 1326507024 }
 0x3f4   :  { %v1137_v58 = vshll.u32 %v1136_v62, 23  ;;  %v1439_v19 = vclz %v7845_v7  ;;  %v4688_v32 = vmul.u32 %v12753_v21, %v4672_v37  ;;  %v4692_v12 = vsel %vm4690_vm10, %v4691_v11, %v12768_v24 }
 0x3f5   :  { %vm1508_vm3 = vcmp.lt.s32.totalorder %v12784_v0, 2  ;;  %v1515_v22 = vsel %vm1507_vm8, %v1494_v31, %v1497_v53  ;;  %v1517_v47 = vsel %vm1509_vm5, %v1500_v42, %v1516_v44  ;;  %v17236_v17 = vand.u32 2147483647, %v12738_v45 }
 0x3f6   :  { %v1519_v50 = vsel %vm1507_vm8, %v1497_v53, %v1500_v42  ;;  %v1521_v62 = vsel %vm1509_vm5, %v1503_v23, %v1520_v46  ;;  %vm2842_vm6 = vcmp.gt.s32.totalorder %v2841_v60, 0  ;;  %v17767_v52 = vand.u32 2147483647, %v17746_v1 }
 0x3f7   :  { %v12858_v41 = vsel %vm12803_vm2, %v12092_v14, %v2812_v49  ;;  %v12860_v24 = vadd.s32 %v4692_v12, %v4688_v32  ;;  %v12862_v26 = vshll.u32 %v1483_v3, 8  ;;  %v2843_v27 = vsel %vm2842_vm6, %v2841_v60, 0  ;;  %v17769_v3 = vld [vmem:[#allocation25_spill] sm:$0xff] }
 0x3f8   :  { %v12853_v21 = vand.u32 8388607, %v17767_v52  ;;  %v12864_v6 = vor.u32 %v1133_v5, %v1132_v20  ;;  %v7846_v2 = vadd.s32 4294967294, %v1439_v19  ;;  %v1518_v23 = vsel %vm1508_vm3, %v1515_v22, %v1517_v47  ;;  %v17768_v20 = vld [vmem:[#allocation23_spill] sm:$0xff] }
 0x3f9   :  { %v2845_v63 = vand.u32 31, %v2843_v27  ;;  %v12868_v7 = vor.u32 4788187, %v1137_v58  ;;  %v1491_v37 = vshrl.u32 %v17463_v61, %v12771_v28  ;;  %v1522_v49 = vsel %vm1508_vm3, %v1519_v50, %v1521_v62 }
 0x3fa   :  { %v2838_v11 = vand.u32 8388607, %v17236_v17  ;;  %v2016_v5 = vshll.u32 %v17463_v61, %v17768_v20  ;;  %v2017_v46 = vshrl.u32 %v17511_v34, %v17769_v3  ;;  %v4694_v58 = vadd.s32 536870912, %v12860_v24 }
 0x3fb   :  { %v12876_v44 = vsub.s32 32, %v2845_v63  ;;  %vm17770_vm6 = vcmp.lt.s32.totalorder %v12784_v0, 4  ;;  %v12887_v19 = vmul.u32.u64.low %v12862_v26, %v1518_v23  ;;  %v12888_v32 = vmul.u32.u64.high %v12862_v26, %v1518_v23, %v12887_v19 }
 0x3fc   :  { %v1512_v28 = vsel %vm17770_vm6, %v1500_v42, 2102212464  ;;  %v12892_v12 = vmul.u32.u64.low %v12862_v26, %v1522_v49  ;;  %v12893_v22 = vmul.u32.u64.high %v12862_v26, %v1522_v49, %v12892_v12  ;;  %v1511_v62 = vsel %vm1507_vm8, %v1491_v37, %v1494_v31 }
 0x3fd   :  { %v2849_v47 = vshrl.u32 %v17511_v34, %v12876_v44  ;;  %v2852_v50 = vshrl.u32 %v17475_v29, %v12876_v44  ;;  %v2855_v42 = vshrl.u32 %v17510_v30, %v12876_v44  ;;  %v2857_v52 = vshll.u32 %v17510_v30, %v2845_v63 }
 0x3fe   :  { %v2858_v23 = vshrl.u32 %v17472_v10, %v12876_v44  ;;  %v1513_v49 = vsel %vm1509_vm5, %v1497_v53, %v1512_v28  ;;  %v12908_v12 = vshrl.u32 %v2843_v27, 5  ;;  %v2848_v17 = vshll.u32 %v17463_v61, %v2845_v63 }
 0x3ff   :  { %v2851_v60 = vshll.u32 %v17511_v34, %v2845_v63  ;;  %v2854_v16 = vshll.u32 %v17475_v29, %v2845_v63  ;;  %v2860_v37 = vshll.u32 %v17472_v10, %v2845_v63  ;;  %v2861_v39 = vshrl.u32 %v17473_v55, %v12876_v44 }
 0x400   :  { %v2859_v31 = vor.u32 %v2858_v23, %v2857_v52  ;;  %v12916_v25 = vshrl.u32 %v4694_v58, 30  ;;  %v2839_v56 = vor.u32 8388608, %v2838_v11  ;;  %v12918_v35 = vor.u32 %v2849_v47, %v2848_v17 }
 0x401   :  { %v12920_v53 = vor.u32 %v2852_v50, %v2851_v60  ;;  %v2856_v27 = vor.u32 %v2855_v42, %v2854_v16  ;;  %v2862_v28 = vor.u32 %v2861_v39, %v2860_v37  ;;  %v2020_v14 = vshrl.u32 %v17475_v29, %v17769_v3 }
 0x402   :  { %v2023_v52 = vshrl.u32 %v17510_v30, %v17769_v3  ;;  %v1514_v63 = vsel %vm1508_vm3, %v1511_v62, %v1513_v49  ;;  %vm17242_vm5 = vcmp.lt.s32.totalorder %v12908_v12, 4  ;;  %v2018_v58 = vor.u32 %v2017_v46, %v2016_v5 }
 0x403   :  { %v2019_v17 = vshll.u32 %v17511_v34, %v17768_v20  ;;  %v1533_v11 = vadd.s32 1, %v12888_v32  ;;  %vm17243_vm8 = vcmp.lt.s32.totalorder %v12908_v12, 1  ;;  %v2872_v16 = vsel %vm17242_vm5, %v2859_v31, 920167782 }
 0x404   :  { %v2022_v39 = vshll.u32 %v17475_v29, %v17768_v20  ;;  %v4696_v60 = vshll.u32 %v12916_v25, 30  ;;  %vm1532_vm3 = vc.u32 %v12893_v22, %v12887_v19  ;;  %vm2865_vm6 = vcmp.lt.s32.totalorder %v12908_v12, 3 }
 0x405   :  { %v2871_v0 = vsel %vm17243_vm8, %v12918_v35, %v12920_v53  ;;  %v2873_v5 = vsel %vm2865_vm6, %v2856_v27, %v2872_v16  ;;  %v2876_v46 = vsel %vm17242_vm5, %v2862_v28, 1326507024  ;;  %v2021_v47 = vor.u32 %v2020_v14, %v2019_v17  ;;  %v17772_v28 = vld [vmem:[#allocation22_spill] sm:$0xff]  ;;  %v17775_v16 = vld [vmem:[#allocation28_spill] sm:$0xff] }
 0x406   :  { %v2024_v20 = vor.u32 %v2023_v52, %v2022_v39  ;;  %v1530_v50 = vmul.u32 %v12862_v26, %v1514_v63  ;;  %vm2864_vm10 = vcmp.lt.s32.totalorder %v12908_v12, 2  ;;  %v2875_v62 = vsel %vm17243_vm8, %v12920_v53, %v2856_v27 }
 0x407   :  { %v2877_v42 = vsel %vm2865_vm6, %v2859_v31, %v2876_v46  ;;  %vm17771_vm4 = vcmp.lt.s32.totalorder %v7846_v2, 0  ;;  %v1534_v49 = vsel %vm1532_vm3, %v1533_v11, %v12888_v32  ;;  %v2874_v14 = vsel %vm2864_vm10, %v2871_v0, %v2873_v5  ;;  %v17773_v31 = vld [vmem:[#allocation32_spill] sm:$0xff]  ;;  %v17774_v11 = vld [vmem:[#allocation33_spill] sm:$0xff] }
 0x408   :  { %v12957_v23 = vsel %vm17771_vm4, 0, %v7846_v2  ;;  %v12962_v37 = vshll.u32 %v2839_v56, 8  ;;  %v12965_v26 = vsub.s32 %v12860_v24, %v4696_v60  ;;  %vm2031_vm5 = vcmp.lt.s32.totalorder %v17772_v28, 1 }
 0x409   :  { %vm2032_vm8 = vcmp.lt.s32.totalorder %v17772_v28, 2  ;;  %vm2033_vm0 = vcmp.lt.s32.totalorder %v17772_v28, 3  ;;  %v2878_v2 = vsel %vm2864_vm10, %v2875_v62, %v2877_v42  ;;  %v2039_v32 = vsel %vm2031_vm5, %v2018_v58, %v2021_v47 }
 0x40a   :  { %v2041_v56 = vsel %vm2033_vm0, %v2024_v20, %v17773_v31  ;;  %v2043_v24 = vsel %vm2031_vm5, %v2021_v47, %v2024_v20  ;;  %v12979_v52 = vadd.s32 %v1534_v49, %v1530_v50  ;;  %v2045_v39 = vsel %vm2033_vm0, %v17775_v16, %v17774_v11 }
 0x40b   :  { %v12982_v63 = vmul.u32.u64.low %v12962_v37, %v2874_v14  ;;  %v12983_v17 = vmul.u32.u64.high %v12962_v37, %v2874_v14, %v12982_v63  ;;  %v1139_v60 = vand.u32 2147483647, %v12868_v7  ;;  %v2042_v0 = vsel %vm2032_vm8, %v2039_v32, %v2041_v56 }
 0x40c   :  { %v2046_v5 = vsel %vm2032_vm8, %v2043_v24, %v2045_v39  ;;  %v17776_v46 = vor.u32 8388608, %v12853_v21  ;;  %v1447_v62 = vsub.s32 4294967266, %v12957_v23  ;;  %vm17777_vm4 = vcmp.lt.s32.totalorder %v17772_v28, 4 }
 0x40d   :  { %v12999_v42 = vmul.u32.u64.low %v12962_v37, %v2878_v2  ;;  %v13000_v49 = vmul.u32.u64.high %v12962_v37, %v2878_v2, %v12999_v42  ;;  %v2036_v14 = vsel %vm17777_vm4, %v2024_v20, 2102212464  ;;  %v4699_v7 = vsub.s32 0, %v12965_v26 }
 0x40e   :  { %v2047_v50 = vshll.u32 %v17776_v46, 8  ;;  %v2015_v32 = vshrl.u32 %v17463_v61, %v17769_v3  ;;  %8635 = vcosq.f32 %v12858_v41  ;;  %v1536_v21 = vadd.s32 536870912, %v12979_v52 }
 0x40f   :  { %v1141_v2 = vcvt.s32.f32 %v12864_v6  ;;  %v1443_v20 = vsub.s32 32, %v12957_v23  ;;  %v2037_v3 = vsel %vm2033_vm0, %v2021_v47, %v2036_v14  ;;  %v1427_v39 = vadd.s32 %v12583_v54, %v12591_v43 }
 0x410   :  { %v13007_v31 = vmul.u32.u64.low %v2047_v50, %v2046_v5  ;;  %v13008_v56 = vmul.u32.u64.high %v2047_v50, %v2046_v5, %v13007_v31  ;;  %v13012_v24 = vmul.u32.u64.low %v2047_v50, %v2042_v0  ;;  %v13013_v11 = vmul.u32.u64.high %v2047_v50, %v2042_v0, %v13012_v24  ;;  %v17779_v0 = vld [vmem:[#allocation18_spill] sm:$0xff] }
 0x411   :  { %v2035_v16 = vsel %vm2031_vm5, %v2015_v32, %v2018_v58  ;;  %v1448_v5 = vadd.s32 127, %v1447_v62  ;;  %vm17778_vm3 = vcmp.lt.s32.totalorder %v12908_v12, 4  ;;  %v17247_v42 = vand.u32 2147483647, %v17779_v0 }
 0x412   :  { %v2868_v46 = vsel %vm17778_vm3, %v2856_v27, 2102212464  ;;  %v1142_v31 = vmul.f32 %v1141_v2, %v1139_v60  ;;  %v1444_v6 = vshll.u32 %v12764_v18, %v12957_v23  ;;  %v7967_v38 = vmin.u32 %v4699_v7, %v12965_v26 }
 0x413   :  { %v2847_v58 = vshrl.u32 %v17463_v61, %v12876_v44  ;;  %v13032_v32 = vshrl.u32 %v1536_v21, 30  ;;  %v2038_v54 = vsel %vm2032_vm8, %v2035_v16, %v2037_v3  ;;  %vm2056_vm0 = vc.u32 %v13008_v56, %v13012_v24  ;;  %v17781_v44 = vld [vmem:[#allocation35_spill] sm:$0xff]  ;;  %v17782_v21 = vld [vmem:[#allocation29_spill] sm:$0xff] }
 0x414   :  { %v2057_v43 = vadd.s32 1, %v13013_v11  ;;  %v1445_v27 = vshrl.u32 %v1427_v39, %v1443_v20  ;;  %vm17780_vm5 = vcmp.lt.s32.totalorder %v12908_v12, 1  ;;  %v2869_v47 = vsel %vm2865_vm6, %v12920_v53, %v2868_v46 }
 0x415   :  { %v2867_v18 = vsel %vm17780_vm5, %v2847_v58, %v12918_v35  ;;  %v2124_v23 = vshrl.u32 %v17475_v29, %v17781_v44  ;;  %v1449_v60 = vshll.u32 %v1448_v5, 23  ;;  %vm2888_vm8 = vc.u32 %v13000_v49, %v12982_v63 }
 0x416   :  { %v2889_v28 = vadd.s32 1, %v12983_v17  ;;  %v2110_v62 = vand.u32 8388607, %v17247_v42  ;;  %v2054_v14 = vmul.u32 %v2047_v50, %v2038_v54  ;;  %v2058_v7 = vsel %vm2056_vm0, %v2057_v43, %v13013_v11 }
 0x417   :  { %v2121_v35 = vshrl.u32 %v17511_v34, %v17781_v44  ;;  %v2123_v53 = vshll.u32 %v17511_v34, %v17782_v21  ;;  %v4701_v2 = vclz %v7967_v38  ;;  %v1538_v20 = vshll.u32 %v13032_v32, 30 }
 0x418   :  { %v2870_v16 = vsel %vm2864_vm10, %v2867_v18, %v2869_v47  ;;  %v2120_v3 = vshll.u32 %v17463_v61, %v17782_v21  ;;  %v2059_v39 = vadd.s32 %v2058_v7, %v2054_v14  ;;  %v2126_v50 = vshll.u32 %v17475_v29, %v17782_v21  ;;  %v17787_v14 = vld [vmem:[#allocation37_spill] sm:$0xff] }
 0x419   :  { %v2125_v5 = vor.u32 %v2124_v23, %v2123_v53  ;;  %v2127_v11 = vshrl.u32 %v17510_v30, %v17781_v44  ;;  %v17783_v46 = vand.u32 2147483647, %v17755_v51  ;;  %v17784_v38 = vmov 0  ;;  %v17788_v53 = vld [vmem:[#allocation43_spill] sm:$0xff] }
 0x41a   :  { %v1143_v58 = vxor.u32 2147483648, %v1142_v31  ;;  %v1450_v12 = vor.u32 4788187, %v1449_v60  ;;  %v2890_v54 = vsel %vm2888_vm8, %v2889_v28, %v12983_v17  ;;  %v2111_v43 = vor.u32 8388608, %v2110_v62 }
 0x41b   :  { %vm13068_vm6 = vcmp.le.f32.partialorder %v17783_v46, 0.7853982  ;;  %v2060_v18 = vadd.s32 536870912, %v2059_v39  ;;  %v2122_v47 = vor.u32 %v2121_v35, %v2120_v3  ;;  %v2128_v23 = vor.u32 %v2127_v11, %v2126_v50  ;;  %v17789_v46 = vld [vmem:[#allocation39_spill] sm:$0xff]  ;;  %v13083_v42 = vpop.eup %8635 }
 0x41c   :  { %v17785_v38 = vsel %vm13068_vm6, 4294967295, %v17784_v38  ;;  %vm2137_vm10 = vcmp.lt.s32.totalorder %v17787_v14, 3  ;;  %v1446_v7 = vor.u32 %v1445_v27, %v1444_v6  ;;  %v2886_v21 = vmul.u32 %v12962_v37, %v2870_v16  ;;  %17790 = vst [vmem:[#allocation25_spill] sm:$0xff] %v13083_v42 }
 0x41d   :  { %17786 = vst [vmem:[#allocation23_spill] sm:$0xff] %v17785_v38  ;;  %vm2135_vm4 = vcmp.lt.s32.totalorder %v17787_v14, 1  ;;  %v2149_v60 = vsel %vm2137_vm10, %v17789_v46, %v17788_v53  ;;  %v7968_v17 = vadd.s32 4294967294, %v4701_v2  ;;  %v13087_v28 = vsub.s32 %v12979_v52, %v1538_v20  ;;  %v17792_v2 = vld [vmem:[#allocation40_spill] sm:$0xff]  ;;  %v185_v53 = vpop.permute.xlu0 %184  ;;  %v3843_v38 = vpop.permute.xlu1 %3842 }
 0x41e   :  { %v13089_v62 = vshrl.u32 %v2060_v18, 30  ;;  %v2147_v37 = vsel %vm2135_vm4, %v2125_v5, %v2128_v23  ;;  %v1451_v6 = vand.u32 2147483647, %v1450_v12  ;;  %v13093_v27 = vadd.s32 %v2890_v54, %v2886_v21 }
 0x41f   :  { %vm2136_vm0 = vcmp.lt.s32.totalorder %v17787_v14, 2  ;;  %v2151_v35 = vshll.u32 %v2111_v43, 8  ;;  %v2143_v3 = vsel %vm2135_vm4, %v2122_v47, %v2125_v5  ;;  %v2145_v52 = vsel %vm2137_vm10, %v2128_v23, %v17792_v2 }
 0x420   :  { %v2062_v16 = vshll.u32 %v13089_v62, 30  ;;  %v2150_v20 = vsel %vm2136_vm0, %v2147_v37, %v2149_v60  ;;  %vm17793_vm5 = vcmp.lt.s32.totalorder %v17755_v51, 0  ;;  %v1453_v11 = vcvt.s32.f32 %v1446_v7 }
 0x421   :  { %v1144_v50 = vsel %vm17793_vm5, %v1143_v58, %v1142_v31  ;;  %v13106_v12 = vmul.u32.u64.low %v2151_v35, %v2150_v20  ;;  %v13107_v54 = vmul.u32.u64.high %v2151_v35, %v2150_v20, %v13106_v12  ;;  %vm7969_vm8 = vcmp.lt.s32.totalorder %v7968_v17, 0 }
 0x422   :  { %v1541_v43 = vsub.s32 0, %v13087_v28  ;;  %v13110_v18 = vsub.s32 %v2059_v39, %v2062_v16  ;;  %vm17794_vm3 = vcmp.lt.s32.totalorder %v17787_v14, 4  ;;  %v1454_v46 = vmul.f32 %v1453_v11, %v1451_v6  ;;  %v13131_v6 = vld [vmem:[#allocation4] ss:$0 sm:$0xff] }
 0x423   :  { %v2140_v21 = vsel %vm17794_vm3, %v2128_v23, 2102212464  ;;  %v2892_v2 = vadd.s32 536870912, %v13093_v27  ;;  %v2119_v60 = vshrl.u32 %v17463_v61, %v17781_v44  ;;  %v2146_v31 = vsel %vm2136_vm0, %v2143_v3, %v2145_v52 }
 0x424   :  { %8637 = vsinq.f32 %v12858_v41  ;;  %v1147_v39 = vsel %vm13068_vm6, %v17755_v51, %v1144_v50  ;;  %v1457_v58 = vsub.s32 4, %v12723_v59  ;;  %v2065_v23 = vsub.s32 0, %v13110_v18 }
 0x425   :  { %v13125_v7 = vsel %vm7969_vm8, 0, %v7968_v17  ;;  %v2139_v37 = vsel %vm2135_vm4, %v2119_v60, %v2122_v47  ;;  %v2141_v44 = vsel %vm2137_vm10, %v2125_v5, %v2140_v21  ;;  %v206_v41 = vmul.f32 %v13131_v6, %v185_v53  ;;  %v13142_v47 = vld [vmem:[#allocation4 + $0x1] ss:$0 sm:$0xff] }
 0x426   :  { %v7849_v16 = vmin.u32 %v1541_v43, %v13087_v28  ;;  %v7865_v3 = vmin.u32 %v2065_v23, %v13110_v18  ;;  %v13136_v52 = vmul.u32.u64.low %v2151_v35, %v2146_v31  ;;  %v13137_v20 = vmul.u32.u64.high %v2151_v35, %v2146_v31, %v13136_v52 }
 0x427   :  { %8639 = vcosq.f32 %v1147_v39  ;;  %v1455_v17 = vxor.u32 2147483648, %v1454_v46  ;;  %v13140_v50 = vshrl.u32 %v2892_v2, 30  ;;  %v13145_v5 = vadd.f32 %v13142_v47, %v206_v41 }
 0x428   :  { %v4705_v11 = vsub.s32 32, %v13125_v7  ;;  %v4709_v12 = vsub.s32 4294967266, %v13125_v7  ;;  %v2067_v43 = vclz %v7865_v3  ;;  %v2142_v21 = vsel %vm2136_vm0, %v2139_v37, %v2141_v44 }
 0x429   :  { %17795 = vst [vmem:[#allocation22_spill] sm:$0xff] %v13145_v5  ;;  %8641 = vsinq.f32 %v1147_v39  ;;  %vm17796_vm10 = vcmp.lt.s32.totalorder %v17791_v4, 0  ;;  %vm2001_vm4 = vcmp.lt.s32.totalorder %v17746_v1, 0  ;;  %vm2160_vm3 = vc.u32 %v13107_v54, %v13136_v52 }
 0x42a   :  { %v13154_v53 = vsel %vm17796_vm10, %v1457_v58, %v12723_v59  ;;  %v4689_v2 = vadd.s32 %v12767_v48, %v12776_v8  ;;  %v1543_v60 = vclz %v7849_v16  ;;  %v7866_v31 = vadd.s32 4294967294, %v2067_v43  ;;  %vm17798_vm0 = vmmov %vm17796_vm10 }
 0x42b   :  { %17797 = vst [vmem:[#allocation32_spill] sm:$0xff] %v13154_v53  ;;  %v2161_v23 = vadd.s32 1, %v13137_v20  ;;  %v13164_v14 = vsel %vm17798_vm0, %v1455_v17, %v1454_v46  ;;  %v2894_v39 = vshll.u32 %v13140_v50, 30  ;;  %v17799_v59 = vand.u32 2147483647, %v17746_v1 }
 0x42c   :  { %v2158_v37 = vmul.u32 %v2151_v35, %v2142_v21  ;;  %v1790_v44 = vand.u32 2139095040, %v13145_v5  ;;  %v4707_v48 = vshrl.u32 %v4689_v2, %v4705_v11  ;;  %v4710_v8 = vadd.s32 127, %v4709_v12 }
 0x42d   :  { %vm13169_vm5 = vcmp.le.f32.partialorder %v17799_v59, 0.7853982  ;;  %vm7867_vm8 = vcmp.lt.s32.totalorder %v7866_v31, 0  ;;  %v2162_v41 = vsel %vm2160_vm3, %v2161_v23, %v13137_v20  ;;  %v2085_v46 = vsub.s32 4, %v13089_v62 }
 0x42e   :  { %v2070_v16 = vsel %vm7867_vm8, 0, %v7866_v31  ;;  %v2163_v3 = vadd.s32 %v2162_v41, %v2158_v37  ;;  %v1791_v17 = vshrl.u32 %v1790_v44, 23  ;;  %v7850_v43 = vadd.s32 4294967294, %v1543_v60 }
 0x42f   :  { %v2055_v59 = vadd.s32 %v13012_v24, %v13008_v56  ;;  %v2071_v53 = vsub.s32 32, %v2070_v16  ;;  %v2075_v51 = vsub.s32 4294967266, %v2070_v16  ;;  %v13179_v35 = vsub.s32 %v13093_v27, %v2894_v39 }
 0x430   :  { %v2164_v11 = vadd.s32 536870912, %v2163_v3  ;;  %v17251_v12 = vand.u32 2147483647, %v13145_v5  ;;  %v7860_v21 = vadd.s32 4294967169, %v1791_v17  ;;  %v4711_v20 = vshll.u32 %v4710_v8, 23 }
 0x431   :  { %v2072_v2 = vshll.u32 %v13110_v18, %v2070_v16  ;;  %v2073_v31 = vshrl.u32 %v2055_v59, %v2071_v53  ;;  %v2076_v23 = vadd.s32 127, %v2075_v51  ;;  %v13183_v37 = vpop.eup %8637  ;;  %v2086_v56 = vsel %vm2001_vm4, %v2085_v46, %v13089_v62 }
 0x432   :  { %17802 = vst [vmem:[#allocation33_spill] sm:$0xff] %v13183_v37  ;;  %v2165_v24 = vshrl.u32 %v2164_v11, 30  ;;  %v1797_v60 = vadd.s32 1, %v7860_v21  ;;  %v3881_v27 = vmul.f32 %v13131_v6, %v3843_v38  ;;  %v4706_v39 = vshll.u32 %v12965_v26, %v13125_v7 }
 0x433   :  { %vm7851_vm10 = vcmp.lt.s32.totalorder %v7850_v43, 0  ;;  %v2074_v44 = vor.u32 %v2073_v31, %v2072_v2  ;;  %v2077_v8 = vshll.u32 %v2076_v23, 23  ;;  %v2897_v18 = vsub.s32 0, %v13179_v35 }
 0x434   :  { %v2166_v53 = vshll.u32 %v2165_v24, 30  ;;  %v1794_v51 = vand.u32 8388607, %v17251_v12  ;;  %vm1798_vm3 = vcmp.gt.s32.totalorder %v1797_v60, 0  ;;  %v13194_v41 = vpop.eup %8639  ;;  %v13196_v62 = vor.u32 %v4707_v48, %v4706_v39 }
 0x435   :  { %17803 = vst [vmem:[#allocation28_spill] sm:$0xff] %v13194_v41  ;;  %v2078_v16 = vor.u32 4788187, %v2077_v8  ;;  %v2088_v38 = vsel %vm13169_vm5, 0, %v2086_v56  ;;  %v1799_v46 = vsel %vm1798_vm3, %v1797_v60, 0  ;;  %v13202_v7 = vsel %vm7851_vm10, 0, %v7850_v43 }
 0x436   :  { %v13200_v26 = vor.u32 4788187, %v4711_v20  ;;  %v13204_v17 = vsub.s32 %v2163_v3, %v2166_v53  ;;  %v13207_v59 = vadd.f32 %v13142_v47, %v3881_v27  ;;  %v13209_v11 = vpop.eup %8641  ;;  %v2081_v2 = vcvt.s32.f32 %v2074_v44 }
 0x437   :  { %17805 = vst [vmem:[#allocation35_spill] sm:$0xff] %v13209_v11  ;;  %v2079_v21 = vand.u32 2147483647, %v2078_v16  ;;  %vm17256_vm0 = vcmp.lt.s32.totalorder %v17779_v0, 0  ;;  %v1801_v48 = vand.u32 31, %v1799_v46  ;;  %v13213_v31 = vmin.u32 %v2897_v18, %v13179_v35 }
 0x438   :  { %17804 = vst [vmem:[#allocation18_spill] sm:$0xff] %v13207_v59  ;;  %v13215_v23 = vadd.s32 3, %v2088_v38  ;;  %v2169_v43 = vsub.s32 0, %v13204_v17  ;;  %v1795_v20 = vor.u32 8388608, %v1794_v51  ;;  %v2159_v56 = vadd.s32 %v13136_v52, %v13107_v54 }
 0x439   :  { %v2082_v3 = vmul.f32 %v2081_v2, %v2079_v21  ;;  %v2189_v60 = vsub.s32 4, %v2165_v24  ;;  %v1802_v27 = vsub.s32 32, %v1801_v48  ;;  %v1804_v44 = vshll.u32 %v17463_v61, %v1801_v48 }
 0x43a   :  { %v7869_v39 = vmin.u32 %v2169_v43, %v13204_v17  ;;  %v1807_v8 = vshll.u32 %v17511_v34, %v1801_v48  ;;  %v1810_v51 = vshll.u32 %v17475_v29, %v1801_v48  ;;  %v13227_v2 = vshrl.u32 %v1799_v46, 5 }
 0x43b   :  { %v2083_v53 = vxor.u32 2147483648, %v2082_v3  ;;  %v1805_v16 = vshrl.u32 %v17511_v34, %v1802_v27  ;;  %v1808_v38 = vshrl.u32 %v17475_v29, %v1802_v27  ;;  %v1813_v54 = vshll.u32 %v17510_v30, %v1801_v48 }
 0x43c   :  { %v2171_v21 = vclz %v7869_v39  ;;  %v13230_v52 = vshll.u32 %v1795_v20, 8  ;;  %v13236_v12 = vsel %vm17256_vm0, %v2189_v60, %v2165_v24  ;;  %v1811_v18 = vshrl.u32 %v17510_v30, %v1802_v27 }
 0x43d   :  { %v2084_v43 = vsel %vm2001_vm4, %v2083_v53, %v2082_v3  ;;  %v4740_v41 = vand.u32 2139095040, %v13207_v59  ;;  %v1806_v42 = vor.u32 %v1805_v16, %v1804_v44  ;;  %v1814_v46 = vshrl.u32 %v17472_v10, %v1802_v27 }
 0x43e   :  { %v7870_v11 = vadd.s32 4294967294, %v2171_v21  ;;  %v1816_v39 = vshll.u32 %v17472_v10, %v1801_v48  ;;  %v2087_v20 = vsel %vm13169_vm5, %v17746_v1, %v2084_v43  ;;  %v1809_v37 = vor.u32 %v1808_v38, %v1807_v8 }
 0x43f   :  { %v1812_v3 = vor.u32 %v1811_v18, %v1810_v51  ;;  %v1817_v53 = vshrl.u32 %v17473_v55, %v1802_v27  ;;  %v1815_v24 = vor.u32 %v1814_v46, %v1813_v54  ;;  %vm1819_vm8 = vcmp.lt.s32.totalorder %v13227_v2, 1 }
 0x440   :  { %vm7871_vm4 = vcmp.lt.s32.totalorder %v7870_v11, 0  ;;  %vm1822_vm10 = vcmp.lt.s32.totalorder %v13227_v2, 4  ;;  %vm1820_vm3 = vcmp.lt.s32.totalorder %v13227_v2, 2  ;;  %vm1821_vm0 = vcmp.lt.s32.totalorder %v13227_v2, 3 }
 0x441   :  { %v2174_v60 = vsel %vm7871_vm4, 0, %v7870_v11  ;;  %v1818_v44 = vor.u32 %v1817_v53, %v1816_v39  ;;  %8643 = vcosq.f32 %v2087_v20  ;;  %v1803_v8 = vshrl.u32 %v17463_v61, %v1802_v27 }
 0x442   :  { %v2175_v48 = vsub.s32 32, %v2174_v60  ;;  %v2179_v58 = vsub.s32 4294967266, %v2174_v60  ;;  %v2176_v18 = vshll.u32 %v13204_v17, %v2174_v60  ;;  %v1827_v16 = vsel %vm1819_vm8, %v1806_v42, %v1809_v37 }
 0x443   :  { %v1828_v38 = vsel %vm1822_vm10, %v1815_v24, 920167782  ;;  %v1831_v11 = vsel %vm1819_vm8, %v1809_v37, %v1812_v3  ;;  %v17806_v51 = vand.u32 2147483647, %v17791_v4  ;;  %v17807_v21 = vmov 0 }
 0x444   :  { %v2177_v54 = vshrl.u32 %v2159_v56, %v2175_v48  ;;  %v2180_v43 = vadd.s32 127, %v2179_v58  ;;  %v1829_v17 = vsel %vm1821_vm0, %v1812_v3, %v1828_v38  ;;  %v1832_v27 = vsel %vm1822_vm10, %v1818_v44, 1326507024 }
 0x445   :  { %vm13260_vm5 = vcmp.le.f32.partialorder %v17806_v51, 0.7853982  ;;  %v1824_v46 = vsel %vm1822_vm10, %v1812_v3, 2102212464  ;;  %v1830_v39 = vsel %vm1820_vm3, %v1827_v16, %v1829_v17  ;;  %v1833_v53 = vsel %vm1821_vm0, %v1815_v24, %v1832_v27 }
 0x446   :  { %v17808_v21 = vsel %vm13260_vm5, 4294967295, %v17807_v21  ;;  %v4741_v60 = vshrl.u32 %v4740_v41, 23  ;;  %8645 = vsinq.f32 %v2087_v20  ;;  %v2178_v51 = vor.u32 %v2177_v54, %v2176_v18 }
 0x447   :  { %17809 = vst [vmem:[#allocation29_spill] sm:$0xff] %v17808_v21  ;;  %v2181_v56 = vshll.u32 %v2180_v43, 23  ;;  %v1834_v48 = vsel %vm1820_vm3, %v1831_v11, %v1833_v53  ;;  %v13281_v44 = vmul.u32.u64.low %v13230_v52, %v1830_v39  ;;  %v13282_v3 = vmul.u32.u64.high %v13230_v52, %v1830_v39, %v13281_v44 }
 0x448   :  { %v13277_v58 = vmul.u32.u64.low %v13230_v52, %v1834_v48  ;;  %v13278_v38 = vmul.u32.u64.high %v13230_v52, %v1834_v48, %v13277_v58  ;;  %v1823_v24 = vsel %vm1819_vm8, %v1803_v8, %v1806_v42  ;;  %v1825_v41 = vsel %vm1821_vm0, %v1809_v37, %v1824_v46 }
 0x449   :  { %v2182_v16 = vor.u32 4788187, %v2181_v56  ;;  %v7970_v20 = vadd.s32 4294967169, %v4741_v60  ;;  %v4713_v18 = vand.u32 2147483647, %v13200_v26  ;;  %v4715_v11 = vcvt.s32.f32 %v13196_v62 }
 0x44a   :  { %v17810_v54 = vand.u32 2147483647, %v17779_v0  ;;  %v17813_v17 = vand.u32 2147483647, %v13207_v59  ;;  %v2185_v53 = vcvt.s32.f32 %v2178_v51  ;;  %v1551_v26 = vsub.s32 4294967266, %v13202_v7 }
 0x44b   :  { %v2183_v39 = vand.u32 2147483647, %v2182_v16  ;;  %v4747_v37 = vadd.s32 1, %v7970_v20  ;;  %v2899_v62 = vclz %v13213_v31  ;;  %v1826_v8 = vsel %vm1820_vm3, %v1823_v24, %v1825_v41  ;;  %v17816_v20 = vld [vmem:[#allocation20_spill] sm:$0xff] }
 0x44c   :  { %vm13293_vm4 = vcmp.le.f32.partialorder %v17810_v54, 0.7853982  ;;  %v4744_v27 = vand.u32 8388607, %v17813_v17  ;;  %v1845_v46 = vadd.s32 1, %v13282_v3  ;;  %v13308_v60 = vand.u32 3, %v13215_v23 }
 0x44d   :  { %v2192_v42 = vsel %vm13293_vm4, 0, %v13236_v12  ;;  %v2186_v56 = vmul.f32 %v2185_v53, %v2183_v39  ;;  %vm1844_vm0 = vc.u32 %v13278_v38, %v13281_v44  ;;  %vm4748_vm8 = vcmp.gt.s32.totalorder %v4747_v37, 0 }
 0x44e   :  { %v13316_v12 = vsel %vm13260_vm5, %v17791_v4, %v13164_v14  ;;  %v2196_v31 = vadd.s32 3, %v2192_v42  ;;  %v4745_v51 = vor.u32 8388608, %v4744_v27  ;;  %v4749_v2 = vsel %vm4748_vm8, %v4747_v37, 0  ;;  %v8644_v24 = vpop.eup %8643 }
 0x44f   :  { %v13318_v48 = vmul.f32 %v4715_v11, %v4713_v18  ;;  %v13322_v23 = vadd.s32 %v12887_v19, %v12893_v22  ;;  %v2187_v58 = vxor.u32 2147483648, %v2186_v56  ;;  %v1842_v16 = vmul.u32 %v13230_v52, %v1826_v8 }
 0x450   :  { %v1846_v14 = vsel %vm1844_vm0, %v1845_v46, %v13282_v3  ;;  %v4751_v54 = vand.u32 31, %v4749_v2  ;;  %v13329_v17 = vadd.s32 127, %v1551_v26  ;;  %v13331_v18 = vadd.s32 4294967294, %v2899_v62 }
 0x451   :  { %vm2098_vm10 = vcmp.eq.s32.totalorder %v13308_v60, 2  ;;  %vm17814_vm3 = vcmp.lt.s32.totalorder %v17779_v0, 0  ;;  %v13339_v52 = vand.u32 3, %v2196_v31  ;;  %v13341_v27 = vshll.u32 %v4745_v51, 8 }
 0x452   :  { %v2188_v19 = vsel %vm17814_vm3, %v2187_v58, %v2186_v56  ;;  %v4752_v11 = vsub.s32 32, %v4751_v54  ;;  %v13344_v3 = vadd.s32 %v1846_v14, %v1842_v16  ;;  %v13346_v39 = vshrl.u32 %v4749_v2, 5  ;;  %v17815_v56 = vld [vmem:[#allocation15_spill] sm:$0xff] }
 0x453   :  { %v2191_v22 = vsel %vm13293_vm4, %v17779_v0, %v2188_v19  ;;  %v4754_v53 = vshll.u32 %v17463_v61, %v4751_v54  ;;  %v8646_v42 = vpop.eup %8645  ;;  %v4757_v43 = vshll.u32 %v17511_v34, %v4751_v54  ;;  %v2099_v62 = vxor.u32 2147483648, %v8644_v24 }
 0x454   :  { %8647 = vcosq.f32 %v2191_v22  ;;  %v4755_v37 = vshrl.u32 %v17511_v34, %v4752_v11  ;;  %v4758_v26 = vshrl.u32 %v17475_v29, %v4752_v11  ;;  %v4760_v8 = vshll.u32 %v17475_v29, %v4751_v54 }
 0x455   :  { %8649 = vsinq.f32 %v2191_v22  ;;  %v4761_v46 = vshrl.u32 %v17510_v30, %v4752_v11  ;;  %v4763_v58 = vshll.u32 %v17510_v30, %v4751_v54  ;;  %v4764_v16 = vshrl.u32 %v17472_v10, %v4752_v11 }
 0x456   :  { %v4756_v51 = vor.u32 %v4755_v37, %v4754_v53  ;;  %v4759_v2 = vor.u32 %v4758_v26, %v4757_v43  ;;  %v2096_v14 = vxor.u32 2147483648, %v8646_v42  ;;  %v1848_v19 = vadd.s32 536870912, %v13344_v3  ;;  %v17817_v37 = vld [vmem:[#allocation24_spill] sm:$0xff] }
 0x457   :  { %v4762_v22 = vor.u32 %v4761_v46, %v4760_v8  ;;  %v3922_v41 = vshll.u32 %v17463_v61, %v17816_v20  ;;  %v4765_v4 = vor.u32 %v4764_v16, %v4763_v58  ;;  %v4766_v21 = vshll.u32 %v17472_v10, %v4751_v54 }
 0x458   :  { %v4767_v31 = vshrl.u32 %v17473_v55, %v4752_v11  ;;  %vm17259_vm8 = vcmp.lt.s32.totalorder %v13346_v39, 1  ;;  %vm4772_vm3 = vcmp.lt.s32.totalorder %v13346_v39, 4  ;;  %v3923_v43 = vshrl.u32 %v17511_v34, %v17817_v37 }
 0x459   :  { %v4777_v53 = vsel %vm17259_vm8, %v4756_v51, %v4759_v2  ;;  %v3926_v26 = vshrl.u32 %v17475_v29, %v17817_v37  ;;  %v2100_v54 = vsel %vm2098_vm10, %v2099_v62, %v8646_v42  ;;  %vm4771_vm0 = vcmp.lt.s32.totalorder %v13346_v39, 3 }
 0x45a   :  { %v4768_v8 = vor.u32 %v4767_v31, %v4766_v21  ;;  %v4778_v46 = vsel %vm4772_vm3, %v4765_v4, 920167782  ;;  %v13377_v58 = vshrl.u32 %v1848_v19, 30  ;;  %vm17268_vm8 = vcmp.lt.s32.totalorder %v13346_v39, 2 }
 0x45b   :  { %v4779_v16 = vsel %vm4771_vm0, %v4762_v22, %v4778_v46  ;;  %vm17819_vm5 = vcmp.lt.s32.totalorder %v13346_v39, 1  ;;  %vm17820_vm4 = vcmp.eq.s32.totalorder %v13308_v60, 0  ;;  %v4774_v21 = vsel %vm4772_vm3, %v4762_v22, 2102212464 }
 0x45c   :  { %17818 = vst [vmem:[#allocation37_spill] sm:$0xff] %v13377_v58  ;;  %v4781_v36 = vsel %vm17819_vm5, %v4759_v2, %v4762_v22  ;;  %v2097_v13 = vsel %vm17820_vm4, %v8644_v24, %v2096_v14  ;;  %v4780_v42 = vsel %vm17268_vm8, %v4777_v53, %v4779_v16  ;;  %v4782_v62 = vsel %vm4772_vm3, %v4768_v8, 1326507024 }
 0x45d   :  { %v4783_v31 = vsel %vm4771_vm0, %v4765_v4, %v4782_v62  ;;  %v13396_v19 = vmul.u32.u64.low %v13341_v27, %v4780_v42  ;;  %v13397_v46 = vmul.u32.u64.high %v13341_v27, %v4780_v42, %v13396_v19  ;;  %v3929_v24 = vshrl.u32 %v17510_v30, %v17817_v37 }
 0x45e   :  { %v4753_v14 = vshrl.u32 %v17463_v61, %v4752_v11  ;;  %v4784_v22 = vsel %vm17268_vm8, %v4781_v36, %v4783_v31  ;;  %v17821_v53 = vand.u32 2147483647, %v17815_v56  ;;  %v3925_v4 = vshll.u32 %v17511_v34, %v17816_v20 }
 0x45f   :  { %v1850_v16 = vshll.u32 %v13377_v58, 30  ;;  %v13411_v42 = vmul.u32.u64.low %v13341_v27, %v4784_v22  ;;  %v13412_v62 = vmul.u32.u64.high %v13341_v27, %v4784_v22, %v13411_v42  ;;  %v3928_v33 = vshll.u32 %v17475_v29, %v17816_v20 }
 0x460   :  { %v3912_v8 = vand.u32 8388607, %v17821_v53  ;;  %vm17822_vm4 = vcmp.lt.s32.totalorder %v13308_v60, 2  ;;  %v4773_v36 = vsel %vm17819_vm5, %v4753_v14, %v4756_v51  ;;  %v4775_v31 = vsel %vm4771_vm0, %v4759_v2, %v4774_v21  ;;  %v8531_v53 = vld [vmem:[#allocation7 + $0x8] sm:$0xff]  }
 0x461   :  { %v8648_v9 = vpop.eup %8647  ;;  %v2101_v11 = vsel %vm17822_vm4, %v2097_v13, %v2100_v54  ;;  %v3924_v22 = vor.u32 %v3923_v43, %v3922_v41  ;;  %v3927_v42 = vor.u32 %v3926_v26, %v3925_v4  ;;  %v3930_v59 = vor.u32 %v3929_v24, %v3928_v33  ;;  %8133 = vmatprep.subr.bf16.mxu0 %v8531_v53  ;;  %v17825_v43 = vld [vmem:[#allocation21_spill] sm:$0xff]  ;;  %v8532_v26 = vld [vmem:[#allocation7] sm:$0xff]   ;;  %v17830_v21 = vld [vmem:[#allocation27_spill] sm:$0xff] }
 0x462   :  { %v8650_v57 = vpop.eup %8649  ;;  %v2203_v58 = vxor.u32 2147483648, %v8648_v9  ;;  %vm2199_vm10 = vcmp.eq.s32.totalorder %v13339_v52, 0  ;;  %vm2202_vm8 = vcmp.eq.s32.totalorder %v13339_v52, 2  ;;  %v3913_v13 = vor.u32 8388608, %v3912_v8  ;;  %8153 = vmatprep.subr.bf16.mxu1 %v8531_v53  ;;  %8134 = vmatpush3.bf16.msra.mxu0 %v8531_v53 }
 0x463   :  { %v2200_v20 = vxor.u32 2147483648, %v8650_v57  ;;  %vm17823_vm4 = vweird.f32 %v17746_v1  ;;  %v13428_v2 = vsub.s32 %v13344_v3, %v1850_v16  ;;  %vm17824_vm0 = vcmp.lt.s32.totalorder %v13346_v39, 2  ;;  %8154 = vmatpush3.bf16.msra.mxu1 %v8531_v53  ;;  %v17827_v39 = vld [vmem:[#allocation30_spill] sm:$0xff]  ;;  %8135 = vmatprep.subr.bf16.mxu0 %v8532_v26 }
 0x464   :  { %v2102_v60 = vsel %vm17823_vm4, nan, %v2101_v11  ;;  %v2204_v51 = vsel %vm2202_vm8, %v2203_v58, %v8650_v57  ;;  %v4776_v41 = vsel %vm17824_vm0, %v4773_v36, %v4775_v31  ;;  %vm3937_vm5 = vcmp.lt.s32.totalorder %v17825_v43, 1  ;;  %8155 = vmatprep.subr.bf16.mxu1 %v8532_v26 }
 0x465   :  { %v2201_v33 = vsel %vm2199_vm10, %v8648_v9, %v2200_v20  ;;  %vm3938_vm3 = vcmp.lt.s32.totalorder %v17825_v43, 2  ;;  %vm3939_vm6 = vcmp.lt.s32.totalorder %v17825_v43, 3  ;;  %vm17826_vm14 = vcmp.lt.s32.totalorder %v13339_v52, 2  ;;  %v17829_v52 = vld [vmem:[#allocation31_spill] sm:$0xff] }
 0x466   :  { %v2205_v1 = vsel %vm17826_vm14, %v2201_v33, %v2204_v51  ;;  %v4795_v57 = vadd.s32 1, %v13397_v46  ;;  %v3945_v3 = vsel %vm3937_vm5, %v3924_v22, %v3927_v42  ;;  %v3947_v54 = vsel %vm3939_vm6, %v3930_v59, %v17827_v39  ;;  %8136 = vmatpush3.bf16.msra.mxu0 %v8532_v26 }
 0x467   :  { %vm17828_vm8 = vweird.f32 %v17779_v0  ;;  %vm4794_vm10 = vc.u32 %v13412_v62, %v13396_v19  ;;  %v3949_v58 = vsel %vm3937_vm5, %v3927_v42, %v3930_v59  ;;  %v3951_v24 = vsel %vm3939_vm6, %v17830_v21, %v17829_v52  ;;  %8156 = vmatpush3.bf16.msra.mxu1 %v8532_v26  ;;  %8173 = vmatprep.subr.bf16.mxu0 %v8531_v53 }
 0x468   :  { %v2206_v9 = vsel %vm17828_vm8, nan, %v2205_v1  ;;  %v17831_v14 = vsub.s32 32, %v13202_v7  ;;  %vm17832_vm14 = vcmp.lt.s32.totalorder %v17825_v43, 4  ;;  %v3952_v16 = vsel %vm3938_vm3, %v3949_v58, %v3951_v24  ;;  %v17837_v43 = vld [vmem:[#allocation42_spill] sm:$0xff] }
 0x469   :  { %v3663_v4 = vpack.c.bf16 %v2206_v9, %v2102_v60  ;;  %v3942_v0 = vsel %vm17832_vm14, %v3930_v59, 2102212464  ;;  %vm4635_vm4 = vcmp.lt.s32.totalorder %v12462_v15, 0  ;;  %vm7899_vm0 = vcmp.lt.s32.totalorder %v13331_v18, 0 }
 0x46a   :  { %v1549_v8 = vshrl.u32 %v13322_v23, %v17831_v14  ;;  %v3921_v11 = vshrl.u32 %v17463_v61, %v17817_v37  ;;  %v3948_v36 = vsel %vm3938_vm3, %v3945_v3, %v3947_v54  ;;  %v3953_v23 = vshll.u32 %v3913_v13, 8  ;;  %v17836_v3 = vld [vmem:[#allocation44_spill] sm:$0xff] }
 0x46b   :  { %v1553_v31 = vshll.u32 %v13329_v17, 23  ;;  %vm17833_vm8 = vcmask 261120   ;;  %v1853_v59 = vsub.s32 0, %v13428_v2  ;;  %v4792_v20 = vmul.u32 %v13341_v27, %v4776_v41  ;;  %v17834_v27 = vld [vmem:[#allocation26_spill] sm:$0xff] }
 0x46c   :  { %8137 = vmatprep.mubr.msk.bf16.mxu0 %vm17833_vm8, %v3663_v4  ;;  %v4796_v60 = vsel %vm4794_vm10, %v4795_v57, %v13397_v46  ;;  %v3941_v37 = vsel %vm3937_vm5, %v3921_v11, %v3924_v22  ;;  %v3943_v13 = vsel %vm3939_vm6, %v3927_v42, %v3942_v0  ;;  %v13482_v17 = vsel %vm7899_vm0, 0, %v13331_v18 }
 0x46d   :  { %v13478_v53 = vmul.u32.u64.low %v3953_v23, %v3952_v16  ;;  %v13479_v51 = vmul.u32.u64.high %v3953_v23, %v3952_v16, %v13478_v53  ;;  %v13484_v33 = vmul.u32.u64.low %v3953_v23, %v3948_v36  ;;  %v13485_v26 = vmul.u32.u64.high %v3953_v23, %v3948_v36, %v13484_v33 }
 0x46e   :  { %v4009_v41 = vand.u32 2147483647, %v17834_v27  ;;  %8651 = vcosq.f32 %v13316_v12  ;;  %v4717_v46 = vxor.u32 2147483648, %v13318_v48  ;;  %v4719_v22 = vsub.s32 4, %v12916_v25 }
 0x46f   :  { %v13492_v1 = vadd.s32 %v4796_v60, %v4792_v20  ;;  %v17835_v42 = vshll.u32 %v13087_v28, %v13202_v7  ;;  %v3944_v18 = vsel %vm3938_vm3, %v3941_v37, %v3943_v13  ;;  %v4027_v39 = vshrl.u32 %v17511_v34, %v17836_v3 }
 0x470   :  { %v4030_v54 = vshrl.u32 %v17475_v29, %v17836_v3  ;;  %v1554_v9 = vor.u32 4788187, %v1553_v31  ;;  %v2907_v58 = vsub.s32 4294967266, %v13482_v17  ;;  %v7861_v52 = vmin.u32 %v1853_v59, %v13428_v2 }
 0x471   :  { %v1550_v57 = vor.u32 %v1549_v8, %v17835_v42  ;;  %vm3962_vm6 = vc.u32 %v13479_v51, %v13484_v33  ;;  %v3963_v28 = vadd.s32 1, %v13485_v26  ;;  %v4016_v7 = vand.u32 8388607, %v4009_v41 }
 0x472   :  { %v4026_v21 = vshll.u32 %v17463_v61, %v17837_v43  ;;  %v4029_v24 = vshll.u32 %v17511_v34, %v17837_v43  ;;  %v4798_v14 = vadd.s32 536870912, %v13492_v1  ;;  %v3960_v8 = vmul.u32 %v3953_v23, %v3944_v18 }
 0x473   :  { %v4032_v4 = vshll.u32 %v17475_v29, %v17837_v43  ;;  %v4033_v0 = vshrl.u32 %v17510_v30, %v17836_v3  ;;  %v4718_v16 = vsel %vm4635_vm4, %v4717_v46, %v13318_v48  ;;  %v3964_v11 = vsel %vm3962_vm6, %v3963_v28, %v13485_v26 }
 0x474   :  { %v4028_v36 = vor.u32 %v4027_v39, %v4026_v21  ;;  %v4031_v31 = vor.u32 %v4030_v54, %v4029_v24  ;;  %v2887_v59 = vadd.s32 %v12982_v63, %v13000_v49  ;;  %v1855_v20 = vclz %v7861_v52  ;;  %v17842_v39 = vld [vmem:[#allocation41_spill] sm:$0xff]  ;;  %v1941_v63 = vpop.permute.xlu1 %1940  ;;  %v17843_v54 = vld [vmem:[#allocation55_spill] sm:$0xff] }
 0x475   :  { %v3965_v60 = vadd.s32 %v3964_v11, %v3960_v8  ;;  %v4034_v23 = vor.u32 %v4033_v0, %v4032_v4  ;;  %v17838_v37 = vand.u32 2147483647, %v12462_v15  ;;  %v17839_v13 = vmov 0 }
 0x476   :  { %v1555_v53 = vand.u32 2147483647, %v1554_v9  ;;  %v1557_v42 = vcvt.s32.f32 %v1550_v57  ;;  %v2908_v18 = vadd.s32 127, %v2907_v58  ;;  %v4017_v48 = vor.u32 8388608, %v4016_v7  ;;  %v17844_v9 = vld [vmem:[#allocation56_spill] sm:$0xff]  ;;  %v17845_v58 = vld [vmem:[#allocation54_spill] sm:$0xff] }
 0x477   :  { %vm13527_vm3 = vcmp.le.f32.partialorder %v17838_v37, 0.7853982  ;;  %v13531_v46 = vshrl.u32 %v4798_v14, 30  ;;  %v3966_v26 = vadd.s32 536870912, %v3965_v60  ;;  %vm4041_vm5 = vcmp.lt.s32.totalorder %v17842_v39, 1 }
 0x478   :  { %v17840_v13 = vsel %vm13527_vm3, 4294967295, %v17839_v13  ;;  %vm4043_vm10 = vcmp.lt.s32.totalorder %v17842_v39, 3  ;;  %v4049_v49 = vsel %vm4041_vm5, %v4028_v36, %v4031_v31  ;;  %v4053_v57 = vsel %vm4041_vm5, %v4031_v31, %v4034_v23 }
 0x479   :  { %17841 = vst [vmem:[#allocation43_spill] sm:$0xff] %v17840_v13  ;;  %v4051_v52 = vsel %vm4043_vm10, %v4034_v23, %v17843_v54  ;;  %v4055_v28 = vsel %vm4043_vm10, %v17845_v58, %v17844_v9  ;;  %v2903_v7 = vsub.s32 32, %v13482_v17  ;;  %v7862_v43 = vadd.s32 4294967294, %v1855_v20 }
 0x47a   :  { %v13547_v21 = vshrl.u32 %v3966_v26, 30  ;;  %vm4042_vm14 = vcmp.lt.s32.totalorder %v17842_v39, 2  ;;  %vm17846_vm0 = vcmp.lt.s32.totalorder %v17842_v39, 4  ;;  %v4057_v8 = vshll.u32 %v4017_v48, 8 }
 0x47b   :  { %v4046_v24 = vsel %vm17846_vm0, %v4034_v23, 2102212464  ;;  %v4056_v14 = vsel %vm4042_vm14, %v4053_v57, %v4055_v28  ;;  %v1976_v4 = vmul.f32 %v13131_v6, %v1941_v63  ;;  %v1558_v0 = vmul.f32 %v1557_v42, %v1555_v53  ;;  %v13560_v26 = vpop.eup %8651 }
 0x47c   :  { %v3968_v11 = vshll.u32 %v13547_v21, 30  ;;  %v4025_v37 = vshrl.u32 %v17463_v61, %v17836_v3  ;;  %v4052_v20 = vsel %vm4042_vm14, %v4049_v49, %v4051_v52  ;;  %17847 = vst [vmem:[#allocation39_spill] sm:$0xff] %v13560_v26  ;;  %v2909_v54 = vshll.u32 %v2908_v18, 23 }
 0x47d   :  { %v4800_v23 = vshll.u32 %v13531_v46, 30  ;;  %v13563_v9 = vmul.u32.u64.low %v4057_v8, %v4056_v14  ;;  %v13564_v58 = vmul.u32.u64.high %v4057_v8, %v4056_v14, %v13563_v9  ;;  %vm17272_vm8 = vcmp.lt.s32.totalorder %v12670_v40, 0 }
 0x47e   :  { %v2905_v48 = vshrl.u32 %v2887_v59, %v2903_v7  ;;  %v13567_v53 = vsub.s32 %v3965_v60, %v3968_v11  ;;  %v4045_v42 = vsel %vm4041_vm5, %v4025_v37, %v4028_v36  ;;  %v4047_v3 = vsel %vm4043_vm10, %v4031_v31, %v4046_v24 }
 0x47f   :  { %vm7863_vm6 = vcmp.lt.s32.totalorder %v7862_v43, 0  ;;  %v13573_v63 = vmul.u32.u64.low %v4057_v8, %v4052_v20  ;;  %v13574_v49 = vmul.u32.u64.high %v4057_v8, %v4052_v20, %v13573_v63  ;;  %v13578_v18 = vadd.f32 %v13142_v47, %v1976_v4 }
 0x480   :  { %8653 = vsinq.f32 %v13316_v12  ;;  %v13586_v59 = vsel %vm4635_vm4, %v4719_v22, %v12916_v25  ;;  %v13591_v36 = vsel %vm13527_vm3, %v12462_v15, %v4718_v16  ;;  %v3971_v31 = vsub.s32 0, %v13567_v53 }
 0x481   :  { %17848 = vst [vmem:[#allocation40_spill] sm:$0xff] %v13578_v18  ;;  %17849 = vst [vmem:[#allocation15_spill] sm:$0xff] %v13586_v59  ;;  %v2904_v60 = vshll.u32 %v13179_v35, %v13482_v17  ;;  %v2910_v52 = vor.u32 4788187, %v2909_v54  ;;  %v13597_v12 = vsub.s32 %v13492_v1, %v4800_v23  ;;  %v4048_v57 = vsel %vm4042_vm14, %v4045_v42, %v4047_v3 }
 0x482   :  { %v1858_v22 = vsel %vm7863_vm6, 0, %v7862_v43  ;;  %v7939_v28 = vmin.u32 %v3971_v31, %v13567_v53  ;;  %vm4066_vm4 = vc.u32 %v13564_v58, %v13573_v63  ;;  %v1559_v16 = vxor.u32 2147483648, %v1558_v0  ;;  %v3847_v31 = vpop.permute.xlu1 %3846 }
 0x483   :  { %v2906_v7 = vor.u32 %v2905_v48, %v2904_v60  ;;  %v4067_v24 = vadd.s32 1, %v13574_v49  ;;  %v2938_v35 = vand.u32 2139095040, %v13578_v18  ;;  %v1843_v17 = vadd.s32 %v13281_v44, %v13278_v38 }
 0x484   :  { %v1859_v1 = vsub.s32 32, %v1858_v22  ;;  %v3973_v39 = vclz %v7939_v28  ;;  %v4064_v14 = vmul.u32 %v4057_v8, %v4048_v57  ;;  %v2911_v4 = vand.u32 2147483647, %v2910_v52 }
 0x485   :  { %v1863_v11 = vsub.s32 4294967266, %v1858_v22  ;;  %v4803_v43 = vsub.s32 0, %v13597_v12  ;;  %v4068_v37 = vsel %vm4066_vm4, %v4067_v24, %v13574_v49  ;;  %8655 = vcosq.f32 %v13591_v36 }
 0x486   :  { %v7940_v20 = vadd.s32 4294967294, %v3973_v39  ;;  %v4069_v54 = vadd.s32 %v4068_v37, %v4064_v14  ;;  %v2939_v23 = vshrl.u32 %v2938_v35, 23  ;;  %v13614_v9 = vsel %vm17272_vm8, %v1559_v16, %v1558_v0 }
 0x487   :  { %v2913_v48 = vcvt.s32.f32 %v2906_v7  ;;  %v1860_v38 = vshll.u32 %v13428_v2, %v1858_v22  ;;  %v17271_v44 = vand.u32 2147483647, %v13578_v18  ;;  %v1861_v8 = vshrl.u32 %v1843_v17, %v1859_v1 }
 0x488   :  { %vm7941_vm5 = vcmp.lt.s32.totalorder %v7940_v20, 0  ;;  %v4070_v42 = vadd.s32 536870912, %v4069_v54  ;;  %v7900_v3 = vadd.s32 4294967169, %v2939_v23  ;;  %v1864_v60 = vadd.s32 127, %v1863_v11 }
 0x489   :  { %v13618_v49 = vmul.f32 %v2913_v48, %v2911_v4  ;;  %v7971_v52 = vmin.u32 %v4803_v43, %v13597_v12  ;;  %v3976_v57 = vsel %vm7941_vm5, 0, %v7940_v20  ;;  %v3961_v0 = vadd.s32 %v13484_v33, %v13479_v51 }
 0x48a   :  { %v3977_v28 = vsub.s32 32, %v3976_v57  ;;  %v3981_v16 = vsub.s32 4294967266, %v3976_v57  ;;  %v3991_v2 = vsub.s32 4, %v13547_v21  ;;  %v13624_v22 = vshrl.u32 %v4070_v42, 30 }
 0x48b   :  { %v2942_v7 = vand.u32 8388607, %v17271_v44  ;;  %v2945_v24 = vadd.s32 1, %v7900_v3  ;;  %v3882_v35 = vmul.f32 %v13131_v6, %v3847_v31  ;;  %v13629_v17 = vor.u32 %v1861_v8, %v1860_v38 }
 0x48c   :  { %v3978_v1 = vshll.u32 %v13567_v53, %v3976_v57  ;;  %v3979_v39 = vshrl.u32 %v3961_v0, %v3977_v28  ;;  %v3982_v14 = vadd.s32 127, %v3981_v16  ;;  %v1865_v51 = vshll.u32 %v1864_v60, 23 }
 0x48d   :  { %v13632_v4 = vpop.eup %8653  ;;  %v4805_v33 = vclz %v7971_v52  ;;  %v4072_v11 = vshll.u32 %v13624_v22, 30  ;;  %vm2946_vm10 = vcmp.gt.s32.totalorder %v2945_v24, 0  ;;  %vm3907_vm14 = vcmp.lt.s32.totalorder %v17815_v56, 0 }
 0x48e   :  { %17850 = vst [vmem:[#allocation20_spill] sm:$0xff] %v13632_v4  ;;  %v3980_v43 = vor.u32 %v3979_v39, %v3978_v1  ;;  %v3983_v37 = vshll.u32 %v3982_v14, 23  ;;  %v2947_v20 = vsel %vm2946_vm10, %v2945_v24, 0  ;;  %v13639_v6 = vsel %vm3907_vm14, %v3991_v2, %v13547_v21 }
 0x48f   :  { %v13641_v53 = vsub.s32 %v4069_v54, %v4072_v11  ;;  %v2943_v23 = vor.u32 8388608, %v2942_v7  ;;  %v13644_v48 = vadd.f32 %v13142_v47, %v3882_v35  ;;  %v17852_v8 = vand.u32 2147483647, %v17815_v56 }
 0x490   :  { %v3984_v3 = vor.u32 4788187, %v3983_v37  ;;  %v2949_v31 = vand.u32 31, %v2947_v20  ;;  %v13653_v60 = vor.u32 4788187, %v1865_v51  ;;  %v13656_v54 = vadd.s32 4294967294, %v4805_v33 }
 0x491   :  { %17851 = vst [vmem:[#allocation24_spill] sm:$0xff] %v13644_v48  ;;  %vm13649_vm0 = vcmp.le.f32.partialorder %v17852_v8, 0.7853982  ;;  %v4075_v52 = vsub.s32 0, %v13641_v53  ;;  %v3987_v57 = vcvt.s32.f32 %v3980_v43  ;;  %v4065_v2 = vadd.s32 %v13573_v63, %v13564_v58 }
 0x492   :  { %v3985_v47 = vand.u32 2147483647, %v3984_v3  ;;  %v2950_v28 = vsub.s32 32, %v2949_v31  ;;  %v13662_v16 = vpop.eup %8655  ;;  %v13667_v24 = vshll.u32 %v2943_v23, 8  ;;  %v4844_v51 = vand.u32 2139095040, %v13644_v48 }
 0x493   :  { %17855 = vst [vmem:[#allocation21_spill] sm:$0xff] %v13662_v16  ;;  %v7943_v7 = vmin.u32 %v4075_v52, %v13641_v53  ;;  %v4095_v11 = vsub.s32 4, %v13624_v22  ;;  %v13674_v43 = vshrl.u32 %v2947_v20, 5  ;;  %v2952_v58 = vshll.u32 %v17463_v61, %v2949_v31 }
 0x494   :  { %v3988_v1 = vmul.f32 %v3987_v57, %v3985_v47  ;;  %v2953_v39 = vshrl.u32 %v17511_v34, %v2950_v28  ;;  %v2956_v14 = vshrl.u32 %v17475_v29, %v2950_v28  ;;  %v2955_v37 = vshll.u32 %v17511_v34, %v2949_v31 }
 0x495   :  { %v4077_v33 = vclz %v7943_v7  ;;  %v2958_v23 = vshll.u32 %v17475_v29, %v2949_v31  ;;  %v2959_v8 = vshrl.u32 %v17510_v30, %v2950_v28  ;;  %v2961_v52 = vshll.u32 %v17510_v30, %v2949_v31 }
 0x496   :  { %v3989_v63 = vxor.u32 2147483648, %v3988_v1  ;;  %v2962_v47 = vshrl.u32 %v17472_v10, %v2950_v28  ;;  %v2965_v57 = vshrl.u32 %v17473_v55, %v2950_v28  ;;  %v2954_v7 = vor.u32 %v2953_v39, %v2952_v58 }
 0x497   :  { %v7944_v3 = vadd.s32 4294967294, %v4077_v33  ;;  %v2957_v44 = vor.u32 %v2956_v14, %v2955_v37  ;;  %v2964_v25 = vshll.u32 %v17472_v10, %v2949_v31  ;;  %v2960_v33 = vor.u32 %v2959_v8, %v2958_v23 }
 0x498   :  { %v3990_v20 = vsel %vm3907_vm14, %v3989_v63, %v3988_v1  ;;  %v2963_v38 = vor.u32 %v2962_v47, %v2961_v52  ;;  %vm2967_vm10 = vcmp.lt.s32.totalorder %v13674_v43, 1  ;;  %vm17273_vm14 = vcmp.lt.s32.totalorder %v13674_v43, 2 }
 0x499   :  { %v3993_v21 = vsel %vm13649_vm0, %v17815_v56, %v3990_v20  ;;  %vm7945_vm5 = vcmp.lt.s32.totalorder %v7944_v3, 0  ;;  %v2966_v0 = vor.u32 %v2965_v57, %v2964_v25  ;;  %vm2969_vm8 = vcmp.lt.s32.totalorder %v13674_v43, 3 }
 0x49a   :  { %v4080_v35 = vsel %vm7945_vm5, 0, %v7944_v3  ;;  %vm2970_vm6 = vcmp.lt.s32.totalorder %v13674_v43, 4  ;;  %8657 = vcosq.f32 %v3993_v21  ;;  %v2975_v14 = vsel %vm2967_vm10, %v2954_v7, %v2957_v44 }
 0x49b   :  { %v4081_v1 = vsub.s32 32, %v4080_v35  ;;  %v4085_v39 = vsub.s32 4294967266, %v4080_v35  ;;  %v4082_v31 = vshll.u32 %v13641_v53, %v4080_v35  ;;  %v2976_v58 = vsel %vm2970_vm6, %v2963_v38, 920167782 }
 0x49c   :  { %v2977_v25 = vsel %vm2969_vm8, %v2960_v33, %v2976_v58  ;;  %v2979_v23 = vsel %vm2967_vm10, %v2957_v44, %v2960_v33  ;;  %v17856_v8 = vand.u32 2147483647, %v12670_v40  ;;  %v17857_v3 = vmov 0 }
 0x49d   :  { %v4083_v63 = vshrl.u32 %v4065_v2, %v4081_v1  ;;  %v4086_v37 = vadd.s32 127, %v4085_v39  ;;  %v2972_v53 = vsel %vm2970_vm6, %v2960_v33, 2102212464  ;;  %v2978_v35 = vsel %vm17273_vm14, %v2975_v14, %v2977_v25 }
 0x49e   :  { %vm13704_vm5 = vcmp.le.f32.partialorder %v17856_v8, 0.7853982  ;;  %v2980_v2 = vsel %vm2970_vm6, %v2966_v0, 1326507024  ;;  %v4845_v52 = vshrl.u32 %v4844_v51, 23  ;;  %8659 = vsinq.f32 %v3993_v21 }
 0x49f   :  { %v17858_v3 = vsel %vm13704_vm5, 4294967295, %v17857_v3  ;;  %v4084_v47 = vor.u32 %v4083_v63, %v4082_v31  ;;  %v4087_v57 = vshll.u32 %v4086_v37, 23  ;;  %v2981_v20 = vsel %vm2969_vm8, %v2963_v38, %v2980_v2 }
 0x4a0   :  { %17859 = vst [vmem:[#allocation30_spill] sm:$0xff] %v17858_v3  ;;  %v2982_v1 = vsel %vm17273_vm14, %v2979_v23, %v2981_v20  ;;  %v13716_v39 = vmul.u32.u64.low %v13667_v24, %v2978_v35  ;;  %v13717_v58 = vmul.u32.u64.high %v13667_v24, %v2978_v35, %v13716_v39  ;;  %v7974_v33 = vadd.s32 4294967169, %v4845_v52 }
 0x4a1   :  { %v4088_v8 = vor.u32 4788187, %v4087_v57  ;;  %v2951_v14 = vshrl.u32 %v17463_v61, %v2950_v28  ;;  %v13722_v0 = vmul.u32.u64.low %v13667_v24, %v2982_v1  ;;  %v13723_v21 = vmul.u32.u64.high %v13667_v24, %v2982_v1, %v13722_v0 }
 0x4a2   :  { %v1867_v51 = vand.u32 2147483647, %v13653_v60  ;;  %vm13728_vm6 = vcmp.le.f32.partialorder %v4009_v41, 0.7853982  ;;  %vm17862_vm4 = vcmp.lt.s32.totalorder %v17834_v27, 0  ;;  %v4851_v63 = vadd.s32 1, %v7974_v33  ;;  %v1945_v60 = vpop.permute.xlu1 %1944 }
 0x4a3   :  { %v4096_v31 = vsel %vm17862_vm4, %v4095_v11, %v13624_v22  ;;  %v4089_v37 = vand.u32 2147483647, %v4088_v8  ;;  %v4091_v25 = vcvt.s32.f32 %v4084_v47  ;;  %v2971_v28 = vsel %vm2967_vm10, %v2951_v14, %v2954_v7 }
 0x4a4   :  { %v2973_v23 = vsel %vm2969_vm8, %v2957_v44, %v2972_v53  ;;  %vm17863_vm14 = vcmp.lt.s32.totalorder %v13656_v54, 0  ;;  %v17864_v35 = vsel %vm13649_vm0, 0, %v13639_v6  ;;  %v2993_v11 = vadd.s32 1, %v13717_v58  ;;  %v13757_v6 = vld [vmem:[#allocation4] ss:$0 sm:$0xff] }
 0x4a5   :  { %v13742_v41 = vsel %vm17863_vm14, 0, %v13656_v54  ;;  %v3998_v22 = vadd.s32 3, %v17864_v35  ;;  %vm4852_vm4 = vcmp.gt.s32.totalorder %v4851_v63, 0  ;;  %v4092_v2 = vmul.f32 %v4091_v25, %v4089_v37 }
 0x4a6   :  { %vm2992_vm10 = vc.u32 %v13723_v21, %v13716_v39  ;;  %v17865_v44 = vand.u32 2147483647, %v13644_v48  ;;  %v4853_v53 = vsel %vm4852_vm4, %v4851_v63, 0  ;;  %v4098_v54 = vsel %vm13728_vm6, 0, %v4096_v31  ;;  %v3851_v3 = vpop.permute.xlu1 %3850 }
 0x4a7   :  { %vm17866_vm8 = vcmp.lt.s32.totalorder %v13674_v43, 2  ;;  %v4855_v52 = vand.u32 31, %v4853_v53  ;;  %v1977_v47 = vmul.f32 %v13757_v6, %v1945_v60  ;;  %8661 = vsinq.f32 %v13591_v36  ;;  %v13780_v31 = vpop.eup %8657 }
 0x4a8   :  { %v4848_v7 = vand.u32 8388607, %v17865_v44  ;;  %v2974_v42 = vsel %vm17866_vm8, %v2971_v28, %v2973_v23  ;;  %v13765_v57 = vsel %vm13704_vm5, %v12670_v40, %v13614_v9  ;;  %v17867_v20 = vxor.u32 2147483648, %v13618_v49  ;;  %v13791_v28 = vld [vmem:[#allocation4 + $0x1] ss:$0 sm:$0xff] }
 0x4a9   :  { %vm17868_vm0 = vcmp.lt.s32.totalorder %v12738_v45, 0  ;;  %v4093_v1 = vxor.u32 2147483648, %v4092_v2  ;;  %v17869_v33 = vcvt.s32.f32 %v13629_v17  ;;  %v2994_v14 = vsel %vm2992_vm10, %v2993_v11, %v13717_v58 }
 0x4aa   :  { %v13772_v43 = vsel %vm17868_vm0, %v17867_v20, %v13618_v49  ;;  %v4856_v0 = vsub.s32 32, %v4855_v52  ;;  %vm17870_vm14 = vcmp.lt.s32.totalorder %v17834_v27, 0  ;;  %v4102_v63 = vadd.s32 3, %v4098_v54 }
 0x4ab   :  { %v13776_v8 = vmul.f32 %v17869_v33, %v1867_v51  ;;  %v4094_v9 = vsel %vm17870_vm14, %v4093_v1, %v4092_v2  ;;  %v2990_v37 = vmul.u32 %v13667_v24, %v2974_v42  ;;  %v4849_v49 = vor.u32 8388608, %v4848_v7  ;;  %v8660_v35 = vpop.eup %8659 }
 0x4ac   :  { %v13785_v25 = vand.u32 3, %v3998_v22  ;;  %v4097_v17 = vsel %vm13728_vm6, %v17834_v27, %v4094_v9  ;;  %v4859_v51 = vshrl.u32 %v17511_v34, %v4856_v0  ;;  %v13794_v58 = vadd.f32 %v13791_v28, %v1977_v47 }
 0x4ad   :  { %8663 = vcosq.f32 %v4097_v17  ;;  %v13796_v23 = vadd.s32 %v2994_v14, %v2990_v37  ;;  %v4858_v60 = vshll.u32 %v17463_v61, %v4855_v52  ;;  %v4862_v24 = vshrl.u32 %v17475_v29, %v4856_v0 }
 0x4ae   :  { %17871 = vst [vmem:[#allocation31_spill] sm:$0xff] %v13794_v58  ;;  %8665 = vsinq.f32 %v4097_v17  ;;  %v4861_v22 = vshll.u32 %v17511_v34, %v4855_v52  ;;  %v4864_v38 = vshll.u32 %v17475_v29, %v4855_v52  ;;  %v4865_v11 = vshrl.u32 %v17510_v30, %v4856_v0 }
 0x4af   :  { %v13803_v2 = vand.u32 3, %v4102_v63  ;;  %v4854_v44 = vshrl.u32 %v4853_v53, 5  ;;  %v4860_v7 = vor.u32 %v4859_v51, %v4858_v60  ;;  %v13805_v54 = vshll.u32 %v4849_v49, 8 }
 0x4b0   :  { %v4863_v42 = vor.u32 %v4862_v24, %v4861_v22  ;;  %v4866_v47 = vor.u32 %v4865_v11, %v4864_v38  ;;  %v4867_v20 = vshll.u32 %v17510_v30, %v4855_v52  ;;  %v4868_v1 = vshrl.u32 %v17472_v10, %v4856_v0 }
 0x4b1   :  { %v2996_v33 = vadd.s32 536870912, %v13796_v23  ;;  %v4870_v14 = vshll.u32 %v17472_v10, %v4855_v52  ;;  %v4871_v9 = vshrl.u32 %v17473_v55, %v4856_v0  ;;  %v3042_v37 = vand.u32 2139095040, %v13794_v58 }
 0x4b2   :  { %v4002_v63 = vxor.u32 2147483648, %v8660_v35  ;;  %v4005_v53 = vxor.u32 2147483648, %v13780_v31  ;;  %v4857_v49 = vshrl.u32 %v17463_v61, %v4856_v0  ;;  %v4869_v17 = vor.u32 %v4868_v1, %v4867_v20 }
 0x4b3   :  { %v4872_v51 = vor.u32 %v4871_v9, %v4870_v14  ;;  %vm4873_vm6 = vcmp.lt.s32.totalorder %v4854_v44, 1  ;;  %vm4875_vm4 = vcmp.lt.s32.totalorder %v4854_v44, 3  ;;  %vm4876_vm10 = vcmp.lt.s32.totalorder %v4854_v44, 4 }
 0x4b4   :  { %v4878_v60 = vsel %vm4876_vm10, %v4866_v47, 2102212464  ;;  %v4881_v24 = vsel %vm4873_vm6, %v4860_v7, %v4863_v42  ;;  %v4882_v22 = vsel %vm4876_vm10, %v4869_v17, 920167782  ;;  %v4885_v38 = vsel %vm4873_vm6, %v4863_v42, %v4866_v47  ;;  %v13818_v26 = vpop.eup %8661 }
 0x4b5   :  { %v13815_v11 = vshrl.u32 %v2996_v33, 30  ;;  %vm4874_vm8 = vcmp.lt.s32.totalorder %v4854_v44, 2  ;;  %v4883_v52 = vsel %vm4875_vm4, %v4866_v47, %v4882_v22  ;;  %v4886_v36 = vsel %vm4876_vm10, %v4872_v51, 1326507024  ;;  %17872 = vst [vmem:[#allocation27_spill] sm:$0xff] %v13818_v26 }
 0x4b6   :  { %v4877_v4 = vsel %vm4873_vm6, %v4857_v49, %v4860_v7  ;;  %v4884_v0 = vsel %vm4874_vm8, %v4881_v24, %v4883_v52  ;;  %v4887_v20 = vsel %vm4875_vm4, %v4869_v17, %v4886_v36  ;;  %v3043_v1 = vshrl.u32 %v3042_v37, 23 }
 0x4b7   :  { %v4879_v14 = vsel %vm4875_vm4, %v4863_v42, %v4878_v60  ;;  %v4888_v33 = vsel %vm4874_vm8, %v4885_v38, %v4887_v20  ;;  %v13826_v9 = vmul.u32.u64.low %v13805_v54, %v4884_v0  ;;  %v13827_v15 = vmul.u32.u64.high %v13805_v54, %v4884_v0, %v13826_v9 }
 0x4b8   :  { %v13831_v47 = vmul.u32.u64.low %v13805_v54, %v4888_v33  ;;  %v13832_v51 = vmul.u32.u64.high %v13805_v54, %v4888_v33, %v13831_v47  ;;  %v7904_v7 = vadd.s32 4294967169, %v3043_v1  ;;  %v3883_v49 = vmul.f32 %v13757_v6, %v3851_v3 }
 0x4b9   :  { %vm4001_vm6 = vcmp.eq.s32.totalorder %v13785_v25, 0  ;;  %vm4004_vm4 = vcmp.eq.s32.totalorder %v13785_v25, 2  ;;  %v2998_v36 = vshll.u32 %v13815_v11, 30  ;;  %v17873_v37 = vand.u32 2147483647, %v12738_v45 }
 0x4ba   :  { %v8664_v42 = vpop.eup %8663  ;;  %v17874_v17 = vmov 0  ;;  %v4003_v60 = vsel %vm4001_vm6, %v13780_v31, %v4002_v63  ;;  %v4006_v24 = vsel %vm4004_vm4, %v4005_v53, %v8660_v35  ;;  %v4880_v3 = vsel %vm4874_vm8, %v4877_v4, %v4879_v14 }
 0x4bb   :  { %vm13841_vm10 = vcmp.le.f32.partialorder %v17873_v37, 0.7853982  ;;  %v3049_v22 = vadd.s32 1, %v7904_v7  ;;  %v8666_v38 = vpop.eup %8665  ;;  %vm4105_vm0 = vcmp.eq.s32.totalorder %v13803_v2, 0  ;;  %vm4108_vm14 = vcmp.eq.s32.totalorder %v13803_v2, 2 }
 0x4bc   :  { %v17875_v17 = vsel %vm13841_vm10, 4294967295, %v17874_v17  ;;  %v4109_v52 = vxor.u32 2147483648, %v8664_v42  ;;  %v4899_v0 = vadd.s32 1, %v13827_v15  ;;  %v4106_v20 = vxor.u32 2147483648, %v8666_v38 }
 0x4bd   :  { %17876 = vst [vmem:[#allocation26_spill] sm:$0xff] %v17875_v17  ;;  %vm4898_vm5 = vc.u32 %v13832_v51, %v13826_v9  ;;  %v17281_v1 = vand.u32 2147483647, %v13794_v58  ;;  %v13854_v31 = vadd.f32 %v13791_v28, %v3883_v49  ;;  %vm17878_vm8 = vcmp.lt.s32.totalorder %v13785_v25, 2 }
 0x4be   :  { %v4007_v4 = vsel %vm17878_vm8, %v4003_v60, %v4006_v24  ;;  %v4110_v35 = vsel %vm4108_vm14, %v4109_v52, %v8666_v38  ;;  %v13859_v44 = vsub.s32 %v13796_v23, %v2998_v36  ;;  %v4896_v63 = vmul.u32 %v13805_v54, %v4880_v3 }
 0x4bf   :  { %17877 = vst [vmem:[#allocation44_spill] sm:$0xff] %v13854_v31  ;;  %vm4104_vm6 = vcmp.lt.s32.totalorder %v13803_v2, 2  ;;  %v4107_v53 = vsel %vm4105_vm0, %v8664_v42, %v4106_v20  ;;  %v4900_v14 = vsel %vm4898_vm5, %v4899_v0, %v13827_v15  ;;  %vm3050_vm4 = vcmp.gt.s32.totalorder %v3049_v22, 0 }
 0x4c0   :  { %v17879_v33 = vsub.s32 4294967266, %v13742_v41  ;;  %vm4101_vm3 = vweird.f32 %v17834_v27  ;;  %v4111_v7 = vsel %vm4104_vm6, %v4107_v53, %v4110_v35  ;;  %v4901_v25 = vadd.s32 %v4900_v14, %v4896_v63 }
 0x4c1   :  { %vm17880_vm14 = vweird.f32 %v17815_v56  ;;  %v4112_v23 = vsel %vm4101_vm3, nan, %v4111_v7  ;;  %v3051_v36 = vsel %vm3050_vm4, %v3049_v22, 0  ;;  %v4948_v54 = vand.u32 2139095040, %v13854_v31 }
 0x4c2   :  { %v4814_v47 = vadd.s32 127, %v17879_v33  ;;  %v4008_v49 = vsel %vm17880_vm14, nan, %v4007_v4  ;;  %v3001_v2 = vsub.s32 0, %v13859_v44  ;;  %v4902_v42 = vadd.s32 536870912, %v4901_v25 }
 0x4c3   :  { %v5569_v37 = vpack.c.bf16 %v4112_v23, %v4008_v49  ;;  %v3046_v15 = vand.u32 8388607, %v17281_v1  ;;  %v17881_v60 = vsub.s32 4, %v13032_v32  ;;  %vm17882_vm5 = vcmp.lt.s32.totalorder %v12670_v40, 0 }
 0x4c4   :  { %8667 = vcosq.f32 %v13765_v57  ;;  %v3053_v24 = vand.u32 31, %v3051_v36  ;;  %v13886_v3 = vsel %vm13841_vm10, %v12738_v45, %v13772_v43  ;;  %v4793_v38 = vadd.s32 %v13396_v19, %v13412_v62 }
 0x4c5   :  { %v13878_v27 = vsel %vm17882_vm5, %v17881_v60, %v13032_v32  ;;  %vm17884_vm3 = vcmask 261120   ;;  %v13892_v32 = vshrl.u32 %v4902_v42, 30  ;;  %v4809_v52 = vsub.s32 32, %v13742_v41 }
 0x4c6   :  { %17883 = vst [vmem:[#allocation42_spill] sm:$0xff] %v13878_v27  ;;  %8157 = vmatprep.mubr.msk.bf16.mxu1 %vm17884_vm3, %v5569_v37  ;;  %v4815_v0 = vshll.u32 %v4814_v47, 23  ;;  %v3054_v20 = vsub.s32 32, %v3053_v24  ;;  %v4949_v4 = vshrl.u32 %v4948_v54, 23  ;;  %v7901_v35 = vmin.u32 %v3001_v2, %v13859_v44 }
 0x4c7   :  { %v4904_v63 = vshll.u32 %v13892_v32, 30  ;;  %v3047_v43 = vor.u32 8388608, %v3046_v15  ;;  %v3056_v53 = vshll.u32 %v17463_v61, %v3053_v24  ;;  %v3059_v19 = vshll.u32 %v17511_v34, %v3053_v24 }
 0x4c8   :  { %v3057_v14 = vshrl.u32 %v17511_v34, %v3054_v20  ;;  %v3060_v62 = vshrl.u32 %v17475_v29, %v3054_v20  ;;  %v3063_v33 = vshrl.u32 %v17510_v30, %v3054_v20  ;;  %v3052_v7 = vshrl.u32 %v3051_v36, 5 }
 0x4c9   :  { %v3062_v47 = vshll.u32 %v17475_v29, %v3053_v24  ;;  %v3065_v49 = vshll.u32 %v17510_v30, %v3053_v24  ;;  %v3066_v23 = vshrl.u32 %v17472_v10, %v3054_v20  ;;  %v13905_v54 = vsub.s32 %v4901_v25, %v4904_v63 }
 0x4ca   :  { %v3058_v37 = vor.u32 %v3057_v14, %v3056_v53  ;;  %v3061_v2 = vor.u32 %v3060_v62, %v3059_v19  ;;  %v7978_v42 = vadd.s32 4294967169, %v4949_v4  ;;  %v3068_v1 = vshll.u32 %v17472_v10, %v3053_v24 }
 0x4cb   :  { %v3064_v15 = vor.u32 %v3063_v33, %v3062_v47  ;;  %v3067_v60 = vor.u32 %v3066_v23, %v3065_v49  ;;  %v3069_v22 = vshrl.u32 %v17473_v55, %v3054_v20  ;;  %v4810_v36 = vshll.u32 %v13597_v12, %v13742_v41 }
 0x4cc   :  { %v4811_v56 = vshrl.u32 %v4793_v38, %v4809_v52  ;;  %v4816_v40 = vor.u32 4788187, %v4815_v0  ;;  %v3003_v27 = vclz %v7901_v35  ;;  %vm3071_vm0 = vcmp.lt.s32.totalorder %v3052_v7, 1 }
 0x4cd   :  { %v3070_v17 = vor.u32 %v3069_v22, %v3068_v1  ;;  %vm3074_vm8 = vcmp.lt.s32.totalorder %v3052_v7, 4  ;;  %v3087_v25 = vshll.u32 %v3047_v43, 8  ;;  %vm3073_vm6 = vcmp.lt.s32.totalorder %v3052_v7, 3 }
 0x4ce   :  { %v3079_v63 = vsel %vm3071_vm0, %v3058_v37, %v3061_v2  ;;  %v3080_v4 = vsel %vm3074_vm8, %v3067_v60, 920167782  ;;  %v4955_v53 = vadd.s32 1, %v7978_v42  ;;  %v4907_v24 = vsub.s32 0, %v13905_v54 }
 0x4cf   :  { %vm3072_vm4 = vcmp.lt.s32.totalorder %v3052_v7, 2  ;;  %v3076_v14 = vsel %vm3074_vm8, %v3064_v15, 2102212464  ;;  %v3081_v12 = vsel %vm3073_vm6, %v3064_v15, %v3080_v4  ;;  %v4812_v41 = vor.u32 %v4811_v56, %v4810_v36 }
 0x4d0   :  { %v3055_v38 = vshrl.u32 %v17463_v61, %v3054_v20  ;;  %v3082_v1 = vsel %vm3072_vm4, %v3079_v63, %v3081_v12  ;;  %v3083_v22 = vsel %vm3071_vm0, %v3061_v2, %v3064_v15  ;;  %v7902_v0 = vadd.s32 4294967294, %v3003_v27 }
 0x4d1   :  { %v13919_v52 = vpop.eup %8667  ;;  %v3084_v35 = vsel %vm3074_vm8, %v3070_v17, 1326507024  ;;  %v13922_v43 = vmul.u32.u64.low %v3087_v25, %v3082_v1  ;;  %v13923_v19 = vmul.u32.u64.high %v3087_v25, %v3082_v1, %v13922_v43  ;;  %v3077_v33 = vsel %vm3073_vm6, %v3061_v2, %v3076_v14 }
 0x4d2   :  { %17885 = vst [vmem:[#allocation41_spill] sm:$0xff] %v13919_v52  ;;  %v3075_v62 = vsel %vm3071_vm0, %v3055_v38, %v3058_v37  ;;  %v3085_v56 = vsel %vm3073_vm6, %v3067_v60, %v3084_v35  ;;  %vm4956_vm14 = vcmp.gt.s32.totalorder %v4955_v53, 0  ;;  %v4817_v20 = vand.u32 2147483647, %v4816_v40  ;;  %v1949_v40 = vpop.permute.xlu1 %1948 }
 0x4d3   :  { %v7975_v47 = vmin.u32 %v4907_v24, %v13905_v54  ;;  %v3086_v49 = vsel %vm3072_vm4, %v3083_v22, %v3085_v56  ;;  %v4957_v23 = vsel %vm4956_vm14, %v4955_v53, 0  ;;  %8669 = vsinq.f32 %v13765_v57 }
 0x4d4   :  { %vm17286_vm5 = vcmp.lt.s32.totalorder %v13145_v5, 0  ;;  %v13933_v17 = vmul.u32.u64.low %v3087_v25, %v3086_v49  ;;  %v13934_v27 = vmul.u32.u64.high %v3087_v25, %v3086_v49, %v13933_v17  ;;  %v4819_v42 = vcvt.s32.f32 %v4812_v41 }
 0x4d5   :  { %v3078_v37 = vsel %vm3072_vm4, %v3075_v62, %v3077_v33  ;;  %v3097_v2 = vadd.s32 1, %v13923_v19  ;;  %v17285_v15 = vand.u32 2147483647, %v13854_v31  ;;  %v17886_v60 = vsub.s32 4, %v13140_v50 }
 0x4d6   :  { %vm17887_vm3 = vcmp.lt.s32.totalorder %v12738_v45, 0  ;;  %8671 = vcosq.f32 %v13886_v3  ;;  %vm7903_vm0 = vcmp.lt.s32.totalorder %v7902_v0, 0  ;;  %v4959_v57 = vand.u32 31, %v4957_v23  ;;  %v17899_v45 = vld [vmem:[#allocation37_spill] sm:$0xff] }
 0x4d7   :  { %v13944_v36 = vsel %vm17887_vm3, %v17886_v60, %v13140_v50  ;;  %8673 = vsinq.f32 %v13886_v3  ;;  %v17889_v7 = vxor.u32 2147483648, %v13776_v8  ;;  %v13955_v4 = vmul.f32 %v4819_v42, %v4817_v20 }
 0x4d8   :  { %17888 = vst [vmem:[#allocation55_spill] sm:$0xff] %v13944_v36  ;;  %v4909_v53 = vclz %v7975_v47  ;;  %v3094_v24 = vmul.u32 %v3087_v25, %v3078_v37  ;;  %vm3096_vm8 = vc.u32 %v13934_v27, %v13922_v43  ;;  %v4960_v50 = vsub.s32 32, %v4959_v57 }
 0x4d9   :  { %v13953_v63 = vsel %vm17286_vm5, %v17889_v7, %v13776_v8  ;;  %v1978_v14 = vmul.f32 %v13757_v6, %v1949_v40  ;;  %v13960_v12 = vsel %vm7903_vm0, 0, %v7902_v0  ;;  %v3098_v3 = vsel %vm3096_vm8, %v3097_v2, %v13923_v19 }
 0x4da   :  { %v4952_v41 = vand.u32 8388607, %v17285_v15  ;;  %v4962_v8 = vshll.u32 %v17463_v61, %v4959_v57  ;;  %v3099_v38 = vadd.s32 %v3098_v3, %v3094_v24  ;;  %v4963_v1 = vshrl.u32 %v17511_v34, %v4960_v50  ;;  %v17898_v15 = vld [vmem:[#allocation18_spill] sm:$0xff] }
 0x4db   :  { %v4965_v25 = vshll.u32 %v17511_v34, %v4959_v57  ;;  %v4966_v22 = vshrl.u32 %v17475_v29, %v4960_v50  ;;  %v7976_v35 = vadd.s32 4294967294, %v4909_v53  ;;  %v4958_v62 = vshrl.u32 %v4957_v23, 5 }
 0x4dc   :  { %v4968_v33 = vshll.u32 %v17475_v29, %v4959_v57  ;;  %v4969_v0 = vshrl.u32 %v17510_v30, %v4960_v50  ;;  %v2991_v19 = vadd.s32 %v13716_v39, %v13723_v21  ;;  %v3100_v56 = vadd.s32 536870912, %v3099_v38 }
 0x4dd   :  { %v4964_v20 = vor.u32 %v4963_v1, %v4962_v8  ;;  %v4967_v47 = vor.u32 %v4966_v22, %v4965_v25  ;;  %v4971_v17 = vshll.u32 %v17510_v30, %v4959_v57  ;;  %v4972_v42 = vshrl.u32 %v17472_v10, %v4960_v50 }
 0x4de   :  { %v4970_v49 = vor.u32 %v4969_v0, %v4968_v33  ;;  %v13976_v37 = vadd.f32 %v13791_v28, %v1978_v14  ;;  %v17891_v23 = vand.u32 2147483647, %v13145_v5  ;;  %v17892_v2 = vmov 0 }
 0x4df   :  { %v3007_v40 = vsub.s32 32, %v13960_v12  ;;  %v3011_v39 = vsub.s32 4294967266, %v13960_v12  ;;  %v4974_v21 = vshll.u32 %v17472_v10, %v4959_v57  ;;  %v4975_v60 = vshrl.u32 %v17473_v55, %v4960_v50 }
 0x4e0   :  { %17890 = vst [vmem:[#allocation56_spill] sm:$0xff] %v13976_v37  ;;  %vm13980_vm6 = vcmp.le.f32.partialorder %v17891_v23, 0.7853982  ;;  %vm7977_vm4 = vcmp.lt.s32.totalorder %v7976_v35, 0  ;;  %v4953_v7 = vor.u32 8388608, %v4952_v41  ;;  %v4973_v53 = vor.u32 %v4972_v42, %v4971_v17  ;;  %v13991_v8 = vpop.eup %8669 }
 0x4e1   :  { %v17893_v2 = vsel %vm13980_vm6, 4294967295, %v17892_v2  ;;  %vm4977_vm14 = vcmp.lt.s32.totalorder %v4958_v62, 1  ;;  %v13988_v24 = vshrl.u32 %v3100_v56, 30  ;;  %v4976_v14 = vor.u32 %v4975_v60, %v4974_v21  ;;  %17895 = vst [vmem:[#allocation157_spill] sm:$0xff] %v13991_v8  ;;  %v3855_v21 = vpop.permute.xlu1 %3854 }
 0x4e2   :  { %17894 = vst [vmem:[#allocation54_spill] sm:$0xff] %v17893_v2  ;;  %vm4980_vm3 = vcmp.lt.s32.totalorder %v4958_v62, 4  ;;  %v4985_v3 = vsel %vm4977_vm14, %v4964_v20, %v4967_v47  ;;  %vm4979_vm0 = vcmp.lt.s32.totalorder %v4958_v62, 3  ;;  %v4989_v25 = vsel %vm4977_vm14, %v4967_v47, %v4970_v49 }
 0x4e3   :  { %v4986_v1 = vsel %vm4980_vm3, %v4973_v53, 920167782  ;;  %v3146_v57 = vand.u32 2139095040, %v13976_v37  ;;  %vm4978_vm8 = vcmp.lt.s32.totalorder %v4958_v62, 2  ;;  %v4982_v22 = vsel %vm4980_vm3, %v4970_v49, 2102212464  ;;  %v13996_v0 = vpop.eup %8671 }
 0x4e4   :  { %v4987_v41 = vsel %vm4979_vm0, %v4970_v49, %v4986_v1  ;;  %v4990_v33 = vsel %vm4980_vm3, %v4976_v14, 1326507024  ;;  %17896 = vst [vmem:[#allocation158_spill] sm:$0xff] %v13996_v0  ;;  %v4961_v56 = vshrl.u32 %v17463_v61, %v4960_v50  ;;  %v4993_v23 = vshll.u32 %v4953_v7, 8  ;;  %v14001_v60 = vpop.eup %8673 }
 0x4e5   :  { %v4988_v17 = vsel %vm4978_vm8, %v4985_v3, %v4987_v41  ;;  %v4991_v42 = vsel %vm4979_vm0, %v4973_v53, %v4990_v33  ;;  %17897 = vst [vmem:[#allocation159_spill] sm:$0xff] %v14001_v60  ;;  %vm4739_vm5 = vcmp.lt.s32.totalorder %v17898_v15, 0  ;;  %v14005_v52 = vsel %vm7977_vm4, 0, %v7976_v35 }
 0x4e6   :  { %v3102_v49 = vshll.u32 %v13988_v24, 30  ;;  %v4992_v14 = vsel %vm4978_vm8, %v4989_v25, %v4991_v42  ;;  %v3147_v1 = vshrl.u32 %v3146_v57, 23  ;;  %v4981_v50 = vsel %vm4977_vm14, %v4961_v56, %v4964_v20 }
 0x4e7   :  { %v4983_v3 = vsel %vm4979_vm0, %v4967_v47, %v4982_v22  ;;  %v14011_v41 = vmul.u32.u64.low %v4993_v23, %v4992_v14  ;;  %v14012_v53 = vmul.u32.u64.high %v4993_v23, %v4992_v14, %v14011_v41  ;;  %v3012_v7 = vadd.s32 127, %v3011_v39 }
 0x4e8   :  { %v14014_v33 = vmul.u32.u64.low %v4993_v23, %v4988_v17  ;;  %v14015_v8 = vmul.u32.u64.high %v4993_v23, %v4988_v17, %v14014_v33  ;;  %v3884_v35 = vmul.f32 %v13757_v6, %v3855_v21  ;;  %v1873_v0 = vsub.s32 4, %v17899_v45 }
 0x4e9   :  { %v3009_v60 = vshrl.u32 %v2991_v19, %v3007_v40  ;;  %v4917_v25 = vsub.s32 4294967266, %v14005_v52  ;;  %v7908_v57 = vadd.s32 4294967169, %v3147_v1  ;;  %v4823_v20 = vsub.s32 4, %v13531_v46 }
 0x4ea   :  { %v14022_v56 = vsub.s32 %v3099_v38, %v3102_v49  ;;  %v4984_v47 = vsel %vm4978_vm8, %v4981_v50, %v4983_v3  ;;  %v17293_v39 = vand.u32 2147483647, %v13976_v37  ;;  %v14030_v22 = vsel %vm13980_vm6, %v13145_v5, %v13953_v63 }
 0x4eb   :  { %v3008_v19 = vshll.u32 %v13859_v44, %v13960_v12  ;;  %vm5002_vm4 = vc.u32 %v14012_v53, %v14014_v33  ;;  %v3153_v40 = vadd.s32 1, %v7908_v57  ;;  %v4821_v38 = vxor.u32 2147483648, %v13955_v4 }
 0x4ec   :  { %v3013_v17 = vshll.u32 %v3012_v7, 23  ;;  %v5003_v62 = vadd.s32 1, %v14015_v8  ;;  %v14039_v42 = vadd.f32 %v13791_v28, %v3884_v35  ;;  %v4918_v49 = vadd.s32 127, %v4917_v25 }
 0x4ed   :  { %v14041_v21 = vor.u32 %v3009_v60, %v3008_v19  ;;  %v5000_v63 = vmul.u32 %v4993_v23, %v4984_v47  ;;  %vm3154_vm14 = vcmp.gt.s32.totalorder %v3153_v40, 0  ;;  %v3105_v14 = vsub.s32 0, %v14022_v56 }
 0x4ee   :  { %17900 = vst [vmem:[#allocation37_spill] sm:$0xff] %v14039_v42  ;;  %v5004_v44 = vsel %vm5002_vm4, %v5003_v62, %v14015_v8  ;;  %v3150_v12 = vand.u32 8388607, %v17293_v39  ;;  %v3155_v1 = vsel %vm3154_vm14, %v3153_v40, 0  ;;  %vm17901_vm3 = vcmp.lt.s32.totalorder %v13145_v5, 0 }
 0x4ef   :  { %v14050_v50 = vsel %vm17901_vm3, %v1873_v0, %v17899_v45  ;;  %v14055_v60 = vsel %vm4739_vm5, %v4823_v20, %v13531_v46  ;;  %v5005_v23 = vadd.s32 %v5004_v44, %v5000_v63  ;;  %v3157_v3 = vand.u32 31, %v3155_v1 }
 0x4f0   :  { %17902 = vst [vmem:[#allocation160_spill] sm:$0xff] %v14050_v50  ;;  %17903 = vst [vmem:[#allocation161_spill] sm:$0xff] %v14055_v60  ;;  %8675 = vcosq.f32 %v14030_v22  ;;  %v4822_v8 = vsel %vm4739_vm5, %v4821_v38, %v13955_v4  ;;  %v14061_v41 = vor.u32 4788187, %v3013_v17  ;;  %v4897_v7 = vadd.s32 %v13826_v9, %v13832_v51 }
 0x4f1   :  { %v3017_v45 = vcvt.s32.f32 %v14041_v21  ;;  %v4913_v0 = vsub.s32 32, %v14005_v52  ;;  %v5006_v35 = vadd.s32 536870912, %v5005_v23  ;;  %v3158_v46 = vsub.s32 32, %v3157_v3 }
 0x4f2   :  { %v4919_v25 = vshll.u32 %v4918_v49, 23  ;;  %v7905_v57 = vmin.u32 %v3105_v14, %v14022_v56  ;;  %v3151_v20 = vor.u32 8388608, %v3150_v12  ;;  %v5052_v47 = vand.u32 2139095040, %v14039_v42 }
 0x4f3   :  { %v14069_v19 = vshrl.u32 %v5006_v35, 30  ;;  %v3160_v4 = vshll.u32 %v17463_v61, %v3157_v3  ;;  %v3161_v40 = vshrl.u32 %v17511_v34, %v3158_v46  ;;  %v3164_v9 = vshrl.u32 %v17475_v29, %v3158_v46 }
 0x4f4   :  { %v3163_v51 = vshll.u32 %v17511_v34, %v3157_v3  ;;  %v3167_v38 = vshrl.u32 %v17510_v30, %v3158_v46  ;;  %v3169_v17 = vshll.u32 %v17510_v30, %v3157_v3  ;;  %v3170_v62 = vshrl.u32 %v17472_v10, %v3158_v46 }
 0x4f5   :  { %v3015_v21 = vand.u32 2147483647, %v14061_v41  ;;  %v5008_v49 = vshll.u32 %v14069_v19, 30  ;;  %v3156_v63 = vshrl.u32 %v3155_v1, 5  ;;  %v3166_v14 = vshll.u32 %v17475_v29, %v3157_v3 }
 0x4f6   :  { %v17904_v44 = vand.u32 2147483647, %v17898_v15  ;;  %v17905_v12 = vmov 0  ;;  %v3162_v35 = vor.u32 %v3161_v40, %v3160_v4  ;;  %v3165_v39 = vor.u32 %v3164_v9, %v3163_v51 }
 0x4f7   :  { %v3171_v5 = vor.u32 %v3170_v62, %v3169_v17  ;;  %v5053_v2 = vshrl.u32 %v5052_v47, 23  ;;  %v4914_v50 = vshll.u32 %v13905_v54, %v14005_v52  ;;  %v3168_v60 = vor.u32 %v3167_v38, %v3166_v14 }
 0x4f8   :  { %vm14083_vm5 = vcmp.le.f32.partialorder %v17904_v44, 0.7853982  ;;  %v3172_v41 = vshll.u32 %v17472_v10, %v3157_v3  ;;  %v3173_v1 = vshrl.u32 %v17473_v55, %v3158_v46  ;;  %v4915_v36 = vshrl.u32 %v4897_v7, %v4913_v0 }
 0x4f9   :  { %v17906_v12 = vsel %vm14083_vm5, 4294967295, %v17905_v12  ;;  %v4920_v16 = vor.u32 4788187, %v4919_v25  ;;  %v3107_v26 = vclz %v7905_v57  ;;  %v3191_v13 = vshll.u32 %v3151_v20, 8 }
 0x4fa   :  { %17907 = vst [vmem:[#allocation162_spill] sm:$0xff] %v17906_v12  ;;  %v14091_v44 = vsub.s32 %v5005_v23, %v5008_v49  ;;  %v3174_v59 = vor.u32 %v3173_v1, %v3172_v41  ;;  %vm3175_vm0 = vcmp.lt.s32.totalorder %v3156_v63, 1  ;;  %vm3178_vm8 = vcmp.lt.s32.totalorder %v3156_v63, 4 }
 0x4fb   :  { %vm3177_vm4 = vcmp.lt.s32.totalorder %v3156_v63, 3  ;;  %v3183_v47 = vsel %vm3175_vm0, %v3162_v35, %v3165_v39  ;;  %v3184_v4 = vsel %vm3178_vm8, %v3171_v5, 920167782  ;;  %v7982_v40 = vadd.s32 4294967169, %v5053_v2 }
 0x4fc   :  { %vm3176_vm14 = vcmp.lt.s32.totalorder %v3156_v63, 2  ;;  %v3180_v54 = vsel %vm3178_vm8, %v3168_v60, 2102212464  ;;  %v3185_v52 = vsel %vm3177_vm4, %v3168_v60, %v3184_v4  ;;  %v3187_v3 = vsel %vm3175_vm0, %v3165_v39, %v3168_v60  ;;  %v17919_v63 = vld [vmem:[#allocation83_spill] sm:$0xff] }
 0x4fd   :  { %v7906_v7 = vadd.s32 4294967294, %v3107_v26  ;;  %v3159_v0 = vshrl.u32 %v17463_v61, %v3158_v46  ;;  %v3186_v23 = vsel %vm3176_vm14, %v3183_v47, %v3185_v52  ;;  %v3188_v25 = vsel %vm3178_vm8, %v3174_v59, 1326507024  ;;  %v14098_v57 = vpop.eup %8675 }
 0x4fe   :  { %17908 = vst [vmem:[#allocation163_spill] sm:$0xff] %v14098_v57  ;;  %v5011_v20 = vsub.s32 0, %v14091_v44  ;;  %v3189_v9 = vsel %vm3177_vm4, %v3171_v5, %v3188_v25  ;;  %v14102_v51 = vmul.u32.u64.low %v3191_v13, %v3186_v23  ;;  %v14103_v2 = vmul.u32.u64.high %v3191_v13, %v3186_v23, %v14102_v51 }
 0x4ff   :  { %v3179_v38 = vsel %vm3175_vm0, %v3159_v0, %v3162_v35  ;;  %v3181_v60 = vsel %vm3177_vm4, %v3165_v39, %v3180_v54  ;;  %v3190_v26 = vsel %vm3176_vm14, %v3187_v3, %v3189_v9  ;;  %v5059_v46 = vadd.s32 1, %v7982_v40 }
 0x500   :  { %v4825_v59 = vsel %vm14083_vm5, %v17898_v15, %v4822_v8  ;;  %v4916_v17 = vor.u32 %v4915_v36, %v4914_v50  ;;  %v14112_v62 = vmul.u32.u64.low %v3191_v13, %v3190_v26  ;;  %v14113_v49 = vmul.u32.u64.high %v3191_v13, %v3190_v26, %v14112_v62 }
 0x501   :  { %8677 = vsinq.f32 %v14030_v22  ;;  %v14116_v5 = vmul.f32 %v3017_v45, %v3015_v21  ;;  %v4921_v14 = vand.u32 2147483647, %v4920_v16  ;;  %vm5060_vm3 = vcmp.gt.s32.totalorder %v5059_v46, 0  ;;  %v17909_v45 = vld [vmem:[#allocation66_spill] sm:$0xff] }
 0x502   :  { %v3182_v35 = vsel %vm3176_vm14, %v3179_v38, %v3181_v60  ;;  %v3201_v39 = vadd.s32 1, %v14103_v2  ;;  %v17299_v41 = vand.u32 2147483647, %v14039_v42  ;;  %v5061_v1 = vsel %vm5060_vm3, %v5059_v46, 0 }
 0x503   :  { %8679 = vcosq.f32 %v4825_v59  ;;  %vm7907_vm0 = vcmp.lt.s32.totalorder %v7906_v7, 0  ;;  %v7979_v36 = vmin.u32 %v5011_v20, %v14091_v44  ;;  %v5063_v50 = vand.u32 31, %v5061_v1 }
 0x504   :  { %8681 = vsinq.f32 %v4825_v59  ;;  %v4923_v22 = vcvt.s32.f32 %v4916_v17  ;;  %v2296_v16 = vsel %vm10368_vm9, 0, %v17909_v45  ;;  %v3198_v47 = vmul.u32 %v3191_v13, %v3182_v35 }
 0x505   :  { %vm3200_vm8 = vc.u32 %v14113_v49, %v14102_v51  ;;  %v5064_v4 = vsub.s32 32, %v5063_v50  ;;  %v14131_v54 = vsel %vm7907_vm0, 0, %v7906_v7  ;;  %v5056_v3 = vand.u32 8388607, %v17299_v41 }
 0x506   :  { %v14129_v40 = vmul.f32 %v4923_v22, %v4921_v14  ;;  %v3202_v52 = vsel %vm3200_vm8, %v3201_v39, %v14103_v2  ;;  %v5013_v0 = vclz %v7979_v36  ;;  %v5066_v13 = vshll.u32 %v17463_v61, %v5063_v50 }
 0x507   :  { %v3203_v23 = vadd.s32 %v3202_v52, %v3198_v47  ;;  %v5067_v25 = vshrl.u32 %v17511_v34, %v5064_v4  ;;  %v5070_v20 = vshrl.u32 %v17475_v29, %v5064_v4  ;;  %v5069_v9 = vshll.u32 %v17511_v34, %v5063_v50 }
 0x508   :  { %v5072_v38 = vshll.u32 %v17475_v29, %v5063_v50  ;;  %v5073_v7 = vshrl.u32 %v17510_v30, %v5064_v4  ;;  %v5062_v26 = vshrl.u32 %v5061_v1, 5  ;;  %v5075_v2 = vshll.u32 %v17510_v30, %v5063_v50 }
 0x509   :  { %v3204_v60 = vadd.s32 536870912, %v3203_v23  ;;  %v5076_v46 = vshrl.u32 %v17472_v10, %v5064_v4  ;;  %v5057_v59 = vor.u32 8388608, %v5056_v3  ;;  %v5068_v17 = vor.u32 %v5067_v25, %v5066_v13 }
 0x50a   :  { %v5071_v62 = vor.u32 %v5070_v20, %v5069_v9  ;;  %v5074_v14 = vor.u32 %v5073_v7, %v5072_v38  ;;  %v5078_v36 = vshll.u32 %v17472_v10, %v5063_v50  ;;  %v5079_v22 = vshrl.u32 %v17473_v55, %v5064_v4 }
 0x50b   :  { %v14144_v35 = vshrl.u32 %v3204_v60, 30  ;;  %v5077_v39 = vor.u32 %v5076_v46, %v5075_v2  ;;  %v3115_v45 = vsub.s32 4294967266, %v14131_v54  ;;  %v7980_v21 = vadd.s32 4294967294, %v5013_v0 }
 0x50c   :  { %v5065_v1 = vshrl.u32 %v17463_v61, %v5064_v4  ;;  %v2300_v47 = vadd.s32 3, %v2296_v16  ;;  %v5080_v41 = vor.u32 %v5079_v22, %v5078_v36  ;;  %vm5081_vm9 = vcmp.lt.s32.totalorder %v5062_v26, 1 }
 0x50d   :  { %v3206_v52 = vshll.u32 %v14144_v35, 30  ;;  %vm5084_vm4 = vcmp.lt.s32.totalorder %v5062_v26, 4  ;;  %vm5083_vm14 = vcmp.lt.s32.totalorder %v5062_v26, 3  ;;  %v5089_v20 = vsel %vm5081_vm9, %v5068_v17, %v5071_v62 }
 0x50e   :  { %v14151_v3 = vpop.eup %8677  ;;  %v5086_v25 = vsel %vm5084_vm4, %v5074_v14, 2102212464  ;;  %v5090_v50 = vsel %vm5084_vm4, %v5077_v39, 920167782  ;;  %vm5082_vm3 = vcmp.lt.s32.totalorder %v5062_v26, 2  ;;  %v5097_v4 = vshll.u32 %v5057_v59, 8 }
 0x50f   :  { %17911 = vst [vmem:[#allocation66_spill] sm:$0xff] %v14151_v3  ;;  %v14155_v13 = vsub.s32 %v3203_v23, %v3206_v52  ;;  %v5091_v0 = vsel %vm5083_vm14, %v5074_v14, %v5090_v50  ;;  %vm7981_vm0 = vcmp.lt.s32.totalorder %v7980_v21, 0  ;;  %v5085_v9 = vsel %vm5081_vm9, %v5065_v1, %v5068_v17 }
 0x510   :  { %v14158_v16 = vpop.eup %8679  ;;  %v5092_v38 = vsel %vm5082_vm3, %v5089_v20, %v5091_v0  ;;  %v5093_v7 = vsel %vm5081_vm9, %v5071_v62, %v5074_v14  ;;  %v5087_v2 = vsel %vm5083_vm14, %v5071_v62, %v5086_v25  ;;  %v5094_v46 = vsel %vm5084_vm4, %v5080_v41, 1326507024  ;;  %v17914_v0 = vld [vmem:[#allocation74_spill] sm:$0xff] }
 0x511   :  { %17912 = vst [vmem:[#allocation71_spill] sm:$0xff] %v14158_v16  ;;  %v14161_v60 = vpop.eup %8681  ;;  %v14165_v36 = vmul.u32.u64.low %v5097_v4, %v5092_v38  ;;  %v14166_v23 = vmul.u32.u64.high %v5097_v4, %v5092_v38, %v14165_v36  ;;  %v3095_v59 = vadd.s32 %v13922_v43, %v13934_v27  ;;  %v3116_v22 = vadd.s32 127, %v3115_v45  ;;  %v1953_v43 = vpop.permute.xlu1 %1952  ;;  %v17915_v45 = vld [vmem:[#allocation72_spill] sm:$0xff] }
 0x512   :  { %17913 = vst [vmem:[#allocation164_spill] sm:$0xff] %v14161_v60  ;;  %v5095_v52 = vsel %vm5083_vm14, %v5077_v39, %v5094_v46  ;;  %v2301_v17 = vand.u32 3, %v2300_v47  ;;  %v14173_v14 = vsel %vm7981_vm0, 0, %v7980_v21  ;;  %v3209_v20 = vsub.s32 0, %v14155_v13  ;;  %v17916_v21 = vld [vmem:[#allocation78_spill] sm:$0xff] }
 0x513   :  { %v5096_v62 = vsel %vm5082_vm3, %v5093_v7, %v5095_v52  ;;  %v5088_v41 = vsel %vm5082_vm3, %v5085_v9, %v5087_v2  ;;  %v2304_v38 = vxor.u32 2147483648, %v17914_v0  ;;  %v3111_v27 = vsub.s32 32, %v14131_v54  ;;  %v17918_v52 = vld [vmem:[#allocation85_spill] sm:$0xff] }
 0x514   :  { %v14178_v25 = vmul.u32.u64.low %v5097_v4, %v5096_v62  ;;  %v14179_v50 = vmul.u32.u64.high %v5097_v4, %v5096_v62, %v14178_v25  ;;  %v5107_v39 = vadd.s32 1, %v14166_v23  ;;  %v2307_v47 = vxor.u32 2147483648, %v17915_v45 }
 0x515   :  { %v2400_v1 = vsel %vm10772_vm12, 0, %v17916_v21  ;;  %v3117_v8 = vshll.u32 %v3116_v22, 23  ;;  %v5021_v26 = vsub.s32 4294967266, %v14173_v14  ;;  %vm2303_vm8 = vcmp.eq.s32.totalorder %v2301_v17, 0 }
 0x516   :  { %v2404_v9 = vadd.s32 3, %v2400_v1  ;;  %v7909_v7 = vmin.u32 %v3209_v20, %v14155_v13  ;;  %v5104_v2 = vmul.u32 %v5097_v4, %v5088_v41  ;;  %v2408_v62 = vxor.u32 2147483648, %v17918_v52 }
 0x517   :  { %v1979_v25 = vmul.f32 %v13757_v6, %v1953_v43  ;;  %vm5106_vm4 = vc.u32 %v14179_v50, %v14165_v36  ;;  %v2305_v46 = vsel %vm2303_vm8, %v17915_v45, %v2304_v38  ;;  %vm2306_vm12 = vcmp.eq.s32.totalorder %v2301_v17, 2  ;;  %v17921_v43 = vld [vmem:[#allocation19_spill] sm:$0xff] }
 0x518   :  { %v2405_v22 = vand.u32 3, %v2404_v9  ;;  %v5108_v21 = vsel %vm5106_vm4, %v5107_v39, %v14166_v23  ;;  %v2308_v1 = vsel %vm2306_vm12, %v2307_v47, %v17914_v0  ;;  %v2411_v20 = vxor.u32 2147483648, %v17919_v63 }
 0x519   :  { %v14200_v4 = vadd.f32 %v13791_v28, %v1979_v25  ;;  %v3113_v41 = vshrl.u32 %v3095_v59, %v3111_v27  ;;  %v5109_v6 = vadd.s32 %v5108_v21, %v5104_v2  ;;  %v17922_v57 = vand.u32 2147483647, %v13578_v18  ;;  %v17925_v25 = vld [vmem:[#allocation50_spill] sm:$0xff] }
 0x51a   :  { %vm2407_vm3 = vcmp.eq.s32.totalorder %v2405_v22, 0  ;;  %v3112_v23 = vshll.u32 %v14022_v56, %v14131_v54  ;;  %v3211_v0 = vclz %v7909_v7  ;;  %vm2302_vm4 = vcmp.lt.s32.totalorder %v2301_v17, 2 }
 0x51b   :  { %17920 = vst [vmem:[#allocation74_spill] sm:$0xff] %v14200_v4  ;;  %vm14205_vm0 = vcmp.le.f32.partialorder %v17922_v57, 0.7853982  ;;  %v2409_v28 = vsel %vm2407_vm3, %v17919_v63, %v2408_v62  ;;  %v3118_v59 = vor.u32 4788187, %v3117_v8  ;;  %v5110_v27 = vadd.s32 536870912, %v5109_v6 }
 0x51c   :  { %v2309_v39 = vsel %vm2302_vm4, %v2305_v46, %v2308_v1  ;;  %vm2410_vm12 = vcmp.eq.s32.totalorder %v2405_v22, 2  ;;  %v5022_v45 = vadd.s32 127, %v5021_v26  ;;  %vm2406_vm9 = vcmp.lt.s32.totalorder %v2405_v22, 2 }
 0x51d   :  { %v2412_v57 = vsel %vm2410_vm12, %v2411_v20, %v17918_v52  ;;  %v3250_v47 = vand.u32 2139095040, %v14200_v4  ;;  %v3114_v9 = vor.u32 %v3113_v41, %v3112_v23  ;;  %v14215_v2 = vshrl.u32 %v5110_v27, 30 }
 0x51e   :  { %vm2403_vm8 = vweird.f32 %v17925_v25  ;;  %v2413_v56 = vsel %vm2406_vm9, %v2409_v28, %v2412_v57  ;;  %v17926_v54 = vand.u32 2147483647, %v13644_v48  ;;  %v17927_v63 = vmov 0  ;;  %v8803_v25 = vld [vmem:[#allocation7 + $0x8] sm:$0xff]  }
 0x51f   :  { %v7910_v8 = vadd.s32 4294967294, %v3211_v0  ;;  %vm17930_vm3 = vweird.f32 %v17921_v43  ;;  %v2414_v26 = vsel %vm2403_vm8, nan, %v2413_v56  ;;  %v3251_v7 = vshrl.u32 %v3250_v47, 23  ;;  %v8804_v56 = vld [vmem:[#allocation7] sm:$0xff]  }
 0x520   :  { %vm14220_vm14 = vcmp.le.f32.partialorder %v17926_v54, 0.7853982  ;;  %v2310_v17 = vsel %vm17930_vm3, nan, %v2309_v39  ;;  %v3119_v52 = vand.u32 2147483647, %v3118_v59  ;;  %v5017_v62 = vsub.s32 32, %v14173_v14 }
 0x521   :  { %v17928_v63 = vsel %vm14220_vm14, 4294967295, %v17927_v63  ;;  %v5112_v46 = vshll.u32 %v14215_v2, 30  ;;  %v3664_v22 = vpack.c.bf16 %v2414_v26, %v2310_v17  ;;  %v17931_v21 = vxor.u32 2147483648, %v14116_v5 }
 0x522   :  { %17929 = vst [vmem:[#allocation72_spill] sm:$0xff] %v17928_v63  ;;  %vm17932_vm9 = vcmp.lt.s32.totalorder %v13578_v18, 0  ;;  %v5023_v20 = vshll.u32 %v5022_v45, 23  ;;  %v17301_v41 = vand.u32 2147483647, %v14200_v4  ;;  %v7912_v23 = vadd.s32 4294967169, %v3251_v7 }
 0x523   :  { %v3020_v1 = vsel %vm17932_vm9, %v17931_v21, %v14116_v5  ;;  %v17933_v43 = vsub.s32 4, %v13815_v11  ;;  %vm17934_vm8 = vmmov %vm17932_vm9  ;;  %v3121_v28 = vcvt.s32.f32 %v3114_v9  ;;  %v5001_v59 = vadd.s32 %v14014_v33, %v14012_v53  ;;  %v17936_v45 = vld [vmem:[#allocation49_spill] sm:$0xff] }
 0x524   :  { %v14243_v27 = vsub.s32 %v5109_v6, %v5112_v46  ;;  %vm17935_vm4 = vcmask 261120   ;;  %v4927_v5 = vsub.s32 4, %v13892_v32  ;;  %vm7911_vm12 = vcmp.lt.s32.totalorder %v7910_v8, 0 }
 0x525   :  { %v14239_v0 = vsel %vm17934_vm8, %v17933_v43, %v13815_v11  ;;  %8138 = vmatmul.mubr.msk.bf16.vlgmr.msra.gmra.mxu0 %vm17935_vm4, %v3664_v22  ;;  %v3257_v39 = vadd.s32 1, %v7912_v23  ;;  %v4202_v47 = vsel %vm10588_vm11, 0, %v17936_v45  ;;  %v14253_v11 = vsel %vm14205_vm0, %v13578_v18, %v3020_v1  ;;  %v17944_v45 = vld [vmem:[#allocation76_spill] sm:$0xff] }
 0x526   :  { %8174 = vmatpush3.bf16.msra.mxu0 %v8803_v25  ;;  %v17938_v53 = vxor.u32 2147483648, %v14129_v40  ;;  %vm17939_vm3 = vcmp.lt.s32.totalorder %v13644_v48, 0  ;;  %v14260_v6 = vmul.f32 %v3121_v28, %v3119_v52  ;;  %v5019_v9 = vshrl.u32 %v5001_v59, %v5017_v62 }
 0x527   :  { %8175 = vmatprep.subr.bf16.mxu0 %v8804_v56  ;;  %v5018_v54 = vshll.u32 %v14091_v44, %v14173_v14  ;;  %v14264_v17 = vor.u32 4788187, %v5023_v20  ;;  %v3254_v26 = vand.u32 8388607, %v17301_v41  ;;  %vm3258_vm11 = vcmp.gt.s32.totalorder %v3257_v39, 0  ;;  %vm17940_vm9 = vmmov %vm17939_vm3  ;;  %v17942_v14 = vld [vmem:[#allocation64_spill] sm:$0xff] }
 0x528   :  { %v4926_v33 = vsel %vm17939_vm3, %v17938_v53, %v14129_v40  ;;  %v14268_v7 = vsel %vm7911_vm12, 0, %v7910_v8  ;;  %v5115_v46 = vsub.s32 0, %v14243_v27  ;;  %v3259_v22 = vsel %vm3258_vm11, %v3257_v39, 0  ;;  %v17946_v20 = vld [vmem:[#allocation90_spill] sm:$0xff] }
 0x529   :  { %v4206_v40 = vadd.s32 3, %v4202_v47  ;;  %8683 = vcosq.f32 %v14253_v11  ;;  %v14275_v52 = vsel %vm17940_vm9, %v4927_v5, %v13892_v32  ;;  %v3261_v44 = vand.u32 31, %v3259_v22  ;;  %v17945_v32 = vld [vmem:[#allocation75_spill] sm:$0xff] }
 0x52a   :  { %17941 = vst [vmem:[#allocation78_spill] sm:$0xff] %v14275_v52  ;;  %v4306_v21 = vsel %vm10924_vm7, 0, %v17942_v14  ;;  %8176 = vmatpush3.bf16.msra.mxu0 %v8804_v56  ;;  %v14283_v8 = vsel %vm14220_vm14, %v13644_v48, %v4926_v33  ;;  %v14287_v23 = vor.u32 %v5019_v9, %v5018_v54  ;;  %v3255_v28 = vor.u32 8388608, %v3254_v26 }
 0x52b   :  { %v3262_v59 = vsub.s32 32, %v3261_v44  ;;  %v7983_v5 = vmin.u32 %v5115_v46, %v14243_v27  ;;  %v4207_v39 = vand.u32 3, %v4206_v40  ;;  %v4210_v57 = vxor.u32 2147483648, %v17944_v45 }
 0x52c   :  { %v4310_v47 = vadd.s32 3, %v4306_v21  ;;  %v3264_v25 = vshll.u32 %v17463_v61, %v3261_v44  ;;  %v3267_v33 = vshll.u32 %v17511_v34, %v3261_v44  ;;  %v3260_v56 = vshrl.u32 %v3259_v22, 5 }
 0x52d   :  { %v3265_v53 = vshrl.u32 %v17511_v34, %v3262_v59  ;;  %v3268_v9 = vshrl.u32 %v17475_v29, %v3262_v59  ;;  %v3270_v54 = vshll.u32 %v17475_v29, %v3261_v44  ;;  %v3271_v26 = vshrl.u32 %v17510_v30, %v3262_v59 }
 0x52e   :  { %v3274_v14 = vshrl.u32 %v17472_v10, %v3262_v59  ;;  %v3273_v62 = vshll.u32 %v17510_v30, %v3261_v44  ;;  %v14301_v21 = vshll.u32 %v3255_v28, 8  ;;  %v5117_v41 = vclz %v7983_v5 }
 0x52f   :  { %v3266_v46 = vor.u32 %v3265_v53, %v3264_v25  ;;  %v3269_v40 = vor.u32 %v3268_v9, %v3267_v33  ;;  %v3272_v43 = vor.u32 %v3271_v26, %v3270_v54  ;;  %v4213_v1 = vxor.u32 2147483648, %v17945_v32  ;;  %v1957_v33 = vpop.permute.xlu1 %1956  ;;  %v17947_v54 = vld [vmem:[#allocation34_spill] sm:$0xff]  ;;  %v17948_v26 = vld [vmem:[#allocation53_spill] sm:$0xff] }
 0x530   :  { %v4314_v3 = vxor.u32 2147483648, %v17946_v20  ;;  %v3275_v48 = vor.u32 %v3274_v14, %v3273_v62  ;;  %v3276_v22 = vshll.u32 %v17472_v10, %v3261_v44  ;;  %v3277_v15 = vshrl.u32 %v17473_v55, %v3262_v59  ;;  %v17949_v14 = vld [vmem:[#allocation89_spill] sm:$0xff] }
 0x531   :  { %vm4209_vm7 = vcmp.eq.s32.totalorder %v4207_v39, 0  ;;  %vm3279_vm8 = vcmp.lt.s32.totalorder %v3260_v56, 1  ;;  %vm3282_vm4 = vcmp.lt.s32.totalorder %v3260_v56, 4  ;;  %v4311_v53 = vand.u32 3, %v4310_v47 }
 0x532   :  { %v4211_v25 = vsel %vm4209_vm7, %v17945_v32, %v4210_v57  ;;  %v3278_v28 = vor.u32 %v3277_v15, %v3276_v22  ;;  %v3284_v5 = vsel %vm3282_vm4, %v3272_v43, 2102212464  ;;  %v3287_v9 = vsel %vm3279_vm8, %v3266_v46, %v3269_v40 }
 0x533   :  { %v4317_v44 = vxor.u32 2147483648, %v17949_v14  ;;  %v7984_v62 = vadd.s32 4294967294, %v5117_v41  ;;  %v3263_v63 = vshrl.u32 %v17463_v61, %v3262_v59  ;;  %vm3281_vm11 = vcmp.lt.s32.totalorder %v3260_v56, 3 }
 0x534   :  { %v3288_v52 = vsel %vm3282_vm4, %v3275_v48, 920167782  ;;  %vm3280_vm7 = vcmp.lt.s32.totalorder %v3260_v56, 2  ;;  %v3291_v32 = vsel %vm3279_vm8, %v3269_v40, %v3272_v43  ;;  %v3292_v57 = vsel %vm3282_vm4, %v3278_v28, 1326507024 }
 0x535   :  { %v3289_v15 = vsel %vm3281_vm11, %v3272_v43, %v3288_v52  ;;  %v3283_v22 = vsel %vm3279_vm8, %v3263_v63, %v3266_v46  ;;  %v3285_v16 = vsel %vm3281_vm11, %v3269_v40, %v3284_v5  ;;  %v3293_v60 = vsel %vm3281_vm11, %v3275_v48, %v3292_v57  ;;  %v3863_v63 = vpop.permute.xlu1 %3862 }
 0x536   :  { %v14318_v47 = vpop.eup %8683  ;;  %v3290_v41 = vsel %vm3280_vm7, %v3287_v9, %v3289_v15  ;;  %v3294_v59 = vsel %vm3280_vm7, %v3291_v32, %v3293_v60  ;;  %vm4212_vm9 = vcmp.eq.s32.totalorder %v4207_v39, 2  ;;  %vm4208_vm4 = vcmp.lt.s32.totalorder %v4207_v39, 2  ;;  %v14357_v15 = vld [vmem:[#allocation4 + $0x1] ss:$0 sm:$0xff] }
 0x537   :  { %v14324_v12 = vmul.u32.u64.low %v14301_v21, %v3290_v41  ;;  %v14325_v18 = vmul.u32.u64.high %v14301_v21, %v3290_v41, %v14324_v12  ;;  %v14329_v52 = vmul.u32.u64.low %v14301_v21, %v3294_v59  ;;  %v14330_v43 = vmul.u32.u64.high %v14301_v21, %v3294_v59, %v14329_v52 }
 0x538   :  { %v4214_v28 = vsel %vm4212_vm9, %v4213_v1, %v17944_v45  ;;  %v3286_v46 = vsel %vm3280_vm7, %v3283_v22, %v3285_v16  ;;  %vm4313_vm8 = vcmp.eq.s32.totalorder %v4311_v53, 0  ;;  %vm4316_vm11 = vcmp.eq.s32.totalorder %v4311_v53, 2  ;;  %v14344_v45 = vld [vmem:[#allocation4] ss:$0 sm:$0xff] }
 0x539   :  { %v4215_v40 = vsel %vm4208_vm4, %v4211_v25, %v4214_v28  ;;  %v17950_v48 = vand.u32 2147483647, %v13794_v58  ;;  %v17951_v60 = vmov 0  ;;  %vm7985_vm12 = vcmp.lt.s32.totalorder %v7984_v62, 0 }
 0x53a   :  { %vm4312_vm6 = vcmp.lt.s32.totalorder %v4311_v53, 2  ;;  %v4315_v5 = vsel %vm4313_vm8, %v17949_v14, %v4314_v3  ;;  %v4318_v39 = vsel %vm4316_vm11, %v4317_v44, %v17946_v20  ;;  %vm4947_vm9 = vcmp.lt.s32.totalorder %v13854_v31, 0 }
 0x53b   :  { %vm14336_vm3 = vcmp.le.f32.partialorder %v17950_v48, 0.7853982  ;;  %v3305_v1 = vadd.s32 1, %v14325_v18  ;;  %v4319_v16 = vsel %vm4312_vm6, %v4315_v5, %v4318_v39  ;;  %v1980_v56 = vmul.f32 %v14344_v45, %v1957_v33 }
 0x53c   :  { %v17952_v60 = vsel %vm14336_vm3, 4294967295, %v17951_v60  ;;  %v3886_v25 = vmul.f32 %v14344_v45, %v3863_v63  ;;  %v3302_v9 = vmul.u32 %v14301_v21, %v3286_v46  ;;  %vm3304_vm7 = vc.u32 %v14330_v43, %v14324_v12 }
 0x53d   :  { %17953 = vst [vmem:[#allocation79_spill] sm:$0xff] %v17952_v60  ;;  %vm17954_vm4 = vweird.f32 %v17947_v54  ;;  %vm17955_vm8 = vweird.f32 %v17948_v26  ;;  %v3219_v53 = vsub.s32 4294967266, %v14268_v7  ;;  %v3306_v14 = vsel %vm3304_vm7, %v3305_v1, %v14325_v18 }
 0x53e   :  { %v4216_v3 = vsel %vm17954_vm4, nan, %v4215_v40  ;;  %v4320_v20 = vsel %vm17955_vm8, nan, %v4319_v16  ;;  %v14360_v33 = vadd.f32 %v14357_v15, %v1980_v56  ;;  %8685 = vsinq.f32 %v14253_v11 }
 0x53f   :  { %v5570_v44 = vpack.c.bf16 %v4320_v20, %v4216_v3  ;;  %v17957_v21 = vsub.s32 4, %v13988_v24  ;;  %vm17958_vm6 = vcmp.lt.s32.totalorder %v13794_v58, 0  ;;  %v3307_v26 = vadd.s32 %v3306_v14, %v3302_v9 }
 0x540   :  { %17956 = vst [vmem:[#allocation85_spill] sm:$0xff] %v14360_v33  ;;  %v14371_v32 = vadd.f32 %v14357_v15, %v3886_v25  ;;  %v5027_v18 = vcvt.s32.f32 %v14287_v23  ;;  %vm17323_vm11 = vcmp.lt.s32.totalorder %v13976_v37, 0  ;;  %v3199_v57 = vadd.s32 %v14102_v51, %v14113_v49  ;;  %vm17963_vm4 = vmmov %vm17958_vm6 }
 0x541   :  { %v14368_v54 = vsel %vm17958_vm6, %v17957_v21, %v13988_v24  ;;  %v14378_v11 = vsel %vm7985_vm12, 0, %v7984_v62  ;;  %vm17961_vm7 = vcmask 261120   ;;  %v3354_v22 = vand.u32 2139095040, %v14360_v33 }
 0x542   :  { %17959 = vst [vmem:[#allocation83_spill] sm:$0xff] %v14368_v54  ;;  %17960 = vst [vmem:[#allocation19_spill] sm:$0xff] %v14371_v32  ;;  %8158 = vmatmul.mubr.msk.bf16.vlgmr.msra.gmra.mxu1 %vm17961_vm7, %v5570_v44  ;;  %8687 = vcosq.f32 %v14283_v8  ;;  %v17962_v24 = vxor.u32 2147483648, %v14260_v6  ;;  %v5031_v41 = vsub.s32 4, %v14069_v19  ;;  %v3308_v59 = vadd.s32 536870912, %v3307_v26  ;;  %v1961_v44 = vpop.permute.xlu1 %1960 }
 0x543   :  { %v17964_v51 = vand.u32 2147483647, %v14264_v17  ;;  %v17965_v62 = vsub.s32 32, %v14268_v7  ;;  %v3220_v28 = vadd.s32 127, %v3219_v53  ;;  %v3355_v63 = vshrl.u32 %v3354_v22, 23 }
 0x544   :  { %v3124_v23 = vsel %vm17963_vm4, %v17962_v24, %v14260_v6  ;;  %8689 = vsinq.f32 %v14283_v8  ;;  %v5125_v46 = vsub.s32 4294967266, %v14378_v11  ;;  %v14395_v40 = vshrl.u32 %v3308_v59, 30 }
 0x545   :  { %v5028_v49 = vmul.f32 %v5027_v18, %v17964_v51  ;;  %v3217_v52 = vshrl.u32 %v3199_v57, %v17965_v62  ;;  %v5260_v48 = vand.u32 2139095040, %v14371_v32  ;;  %v3127_v6 = vsel %vm14336_vm3, %v13794_v58, %v3124_v23 }
 0x546   :  { %v3216_v17 = vshll.u32 %v14155_v13, %v14268_v7  ;;  %v17313_v5 = vand.u32 2147483647, %v14360_v33  ;;  %v7916_v39 = vadd.s32 4294967169, %v3355_v63  ;;  %v14407_v8 = vsel %vm4947_vm9, %v5031_v41, %v14069_v19 }
 0x547   :  { %17966 = vst [vmem:[#allocation50_spill] sm:$0xff] %v14407_v8  ;;  %v3229_v1 = vsub.s32 4, %v14144_v35  ;;  %v3310_v16 = vshll.u32 %v14395_v40, 30  ;;  %v5261_v56 = vshrl.u32 %v5260_v48, 23  ;;  %v5029_v25 = vxor.u32 2147483648, %v5028_v49 }
 0x548   :  { %v14411_v9 = vor.u32 %v3217_v52, %v3216_v17  ;;  %v3221_v3 = vshll.u32 %v3220_v28, 23  ;;  %v3361_v20 = vadd.s32 1, %v7916_v39  ;;  %8691 = vcosq.f32 %v3127_v6 }
 0x549   :  { %v5121_v13 = vsub.s32 32, %v14378_v11  ;;  %v14414_v7 = vadd.s32 127, %v5125_v46  ;;  %v14416_v53 = vsub.s32 %v3307_v26, %v3310_v16  ;;  %8693 = vsinq.f32 %v3127_v6 }
 0x54a   :  { %v3358_v19 = vand.u32 8388607, %v17313_v5  ;;  %vm3362_vm12 = vcmp.gt.s32.totalorder %v3361_v20, 0  ;;  %v7990_v14 = vadd.s32 4294967169, %v5261_v56  ;;  %v14423_v21 = vsel %vm17323_vm11, %v3229_v1, %v14144_v35 }
 0x54b   :  { %17967 = vst [vmem:[#allocation49_spill] sm:$0xff] %v14423_v21  ;;  %v5105_v18 = vadd.s32 %v14165_v36, %v14179_v50  ;;  %v3313_v57 = vsub.s32 0, %v14416_v53  ;;  %v3363_v22 = vsel %vm3362_vm12, %v3361_v20, 0  ;;  %v14430_v26 = vsel %vm4947_vm9, %v5029_v25, %v5028_v49  ;;  %v14438_v36 = vpop.eup %8685 }
 0x54c   :  { %v14432_v24 = vor.u32 4788187, %v3221_v3  ;;  %v3365_v41 = vand.u32 31, %v3363_v22  ;;  %v5127_v51 = vshll.u32 %v14414_v7, 23  ;;  %v1981_v62 = vmul.f32 %v14344_v45, %v1961_v44 }
 0x54d   :  { %v5123_v59 = vshrl.u32 %v5105_v18, %v5121_v13  ;;  %v7913_v35 = vmin.u32 %v3313_v57, %v14416_v53  ;;  %v3359_v50 = vor.u32 8388608, %v3358_v19  ;;  %v17314_v28 = vand.u32 2147483647, %v14371_v32 }
 0x54e   :  { %v3366_v52 = vsub.s32 32, %v3365_v41  ;;  %v5267_v49 = vadd.s32 1, %v7990_v14  ;;  %v3364_v63 = vshrl.u32 %v3363_v22, 5  ;;  %v3368_v46 = vshll.u32 %v17463_v61, %v3365_v41 }
 0x54f   :  { %v3371_v48 = vshll.u32 %v17511_v34, %v3365_v41  ;;  %v3374_v6 = vshll.u32 %v17475_v29, %v3365_v41  ;;  %v14444_v17 = vpop.eup %8687  ;;  %v3315_v39 = vclz %v7913_v35  ;;  %v3377_v25 = vshll.u32 %v17510_v30, %v3365_v41 }
 0x550   :  { %17968 = vst [vmem:[#allocation73_spill] sm:$0xff] %v14444_v17  ;;  %v3369_v1 = vshrl.u32 %v17511_v34, %v3366_v52  ;;  %v3372_v16 = vshrl.u32 %v17475_v29, %v3366_v52  ;;  %v3375_v56 = vshrl.u32 %v17510_v30, %v3366_v52  ;;  %v3378_v3 = vshrl.u32 %v17472_v10, %v3366_v52 }
 0x551   :  { %v3380_v20 = vshll.u32 %v17472_v10, %v3365_v41  ;;  %v3381_v13 = vshrl.u32 %v17473_v55, %v3366_v52  ;;  %v14453_v7 = vpop.eup %8689  ;;  %v14457_v18 = vand.u32 8388607, %v17314_v28  ;;  %vm3386_vm9 = vcmp.lt.s32.totalorder %v3364_v63, 4  ;;  %v3867_v28 = vpop.permute.xlu1 %3866 }
 0x552   :  { %v3370_v19 = vor.u32 %v3369_v1, %v3368_v46  ;;  %v3373_v14 = vor.u32 %v3372_v16, %v3371_v48  ;;  %v3376_v44 = vor.u32 %v3375_v56, %v3374_v6  ;;  %v3379_v57 = vor.u32 %v3378_v3, %v3377_v25 }
 0x553   :  { %v3382_v22 = vor.u32 %v3381_v13, %v3380_v20  ;;  %v14460_v35 = vadd.f32 %v14357_v15, %v1981_v62  ;;  %vm3383_vm8 = vcmp.lt.s32.totalorder %v3364_v63, 1  ;;  %v3399_v41 = vshll.u32 %v3359_v50, 8 }
 0x554   :  { %v3388_v5 = vsel %vm3386_vm9, %v3376_v44, 2102212464  ;;  %vm5268_vm6 = vcmp.gt.s32.totalorder %v5267_v49, 0  ;;  %v7914_v23 = vadd.s32 4294967294, %v3315_v39  ;;  %v3367_v8 = vshrl.u32 %v17463_v61, %v3366_v52 }
 0x555   :  { %17969 = vst [vmem:[#allocation64_spill] sm:$0xff] %v14460_v35  ;;  %vm3384_vm7 = vcmp.lt.s32.totalorder %v3364_v63, 2  ;;  %v3391_v46 = vsel %vm3383_vm8, %v3370_v19, %v3373_v14  ;;  %v14463_v48 = vpop.eup %8691  ;;  %vm3385_vm4 = vcmp.lt.s32.totalorder %v3364_v63, 3  ;;  %v3392_v6 = vsel %vm3386_vm9, %v3379_v57, 920167782 }
 0x556   :  { %17970 = vst [vmem:[#allocation82_spill] sm:$0xff] %v14463_v48  ;;  %v3395_v1 = vsel %vm3383_vm8, %v3373_v14, %v3376_v44  ;;  %v3396_v16 = vsel %vm3386_vm9, %v3382_v22, 1326507024  ;;  %v14465_v56 = vpop.eup %8693  ;;  %v3387_v25 = vsel %vm3383_vm8, %v3367_v8, %v3370_v19  ;;  %v3389_v62 = vsel %vm3385_vm4, %v3373_v14, %v3388_v5 }
 0x557   :  { %17971 = vst [vmem:[#allocation76_spill] sm:$0xff] %v14465_v56  ;;  %v3393_v3 = vsel %vm3385_vm4, %v3376_v44, %v3392_v6  ;;  %v3397_v20 = vsel %vm3385_vm4, %v3379_v57, %v3396_v16  ;;  %v5269_v52 = vsel %vm5268_vm6, %v5267_v49, 0  ;;  %v3458_v13 = vand.u32 2139095040, %v14460_v35 }
 0x558   :  { %v3394_v50 = vsel %vm3384_vm7, %v3391_v46, %v3393_v3  ;;  %v3398_v39 = vsel %vm3384_vm7, %v3395_v1, %v3397_v20  ;;  %v5122_v58 = vshll.u32 %v14243_v27, %v14378_v11  ;;  %vm7915_vm12 = vcmp.lt.s32.totalorder %v7914_v23, 0 }
 0x559   :  { %v14473_v22 = vmul.u32.u64.low %v3399_v41, %v3398_v39  ;;  %v14474_v21 = vmul.u32.u64.high %v3399_v41, %v3398_v39, %v14473_v22  ;;  %v3390_v5 = vsel %vm3384_vm7, %v3387_v25, %v3389_v62  ;;  %v5271_v14 = vand.u32 31, %v5269_v52 }
 0x55a   :  { %v14477_v8 = vmul.u32.u64.low %v3399_v41, %v3394_v50  ;;  %v14478_v19 = vmul.u32.u64.high %v3399_v41, %v3394_v50, %v14477_v8  ;;  %v14482_v49 = vor.u32 %v5123_v59, %v5122_v58  ;;  %v14484_v57 = vor.u32 4788187, %v5127_v51 }
 0x55b   :  { %v3887_v46 = vmul.f32 %v14344_v45, %v3867_v28  ;;  %v14487_v27 = vsel %vm7915_vm12, 0, %v7914_v23  ;;  %v5265_v11 = vor.u32 8388608, %v14457_v18  ;;  %v5272_v6 = vsub.s32 32, %v5271_v14 }
 0x55c   :  { %v3459_v63 = vshrl.u32 %v3458_v13, 23  ;;  %v3406_v1 = vmul.u32 %v3399_v41, %v3390_v5  ;;  %vm3408_vm9 = vc.u32 %v14474_v21, %v14477_v8  ;;  %v5270_v16 = vshrl.u32 %v5269_v52, 5 }
 0x55d   :  { %v5274_v25 = vshll.u32 %v17463_v61, %v5271_v14  ;;  %v3409_v58 = vadd.s32 1, %v14478_v19  ;;  %v5275_v59 = vshrl.u32 %v17511_v34, %v5272_v6  ;;  %v5277_v51 = vshll.u32 %v17511_v34, %v5271_v14 }
 0x55e   :  { %v5278_v23 = vshrl.u32 %v17475_v29, %v5272_v6  ;;  %v5280_v28 = vshll.u32 %v17475_v29, %v5271_v14  ;;  %v5281_v18 = vshrl.u32 %v17510_v30, %v5272_v6  ;;  %v5283_v41 = vshll.u32 %v17510_v30, %v5271_v14 }
 0x55f   :  { %v5284_v62 = vshrl.u32 %v17472_v10, %v5272_v6  ;;  %v3410_v3 = vsel %vm3408_vm9, %v3409_v58, %v14478_v19  ;;  %v5276_v20 = vor.u32 %v5275_v59, %v5274_v25  ;;  %v5287_v39 = vshrl.u32 %v17473_v55, %v5272_v6 }
 0x560   :  { %v5279_v50 = vor.u32 %v5278_v23, %v5277_v51  ;;  %v3411_v52 = vadd.s32 %v3410_v3, %v3406_v1  ;;  %v5282_v13 = vor.u32 %v5281_v18, %v5280_v28  ;;  %v5286_v5 = vshll.u32 %v17472_v10, %v5271_v14 }
 0x561   :  { %v5285_v22 = vor.u32 %v5284_v62, %v5283_v41  ;;  %v3323_v44 = vsub.s32 4294967266, %v14487_v27  ;;  %v5305_v48 = vshll.u32 %v5265_v11, 8  ;;  %v17326_v56 = vand.u32 2147483647, %v14460_v35 }
 0x562   :  { %v7920_v60 = vadd.s32 4294967169, %v3459_v63  ;;  %v3412_v54 = vadd.s32 536870912, %v3411_v52  ;;  %v5288_v17 = vor.u32 %v5287_v39, %v5286_v5  ;;  %vm5289_vm8 = vcmp.lt.s32.totalorder %v5270_v16, 1 }
 0x563   :  { %vm5292_vm6 = vcmp.lt.s32.totalorder %v5270_v16, 4  ;;  %vm5291_vm7 = vcmp.lt.s32.totalorder %v5270_v16, 3  ;;  %v5297_v25 = vsel %vm5289_vm8, %v5276_v20, %v5279_v50  ;;  %v5273_v14 = vshrl.u32 %v17463_v61, %v5272_v6 }
 0x564   :  { %v5294_v19 = vsel %vm5292_vm6, %v5282_v13, 2102212464  ;;  %v5298_v1 = vsel %vm5292_vm6, %v5285_v22, 920167782  ;;  %v14508_v58 = vshrl.u32 %v3412_v54, 30  ;;  %vm5290_vm4 = vcmp.lt.s32.totalorder %v5270_v16, 2 }
 0x565   :  { %v5299_v11 = vsel %vm5291_vm7, %v5282_v13, %v5298_v1  ;;  %v3319_v59 = vsub.s32 32, %v14487_v27  ;;  %v3324_v63 = vadd.s32 127, %v3323_v44  ;;  %v5301_v23 = vsel %vm5289_vm8, %v5279_v50, %v5282_v13 }
 0x566   :  { %v5300_v51 = vsel %vm5290_vm4, %v5297_v25, %v5299_v11  ;;  %v3414_v28 = vshll.u32 %v14508_v58, 30  ;;  %v5293_v18 = vsel %vm5289_vm8, %v5273_v14, %v5276_v20  ;;  %v5295_v41 = vsel %vm5291_vm7, %v5279_v50, %v5294_v19 }
 0x567   :  { %v5302_v62 = vsel %vm5292_vm6, %v5288_v17, 1326507024  ;;  %v14518_v3 = vmul.u32.u64.low %v5305_v48, %v5300_v51  ;;  %v14519_v6 = vmul.u32.u64.high %v5305_v48, %v5300_v51, %v14518_v3  ;;  %v3465_v39 = vadd.s32 1, %v7920_v60 }
 0x568   :  { %v5303_v54 = vsel %vm5291_vm7, %v5285_v22, %v5302_v62  ;;  %v3303_v44 = vadd.s32 %v14324_v12, %v14330_v43  ;;  %v14524_v5 = vsub.s32 %v3411_v52, %v3414_v28  ;;  %v14528_v20 = vadd.f32 %v14357_v15, %v3887_v46 }
 0x569   :  { %v5304_v13 = vsel %vm5290_vm4, %v5301_v23, %v5303_v54  ;;  %v3462_v17 = vand.u32 8388607, %v17326_v56  ;;  %vm3466_vm12 = vcmp.gt.s32.totalorder %v3465_v39, 0  ;;  %v5296_v25 = vsel %vm5290_vm4, %v5293_v18, %v5295_v41 }
 0x56a   :  { %17972 = vst [vmem:[#allocation75_spill] sm:$0xff] %v14528_v20  ;;  %v14530_v50 = vmul.u32.u64.low %v5305_v48, %v5304_v13  ;;  %v14531_v19 = vmul.u32.u64.high %v5305_v48, %v5304_v13, %v14530_v50  ;;  %v3321_v22 = vshrl.u32 %v3303_v44, %v3319_v59  ;;  %v3417_v60 = vsub.s32 0, %v14524_v5 }
 0x56b   :  { %v3467_v12 = vsel %vm3466_vm12, %v3465_v39, 0  ;;  %v17973_v43 = vand.u32 2147483647, %v13854_v31  ;;  %v17974_v52 = vmov 0  ;;  %v17977_v46 = vand.u32 2147483647, %v14432_v24 }
 0x56c   :  { %v17978_v1 = vcvt.s32.f32 %v14411_v9  ;;  %v3325_v11 = vshll.u32 %v3324_v63, 23  ;;  %v5315_v59 = vadd.s32 1, %v14519_v6  ;;  %v3469_v51 = vand.u32 31, %v3467_v12 }
 0x56d   :  { %vm14539_vm9 = vcmp.le.f32.partialorder %v17973_v43, 0.7853982  ;;  %v5131_v16 = vcvt.s32.f32 %v14482_v49  ;;  %v3320_v23 = vshll.u32 %v14416_v53, %v14487_v27  ;;  %v7917_v28 = vmin.u32 %v3417_v60, %v14524_v5 }
 0x56e   :  { %v17975_v52 = vsel %vm14539_vm9, 4294967295, %v17974_v52  ;;  %v14547_v14 = vmul.f32 %v17978_v1, %v17977_v46  ;;  %v5364_v18 = vand.u32 2139095040, %v14528_v20  ;;  %v5129_v41 = vand.u32 2147483647, %v14484_v57 }
 0x56f   :  { %17976 = vst [vmem:[#allocation90_spill] sm:$0xff] %v17975_v52  ;;  %v5312_v24 = vmul.u32 %v5305_v48, %v5296_v25  ;;  %vm5314_vm8 = vc.u32 %v14531_v19, %v14518_v3  ;;  %v3470_v9 = vsub.s32 32, %v3469_v51  ;;  %v3322_v63 = vor.u32 %v3321_v22, %v3320_v23  ;;  %v17997_v52 = vld [vmem:[#allocation121_spill] sm:$0xff] }
 0x570   :  { %v3419_v62 = vclz %v7917_v28  ;;  %v5316_v54 = vsel %vm5314_vm8, %v5315_v59, %v14519_v6  ;;  %v3463_v39 = vor.u32 8388608, %v3462_v17  ;;  %v3326_v49 = vor.u32 4788187, %v3325_v11 }
 0x571   :  { %v5317_v44 = vadd.s32 %v5316_v54, %v5312_v24  ;;  %v3473_v53 = vshrl.u32 %v17511_v34, %v3470_v9  ;;  %v3476_v27 = vshrl.u32 %v17475_v29, %v3470_v9  ;;  %v3472_v13 = vshll.u32 %v17463_v61, %v3469_v51 }
 0x572   :  { %v3479_v57 = vshrl.u32 %v17510_v30, %v3470_v9  ;;  %v3482_v48 = vshrl.u32 %v17472_v10, %v3470_v9  ;;  %v5365_v50 = vshrl.u32 %v5364_v18, 23  ;;  %v7918_v60 = vadd.s32 4294967294, %v3419_v62 }
 0x573   :  { %v5318_v25 = vadd.s32 536870912, %v5317_v44  ;;  %v3475_v22 = vshll.u32 %v17511_v34, %v3469_v51  ;;  %v3478_v6 = vshll.u32 %v17475_v29, %v3469_v51  ;;  %v3468_v17 = vshrl.u32 %v3467_v12, 5 }
 0x574   :  { %v3474_v43 = vor.u32 %v3473_v53, %v3472_v13  ;;  %v3481_v46 = vshll.u32 %v17510_v30, %v3469_v51  ;;  %v3485_v1 = vshrl.u32 %v17473_v55, %v3470_v9  ;;  %v3484_v28 = vshll.u32 %v17472_v10, %v3469_v51 }
 0x575   :  { %v14568_v11 = vshrl.u32 %v5318_v25, 30  ;;  %v3477_v59 = vor.u32 %v3476_v27, %v3475_v22  ;;  %v3480_v23 = vor.u32 %v3479_v57, %v3478_v6  ;;  %v5033_v18 = vsel %vm14539_vm9, %v13854_v31, %v14430_v26 }
 0x576   :  { %v3227_v24 = vxor.u32 2147483648, %v14547_v14  ;;  %v5132_v62 = vmul.f32 %v5131_v16, %v5129_v41  ;;  %v3483_v12 = vor.u32 %v3482_v48, %v3481_v46  ;;  %v3329_v54 = vcvt.s32.f32 %v3322_v63 }
 0x577   :  { %vm7919_vm6 = vcmp.lt.s32.totalorder %v7918_v60, 0  ;;  %v5320_v53 = vshll.u32 %v14568_v11, 30  ;;  %v3486_v13 = vor.u32 %v3485_v1, %v3484_v28  ;;  %v17979_v25 = vand.u32 2147483647, %v13976_v37 }
 0x578   :  { %v17980_v27 = vmov 0  ;;  %v3327_v51 = vand.u32 2147483647, %v3326_v49  ;;  %vm3487_vm4 = vcmp.lt.s32.totalorder %v3468_v17, 1  ;;  %vm3490_vm12 = vcmp.lt.s32.totalorder %v3468_v17, 4 }
 0x579   :  { %vm14579_vm7 = vcmp.le.f32.partialorder %v17979_v25, 0.7853982  ;;  %v3503_v57 = vshll.u32 %v3463_v39, 8  ;;  %v3471_v26 = vshrl.u32 %v17463_v61, %v3470_v9  ;;  %v3492_v22 = vsel %vm3490_vm12, %v3480_v23, 2102212464 }
 0x57a   :  { %v17981_v27 = vsel %vm14579_vm7, 4294967295, %v17980_v27  ;;  %v3495_v16 = vsel %vm3487_vm4, %v3474_v43, %v3477_v59  ;;  %v7994_v41 = vadd.s32 4294967169, %v5365_v50  ;;  %v14585_v63 = vsel %vm7919_vm6, 0, %v7918_v60 }
 0x57b   :  { %17982 = vst [vmem:[#allocation34_spill] sm:$0xff] %v17981_v27  ;;  %v14587_v48 = vsub.s32 %v5317_v44, %v5320_v53  ;;  %vm3489_vm8 = vcmp.lt.s32.totalorder %v3468_v17, 3  ;;  %v3496_v6 = vsel %vm3490_vm12, %v3483_v12, 920167782  ;;  %vm5051_vm11 = vcmp.lt.s32.totalorder %v14039_v42, 0 }
 0x57c   :  { %vm3488_vm9 = vcmp.lt.s32.totalorder %v3468_v17, 2  ;;  %v3497_v46 = vsel %vm3489_vm8, %v3480_v23, %v3496_v6  ;;  %v3499_v49 = vsel %vm3487_vm4, %v3477_v59, %v3480_v23  ;;  %v3500_v1 = vsel %vm3490_vm12, %v3486_v13, 1326507024 }
 0x57d   :  { %v3491_v39 = vsel %vm3487_vm4, %v3471_v26, %v3474_v43  ;;  %v3493_v9 = vsel %vm3489_vm8, %v3477_v59, %v3492_v22  ;;  %v3498_v28 = vsel %vm3488_vm9, %v3495_v16, %v3497_v46  ;;  %v3501_v25 = vsel %vm3489_vm8, %v3483_v12, %v3500_v1 }
 0x57e   :  { %v3330_v50 = vmul.f32 %v3329_v54, %v3327_v51  ;;  %v3502_v60 = vsel %vm3488_vm9, %v3499_v49, %v3501_v25  ;;  %v14594_v44 = vmul.u32.u64.low %v3503_v57, %v3498_v28  ;;  %v14595_v53 = vmul.u32.u64.high %v3503_v57, %v3498_v28, %v14594_v44 }
 0x57f   :  { %vm17983_vm6 = vcmp.lt.s32.totalorder %v13976_v37, 0  ;;  %v17984_v23 = vand.u32 2147483647, %v14039_v42  ;;  %v17985_v13 = vmov 0  ;;  %v5323_v43 = vsub.s32 0, %v14587_v48 }
 0x580   :  { %v3228_v6 = vsel %vm17983_vm6, %v3227_v24, %v14547_v14  ;;  %v14608_v59 = vmul.u32.u64.low %v3503_v57, %v3502_v60  ;;  %v14609_v12 = vmul.u32.u64.high %v3503_v57, %v3502_v60, %v14608_v59  ;;  %8695 = vcosq.f32 %v5033_v18 }
 0x581   :  { %vm14603_vm12 = vcmp.le.f32.partialorder %v17984_v23, 0.7853982  ;;  %v3427_v54 = vsub.s32 4294967266, %v14585_v63  ;;  %v3494_v51 = vsel %vm3488_vm9, %v3491_v39, %v3493_v9  ;;  %v5371_v26 = vadd.s32 1, %v7994_v41 }
 0x582   :  { %v17986_v13 = vsel %vm14603_vm12, 4294967295, %v17985_v13  ;;  %8697 = vsinq.f32 %v5033_v18  ;;  %v5133_v22 = vxor.u32 2147483648, %v5132_v62  ;;  %v5135_v14 = vsub.s32 4, %v14215_v2 }
 0x583   :  { %17987 = vst [vmem:[#allocation53_spill] sm:$0xff] %v17986_v13  ;;  %v17325_v24 = vand.u32 2147483647, %v14528_v20  ;;  %v3231_v16 = vsel %vm14579_vm7, %v13976_v37, %v3228_v6  ;;  %v3331_v46 = vxor.u32 2147483648, %v3330_v50  ;;  %v3513_v49 = vadd.s32 1, %v14595_v53 }
 0x584   :  { %vm5372_vm4 = vcmp.gt.s32.totalorder %v5371_v26, 0  ;;  %v7991_v1 = vmin.u32 %v5323_v43, %v14587_v48  ;;  %v3510_v28 = vmul.u32 %v3503_v57, %v3494_v51  ;;  %vm3512_vm9 = vc.u32 %v14609_v12, %v14594_v44 }
 0x585   :  { %v5373_v17 = vsel %vm5372_vm4, %v5371_v26, 0  ;;  %v3423_v18 = vsub.s32 32, %v14585_v63  ;;  %v3428_v41 = vadd.s32 127, %v3427_v54  ;;  %v3514_v39 = vsel %vm3512_vm9, %v3513_v49, %v14595_v53  ;;  %v17989_v54 = vld [vmem:[#allocation95_spill] sm:$0xff] }
 0x586   :  { %v5375_v9 = vand.u32 31, %v5373_v17  ;;  %8699 = vcosq.f32 %v3231_v16  ;;  %v5134_v25 = vsel %vm5051_vm11, %v5133_v22, %v5132_v62  ;;  %v3515_v60 = vadd.s32 %v3514_v39, %v3510_v28 }
 0x587   :  { %v5368_v6 = vand.u32 8388607, %v17325_v24  ;;  %8701 = vsinq.f32 %v3231_v16  ;;  %v14631_v57 = vsel %vm5051_vm11, %v5135_v14, %v14215_v2  ;;  %vm17337_vm8 = vcmp.lt.s32.totalorder %v14200_v4, 0 }
 0x588   :  { %17988 = vst [vmem:[#allocation89_spill] sm:$0xff] %v14631_v57  ;;  %v3407_v53 = vadd.s32 %v14477_v8, %v14474_v21  ;;  %v5325_v23 = vclz %v7991_v1  ;;  %v3516_v43 = vadd.s32 536870912, %v3515_v60  ;;  %v5376_v59 = vsub.s32 32, %v5375_v9 }
 0x589   :  { %v2504_v51 = vsel %vm11380_vm15, 0, %v17989_v54  ;;  %v14642_v26 = vsel %vm14603_vm12, %v14039_v42, %v5134_v25  ;;  %v14646_v2 = vsel %vm17337_vm8, %v3331_v46, %v3330_v50  ;;  %v3429_v14 = vshll.u32 %v3428_v41, 23 }
 0x58a   :  { %v3425_v22 = vshrl.u32 %v3407_v53, %v3423_v18  ;;  %v14648_v16 = vshrl.u32 %v3516_v43, 30  ;;  %v5369_v21 = vor.u32 8388608, %v5368_v6  ;;  %v5379_v8 = vshrl.u32 %v17511_v34, %v5376_v59 }
 0x58b   :  { %v5382_v49 = vshrl.u32 %v17475_v29, %v5376_v59  ;;  %v3424_v1 = vshll.u32 %v14524_v5, %v14585_v63  ;;  %v5378_v28 = vshll.u32 %v17463_v61, %v5375_v9  ;;  %v5385_v39 = vshrl.u32 %v17510_v30, %v5376_v59 }
 0x58c   :  { %v2508_v25 = vadd.s32 3, %v2504_v51  ;;  %v7992_v54 = vadd.s32 4294967294, %v5325_v23  ;;  %v3518_v50 = vshll.u32 %v14648_v16, 30  ;;  %v5381_v46 = vshll.u32 %v17511_v34, %v5375_v9 }
 0x58d   :  { %v5384_v18 = vshll.u32 %v17475_v29, %v5375_v9  ;;  %v14659_v41 = vor.u32 %v3425_v22, %v3424_v1  ;;  %v14661_v6 = vor.u32 4788187, %v3429_v14  ;;  %v5374_v53 = vshrl.u32 %v5373_v17, 5  ;;  %v14663_v62 = vpop.eup %8695 }
 0x58e   :  { %v5380_v43 = vor.u32 %v5379_v8, %v5378_v28  ;;  %17991 = vst [vmem:[#allocation95_spill] sm:$0xff] %v14663_v62  ;;  %v5383_v5 = vor.u32 %v5382_v49, %v5381_v46  ;;  %v5387_v24 = vshll.u32 %v17510_v30, %v5375_v9  ;;  %v5388_v23 = vshrl.u32 %v17472_v10, %v5376_v59  ;;  %v17993_v8 = vld [vmem:[#allocation109_spill] sm:$0xff] }
 0x58f   :  { %v5386_v63 = vor.u32 %v5385_v39, %v5384_v18  ;;  %v14667_v51 = vpop.eup %8697  ;;  %v5390_v56 = vshll.u32 %v17472_v10, %v5375_v9  ;;  %v5391_v42 = vshrl.u32 %v17473_v55, %v5376_v59  ;;  %v5409_v22 = vshll.u32 %v5369_v21, 8 }
 0x590   :  { %17992 = vst [vmem:[#allocation97_spill] sm:$0xff] %v14667_v51  ;;  %v2509_v1 = vand.u32 3, %v2508_v25  ;;  %vm7993_vm15 = vcmp.lt.s32.totalorder %v7992_v54, 0  ;;  %v14671_v14 = vsub.s32 %v3515_v60, %v3518_v50  ;;  %v5389_v17 = vor.u32 %v5388_v23, %v5387_v24 }
 0x591   :  { %v2512_v28 = vxor.u32 2147483648, %v17993_v8  ;;  %v5377_v49 = vshrl.u32 %v17463_v61, %v5376_v59  ;;  %v5392_v39 = vor.u32 %v5391_v42, %v5390_v56  ;;  %vm5393_vm11 = vcmp.lt.s32.totalorder %v5374_v53, 1 }
 0x592   :  { %vm5396_vm6 = vcmp.lt.s32.totalorder %v5374_v53, 4  ;;  %vm5395_vm4 = vcmp.lt.s32.totalorder %v5374_v53, 3  ;;  %v5401_v18 = vsel %vm5393_vm11, %v5380_v43, %v5383_v5  ;;  %v14677_v13 = vsel %vm7993_vm15, 0, %v7992_v54 }
 0x593   :  { %v5398_v46 = vsel %vm5396_vm6, %v5386_v63, 2102212464  ;;  %v5402_v31 = vsel %vm5396_vm6, %v5389_v17, 920167782  ;;  %v14675_v9 = vpop.eup %8699  ;;  %vm5394_vm9 = vcmp.lt.s32.totalorder %v5374_v53, 2  ;;  %v5405_v60 = vsel %vm5393_vm11, %v5383_v5, %v5386_v63 }
 0x594   :  { %17994 = vst [vmem:[#allocation109_spill] sm:$0xff] %v14675_v9  ;;  %v5403_v21 = vsel %vm5395_vm4, %v5386_v63, %v5402_v31  ;;  %v14679_v25 = vpop.eup %8701  ;;  %v3521_v24 = vsub.s32 0, %v14671_v14  ;;  %v5397_v50 = vsel %vm5393_vm11, %v5377_v49, %v5380_v43  ;;  %v5406_v56 = vsel %vm5396_vm6, %v5392_v39, 1326507024  ;;  %v17996_v31 = vld [vmem:[#allocation102_spill] sm:$0xff] }
 0x595   :  { %17995 = vst [vmem:[#allocation165_spill] sm:$0xff] %v14679_v25  ;;  %v5404_v42 = vsel %vm5394_vm9, %v5401_v18, %v5403_v21  ;;  %v5399_v59 = vsel %vm5395_vm4, %v5383_v5, %v5398_v46  ;;  %v5407_v23 = vsel %vm5395_vm4, %v5389_v17, %v5406_v56  ;;  %v5333_v54 = vsub.s32 4294967266, %v14677_v13  ;;  %v17999_v39 = vld [vmem:[#allocation38_spill] sm:$0xff] }
 0x596   :  { %v14683_v57 = vmul.u32.u64.low %v5409_v22, %v5404_v42  ;;  %v14684_v62 = vmul.u32.u64.high %v5409_v22, %v5404_v42, %v14683_v57  ;;  %v5408_v51 = vsel %vm5394_vm9, %v5405_v60, %v5407_v23  ;;  %v2515_v63 = vxor.u32 2147483648, %v17996_v31 }
 0x597   :  { %v2608_v25 = vsel %vm11746_vm13, 0, %v17997_v52  ;;  %v3433_v43 = vcvt.s32.f32 %v14659_v41  ;;  %v5313_v5 = vadd.s32 %v14518_v3, %v14531_v19  ;;  %v3431_v46 = vand.u32 2147483647, %v14661_v6 }
 0x598   :  { %v14696_v17 = vmul.u32.u64.low %v5409_v22, %v5408_v51  ;;  %v14697_v49 = vmul.u32.u64.high %v5409_v22, %v5408_v51, %v14696_v17  ;;  %v5329_v18 = vsub.s32 32, %v14677_v13  ;;  %v7921_v21 = vmin.u32 %v3521_v24, %v14671_v14 }
 0x599   :  { %v5400_v60 = vsel %vm5394_vm9, %v5397_v50, %v5399_v59  ;;  %v18000_v52 = vand.u32 2147483647, %v14200_v4  ;;  %v18001_v41 = vmov 0  ;;  %v5419_v3 = vadd.s32 1, %v14684_v62  ;;  %v18004_v50 = vld [vmem:[#allocation125_spill] sm:$0xff]  ;;  %v18005_v17 = vld [vmem:[#allocation124_spill] sm:$0xff] }
 0x59a   :  { %vm2511_vm11 = vcmp.eq.s32.totalorder %v2509_v1, 0  ;;  %vm2514_vm6 = vcmp.eq.s32.totalorder %v2509_v1, 2  ;;  %v2612_v19 = vadd.s32 3, %v2608_v25  ;;  %v5334_v51 = vadd.s32 127, %v5333_v54  ;;  %v1965_v25 = vpop.permute.xlu1 %1964 }
 0x59b   :  { %vm14706_vm13 = vcmp.le.f32.partialorder %v18000_v52, 0.7853982  ;;  %vm2510_vm4 = vcmp.lt.s32.totalorder %v2509_v1, 2  ;;  %v2513_v6 = vsel %vm2511_vm11, %v17996_v31, %v2512_v28  ;;  %v2516_v9 = vsel %vm2514_vm6, %v2515_v63, %v17993_v8  ;;  %v18006_v63 = vld [vmem:[#allocation86_spill] sm:$0xff] }
 0x59c   :  { %v18002_v41 = vsel %vm14706_vm13, 4294967295, %v18001_v41  ;;  %v5416_v24 = vmul.u32 %v5409_v22, %v5400_v60  ;;  %vm5418_vm9 = vc.u32 %v14697_v49, %v14683_v57  ;;  %v2613_v53 = vand.u32 3, %v2612_v19  ;;  %v18015_v19 = vld [vmem:[#allocation117_spill] sm:$0xff] }
 0x59d   :  { %18003 = vst [vmem:[#allocation102_spill] sm:$0xff] %v18002_v41  ;;  %v2616_v42 = vxor.u32 2147483648, %v18004_v50  ;;  %v5331_v56 = vshrl.u32 %v5313_v5, %v5329_v18  ;;  %v3523_v59 = vclz %v7921_v21  ;;  %v5420_v23 = vsel %vm5418_vm9, %v5419_v3, %v14684_v62  ;;  %v18008_v3 = vld [vmem:[#allocation107_spill] sm:$0xff] }
 0x59e   :  { %v2619_v52 = vxor.u32 2147483648, %v18005_v17  ;;  %v5421_v54 = vadd.s32 %v5420_v23, %v5416_v24  ;;  %v2517_v1 = vsel %vm2510_vm4, %v2513_v6, %v2516_v9  ;;  %vm2615_vm8 = vcmp.eq.s32.totalorder %v2613_v53, 0 }
 0x59f   :  { %vm2618_vm11 = vcmp.eq.s32.totalorder %v2613_v53, 2  ;;  %v5335_v28 = vshll.u32 %v5334_v51, 23  ;;  %vm2614_vm6 = vcmp.lt.s32.totalorder %v2613_v53, 2  ;;  %v2617_v22 = vsel %vm2615_vm8, %v18005_v17, %v2616_v42 }
 0x5a0   :  { %v2620_v8 = vsel %vm2618_vm11, %v2619_v52, %v18004_v50  ;;  %v5422_v31 = vadd.s32 536870912, %v5421_v54  ;;  %vm2611_vm15 = vweird.f32 %v18006_v63  ;;  %v1982_v18 = vmul.f32 %v14344_v45, %v1965_v25 }
 0x5a1   :  { %v2621_v5 = vsel %vm2614_vm6, %v2617_v22, %v2620_v8  ;;  %v7922_v62 = vadd.s32 4294967294, %v3523_v59  ;;  %vm18007_vm9 = vweird.f32 %v17999_v39  ;;  %v4410_v51 = vsel %vm11668_vm1, 0, %v18008_v3  ;;  %v18014_v3 = vld [vmem:[#allocation118_spill] sm:$0xff] }
 0x5a2   :  { %v2518_v21 = vsel %vm18007_vm9, nan, %v2517_v1  ;;  %v2622_v60 = vsel %vm2611_vm15, nan, %v2621_v5  ;;  %vm17338_vm4 = vcmp.lt.s32.totalorder %v14360_v33, 0  ;;  %v14728_v6 = vshrl.u32 %v5422_v31, 30 }
 0x5a3   :  { %v3665_v9 = vpack.c.bf16 %v2622_v60, %v2518_v21  ;;  %v14731_v24 = vadd.f32 %v14357_v15, %v1982_v18  ;;  %v14737_v53 = vsel %vm14706_vm13, %v14200_v4, %v14646_v2  ;;  %v3434_v39 = vmul.f32 %v3433_v43, %v3431_v46  ;;  %v18012_v46 = vld [vmem:[#allocation129_spill] sm:$0xff] }
 0x5a4   :  { %v5330_v50 = vshll.u32 %v14587_v48, %v14677_v13  ;;  %v5336_v42 = vor.u32 4788187, %v5335_v28  ;;  %8703 = vcosq.f32 %v14642_v26  ;;  %v5424_v59 = vshll.u32 %v14728_v6, 30  ;;  %v18011_v13 = vld [vmem:[#allocation127_spill] sm:$0xff] }
 0x5a5   :  { %vm18010_vm1 = vcmask 261120   ;;  %v17340_v15 = vand.u32 2147483647, %v14731_v24  ;;  %v4414_v23 = vadd.s32 3, %v4410_v51  ;;  %8705 = vsinq.f32 %v14642_v26 }
 0x5a6   :  { %8141 = vmatprep.mubr.msk.bf16.mxu0 %vm18010_vm1, %v3665_v9  ;;  %v5332_v17 = vor.u32 %v5331_v56, %v5330_v50  ;;  %vm7923_vm8 = vcmp.lt.s32.totalorder %v7922_v62, 0  ;;  %v3562_v2 = vand.u32 2139095040, %v14731_v24  ;;  %8707 = vcosq.f32 %v14737_v53 }
 0x5a7   :  { %v14749_v48 = vsub.s32 %v5421_v54, %v5424_v59  ;;  %vm18013_vm15 = vnez %v18012_v46  ;;  %v3435_v25 = vxor.u32 2147483648, %v3434_v39  ;;  %v5337_v28 = vand.u32 2147483647, %v5336_v42 }
 0x5a8   :  { %v4514_v52 = vsel %vm18013_vm15, 0, %v18011_v13  ;;  %v3563_v22 = vshrl.u32 %v3562_v2, 23  ;;  %v14755_v26 = vsel %vm7923_vm8, 0, %v7922_v62  ;;  %v3566_v8 = vand.u32 8388607, %v17340_v15  ;;  %v18017_v13 = vld [vmem:[#allocation134_spill] sm:$0xff] }
 0x5a9   :  { %v5427_v56 = vsub.s32 0, %v14749_v48  ;;  %v4415_v31 = vand.u32 3, %v4414_v23  ;;  %v5339_v63 = vcvt.s32.f32 %v5332_v17  ;;  %v4518_v18 = vadd.s32 3, %v4514_v52 }
 0x5aa   :  { %v7924_v5 = vadd.s32 4294967169, %v3563_v22  ;;  %v14763_v21 = vadd.s32 %v14594_v44, %v14609_v12  ;;  %v4418_v62 = vxor.u32 2147483648, %v18014_v3  ;;  %v4421_v51 = vxor.u32 2147483648, %v18015_v19  ;;  %v18016_v12 = vld [vmem:[#allocation137_spill] sm:$0xff] }
 0x5ab   :  { %v7995_v60 = vmin.u32 %v5427_v56, %v14749_v48  ;;  %v14770_v9 = vsel %vm17338_vm4, %v3435_v25, %v3434_v39  ;;  %v14772_v50 = vmul.f32 %v5339_v63, %v5337_v28  ;;  %v3531_v42 = vsub.s32 4294967266, %v14755_v26  ;;  %v5732_v28 = vpop.permute.xlu1 %5731 }
 0x5ac   :  { %v3569_v59 = vadd.s32 1, %v7924_v5  ;;  %v3567_v17 = vor.u32 8388608, %v3566_v8  ;;  %vm4417_vm11 = vcmp.eq.s32.totalorder %v4415_v31, 0  ;;  %v4519_v44 = vand.u32 3, %v4518_v18  ;;  %v18018_v5 = vld [vmem:[#allocation46_spill] sm:$0xff]  ;;  %v18019_v8 = vld [vmem:[#allocation93_spill] sm:$0xff] }
 0x5ad   :  { %vm4420_vm9 = vcmp.eq.s32.totalorder %v4415_v31, 2  ;;  %v4522_v2 = vxor.u32 2147483648, %v18016_v12  ;;  %v4525_v46 = vxor.u32 2147483648, %v18017_v13  ;;  %v5429_v52 = vclz %v7995_v60 }
 0x5ae   :  { %vm3570_vm6 = vcmp.gt.s32.totalorder %v3569_v59, 0  ;;  %v4419_v39 = vsel %vm4417_vm11, %v18015_v19, %v4418_v62  ;;  %v4422_v25 = vsel %vm4420_vm9, %v4421_v51, %v18014_v3  ;;  %v14780_v56 = vadd.s32 127, %v3531_v42 }
 0x5af   :  { %v3571_v22 = vsel %vm3570_vm6, %v3569_v59, 0  ;;  %vm4413_vm1 = vweird.f32 %v18018_v5  ;;  %vm4517_vm8 = vweird.f32 %v18019_v8  ;;  %v14784_v18 = vshll.u32 %v3567_v17, 8 }
 0x5b0   :  { %v3573_v63 = vand.u32 31, %v3571_v22  ;;  %vm4416_vm15 = vcmp.lt.s32.totalorder %v4415_v31, 2  ;;  %vm4521_vm4 = vcmp.eq.s32.totalorder %v4519_v44, 0  ;;  %vm4524_vm13 = vcmp.eq.s32.totalorder %v4519_v44, 2 }
 0x5b1   :  { %v14786_v15 = vpop.eup %8703  ;;  %v4423_v59 = vsel %vm4416_vm15, %v4419_v39, %v4422_v25  ;;  %v4523_v62 = vsel %vm4521_vm4, %v18017_v13, %v4522_v2  ;;  %v4526_v3 = vsel %vm4524_vm13, %v4525_v46, %v18016_v12  ;;  %v7996_v51 = vadd.s32 4294967294, %v5429_v52  ;;  %v5740_v25 = vpop.permute.xlu1 %5739 }
 0x5b2   :  { %18020 = vst [vmem:[#allocation121_spill] sm:$0xff] %v14786_v15  ;;  %v3574_v60 = vsub.s32 32, %v3573_v63  ;;  %v14790_v19 = vpop.eup %8705  ;;  %v3576_v42 = vshll.u32 %v17463_v61, %v3573_v63  ;;  %v3579_v54 = vshll.u32 %v17511_v34, %v3573_v63  ;;  %vm4520_vm11 = vcmp.lt.s32.totalorder %v4519_v44, 2 }
 0x5b3   :  { %18021 = vst [vmem:[#allocation110_spill] sm:$0xff] %v14790_v19  ;;  %v14794_v17 = vpop.eup %8707  ;;  %v3582_v39 = vshll.u32 %v17475_v29, %v3573_v63  ;;  %v3572_v13 = vshrl.u32 %v3571_v22, 5  ;;  %v3585_v12 = vshll.u32 %v17510_v30, %v3573_v63  ;;  %v4527_v52 = vsel %vm4520_vm11, %v4523_v62, %v4526_v3 }
 0x5b4   :  { %18022 = vst [vmem:[#allocation38_spill] sm:$0xff] %v14794_v17  ;;  %v3577_v31 = vshrl.u32 %v17511_v34, %v3574_v60  ;;  %v3580_v1 = vshrl.u32 %v17475_v29, %v3574_v60  ;;  %v3583_v2 = vshrl.u32 %v17510_v30, %v3574_v60  ;;  %v3586_v46 = vshrl.u32 %v17472_v10, %v3574_v60 }
 0x5b5   :  { %v4424_v17 = vsel %vm4413_vm1, nan, %v4423_v59  ;;  %v3588_v15 = vshll.u32 %v17472_v10, %v3573_v63  ;;  %v3589_v19 = vshrl.u32 %v17473_v55, %v3574_v60  ;;  %v5782_v37 = vmul.f32 %v14344_v45, %v5732_v28 }
 0x5b6   :  { %v3578_v23 = vor.u32 %v3577_v31, %v3576_v42  ;;  %v3581_v43 = vor.u32 %v3580_v1, %v3579_v54  ;;  %v3584_v44 = vor.u32 %v3583_v2, %v3582_v39  ;;  %v3587_v41 = vor.u32 %v3586_v46, %v3585_v12 }
 0x5b7   :  { %v18023_v22 = vand.u32 2147483647, %v14360_v33  ;;  %v18024_v27 = vmov 0  ;;  %vm5259_vm4 = vcmp.lt.s32.totalorder %v14371_v32, 0  ;;  %vm7997_vm6 = vcmp.lt.s32.totalorder %v7996_v51, 0 }
 0x5b8   :  { %v3575_v1 = vshrl.u32 %v17463_v61, %v3574_v60  ;;  %v4528_v54 = vsel %vm4517_vm8, nan, %v4527_v52  ;;  %v5784_v63 = vmul.f32 %v14344_v45, %v5740_v25  ;;  %v3590_v5 = vor.u32 %v3589_v19, %v3588_v15 }
 0x5b9   :  { %vm14809_vm13 = vcmp.le.f32.partialorder %v18023_v22, 0.7853982  ;;  %vm3591_vm9 = vcmp.lt.s32.totalorder %v3572_v13, 1  ;;  %vm3593_vm1 = vcmp.lt.s32.totalorder %v3572_v13, 3  ;;  %vm3594_vm15 = vcmp.lt.s32.totalorder %v3572_v13, 4 }
 0x5ba   :  { %v18025_v27 = vsel %vm14809_vm13, 4294967295, %v18024_v27  ;;  %v3596_v28 = vsel %vm3594_vm15, %v3584_v44, 2102212464  ;;  %v3599_v59 = vsel %vm3591_vm9, %v3578_v23, %v3581_v43  ;;  %v3600_v62 = vsel %vm3594_vm15, %v3587_v41, 920167782 }
 0x5bb   :  { %18026 = vst [vmem:[#allocation125_spill] sm:$0xff] %v18025_v27  ;;  %v3603_v3 = vsel %vm3591_vm9, %v3581_v43, %v3584_v44  ;;  %vm3592_vm11 = vcmp.lt.s32.totalorder %v3572_v13, 2  ;;  %v3595_v42 = vsel %vm3591_vm9, %v3575_v1, %v3578_v23  ;;  %v3601_v31 = vsel %vm3593_vm1, %v3584_v44, %v3600_v62 }
 0x5bc   :  { %v3604_v39 = vsel %vm3594_vm15, %v3590_v5, 1326507024  ;;  %v3597_v2 = vsel %vm3593_vm1, %v3581_v43, %v3596_v28  ;;  %v3602_v60 = vsel %vm3592_vm11, %v3599_v59, %v3601_v31  ;;  %v5571_v8 = vpack.c.bf16 %v4528_v54, %v4424_v17 }
 0x5bd   :  { %v3605_v12 = vsel %vm3593_vm1, %v3587_v41, %v3604_v39  ;;  %v14820_v46 = vsel %vm7997_vm6, 0, %v7996_v51  ;;  %v14824_v15 = vmul.u32.u64.low %v14784_v18, %v3602_v60  ;;  %v14825_v19 = vmul.u32.u64.high %v14784_v18, %v3602_v60, %v14824_v15  ;;  %v14840_v51 = vld [vmem:[#allocation4 + $0x1] ss:$0 sm:$0xff] }
 0x5be   :  { %v3606_v45 = vsel %vm3592_vm11, %v3603_v3, %v3605_v12  ;;  %v18027_v52 = vand.u32 2147483647, %v14371_v32  ;;  %v18028_v23 = vmov 0  ;;  %v5341_v43 = vxor.u32 2147483648, %v14772_v50 }
 0x5bf   :  { %v14836_v41 = vmul.u32.u64.low %v14784_v18, %v3606_v45  ;;  %v14837_v17 = vmul.u32.u64.high %v14784_v18, %v3606_v45, %v14836_v41  ;;  %vm18031_vm6 = vcmask 261120   ;;  %v14843_v25 = vadd.f32 %v14840_v51, %v5782_v37 }
 0x5c0   :  { %vm14830_vm8 = vcmp.le.f32.partialorder %v18027_v52, 0.7853982  ;;  %8161 = vmatprep.mubr.msk.bf16.mxu1 %vm18031_vm6, %v5571_v8  ;;  %v18033_v44 = vsub.s32 4, %v14395_v40  ;;  %vm18034_vm9 = vcmp.lt.s32.totalorder %v14200_v4, 0  ;;  %8709 = vsinq.f32 %v14737_v53 }
 0x5c1   :  { %v18029_v23 = vsel %vm14830_vm8, 4294967295, %v18028_v23  ;;  %18032 = vst [vmem:[#allocation86_spill] sm:$0xff] %v14843_v25  ;;  %v3533_v1 = vshll.u32 %v14780_v56, 23  ;;  %v3598_v54 = vsel %vm3592_vm11, %v3595_v42, %v3597_v2  ;;  %v18036_v5 = vsub.s32 32, %v14755_v26 }
 0x5c2   :  { %18030 = vst [vmem:[#allocation124_spill] sm:$0xff] %v18029_v23  ;;  %v14850_v22 = vsel %vm18034_vm9, %v18033_v44, %v14395_v40  ;;  %v5437_v37 = vsub.s32 4294967266, %v14820_v46  ;;  %v6229_v59 = vand.u32 2139095040, %v14843_v25  ;;  %v14861_v62 = vadd.f32 %v14840_v51, %v5784_v63 }
 0x5c3   :  { %18035 = vst [vmem:[#allocation107_spill] sm:$0xff] %v14850_v22  ;;  %v3529_v28 = vshrl.u32 %v14763_v21, %v18036_v5  ;;  %v18038_v40 = vsub.s32 4, %v14508_v58  ;;  %vm18039_vm1 = vcmp.lt.s32.totalorder %v14360_v33, 0  ;;  %v3439_v56 = vsel %vm14809_vm13, %v14360_v33, %v14770_v9 }
 0x5c4   :  { %18037 = vst [vmem:[#allocation105_spill] sm:$0xff] %v14861_v62  ;;  %v18041_v21 = vsub.s32 4, %v14568_v11  ;;  %vm3457_vm15 = vcmp.lt.s32.totalorder %v14460_v35, 0  ;;  %v3617_v63 = vadd.s32 1, %v14825_v19  ;;  %v3528_v3 = vshll.u32 %v14671_v14, %v14755_v26 }
 0x5c5   :  { %v14868_v53 = vsel %vm18039_vm1, %v18038_v40, %v14508_v58  ;;  %v5342_v58 = vsel %vm5259_vm4, %v5341_v43, %v14772_v50  ;;  %v3614_v9 = vmul.u32 %v14784_v18, %v3598_v54  ;;  %vm3616_vm11 = vc.u32 %v14837_v17, %v14824_v15  ;;  %v5744_v18 = vpop.permute.xlu1 %5743 }
 0x5c6   :  { %18040 = vst [vmem:[#allocation127_spill] sm:$0xff] %v14868_v53  ;;  %v14879_v13 = vsel %vm5259_vm4, %v18041_v21, %v14568_v11  ;;  %v3534_v42 = vor.u32 4788187, %v3533_v1  ;;  %v5433_v11 = vsub.s32 32, %v14820_v46  ;;  %v3618_v31 = vsel %vm3616_vm11, %v3617_v63, %v14825_v19 }
 0x5c7   :  { %18042 = vst [vmem:[#allocation129_spill] sm:$0xff] %v14879_v13  ;;  %v6230_v39 = vshrl.u32 %v6229_v59, 23  ;;  %v3530_v2 = vor.u32 %v3529_v28, %v3528_v3  ;;  %v5438_v60 = vadd.s32 127, %v5437_v37  ;;  %v3619_v12 = vadd.s32 %v3618_v31, %v3614_v9 }
 0x5c8   :  { %v6437_v8 = vand.u32 2139095040, %v14861_v62  ;;  %8711 = vcosq.f32 %v3439_v56  ;;  %v5417_v14 = vadd.s32 %v14683_v57, %v14697_v49  ;;  %v17348_v26 = vand.u32 2147483647, %v14843_v25  ;;  %v14903_v57 = vld [vmem:[#allocation4] ss:$0 sm:$0xff] }
 0x5c9   :  { %v8026_v50 = vadd.s32 4294967169, %v6230_v39  ;;  %8713 = vsinq.f32 %v3439_v56  ;;  %v3541_v45 = vsub.s32 4, %v14648_v16  ;;  %v3620_v52 = vadd.s32 536870912, %v3619_v12 }
 0x5ca   :  { %v6438_v43 = vshrl.u32 %v6437_v8, 23  ;;  %v5345_v19 = vsel %vm14830_vm8, %v14371_v32, %v5342_v58  ;;  %v3535_v41 = vand.u32 2147483647, %v3534_v42  ;;  %v5435_v44 = vshrl.u32 %v5417_v14, %v5433_v11 }
 0x5cb   :  { %v6236_v1 = vadd.s32 1, %v8026_v50  ;;  %v3537_v54 = vcvt.s32.f32 %v3530_v2  ;;  %v5439_v5 = vshll.u32 %v5438_v60, 23  ;;  %v14901_v28 = vshrl.u32 %v3620_v52, 30 }
 0x5cc   :  { %v5785_v49 = vmul.f32 %v14903_v57, %v5744_v18  ;;  %v5434_v37 = vshll.u32 %v14749_v48, %v14820_v46  ;;  %v6233_v59 = vand.u32 8388607, %v17348_v26  ;;  %v8034_v40 = vadd.s32 4294967169, %v6438_v43 }
 0x5cd   :  { %vm6237_vm4 = vcmp.gt.s32.totalorder %v6236_v1, 0  ;;  %8715 = vcosq.f32 %v5345_v19  ;;  %v14913_v56 = vsel %vm3457_vm15, %v3541_v45, %v14648_v16  ;;  %v3622_v21 = vshll.u32 %v14901_v28, 30  ;;  %v14920_v46 = vpop.eup %8709 }
 0x5ce   :  { %18043 = vst [vmem:[#allocation118_spill] sm:$0xff] %v14913_v56  ;;  %v6238_v63 = vsel %vm6237_vm4, %v6236_v1, 0  ;;  %8717 = vsinq.f32 %v5345_v19  ;;  %v14916_v58 = vmul.f32 %v3537_v54, %v3535_v41  ;;  %v14918_v3 = vor.u32 %v5435_v44, %v5434_v37  ;;  %18044 = vst [vmem:[#allocation117_spill] sm:$0xff] %v14920_v46 }
 0x5cf   :  { %v6240_v48 = vand.u32 31, %v6238_v63  ;;  %v14922_v9 = vor.u32 4788187, %v5439_v5  ;;  %v14924_v42 = vsub.s32 %v3619_v12, %v3622_v21  ;;  %v17349_v11 = vand.u32 2147483647, %v14861_v62 }
 0x5d0   :  { %v14928_v16 = vadd.f32 %v14840_v51, %v5785_v49  ;;  %v6234_v31 = vor.u32 8388608, %v6233_v59  ;;  %v6239_v39 = vshrl.u32 %v6238_v63, 5  ;;  %v6444_v60 = vadd.s32 1, %v8034_v40 }
 0x5d1   :  { %v6241_v2 = vsub.s32 32, %v6240_v48  ;;  %v3625_v8 = vsub.s32 0, %v14924_v42  ;;  %v6243_v14 = vshll.u32 %v17463_v61, %v6240_v48  ;;  %v6246_v50 = vshll.u32 %v17511_v34, %v6240_v48 }
 0x5d2   :  { %18045 = vst [vmem:[#allocation137_spill] sm:$0xff] %v14928_v16  ;;  %v6249_v18 = vshll.u32 %v17475_v29, %v6240_v48  ;;  %v6252_v43 = vshll.u32 %v17510_v30, %v6240_v48  ;;  %v6255_v44 = vshll.u32 %v17472_v10, %v6240_v48  ;;  %v6274_v37 = vshll.u32 %v6234_v31, 8 }
 0x5d3   :  { %v6244_v12 = vshrl.u32 %v17511_v34, %v6241_v2  ;;  %v6247_v45 = vshrl.u32 %v17475_v29, %v6241_v2  ;;  %v6250_v52 = vshrl.u32 %v17510_v30, %v6241_v2  ;;  %v7925_v19 = vmin.u32 %v3625_v8, %v14924_v42 }
 0x5d4   :  { %v6253_v41 = vshrl.u32 %v17472_v10, %v6241_v2  ;;  %v6256_v1 = vshrl.u32 %v17473_v55, %v6241_v2  ;;  %vm6258_vm6 = vcmp.lt.s32.totalorder %v6239_v39, 1  ;;  %vm6445_vm9 = vcmp.gt.s32.totalorder %v6444_v60, 0 }
 0x5d5   :  { %v6245_v54 = vor.u32 %v6244_v12, %v6243_v14  ;;  %v6248_v5 = vor.u32 %v6247_v45, %v6246_v50  ;;  %v6251_v49 = vor.u32 %v6250_v52, %v6249_v18  ;;  %v14942_v59 = vpop.eup %8711  ;;  %v3627_v26 = vclz %v7925_v19 }
 0x5d6   :  { %18046 = vst [vmem:[#allocation134_spill] sm:$0xff] %v14942_v59  ;;  %v6254_v40 = vor.u32 %v6253_v41, %v6252_v43  ;;  %v6257_v21 = vor.u32 %v6256_v1, %v6255_v44  ;;  %v14944_v63 = vpop.eup %8713  ;;  %vm6261_vm1 = vcmp.lt.s32.totalorder %v6239_v39, 4  ;;  %vm6259_vm11 = vcmp.lt.s32.totalorder %v6239_v39, 2 }
 0x5d7   :  { %18047 = vst [vmem:[#allocation46_spill] sm:$0xff] %v14944_v63  ;;  %v6266_v8 = vsel %vm6258_vm6, %v6245_v54, %v6248_v5  ;;  %v6270_v48 = vsel %vm6258_vm6, %v6248_v5, %v6251_v49  ;;  %vm6260_vm4 = vcmp.lt.s32.totalorder %v6239_v39, 3  ;;  %v6263_v18 = vsel %vm6261_vm1, %v6251_v49, 2102212464 }
 0x5d8   :  { %v6267_v14 = vsel %vm6261_vm1, %v6254_v40, 920167782  ;;  %v6271_v50 = vsel %vm6261_vm1, %v6257_v21, 1326507024  ;;  %v6446_v45 = vsel %vm6445_vm9, %v6444_v60, 0  ;;  %v6242_v52 = vshrl.u32 %v17463_v61, %v6241_v2 }
 0x5d9   :  { %v6268_v31 = vsel %vm6260_vm4, %v6251_v49, %v6267_v14  ;;  %v6272_v12 = vsel %vm6260_vm4, %v6254_v40, %v6271_v50  ;;  %v6441_v41 = vand.u32 8388607, %v17349_v11  ;;  %v7926_v1 = vadd.s32 4294967294, %v3627_v26 }
 0x5da   :  { %v6269_v43 = vsel %vm6259_vm11, %v6266_v8, %v6268_v31  ;;  %v6273_v19 = vsel %vm6259_vm11, %v6270_v48, %v6272_v12  ;;  %v14955_v44 = vpop.eup %8715  ;;  %v6541_v49 = vand.u32 2139095040, %v14928_v16  ;;  %v6262_v2 = vsel %vm6258_vm6, %v6242_v52, %v6245_v54 }
 0x5db   :  { %18048 = vst [vmem:[#allocation93_spill] sm:$0xff] %v14955_v44  ;;  %v14957_v56 = vmul.u32.u64.low %v6274_v37, %v6273_v19  ;;  %v14958_v21 = vmul.u32.u64.high %v6274_v37, %v6273_v19, %v14957_v56  ;;  %v14961_v14 = vpop.eup %8717  ;;  %v6264_v40 = vsel %vm6260_vm4, %v6248_v5, %v6263_v18  ;;  %v6448_v8 = vand.u32 31, %v6446_v45 }
 0x5dc   :  { %18049 = vst [vmem:[#allocation166_spill] sm:$0xff] %v14961_v14  ;;  %v3539_v48 = vxor.u32 2147483648, %v14916_v58  ;;  %v5443_v50 = vcvt.s32.f32 %v14918_v3  ;;  %v14968_v31 = vmul.u32.u64.low %v6274_v37, %v6269_v43  ;;  %v14969_v26 = vmul.u32.u64.high %v6274_v37, %v6269_v43, %v14968_v31 }
 0x5dd   :  { %v5441_v56 = vand.u32 2147483647, %v14922_v9  ;;  %v6442_v12 = vor.u32 8388608, %v6441_v41  ;;  %v6449_v19 = vsub.s32 32, %v6448_v8  ;;  %vm7927_vm9 = vcmp.lt.s32.totalorder %v7926_v1, 0 }
 0x5de   :  { %v6265_v54 = vsel %vm6259_vm11, %v6262_v2, %v6264_v40  ;;  %v6447_v52 = vshrl.u32 %v6446_v45, 5  ;;  %v6542_v5 = vshrl.u32 %v6541_v49, 23  ;;  %vm6283_vm6 = vc.u32 %v14958_v21, %v14968_v31 }
 0x5df   :  { %v6451_v3 = vshll.u32 %v17463_v61, %v6448_v8  ;;  %v6452_v18 = vshrl.u32 %v17511_v34, %v6449_v19  ;;  %v6454_v43 = vshll.u32 %v17511_v34, %v6448_v8  ;;  %v6284_v9 = vadd.s32 1, %v14969_v26 }
 0x5e0   :  { %v6455_v41 = vshrl.u32 %v17475_v29, %v6449_v19  ;;  %v6457_v60 = vshll.u32 %v17475_v29, %v6448_v8  ;;  %v6458_v39 = vshrl.u32 %v17510_v30, %v6449_v19  ;;  %v6281_v2 = vmul.u32 %v6274_v37, %v6265_v54 }
 0x5e1   :  { %v6453_v45 = vor.u32 %v6452_v18, %v6451_v3  ;;  %v6460_v49 = vshll.u32 %v17510_v30, %v6448_v8  ;;  %v6461_v40 = vshrl.u32 %v17472_v10, %v6449_v19  ;;  %v6285_v11 = vsel %vm6283_vm6, %v6284_v9, %v14969_v26 }
 0x5e2   :  { %v6456_v32 = vor.u32 %v6455_v41, %v6454_v43  ;;  %v6459_v44 = vor.u32 %v6458_v39, %v6457_v60  ;;  %v8038_v14 = vadd.s32 4294967169, %v6542_v5  ;;  %v6286_v23 = vadd.s32 %v6285_v11, %v6281_v2 }
 0x5e3   :  { %v6462_v13 = vor.u32 %v6461_v40, %v6460_v49  ;;  %v6463_v33 = vshll.u32 %v17472_v10, %v6448_v8  ;;  %v6464_v59 = vshrl.u32 %v17473_v55, %v6449_v19  ;;  %v14990_v63 = vsel %vm7927_vm9, 0, %v7926_v1 }
 0x5e4   :  { %vm6466_vm1 = vcmp.lt.s32.totalorder %v6447_v52, 1  ;;  %vm6467_vm11 = vcmp.lt.s32.totalorder %v6447_v52, 2  ;;  %v6482_v37 = vshll.u32 %v6442_v12, 8  ;;  %v6287_v54 = vadd.s32 536870912, %v6286_v23 }
 0x5e5   :  { %v6465_v3 = vor.u32 %v6464_v59, %v6463_v33  ;;  %vm6469_vm4 = vcmp.lt.s32.totalorder %v6447_v52, 4  ;;  %v6474_v26 = vsel %vm6466_vm1, %v6453_v45, %v6456_v32  ;;  %vm6468_vm6 = vcmp.lt.s32.totalorder %v6447_v52, 3 }
 0x5e6   :  { %v6471_v60 = vsel %vm6469_vm4, %v6459_v44, 2102212464  ;;  %v6475_v5 = vsel %vm6469_vm4, %v6462_v13, 920167782  ;;  %v6548_v11 = vadd.s32 1, %v8038_v14  ;;  %v14993_v18 = vshrl.u32 %v6287_v54, 30 }
 0x5e7   :  { %v6450_v8 = vshrl.u32 %v17463_v61, %v6449_v19  ;;  %v6476_v43 = vsel %vm6468_vm6, %v6459_v44, %v6475_v5  ;;  %v6478_v1 = vsel %vm6466_vm1, %v6456_v32, %v6459_v44  ;;  %v3631_v9 = vsub.s32 32, %v14990_v63 }
 0x5e8   :  { %v6477_v12 = vsel %vm6467_vm11, %v6474_v26, %v6476_v43  ;;  %v6479_v41 = vsel %vm6469_vm4, %v6465_v3, 1326507024  ;;  %vm6549_vm9 = vcmp.gt.s32.totalorder %v6548_v11, 0  ;;  %v6289_v33 = vshll.u32 %v14993_v18, 30 }
 0x5e9   :  { %v6470_v59 = vsel %vm6466_vm1, %v6450_v8, %v6453_v45  ;;  %v6472_v39 = vsel %vm6468_vm6, %v6456_v32, %v6471_v60  ;;  %v6480_v2 = vsel %vm6468_vm6, %v6462_v13, %v6479_v41  ;;  %v3635_v14 = vsub.s32 4294967266, %v14990_v63 }
 0x5ea   :  { %v6481_v49 = vsel %vm6467_vm11, %v6478_v1, %v6480_v2  ;;  %v15003_v19 = vmul.u32.u64.low %v6482_v37, %v6477_v12  ;;  %v15004_v40 = vmul.u32.u64.high %v6482_v37, %v6477_v12, %v15003_v19  ;;  %v15010_v44 = vsel %vm3457_vm15, %v3539_v48, %v14916_v58  ;;  %v18051_v48 = vld [vmem:[#allocation141_spill] sm:$0xff] }
 0x5eb   :  { %v15012_v54 = vmul.f32 %v5443_v50, %v5441_v56  ;;  %v15014_v3 = vsub.s32 %v6286_v23, %v6289_v33  ;;  %v6550_v45 = vsel %vm6549_vm9, %v6548_v11, 0  ;;  %v3615_v32 = vadd.s32 %v14824_v15, %v14837_v17  ;;  %v18052_v50 = vld [vmem:[#allocation138_spill] sm:$0xff] }
 0x5ec   :  { %v6473_v13 = vsel %vm6467_vm11, %v6470_v59, %v6472_v39  ;;  %v15019_v26 = vmul.u32.u64.low %v6482_v37, %v6481_v49  ;;  %v15020_v60 = vmul.u32.u64.high %v6482_v37, %v6481_v49, %v15019_v26  ;;  %v18050_v8 = vand.u32 2147483647, %v14928_v16 }
 0x5ed   :  { %v6292_v5 = vsub.s32 0, %v15014_v3  ;;  %v6552_v58 = vand.u32 31, %v6550_v45  ;;  %vm18053_vm15 = vnez %v18052_v50  ;;  %v3632_v56 = vshll.u32 %v14924_v42, %v14990_v63 }
 0x5ee   :  { %v6545_v43 = vand.u32 8388607, %v18050_v8  ;;  %v2712_v23 = vsel %vm18053_vm15, 0, %v18051_v48  ;;  %v3633_v11 = vshrl.u32 %v3615_v32, %v3631_v9  ;;  %v15030_v15 = vadd.s32 127, %v3635_v14 }
 0x5ef   :  { %v6492_v17 = vadd.s32 1, %v15004_v40  ;;  %v8027_v52 = vmin.u32 %v6292_v5, %v15014_v3  ;;  %v6489_v1 = vmul.u32 %v6482_v37, %v6473_v13  ;;  %v6551_v12 = vshrl.u32 %v6550_v45, 5 }
 0x5f0   :  { %v6553_v41 = vsub.s32 32, %v6552_v58  ;;  %vm6491_vm1 = vc.u32 %v15020_v60, %v15003_v19  ;;  %v6555_v33 = vshll.u32 %v17463_v61, %v6552_v58  ;;  %v6558_v59 = vshll.u32 %v17511_v34, %v6552_v58 }
 0x5f1   :  { %v6561_v39 = vshll.u32 %v17475_v29, %v6552_v58  ;;  %v6294_v42 = vclz %v8027_v52  ;;  %v6493_v63 = vsel %vm6491_vm1, %v6492_v17, %v15004_v40  ;;  %v6564_v2 = vshll.u32 %v17510_v30, %v6552_v58 }
 0x5f2   :  { %v6556_v9 = vshrl.u32 %v17511_v34, %v6553_v41  ;;  %v6494_v14 = vadd.s32 %v6493_v63, %v6489_v1  ;;  %v6559_v37 = vshrl.u32 %v17475_v29, %v6553_v41  ;;  %v6562_v49 = vshrl.u32 %v17510_v30, %v6553_v41 }
 0x5f3   :  { %v6565_v45 = vshrl.u32 %v17472_v10, %v6553_v41  ;;  %v8028_v32 = vadd.s32 4294967294, %v6294_v42  ;;  %v6567_v26 = vshll.u32 %v17472_v10, %v6552_v58  ;;  %v6568_v5 = vshrl.u32 %v17473_v55, %v6553_v41 }
 0x5f4   :  { %v6557_v13 = vor.u32 %v6556_v9, %v6555_v33  ;;  %vm17361_vm11 = vcmp.lt.s32.totalorder %v14528_v20, 0  ;;  %v6495_v40 = vadd.s32 536870912, %v6494_v14  ;;  %v6560_v8 = vor.u32 %v6559_v37, %v6558_v59 }
 0x5f5   :  { %v6563_v48 = vor.u32 %v6562_v49, %v6561_v39  ;;  %v6566_v50 = vor.u32 %v6565_v45, %v6564_v2  ;;  %v5445_v17 = vxor.u32 2147483648, %v15012_v54  ;;  %vm8029_vm4 = vcmp.lt.s32.totalorder %v8028_v32, 0 }
 0x5f6   :  { %v6546_v52 = vor.u32 8388608, %v6545_v43  ;;  %v2716_v1 = vadd.s32 3, %v2712_v23  ;;  %v15049_v63 = vor.u32 %v3633_v11, %v3632_v56  ;;  %v15051_v27 = vshrl.u32 %v6495_v40, 30 }
 0x5f7   :  { %v6569_v33 = vor.u32 %v6568_v5, %v6567_v26  ;;  %vm6570_vm6 = vcmp.lt.s32.totalorder %v6551_v12, 1  ;;  %v3637_v58 = vshll.u32 %v15030_v15, 23  ;;  %vm6572_vm9 = vcmp.lt.s32.totalorder %v6551_v12, 3 }
 0x5f8   :  { %vm6573_vm15 = vcmp.lt.s32.totalorder %v6551_v12, 4  ;;  %v6578_v42 = vsel %vm6570_vm6, %v6557_v13, %v6560_v8  ;;  %v15055_v59 = vsel %vm8029_vm4, 0, %v8028_v32  ;;  %v6497_v39 = vshll.u32 %v15051_v27, 30 }
 0x5f9   :  { %v6575_v9 = vsel %vm6573_vm15, %v6563_v48, 2102212464  ;;  %v6579_v2 = vsel %vm6573_vm15, %v6566_v50, 920167782  ;;  %v6554_v43 = vshrl.u32 %v17463_v61, %v6553_v41  ;;  %vm6571_vm1 = vcmp.lt.s32.totalorder %v6551_v12, 2 }
 0x5fa   :  { %v6580_v23 = vsel %vm6572_vm9, %v6563_v48, %v6579_v2  ;;  %v6582_v56 = vsel %vm6570_vm6, %v6560_v8, %v6563_v48  ;;  %v15061_v11 = vsub.s32 %v6494_v14, %v6497_v39  ;;  %v6583_v37 = vsel %vm6573_vm15, %v6569_v33, 1326507024  ;;  %v18054_v39 = vld [vmem:[#allocation147_spill] sm:$0xff] }
 0x5fb   :  { %v6581_v15 = vsel %vm6571_vm1, %v6578_v42, %v6580_v23  ;;  %v6586_v49 = vshll.u32 %v6546_v52, 8  ;;  %v6302_v45 = vsub.s32 4294967266, %v15055_v59  ;;  %v6574_v32 = vsel %vm6570_vm6, %v6554_v43, %v6557_v13 }
 0x5fc   :  { %v6576_v26 = vsel %vm6572_vm9, %v6560_v8, %v6575_v9  ;;  %v6584_v5 = vsel %vm6572_vm9, %v6566_v50, %v6583_v37  ;;  %v6500_v41 = vsub.s32 0, %v15061_v11  ;;  %v15077_v14 = vsel %vm17361_vm11, %v5445_v17, %v15012_v54  ;;  %v18056_v54 = vld [vmem:[#allocation149_spill] sm:$0xff] }
 0x5fd   :  { %v6585_v40 = vsel %vm6571_vm1, %v6582_v56, %v6584_v5  ;;  %v15070_v2 = vmul.u32.u64.low %v6586_v49, %v6581_v15  ;;  %v15071_v48 = vmul.u32.u64.high %v6586_v49, %v6581_v15, %v15070_v2  ;;  %v2717_v13 = vand.u32 3, %v2716_v1  ;;  %v18055_v56 = vld [vmem:[#allocation16_spill] sm:$0xff] }
 0x5fe   :  { %v15079_v52 = vmul.u32.u64.low %v6586_v49, %v6585_v40  ;;  %v15080_v33 = vmul.u32.u64.high %v6586_v49, %v6585_v40, %v15079_v52  ;;  %v6282_v8 = vadd.s32 %v14968_v31, %v14958_v21  ;;  %v8035_v50 = vmin.u32 %v6500_v41, %v15061_v11  ;;  %v18058_v21 = vld [vmem:[#allocation103_spill] sm:$0xff] }
 0x5ff   :  { %v6577_v42 = vsel %vm6571_vm1, %v6574_v32, %v6576_v26  ;;  %v2720_v9 = vxor.u32 2147483648, %v18054_v39  ;;  %v3638_v43 = vor.u32 4788187, %v3637_v58  ;;  %v3641_v23 = vcvt.s32.f32 %v15049_v63 }
 0x600   :  { %v2723_v15 = vxor.u32 2147483648, %v18055_v56  ;;  %v2816_v37 = vsel %vm12803_vm2, 0, %v18056_v54  ;;  %v6303_v5 = vadd.s32 127, %v6302_v45  ;;  %v6502_v1 = vclz %v8035_v50 }
 0x601   :  { %v6596_v40 = vadd.s32 1, %v15071_v48  ;;  %v2820_v31 = vadd.s32 3, %v2816_v37  ;;  %v18059_v12 = vand.u32 2147483647, %v14460_v35  ;;  %v18060_v32 = vmov 0  ;;  %v18068_v37 = vld [vmem:[#allocation25_spill] sm:$0xff] }
 0x602   :  { %v6593_v63 = vmul.u32 %v6586_v49, %v6577_v42  ;;  %vm6595_vm9 = vc.u32 %v15080_v33, %v15070_v2  ;;  %vm2719_vm15 = vcmp.eq.s32.totalorder %v2717_v13, 0  ;;  %vm2722_vm1 = vcmp.eq.s32.totalorder %v2717_v13, 2  ;;  %v18067_v42 = vld [vmem:[#allocation33_spill] sm:$0xff] }
 0x603   :  { %vm15096_vm6 = vcmp.le.f32.partialorder %v18059_v12, 0.7853982  ;;  %v18063_v58 = vand.u32 2147483647, %v14528_v20  ;;  %v18064_v45 = vmov 0  ;;  %v8036_v26 = vadd.s32 4294967294, %v6502_v1 }
 0x604   :  { %v18061_v32 = vsel %vm15096_vm6, 4294967295, %v18060_v32  ;;  %v6597_v41 = vsel %vm6595_vm9, %v6596_v40, %v15071_v48  ;;  %v2721_v52 = vsel %vm2719_vm15, %v18055_v56, %v2720_v9  ;;  %v2821_v50 = vand.u32 3, %v2820_v31 }
 0x605   :  { %18062 = vst [vmem:[#allocation141_spill] sm:$0xff] %v18061_v32  ;;  %vm15104_vm2 = vcmp.le.f32.partialorder %v18063_v58, 0.7853982  ;;  %v6598_v54 = vadd.s32 %v6597_v41, %v6593_v63  ;;  %v2724_v49 = vsel %vm2722_vm1, %v2723_v15, %v18054_v39  ;;  %v2824_v17 = vxor.u32 2147483648, %v18067_v42  ;;  %v135_v58 = vpop.permute.xlu1 %134 }
 0x606   :  { %v18065_v45 = vsel %vm15104_vm2, 4294967295, %v18064_v45  ;;  %v2827_v12 = vxor.u32 2147483648, %v18068_v37  ;;  %v3639_v53 = vand.u32 2147483647, %v3638_v43  ;;  %v6298_v46 = vsub.s32 32, %v15055_v59 }
 0x607   :  { %18066 = vst [vmem:[#allocation138_spill] sm:$0xff] %v18065_v45  ;;  %vm8037_vm11 = vcmp.lt.s32.totalorder %v8036_v26, 0  ;;  %vm2823_vm4 = vcmp.eq.s32.totalorder %v2821_v50, 0  ;;  %v6599_v1 = vadd.s32 536870912, %v6598_v54  ;;  %vm2718_vm9 = vcmp.lt.s32.totalorder %v2717_v13, 2 }
 0x608   :  { %v15114_v4 = vsel %vm8037_vm11, 0, %v8036_v26  ;;  %v2825_v48 = vsel %vm2823_vm4, %v18068_v37, %v2824_v17  ;;  %v6304_v9 = vshll.u32 %v6303_v5, 23  ;;  %v2725_v56 = vsel %vm2718_vm9, %v2721_v52, %v2724_v49  ;;  %v18069_v26 = vld [vmem:[#allocation100_spill] sm:$0xff] }
 0x609   :  { %vm2822_vm15 = vcmp.lt.s32.totalorder %v2821_v50, 2  ;;  %vm2826_vm1 = vcmp.eq.s32.totalorder %v2821_v50, 2  ;;  %v6510_v39 = vsub.s32 4294967266, %v15114_v4  ;;  %v15118_v15 = vshrl.u32 %v6599_v1, 30 }
 0x60a   :  { %v2828_v43 = vsel %vm2826_vm1, %v2827_v12, %v18067_v42  ;;  %v196_v40 = vmul.f32 %v14903_v57, %v135_v58  ;;  %vm17374_vm8 = vcmp.lt.s32.totalorder %v14731_v24, 0  ;;  %v3642_v31 = vmul.f32 %v3641_v23, %v3639_v53  ;;  %v18075_v12 = vld [vmem:[#allocation144_spill] sm:$0xff] }
 0x60b   :  { %v6300_v63 = vshrl.u32 %v6282_v8, %v6298_v46  ;;  %vm2819_vm11 = vweird.f32 %v18069_v26  ;;  %v2829_v13 = vsel %vm2822_vm15, %v2825_v48, %v2828_v43  ;;  %v6601_v5 = vshll.u32 %v15118_v15, 30  ;;  %v18076_v58 = vld [vmem:[#allocation140_spill] sm:$0xff] }
 0x60c   :  { %vm18070_vm4 = vweird.f32 %v18058_v21  ;;  %v2830_v52 = vsel %vm2819_vm11, nan, %v2829_v13  ;;  %v15128_v50 = vadd.f32 %v14840_v51, %v196_v40  ;;  %v3543_v49 = vsel %vm15096_vm6, %v14460_v35, %v15010_v44 }
 0x60d   :  { %v2726_v41 = vsel %vm18070_vm4, nan, %v2725_v56  ;;  %v6299_v53 = vshll.u32 %v15014_v3, %v15055_v59  ;;  %v6305_v46 = vor.u32 4788187, %v6304_v9  ;;  %v18071_v23 = vsub.s32 4, %v14728_v6 }
 0x60e   :  { %v3666_v8 = vpack.c.bf16 %v2830_v52, %v2726_v41  ;;  %vm18072_vm9 = vcmp.lt.s32.totalorder %v14528_v20, 0  ;;  %v5449_v42 = vsel %vm15104_vm2, %v14528_v20, %v15077_v14  ;;  %v6511_v17 = vadd.s32 127, %v6510_v39 }
 0x60f   :  { %v15141_v21 = vsel %vm18072_vm9, %v18071_v23, %v14728_v6  ;;  %v15147_v37 = vsub.s32 %v6598_v54, %v6601_v5  ;;  %v6301_v44 = vor.u32 %v6300_v63, %v6299_v53  ;;  %vm18074_vm15 = vcmask 261120  }
 0x610   :  { %18073 = vst [vmem:[#allocation147_spill] sm:$0xff] %v15141_v21  ;;  %8142 = vmatmul.mubr.msk.bf16.gmra.mxu0 %vm18074_vm15, %v3666_v8  ;;  %v17365_v3 = vand.u32 2147483647, %v15128_v50  ;;  %v750_v59 = vand.u32 2139095040, %v15128_v50  ;;  %vm18077_vm1 = vnez %v18076_v58  ;;  %8719 = vcosq.f32 %v3543_v49  ;;  %v18093_v21 = vld [vmem:[#allocation116_spill] sm:$0xff] }
 0x611   :  { %v4618_v6 = vsel %vm18077_vm1, 0, %v18075_v12  ;;  %v18078_v1 = vand.u32 2147483647, %v14731_v24  ;;  %v18079_v48 = vmov 0  ;;  %v3643_v14 = vxor.u32 2147483648, %v3642_v31 }
 0x612   :  { %v6604_v54 = vsub.s32 0, %v15147_v37  ;;  %8721 = vsinq.f32 %v3543_v49  ;;  %v6306_v9 = vand.u32 2147483647, %v6305_v46  ;;  %v6506_v56 = vsub.s32 32, %v15114_v4 }
 0x613   :  { %vm15157_vm11 = vcmp.le.f32.partialorder %v18078_v1, 0.7853982  ;;  %v751_v39 = vshrl.u32 %v750_v59, 23  ;;  %8723 = vcosq.f32 %v5449_v42  ;;  %v6512_v43 = vshll.u32 %v6511_v17, 23  ;;  %v18082_v59 = vld [vmem:[#allocation152_spill] sm:$0xff]  ;;  %v18085_v1 = vld [vmem:[#allocation43_spill] sm:$0xff] }
 0x614   :  { %v18080_v48 = vsel %vm15157_vm11, 4294967295, %v18079_v48  ;;  %v8039_v40 = vmin.u32 %v6604_v54, %v15147_v37  ;;  %v4622_v63 = vadd.s32 3, %v4618_v6  ;;  %v6308_v26 = vcvt.s32.f32 %v6301_v44  ;;  %v18084_v6 = vld [vmem:[#allocation15_spill] sm:$0xff] }
 0x615   :  { %18081 = vst [vmem:[#allocation16_spill] sm:$0xff] %v18080_v48  ;;  %v6490_v13 = vadd.s32 %v15003_v19, %v15020_v60  ;;  %v7820_v5 = vadd.s32 4294967169, %v751_v39  ;;  %v754_v41 = vand.u32 8388607, %v17365_v3  ;;  %8725 = vsinq.f32 %v5449_v42 }
 0x616   :  { %v3644_v52 = vsel %vm17374_vm8, %v3643_v14, %v3642_v31  ;;  %v6606_v53 = vclz %v8039_v40  ;;  %v15171_v46 = vmul.f32 %v6308_v26, %v6306_v9  ;;  %v6507_v8 = vshll.u32 %v15061_v11, %v15114_v4  ;;  %v18083_v31 = vld [vmem:[#allocation151_spill] sm:$0xff]  ;;  %v140_v9 = vpop.permute.xlu1 %139 }
 0x617   :  { %v6508_v23 = vshrl.u32 %v6490_v13, %v6506_v56  ;;  %v757_v17 = vadd.s32 1, %v7820_v5  ;;  %v15175_v44 = vor.u32 4788187, %v6512_v43  ;;  %v15177_v60 = vand.u32 3, %v4622_v63 }
 0x618   :  { %v8040_v19 = vadd.s32 4294967294, %v6606_v53  ;;  %v4626_v42 = vxor.u32 2147483648, %v18082_v59  ;;  %v755_v12 = vor.u32 8388608, %v754_v41  ;;  %v4629_v58 = vxor.u32 2147483648, %v18083_v31 }
 0x619   :  { %vm758_vm4 = vcmp.gt.s32.totalorder %v757_v17, 0  ;;  %vm18086_vm9 = vnez %v18085_v1  ;;  %v15187_v4 = vsel %vm15157_vm11, %v14731_v24, %v3644_v52  ;;  %v15191_v11 = vadd.s32 %v15070_v2, %v15080_v33 }
 0x61a   :  { %v4722_v14 = vsel %vm18086_vm9, 0, %v18084_v6  ;;  %vm8041_vm15 = vcmp.lt.s32.totalorder %v8040_v19, 0  ;;  %v759_v54 = vsel %vm758_vm4, %v757_v17, 0  ;;  %v15194_v56 = vor.u32 %v6508_v23, %v6507_v8  ;;  %v5748_v22 = vpop.permute.xlu1 %5747 }
 0x61b   :  { %v15196_v39 = vsel %vm8041_vm15, 0, %v8040_v19  ;;  %v761_v43 = vand.u32 31, %v759_v54  ;;  %vm4625_vm1 = vcmp.eq.s32.totalorder %v15177_v60, 0  ;;  %vm4628_vm9 = vcmp.eq.s32.totalorder %v15177_v60, 2 }
 0x61c   :  { %v4726_v63 = vadd.s32 3, %v4722_v14  ;;  %v15201_v13 = vshll.u32 %v755_v12, 8  ;;  %v4627_v2 = vsel %vm4625_vm1, %v18083_v31, %v4626_v42  ;;  %v4630_v33 = vsel %vm4628_vm9, %v4629_v58, %v18082_v59 }
 0x61d   :  { %v762_v26 = vsub.s32 32, %v761_v43  ;;  %v6614_v5 = vsub.s32 4294967266, %v15196_v39  ;;  %v760_v41 = vshrl.u32 %v759_v54, 5  ;;  %v764_v52 = vshll.u32 %v17463_v61, %v761_v43  ;;  %v15208_v8 = vpop.eup %8719 }
 0x61e   :  { %v767_v53 = vshll.u32 %v17511_v34, %v761_v43  ;;  %18087 = vst [vmem:[#allocation149_spill] sm:$0xff] %v15208_v8  ;;  %v770_v19 = vshll.u32 %v17475_v29, %v761_v43  ;;  %v773_v42 = vshll.u32 %v17510_v30, %v761_v43  ;;  %v776_v58 = vshll.u32 %v17472_v10, %v761_v43  ;;  %v18090_v8 = vld [vmem:[#allocation27_spill] sm:$0xff] }
 0x61f   :  { %v765_v23 = vshrl.u32 %v17511_v34, %v762_v26  ;;  %v768_v17 = vshrl.u32 %v17475_v29, %v762_v26  ;;  %v771_v12 = vshrl.u32 %v17510_v30, %v762_v26  ;;  %v15215_v59 = vpop.eup %8721  ;;  %v774_v31 = vshrl.u32 %v17472_v10, %v762_v26 }
 0x620   :  { %18088 = vst [vmem:[#allocation135_spill] sm:$0xff] %v15215_v59  ;;  %v777_v6 = vshrl.u32 %v17473_v55, %v762_v26  ;;  %v15221_v1 = vpop.eup %8723  ;;  %v4727_v40 = vand.u32 3, %v4726_v63  ;;  %v4730_v48 = vxor.u32 2147483648, %v18090_v8  ;;  %v18091_v59 = vld [vmem:[#allocation21_spill] sm:$0xff]  ;;  %v6615_v45 = vadd.s32 127, %v6614_v5 }
 0x621   :  { %18089 = vst [vmem:[#allocation103_spill] sm:$0xff] %v15221_v1  ;;  %v766_v14 = vor.u32 %v765_v23, %v764_v52  ;;  %v769_v54 = vor.u32 %v768_v17, %v767_v53  ;;  %v772_v3 = vor.u32 %v771_v12, %v770_v19  ;;  %v775_v49 = vor.u32 %v774_v31, %v773_v42  ;;  %v18094_v52 = vld [vmem:[#allocation136_spill] sm:$0xff] }
 0x622   :  { %v778_v35 = vor.u32 %v777_v6, %v776_v58  ;;  %v4733_v32 = vxor.u32 2147483648, %v18091_v59  ;;  %v15225_v20 = vpop.eup %8725  ;;  %v763_v43 = vshrl.u32 %v17463_v61, %v762_v26  ;;  %vm779_vm15 = vcmp.lt.s32.totalorder %v760_v41, 1 }
 0x623   :  { %18092 = vst [vmem:[#allocation33_spill] sm:$0xff] %v15225_v20  ;;  %vm782_vm1 = vcmp.lt.s32.totalorder %v760_v41, 4  ;;  %vm4621_vm9 = vweird.f32 %v18093_v21  ;;  %vm781_vm4 = vcmp.lt.s32.totalorder %v760_v41, 3  ;;  %v787_v53 = vsel %vm779_vm15, %v766_v14, %v769_v54 }
 0x624   :  { %v784_v63 = vsel %vm782_vm1, %v772_v3, 2102212464  ;;  %v788_v23 = vsel %vm782_vm1, %v775_v49, 920167782  ;;  %vm780_vm11 = vcmp.lt.s32.totalorder %v760_v41, 2  ;;  %v791_v19 = vsel %vm779_vm15, %v769_v54, %v772_v3 }
 0x625   :  { %v789_v17 = vsel %vm781_vm4, %v772_v3, %v788_v23  ;;  %v792_v12 = vsel %vm782_vm1, %v778_v35, 1326507024  ;;  %v783_v42 = vsel %vm779_vm15, %v763_v43, %v766_v14  ;;  %v785_v31 = vsel %vm781_vm4, %v769_v54, %v784_v63 }
 0x626   :  { %v790_v5 = vsel %vm780_vm11, %v787_v53, %v789_v17  ;;  %v793_v58 = vsel %vm781_vm4, %v775_v49, %v792_v12  ;;  %v6610_v26 = vsub.s32 32, %v15196_v39  ;;  %v6616_v23 = vshll.u32 %v6615_v45, 23  ;;  %v5756_v12 = vpop.permute.xlu1 %5755 }
 0x627   :  { %v794_v6 = vsel %vm780_vm11, %v791_v19, %v793_v58  ;;  %v15235_v1 = vmul.u32.u64.low %v15201_v13, %v790_v5  ;;  %v15236_v20 = vmul.u32.u64.high %v15201_v13, %v790_v5, %v15235_v1  ;;  %vm18095_vm15 = vcmp.lt.s32.totalorder %v15177_v60, 2 }
 0x628   :  { %v15240_v35 = vmul.u32.u64.low %v15201_v13, %v794_v6  ;;  %v15241_v3 = vmul.u32.u64.high %v15201_v13, %v794_v6, %v15240_v35  ;;  %v4631_v49 = vsel %vm18095_vm15, %v4627_v2, %v4630_v33  ;;  %v786_v14 = vsel %vm780_vm11, %v783_v42, %v785_v31 }
 0x629   :  { %vm4729_vm4 = vcmp.eq.s32.totalorder %v4727_v40, 0  ;;  %vm4732_vm1 = vcmp.eq.s32.totalorder %v4727_v40, 2  ;;  %v197_v54 = vmul.f32 %v14903_v57, %v140_v9  ;;  %v18096_v43 = vand.u32 2147483647, %v14843_v25 }
 0x62a   :  { %v18097_v63 = vmov 0  ;;  %vm4728_vm8 = vcmp.lt.s32.totalorder %v4727_v40, 2  ;;  %v4731_v45 = vsel %vm4729_vm4, %v18091_v59, %v4730_v48  ;;  %v4734_v53 = vsel %vm4732_vm1, %v4733_v32, %v18090_v8 }
 0x62b   :  { %vm15249_vm6 = vcmp.le.f32.partialorder %v18096_v43, 0.7853982  ;;  %v5786_v60 = vmul.f32 %v14903_v57, %v5748_v22  ;;  %v6612_v2 = vshrl.u32 %v15191_v11, %v6610_v26  ;;  %v805_v33 = vadd.s32 1, %v15236_v20 }
 0x62c   :  { %v18098_v63 = vsel %vm15249_vm6, 4294967295, %v18097_v63  ;;  %v4735_v41 = vsel %vm4728_vm8, %v4731_v45, %v4734_v53  ;;  %v15259_v9 = vadd.f32 %v14840_v51, %v197_v54  ;;  %v802_v17 = vmul.u32 %v15201_v13, %v786_v14 }
 0x62d   :  { %18099 = vst [vmem:[#allocation25_spill] sm:$0xff] %v18098_v63  ;;  %vm804_vm11 = vc.u32 %v15241_v3, %v15235_v1  ;;  %v4632_v48 = vsel %vm4621_vm9, nan, %v4631_v49  ;;  %vm18101_vm15 = vweird.f32 %v18094_v52  ;;  %v6611_v22 = vshll.u32 %v15147_v37, %v15196_v39 }
 0x62e   :  { %18100 = vst [vmem:[#allocation100_spill] sm:$0xff] %v15259_v9  ;;  %v4736_v32 = vsel %vm18101_vm15, nan, %v4735_v41  ;;  %v6617_v11 = vor.u32 4788187, %v6616_v23  ;;  %v806_v40 = vsel %vm804_vm11, %v805_v33, %v15236_v20  ;;  %vm6436_vm8 = vcmp.lt.s32.totalorder %v14861_v62, 0 }
 0x62f   :  { %v5572_v8 = vpack.c.bf16 %v4736_v32, %v4632_v48  ;;  %v6516_v13 = vcvt.s32.f32 %v15194_v56  ;;  %v807_v59 = vadd.s32 %v806_v40, %v802_v17  ;;  %v854_v19 = vand.u32 2139095040, %v15259_v9 }
 0x630   :  { %v15275_v21 = vadd.f32 %v14840_v51, %v5786_v60  ;;  %v18103_v52 = vsub.s32 4, %v14901_v28  ;;  %vm18104_vm9 = vcmp.lt.s32.totalorder %v14731_v24, 0  ;;  %8727 = vcosq.f32 %v15187_v4 }
 0x631   :  { %vm17381_vm4 = vcmp.lt.s32.totalorder %v14928_v16, 0  ;;  %v6613_v20 = vor.u32 %v6612_v2, %v6611_v22  ;;  %vm18105_vm1 = vcmask 261120   ;;  %v18106_v56 = vxor.u32 2147483648, %v15171_v46 }
 0x632   :  { %18102 = vst [vmem:[#allocation144_spill] sm:$0xff] %v15275_v21  ;;  %v15282_v37 = vsel %vm18104_vm9, %v18103_v52, %v14901_v28  ;;  %8162 = vmatmul.mubr.msk.bf16.gmra.mxu1 %vm18105_vm1, %v5572_v8  ;;  %vm18107_vm11 = vcmp.lt.s32.totalorder %v14843_v25, 0  ;;  %v18108_v42 = vand.u32 2147483647, %v15175_v44  ;;  %v808_v5 = vadd.s32 536870912, %v807_v59 }
 0x633   :  { %v6311_v39 = vsel %vm18107_vm11, %v18106_v56, %v15171_v46  ;;  %v855_v58 = vshrl.u32 %v854_v19, 23  ;;  %v6618_v28 = vand.u32 2147483647, %v6617_v11  ;;  %v17380_v26 = vand.u32 2147483647, %v15259_v9  ;;  %vm18110_vm9 = vmmov %vm18107_vm11 }
 0x634   :  { %v6517_v31 = vmul.f32 %v6516_v13, %v18108_v42  ;;  %v6645_v6 = vand.u32 2139095040, %v15275_v21  ;;  %v5788_v23 = vmul.f32 %v14903_v57, %v5756_v12  ;;  %8729 = vsinq.f32 %v15187_v4 }
 0x635   :  { %v6312_v35 = vsub.s32 4, %v14993_v18  ;;  %v15299_v49 = vshrl.u32 %v808_v5, 30  ;;  %v7824_v14 = vadd.s32 4294967169, %v855_v58  ;;  %v6314_v46 = vsel %vm15249_vm6, %v14843_v25, %v6311_v39 }
 0x636   :  { %v6520_v44 = vsub.s32 4, %v15051_v27  ;;  %v6620_v54 = vcvt.s32.f32 %v6613_v20  ;;  %v6646_v43 = vshrl.u32 %v6645_v6, 23  ;;  %v6518_v45 = vxor.u32 2147483648, %v6517_v31 }
 0x637   :  { %v6624_v53 = vsub.s32 4, %v15118_v15  ;;  %v810_v57 = vshll.u32 %v15299_v49, 30  ;;  %v861_v60 = vadd.s32 1, %v7824_v14  ;;  %v858_v2 = vand.u32 8388607, %v17380_v26 }
 0x638   :  { %v15307_v4 = vmul.f32 %v6620_v54, %v6618_v28  ;;  %v17379_v33 = vand.u32 2147483647, %v15275_v21  ;;  %v15313_v41 = vadd.f32 %v14840_v51, %v5788_v23  ;;  %8731 = vcosq.f32 %v6314_v46 }
 0x639   :  { %v15315_v17 = vsub.s32 %v807_v59, %v810_v57  ;;  %vm862_vm15 = vcmp.gt.s32.totalorder %v861_v60, 0  ;;  %v8042_v48 = vadd.s32 4294967169, %v6646_v43  ;;  %v15320_v32 = vsel %vm18110_vm9, %v6312_v35, %v14993_v18 }
 0x63a   :  { %18109 = vst [vmem:[#allocation140_spill] sm:$0xff] %v15313_v41  ;;  %8733 = vsinq.f32 %v6314_v46  ;;  %v15325_v22 = vsel %vm6436_vm8, %v6520_v44, %v15051_v27  ;;  %v863_v11 = vsel %vm862_vm15, %v861_v60, 0  ;;  %v6519_v51 = vsel %vm6436_vm8, %v6518_v45, %v6517_v31 }
 0x63b   :  { %18111 = vst [vmem:[#allocation152_spill] sm:$0xff] %v15325_v22  ;;  %v15332_v40 = vsel %vm17381_vm4, %v6624_v53, %v15118_v15  ;;  %v813_v8 = vsub.s32 0, %v15315_v17  ;;  %v865_v13 = vand.u32 31, %v863_v11  ;;  %v6622_v18 = vxor.u32 2147483648, %v15307_v4 }
 0x63c   :  { %18112 = vst [vmem:[#allocation151_spill] sm:$0xff] %v15332_v40  ;;  %v859_v59 = vor.u32 8388608, %v858_v2  ;;  %v15338_v19 = vand.u32 8388607, %v17379_v33  ;;  %v6652_v20 = vadd.s32 1, %v8042_v48  ;;  %v6853_v56 = vand.u32 2139095040, %v15313_v41 }
 0x63d   :  { %v7821_v12 = vmin.u32 %v813_v8, %v15315_v17  ;;  %v866_v52 = vsub.s32 32, %v865_v13  ;;  %v864_v15 = vshrl.u32 %v863_v11, 5  ;;  %v868_v39 = vshll.u32 %v17463_v61, %v865_v13  ;;  %v15346_v5 = vpop.eup %8727 }
 0x63e   :  { %v871_v42 = vshll.u32 %v17511_v34, %v865_v13  ;;  %v874_v31 = vshll.u32 %v17475_v29, %v865_v13  ;;  %v877_v23 = vshll.u32 %v17510_v30, %v865_v13  ;;  %v18113_v35 = vand.u32 2147483647, %v14861_v62 }
 0x63f   :  { %v815_v58 = vclz %v7821_v12  ;;  %v869_v28 = vshrl.u32 %v17511_v34, %v866_v52  ;;  %v872_v6 = vshrl.u32 %v17475_v29, %v866_v52  ;;  %v18114_v14 = vmov 0 }
 0x640   :  { %vm15353_vm8 = vcmp.le.f32.partialorder %v18113_v35, 0.7853982  ;;  %v875_v46 = vshrl.u32 %v17510_v30, %v866_v52  ;;  %v878_v44 = vshrl.u32 %v17472_v10, %v866_v52  ;;  %v880_v54 = vshll.u32 %v17472_v10, %v865_v13 }
 0x641   :  { %v18115_v14 = vsel %vm15353_vm8, 4294967295, %v18114_v14  ;;  %v881_v43 = vshrl.u32 %v17473_v55, %v866_v52  ;;  %v7822_v45 = vadd.s32 4294967294, %v815_v58  ;;  %v870_v53 = vor.u32 %v869_v28, %v868_v39  ;;  %v15361_v2 = vpop.eup %8729 }
 0x642   :  { %18116 = vst [vmem:[#allocation15_spill] sm:$0xff] %v18115_v14  ;;  %v873_v57 = vor.u32 %v872_v6, %v871_v42  ;;  %v899_v60 = vshll.u32 %v859_v59, 8  ;;  %v876_v48 = vor.u32 %v875_v46, %v874_v31  ;;  %v879_v11 = vor.u32 %v878_v44, %v877_v23 }
 0x643   :  { %v882_v8 = vor.u32 %v881_v43, %v880_v54  ;;  %v6854_v12 = vshrl.u32 %v6853_v56, 23  ;;  %vm7823_vm1 = vcmp.lt.s32.totalorder %v7822_v45, 0  ;;  %vm883_vm11 = vcmp.lt.s32.totalorder %v864_v15, 1 }
 0x644   :  { %vm886_vm15 = vcmp.lt.s32.totalorder %v864_v15, 4  ;;  %vm6653_vm9 = vcmp.gt.s32.totalorder %v6652_v20, 0  ;;  %v867_v35 = vshrl.u32 %v17463_v61, %v866_v52  ;;  %v891_v13 = vsel %vm883_vm11, %v870_v53, %v873_v57 }
 0x645   :  { %v888_v33 = vsel %vm886_vm15, %v876_v48, 2102212464  ;;  %v892_v26 = vsel %vm886_vm15, %v879_v11, 920167782  ;;  %vm884_vm4 = vcmp.lt.s32.totalorder %v864_v15, 2  ;;  %vm885_vm6 = vcmp.lt.s32.totalorder %v864_v15, 3  ;;  %v15365_v42 = vpop.eup %8731 }
 0x646   :  { %v895_v39 = vsel %vm883_vm11, %v873_v57, %v876_v48  ;;  %v6650_v59 = vor.u32 8388608, %v15338_v19  ;;  %18117 = vst [vmem:[#allocation43_spill] sm:$0xff] %v15365_v42  ;;  %v15367_v31 = vsel %vm7823_vm1, 0, %v7822_v45  ;;  %v887_v58 = vsel %vm883_vm11, %v867_v35, %v870_v53  ;;  %v5760_v45 = vpop.permute.xlu1 %5759 }
 0x647   :  { %v893_v56 = vsel %vm885_vm6, %v876_v48, %v892_v26  ;;  %v896_v28 = vsel %vm886_vm15, %v882_v8, 1326507024  ;;  %v15369_v6 = vpop.eup %8733  ;;  %v889_v23 = vsel %vm885_vm6, %v873_v57, %v888_v33  ;;  %v6654_v44 = vsel %vm6653_vm9, %v6652_v20, 0 }
 0x648   :  { %18118 = vst [vmem:[#allocation27_spill] sm:$0xff] %v15369_v6  ;;  %v894_v52 = vsel %vm884_vm4, %v891_v13, %v893_v56  ;;  %v897_v46 = vsel %vm885_vm6, %v879_v11, %v896_v28  ;;  %v8050_v19 = vadd.s32 4294967169, %v6854_v12  ;;  %v15381_v26 = vsel %vm15353_vm8, %v14861_v62, %v6519_v51 }
 0x649   :  { %v898_v54 = vsel %vm884_vm4, %v895_v39, %v897_v46  ;;  %v15374_v43 = vmul.u32.u64.low %v899_v60, %v894_v52  ;;  %v15375_v27 = vmul.u32.u64.high %v899_v60, %v894_v52, %v15374_v43  ;;  %v819_v33 = vsub.s32 32, %v15367_v31  ;;  %v15402_v39 = vld [vmem:[#allocation4] ss:$0 sm:$0xff] }
 0x64a   :  { %v15384_v53 = vmul.u32.u64.low %v899_v60, %v898_v54  ;;  %v15385_v57 = vmul.u32.u64.high %v899_v60, %v898_v54, %v15384_v53  ;;  %vm18119_vm6 = vcmp.lt.s32.totalorder %v14928_v16, 0  ;;  %v803_v48 = vadd.s32 %v15235_v1, %v15241_v3 }
 0x64b   :  { %v15390_v20 = vsel %vm18119_vm6, %v6622_v18, %v15307_v4  ;;  %v890_v11 = vsel %vm884_vm4, %v887_v58, %v889_v23  ;;  %v6656_v8 = vand.u32 31, %v6654_v44  ;;  %v823_v12 = vsub.s32 4294967266, %v15367_v31 }
 0x64c   :  { %v15396_v51 = vshll.u32 %v6650_v59, 8  ;;  %v18120_v35 = vand.u32 2147483647, %v15313_v41  ;;  %v5789_v56 = vmul.f32 %v15402_v39, %v5760_v45  ;;  %v909_v4 = vadd.s32 1, %v15375_v27 }
 0x64d   :  { %v6655_v18 = vshrl.u32 %v6654_v44, 5  ;;  %v6657_v28 = vsub.s32 32, %v6656_v8  ;;  %v6860_v1 = vadd.s32 1, %v8050_v19  ;;  %v821_v3 = vshrl.u32 %v803_v48, %v819_v33 }
 0x64e   :  { %v15400_v13 = vand.u32 8388607, %v18120_v35  ;;  %v906_v15 = vmul.u32 %v899_v60, %v890_v11  ;;  %vm908_vm4 = vc.u32 %v15385_v57, %v15374_v43  ;;  %v6659_v59 = vshll.u32 %v17463_v61, %v6656_v8 }
 0x64f   :  { %v910_v58 = vsel %vm908_vm4, %v909_v4, %v15375_v27  ;;  %v6660_v23 = vshrl.u32 %v17511_v34, %v6657_v28  ;;  %v6662_v52 = vshll.u32 %v17511_v34, %v6656_v8  ;;  %v6663_v46 = vshrl.u32 %v17475_v29, %v6657_v28 }
 0x650   :  { %v824_v54 = vadd.s32 127, %v823_v12  ;;  %v911_v45 = vadd.s32 %v910_v58, %v906_v15  ;;  %v6665_v44 = vshll.u32 %v17475_v29, %v6656_v8  ;;  %v6666_v19 = vshrl.u32 %v17510_v30, %v6657_v28 }
 0x651   :  { %v6661_v60 = vor.u32 %v6660_v23, %v6659_v59  ;;  %v6664_v33 = vor.u32 %v6663_v46, %v6662_v52  ;;  %v6668_v53 = vshll.u32 %v17510_v30, %v6656_v8  ;;  %v6669_v48 = vshrl.u32 %v17472_v10, %v6657_v28 }
 0x652   :  { %v912_v11 = vadd.s32 536870912, %v911_v45  ;;  %v6667_v27 = vor.u32 %v6666_v19, %v6665_v44  ;;  %v6671_v35 = vshll.u32 %v17472_v10, %v6656_v8  ;;  %v6672_v4 = vshrl.u32 %v17473_v55, %v6657_v28 }
 0x653   :  { %v6670_v40 = vor.u32 %v6669_v48, %v6668_v53  ;;  %vm6674_vm1 = vcmp.lt.s32.totalorder %v6655_v18, 1  ;;  %vm6677_vm11 = vcmp.lt.s32.totalorder %v6655_v18, 4  ;;  %vm6861_vm15 = vcmp.gt.s32.totalorder %v6860_v1, 0 }
 0x654   :  { %v15419_v12 = vshrl.u32 %v912_v11, 30  ;;  %v6658_v15 = vshrl.u32 %v17463_v61, %v6657_v28  ;;  %v6673_v59 = vor.u32 %v6672_v4, %v6671_v35  ;;  %v6679_v58 = vsel %vm6677_vm11, %v6667_v27, 2102212464 }
 0x655   :  { %v825_v23 = vshll.u32 %v824_v54, 23  ;;  %vm6676_vm9 = vcmp.lt.s32.totalorder %v6655_v18, 3  ;;  %v6682_v52 = vsel %vm6674_vm1, %v6661_v60, %v6664_v33  ;;  %v6683_v46 = vsel %vm6677_vm11, %v6670_v40, 920167782 }
 0x656   :  { %v914_v8 = vshll.u32 %v15419_v12, 30  ;;  %v6678_v44 = vsel %vm6674_vm1, %v6658_v15, %v6661_v60  ;;  %v6680_v19 = vsel %vm6676_vm9, %v6664_v33, %v6679_v58  ;;  %v6686_v53 = vsel %vm6674_vm1, %v6664_v33, %v6667_v27 }
 0x657   :  { %vm6675_vm6 = vcmp.lt.s32.totalorder %v6655_v18, 2  ;;  %v6684_v48 = vsel %vm6676_vm9, %v6667_v27, %v6683_v46  ;;  %v6687_v11 = vsel %vm6677_vm11, %v6673_v59, 1326507024  ;;  %v6862_v62 = vsel %vm6861_vm15, %v6860_v1, 0 }
 0x658   :  { %v820_v28 = vshll.u32 %v15315_v17, %v15367_v31  ;;  %v15429_v35 = vsub.s32 %v911_v45, %v914_v8  ;;  %v6685_v54 = vsel %vm6675_vm6, %v6682_v52, %v6684_v48  ;;  %v6688_v4 = vsel %vm6676_vm9, %v6670_v40, %v6687_v11  ;;  %v15442_v45 = vld [vmem:[#allocation4 + $0x1] ss:$0 sm:$0xff] }
 0x659   :  { %v6681_v14 = vsel %vm6675_vm6, %v6678_v44, %v6680_v19  ;;  %v6689_v22 = vsel %vm6675_vm6, %v6686_v53, %v6688_v4  ;;  %v15432_v42 = vmul.u32.u64.low %v15396_v51, %v6685_v54  ;;  %v15433_v60 = vmul.u32.u64.high %v15396_v51, %v6685_v54, %v15432_v42 }
 0x65a   :  { %v917_v33 = vsub.s32 0, %v15429_v35  ;;  %v15438_v18 = vmul.u32.u64.low %v15396_v51, %v6689_v22  ;;  %v15439_v27 = vmul.u32.u64.high %v15396_v51, %v6689_v22, %v15438_v18  ;;  %v6864_v1 = vand.u32 31, %v6862_v62 }
 0x65b   :  { %v822_v15 = vor.u32 %v821_v3, %v820_v28  ;;  %v826_v17 = vor.u32 4788187, %v825_v23  ;;  %v6858_v31 = vor.u32 8388608, %v15400_v13  ;;  %v15445_v40 = vadd.f32 %v15442_v45, %v5789_v56 }
 0x65c   :  { %v7825_v59 = vmin.u32 %v917_v33, %v15429_v35  ;;  %v6697_v58 = vmul.u32 %v15396_v51, %v6681_v14  ;;  %v15449_v52 = vshrl.u32 %v6862_v62, 5  ;;  %v6865_v46 = vsub.s32 32, %v6864_v1 }
 0x65d   :  { %18121 = vst [vmem:[#allocation21_spill] sm:$0xff] %v15445_v40  ;;  %v6700_v22 = vadd.s32 1, %v15433_v60  ;;  %v6867_v8 = vshll.u32 %v17463_v61, %v6864_v1  ;;  %v6870_v3 = vshll.u32 %v17511_v34, %v6864_v1  ;;  %v6873_v13 = vshll.u32 %v17475_v29, %v6864_v1 }
 0x65e   :  { %v919_v23 = vclz %v7825_v59  ;;  %vm6699_vm4 = vc.u32 %v15439_v27, %v15432_v42  ;;  %v6876_v56 = vshll.u32 %v17510_v30, %v6864_v1  ;;  %v6879_v44 = vshll.u32 %v17472_v10, %v6864_v1 }
 0x65f   :  { %v6701_v62 = vsel %vm6699_vm4, %v6700_v22, %v15433_v60  ;;  %v6868_v14 = vshrl.u32 %v17511_v34, %v6865_v46  ;;  %v6871_v51 = vshrl.u32 %v17475_v29, %v6865_v46  ;;  %v6874_v19 = vshrl.u32 %v17510_v30, %v6865_v46 }
 0x660   :  { %v7826_v53 = vadd.s32 4294967294, %v919_v23  ;;  %v6702_v48 = vadd.s32 %v6701_v62, %v6697_v58  ;;  %v6877_v11 = vshrl.u32 %v17472_v10, %v6865_v46  ;;  %v6880_v28 = vshrl.u32 %v17473_v55, %v6865_v46 }
 0x661   :  { %v6869_v54 = vor.u32 %v6868_v14, %v6867_v8  ;;  %v6872_v4 = vor.u32 %v6871_v51, %v6870_v3  ;;  %v6875_v33 = vor.u32 %v6874_v19, %v6873_v13  ;;  %v17391_v18 = vand.u32 2147483647, %v15445_v40 }
 0x662   :  { %vm7827_vm1 = vcmp.lt.s32.totalorder %v7826_v53, 0  ;;  %v6703_v1 = vadd.s32 536870912, %v6702_v48  ;;  %v6878_v60 = vor.u32 %v6877_v11, %v6876_v56  ;;  %v6881_v59 = vor.u32 %v6880_v28, %v6879_v44 }
 0x663   :  { %v827_v22 = vand.u32 2147483647, %v826_v17  ;;  %v829_v6 = vcvt.s32.f32 %v822_v15  ;;  %v922_v25 = vsel %vm7827_vm1, 0, %v7826_v53  ;;  %v6898_v63 = vshll.u32 %v6858_v31, 8 }
 0x664   :  { %v18122_v23 = vand.u32 2147483647, %v14928_v16  ;;  %v18123_v58 = vmov 0  ;;  %v907_v8 = vadd.s32 %v15374_v43, %v15385_v57  ;;  %v927_v3 = vsub.s32 4294967266, %v922_v25 }
 0x665   :  { %v15474_v13 = vshrl.u32 %v6703_v1, 30  ;;  %vm6885_vm15 = vcmp.lt.s32.totalorder %v15449_v52, 4  ;;  %vm6882_vm9 = vcmp.lt.s32.totalorder %v15449_v52, 1  ;;  %vm6884_vm6 = vcmp.lt.s32.totalorder %v15449_v52, 3 }
 0x666   :  { %vm15468_vm11 = vcmp.le.f32.partialorder %v18122_v23, 0.7853982  ;;  %v6891_v15 = vsel %vm6885_vm15, %v6878_v60, 920167782  ;;  %v6895_v17 = vsel %vm6885_vm15, %v6881_v59, 1326507024  ;;  %v6890_v44 = vsel %vm6882_vm9, %v6869_v54, %v6872_v4 }
 0x667   :  { %v18124_v58 = vsel %vm15468_vm11, 4294967295, %v18123_v58  ;;  %v928_v31 = vadd.s32 127, %v927_v3  ;;  %v6705_v56 = vshll.u32 %v15474_v13, 30  ;;  %v6894_v43 = vsel %vm6882_vm9, %v6872_v4, %v6875_v33 }
 0x668   :  { %18125 = vst [vmem:[#allocation116_spill] sm:$0xff] %v18124_v58  ;;  %v6887_v57 = vsel %vm6885_vm15, %v6875_v33, 2102212464  ;;  %v6892_v62 = vsel %vm6884_vm6, %v6875_v33, %v6891_v15  ;;  %v6896_v14 = vsel %vm6884_vm6, %v6878_v60, %v6895_v17  ;;  %v6957_v51 = vand.u32 2139095040, %v15445_v40 }
 0x669   :  { %v923_v19 = vsub.s32 32, %v922_v25  ;;  %v15489_v53 = vsub.s32 %v6702_v48, %v6705_v56  ;;  %v6866_v11 = vshrl.u32 %v17463_v61, %v6865_v46  ;;  %vm6883_vm4 = vcmp.lt.s32.totalorder %v15449_v52, 2 }
 0x66a   :  { %v830_v28 = vmul.f32 %v829_v6, %v827_v22  ;;  %v6893_v1 = vsel %vm6883_vm4, %v6890_v44, %v6892_v62  ;;  %v6897_v59 = vsel %vm6883_vm4, %v6894_v43, %v6896_v14  ;;  %v6958_v33 = vshrl.u32 %v6957_v51, 23 }
 0x66b   :  { %v929_v23 = vshll.u32 %v928_v31, 23  ;;  %v6708_v60 = vsub.s32 0, %v15489_v53  ;;  %v6886_v3 = vsel %vm6882_vm9, %v6866_v11, %v6869_v54  ;;  %v6888_v48 = vsel %vm6884_vm6, %v6872_v4, %v6887_v57 }
 0x66c   :  { %v15502_v46 = vmul.u32.u64.low %v6898_v63, %v6897_v59  ;;  %v15503_v15 = vmul.u32.u64.high %v6898_v63, %v6897_v59, %v15502_v46  ;;  %v15505_v6 = vmul.u32.u64.low %v6898_v63, %v6893_v1  ;;  %v15506_v22 = vmul.u32.u64.high %v6898_v63, %v6893_v1, %v15505_v6 }
 0x66d   :  { %8735 = vcosq.f32 %v15381_v26  ;;  %v925_v17 = vshrl.u32 %v907_v8, %v923_v19  ;;  %v8043_v56 = vmin.u32 %v6708_v60, %v15489_v53  ;;  %v8054_v31 = vadd.s32 4294967169, %v6958_v33  ;;  %v18130_v46 = vld [vmem:[#allocation55_spill] sm:$0xff] }
 0x66e   :  { %v6626_v54 = vsel %vm15468_vm11, %v14928_v16, %v15390_v20  ;;  %v831_v44 = vxor.u32 2147483648, %v830_v28  ;;  %v924_v4 = vshll.u32 %v15429_v35, %v922_v25  ;;  %v6889_v43 = vsel %vm6883_vm4, %v6886_v3, %v6888_v48 }
 0x66f   :  { %v930_v57 = vor.u32 4788187, %v929_v23  ;;  %v6710_v62 = vclz %v8043_v56  ;;  %v6961_v14 = vand.u32 8388607, %v17391_v18  ;;  %v6964_v8 = vadd.s32 1, %v8054_v31 }
 0x670   :  { %8737 = vsinq.f32 %v15381_v26  ;;  %vm17398_vm1 = vcmp.lt.s32.totalorder %v15128_v50, 0  ;;  %vm6907_vm15 = vc.u32 %v15503_v15, %v15505_v6  ;;  %v6908_v20 = vadd.s32 1, %v15506_v22 }
 0x671   :  { %v926_v51 = vor.u32 %v925_v17, %v924_v4  ;;  %v8044_v19 = vadd.s32 4294967294, %v6710_v62  ;;  %v6905_v25 = vmul.u32 %v6898_v63, %v6889_v43  ;;  %vm6965_vm9 = vcmp.gt.s32.totalorder %v6964_v8, 0 }
 0x672   :  { %8739 = vcosq.f32 %v6626_v54  ;;  %v832_v35 = vsel %vm17398_vm1, %v831_v44, %v830_v28  ;;  %v6909_v52 = vsel %vm6907_vm15, %v6908_v20, %v15506_v22  ;;  %v6966_v11 = vsel %vm6965_vm9, %v6964_v8, 0  ;;  %v18132_v44 = vld [vmem:[#allocation159_spill] sm:$0xff] }
 0x673   :  { %v931_v1 = vand.u32 2147483647, %v930_v57  ;;  %vm8045_vm6 = vcmp.lt.s32.totalorder %v8044_v19, 0  ;;  %v6910_v26 = vadd.s32 %v6909_v52, %v6905_v25  ;;  %v6962_v59 = vor.u32 8388608, %v6961_v14  ;;  %v18133_v14 = vld [vmem:[#allocation158_spill] sm:$0xff] }
 0x674   :  { %8741 = vsinq.f32 %v6626_v54  ;;  %v18126_v33 = vand.u32 2147483647, %v15128_v50  ;;  %v18127_v23 = vmov 0  ;;  %v6968_v60 = vand.u32 31, %v6966_v11 }
 0x675   :  { %v933_v3 = vcvt.s32.f32 %v926_v51  ;;  %v6698_v48 = vadd.s32 %v15432_v42, %v15439_v27  ;;  %v2920_v17 = vsel %vm13841_vm10, 0, %v18130_v46  ;;  %v15543_v56 = vsel %vm8045_vm6, 0, %v8044_v19 }
 0x676   :  { %vm15528_vm4 = vcmp.le.f32.partialorder %v18126_v33, 0.7853982  ;;  %v6911_v31 = vadd.s32 536870912, %v6910_v26  ;;  %v6969_v54 = vsub.s32 32, %v6968_v60  ;;  %v15549_v57 = vadd.s32 %v15505_v6, %v15503_v15 }
 0x677   :  { %v18128_v23 = vsel %vm15528_vm4, 4294967295, %v18127_v23  ;;  %v15536_v28 = vsel %vm15528_vm4, %v15128_v50, %v832_v35  ;;  %v15546_v43 = vmul.f32 %v933_v3, %v931_v1  ;;  %v15551_v62 = vshll.u32 %v6962_v59, 8 }
 0x678   :  { %18129 = vst [vmem:[#allocation136_spill] sm:$0xff] %v18128_v23  ;;  %v15554_v42 = vshrl.u32 %v6911_v31, 30  ;;  %v6972_v27 = vshrl.u32 %v17511_v34, %v6969_v54  ;;  %v6975_v20 = vshrl.u32 %v17475_v29, %v6969_v54  ;;  %v2924_v51 = vadd.s32 3, %v2920_v17 }
 0x679   :  { %v6718_v19 = vsub.s32 4294967266, %v15543_v56  ;;  %v6971_v25 = vshll.u32 %v17463_v61, %v6968_v60  ;;  %v6974_v35 = vshll.u32 %v17511_v34, %v6968_v60  ;;  %v6978_v15 = vshrl.u32 %v17510_v30, %v6969_v54 }
 0x67a   :  { %v15562_v6 = vpop.eup %8735  ;;  %v6913_v52 = vshll.u32 %v15554_v42, 30  ;;  %v6967_v1 = vshrl.u32 %v6966_v11, 5  ;;  %v6977_v59 = vshll.u32 %v17475_v29, %v6968_v60  ;;  %v3024_v33 = vsel %vm14205_vm0, 0, %v14239_v0 }
 0x67b   :  { %v6973_v3 = vor.u32 %v6972_v27, %v6971_v25  ;;  %v6976_v46 = vor.u32 %v6975_v20, %v6974_v35  ;;  %v6980_v22 = vshll.u32 %v17510_v30, %v6968_v60  ;;  %v6981_v17 = vshrl.u32 %v17472_v10, %v6969_v54 }
 0x67c   :  { %v15571_v31 = vsub.s32 %v6910_v26, %v6913_v52  ;;  %v6979_v18 = vor.u32 %v6978_v15, %v6977_v59  ;;  %v6983_v63 = vshll.u32 %v17472_v10, %v6968_v60  ;;  %v6984_v8 = vshrl.u32 %v17473_v55, %v6969_v54 }
 0x67d   :  { %v15575_v11 = vpop.eup %8737  ;;  %v6714_v4 = vsub.s32 32, %v15543_v56  ;;  %v6719_v23 = vadd.s32 127, %v6718_v19  ;;  %v6982_v38 = vor.u32 %v6981_v17, %v6980_v22  ;;  %v2925_v0 = vand.u32 3, %v2924_v51 }
 0x67e   :  { %v6715_v27 = vshll.u32 %v15489_v53, %v15543_v56  ;;  %v6916_v20 = vsub.s32 0, %v15571_v31  ;;  %v6985_v25 = vor.u32 %v6984_v8, %v6983_v63  ;;  %vm6986_vm10 = vcmp.lt.s32.totalorder %v6967_v1, 1 }
 0x67f   :  { %v15581_v26 = vpop.eup %8739  ;;  %v6970_v60 = vshrl.u32 %v17463_v61, %v6969_v54  ;;  %vm6988_vm0 = vcmp.lt.s32.totalorder %v6967_v1, 3  ;;  %vm6989_vm15 = vcmp.lt.s32.totalorder %v6967_v1, 4  ;;  %v6994_v35 = vsel %vm6986_vm10, %v6973_v3, %v6976_v46 }
 0x680   :  { %18134 = vst [vmem:[#allocation55_spill] sm:$0xff] %v15581_v26  ;;  %v8051_v15 = vmin.u32 %v6916_v20, %v15571_v31  ;;  %v6991_v19 = vsel %vm6989_vm15, %v6979_v18, 2102212464  ;;  %v6995_v52 = vsel %vm6989_vm15, %v6982_v38, 920167782  ;;  %v6998_v51 = vsel %vm6986_vm10, %v6976_v46, %v6979_v18 }
 0x681   :  { %v15587_v59 = vpop.eup %8741  ;;  %v6720_v53 = vshll.u32 %v6719_v23, 23  ;;  %vm6987_vm9 = vcmp.lt.s32.totalorder %v6967_v1, 2  ;;  %v6996_v63 = vsel %vm6988_vm0, %v6979_v18, %v6995_v52  ;;  %v6999_v56 = vsel %vm6989_vm15, %v6985_v25, 1326507024  ;;  %v18139_v52 = vld [vmem:[#allocation40_spill] sm:$0xff] }
 0x682   :  { %18135 = vst [vmem:[#allocation26_spill] sm:$0xff] %v15587_v59  ;;  %v6918_v8 = vclz %v8051_v15  ;;  %v6990_v54 = vsel %vm6986_vm10, %v6970_v60, %v6973_v3  ;;  %v6997_v22 = vsel %vm6987_vm9, %v6994_v35, %v6996_v63  ;;  %v7000_v17 = vsel %vm6988_vm0, %v6982_v38, %v6999_v56  ;;  %v18136_v60 = vld [vmem:[#allocation153_spill] sm:$0xff]  ;;  %v155_v63 = vpop.permute.xlu1 %154 }
 0x683   :  { %v6992_v20 = vsel %vm6988_vm0, %v6976_v46, %v6991_v19  ;;  %v7001_v16 = vsel %vm6987_vm9, %v6998_v51, %v7000_v17  ;;  %v15596_v26 = vmul.u32.u64.low %v15551_v62, %v6997_v22  ;;  %v15597_v58 = vmul.u32.u64.high %v15551_v62, %v6997_v22, %v15596_v26 }
 0x684   :  { %v6716_v23 = vshrl.u32 %v6698_v48, %v6714_v4  ;;  %v8052_v59 = vadd.s32 4294967294, %v6918_v8  ;;  %v15601_v18 = vmul.u32.u64.low %v15551_v62, %v7001_v16  ;;  %v15602_v25 = vmul.u32.u64.high %v15551_v62, %v7001_v16, %v15601_v18 }
 0x685   :  { %v15604_v3 = vor.u32 4788187, %v6720_v53  ;;  %vm2927_vm6 = vcmp.eq.s32.totalorder %v2925_v0, 0  ;;  %vm2930_vm10 = vcmp.eq.s32.totalorder %v2925_v0, 2  ;;  %v3028_v38 = vadd.s32 3, %v3024_v33 }
 0x686   :  { %vm8053_vm15 = vcmp.lt.s32.totalorder %v8052_v59, 0  ;;  %v6993_v46 = vsel %vm6987_vm9, %v6990_v54, %v6992_v20  ;;  %vm2923_vm0 = vweird.f32 %v18136_v60  ;;  %v18137_v35 = vxor.u32 2147483648, %v18132_v44 }
 0x687   :  { %v18138_v48 = vxor.u32 2147483648, %v18133_v14  ;;  %v6921_v16 = vsel %vm8053_vm15, 0, %v8052_v59  ;;  %v7012_v19 = vadd.s32 1, %v15597_v58  ;;  %vm3027_vm1 = vweird.f32 %v18139_v52 }
 0x688   :  { %v2929_v15 = vsel %vm2927_vm6, %v18133_v14, %v18137_v35  ;;  %v3029_v51 = vand.u32 3, %v3028_v38  ;;  %v6717_v33 = vor.u32 %v6716_v23, %v6715_v27  ;;  %v6922_v53 = vsub.s32 32, %v6921_v16  ;;  %v18140_v23 = vld [vmem:[#allocation161_spill] sm:$0xff] }
 0x689   :  { %v2932_v4 = vsel %vm2930_vm10, %v18138_v48, %v18132_v44  ;;  %v6926_v1 = vsub.s32 4294967266, %v6921_v16  ;;  %vm2926_vm9 = vcmp.lt.s32.totalorder %v2925_v0, 2  ;;  %v6722_v56 = vand.u32 2147483647, %v15604_v3 }
 0x68a   :  { %v7009_v8 = vmul.u32 %v15551_v62, %v6993_v46  ;;  %vm7011_vm6 = vc.u32 %v15602_v25, %v15596_v26  ;;  %v2933_v14 = vsel %vm2926_vm9, %v2929_v15, %v2932_v4  ;;  %vm3031_vm10 = vcmp.eq.s32.totalorder %v3029_v51, 0 }
 0x68b   :  { %v6927_v44 = vadd.s32 127, %v6926_v1  ;;  %v7013_v59 = vsel %vm7011_vm6, %v7012_v19, %v15597_v58  ;;  %v3032_v54 = vxor.u32 2147483648, %v14438_v36  ;;  %v6924_v27 = vshrl.u32 %v15549_v57, %v6922_v53 }
 0x68c   :  { %v7014_v22 = vadd.s32 %v7013_v59, %v7009_v8  ;;  %v3035_v0 = vxor.u32 2147483648, %v14318_v47  ;;  %v200_v17 = vmul.f32 %v15402_v39, %v155_v63  ;;  %vm3034_vm15 = vcmp.eq.s32.totalorder %v3029_v51, 2 }
 0x68d   :  { %v6928_v20 = vshll.u32 %v6927_v44, 23  ;;  %v3033_v62 = vsel %vm3031_vm10, %v14318_v47, %v3032_v54  ;;  %v4826_v3 = vsel %vm14083_vm5, 0, %v18140_v23  ;;  %vm3030_vm9 = vcmp.lt.s32.totalorder %v3029_v51, 2 }
 0x68e   :  { %v7015_v38 = vadd.s32 536870912, %v7014_v22  ;;  %v3036_v58 = vsel %vm3034_vm15, %v3035_v0, %v14438_v36  ;;  %v15631_v46 = vadd.f32 %v15442_v45, %v200_v17  ;;  %v6923_v57 = vshll.u32 %v15571_v31, %v6921_v16  ;;  %v18146_v0 = vld [vmem:[#allocation164_spill] sm:$0xff] }
 0x68f   :  { %v6929_v35 = vor.u32 4788187, %v6928_v20  ;;  %v3037_v15 = vsel %vm3030_vm9, %v3033_v62, %v3036_v58  ;;  %v4830_v48 = vadd.s32 3, %v4826_v3  ;;  %vm853_vm6 = vcmp.lt.s32.totalorder %v15259_v9, 0  ;;  %v18147_v62 = vld [vmem:[#allocation71_spill] sm:$0xff] }
 0x690   :  { %18142 = vst [vmem:[#allocation159_spill] sm:$0xff] %v15631_v46  ;;  %v15635_v47 = vshrl.u32 %v7015_v38, 30  ;;  %v2934_v4 = vsel %vm2923_vm0, nan, %v2933_v14  ;;  %v3038_v19 = vsel %vm3027_vm1, nan, %v3037_v15  ;;  %v17399_v36 = vand.u32 2147483647, %v15631_v46 }
 0x691   :  { %v6925_v51 = vor.u32 %v6924_v27, %v6923_v57  ;;  %v3667_v53 = vpack.c.bf16 %v3038_v19, %v2934_v4  ;;  %v1166_v1 = vand.u32 2139095040, %v15631_v46  ;;  %v4831_v31 = vand.u32 3, %v4830_v48  ;;  %v18148_v38 = vld [vmem:[#allocation78_spill] sm:$0xff] }
 0x692   :  { %v18143_v16 = vsub.s32 4, %v15299_v49  ;;  %vm18144_vm5 = vcmp.lt.s32.totalorder %v15128_v50, 0  ;;  %8743 = vcosq.f32 %v15536_v28  ;;  %v6724_v60 = vcvt.s32.f32 %v6717_v33 }
 0x693   :  { %v7017_v52 = vshll.u32 %v15635_v47, 30  ;;  %v935_v8 = vxor.u32 2147483648, %v15546_v43  ;;  %v937_v14 = vsub.s32 4, %v15419_v12  ;;  %v6930_v44 = vand.u32 2147483647, %v6929_v35 }
 0x694   :  { %v15648_v63 = vsel %vm18144_vm5, %v18143_v16, %v15299_v49  ;;  %vm18145_vm1 = vcmask 261120   ;;  %v1167_v59 = vshrl.u32 %v1166_v1, 23  ;;  %v15655_v54 = vmul.f32 %v6724_v60, %v6722_v56 }
 0x695   :  { %8145 = vmatprep.mubr.msk.bf16.mxu0 %vm18145_vm1, %v3667_v53  ;;  %v15657_v27 = vsub.s32 %v7014_v22, %v7017_v52  ;;  %v1170_v49 = vand.u32 8388607, %v17399_v36  ;;  %v4834_v17 = vxor.u32 2147483648, %v18146_v0  ;;  %v6932_v33 = vcvt.s32.f32 %v6925_v51  ;;  %v18152_v36 = vld [vmem:[#allocation24_spill] sm:$0xff] }
 0x696   :  { %v7836_v20 = vadd.s32 4294967169, %v1167_v59  ;;  %vm4833_vm0 = vcmp.eq.s32.totalorder %v4831_v31, 0  ;;  %v4837_v23 = vxor.u32 2147483648, %v18147_v62  ;;  %vm4836_vm10 = vcmp.eq.s32.totalorder %v4831_v31, 2 }
 0x697   :  { %v7020_v18 = vsub.s32 0, %v15657_v27  ;;  %v4835_v3 = vsel %vm4833_vm0, %v18147_v62, %v4834_v17  ;;  %v4930_v22 = vsel %vm14220_vm14, 0, %v18148_v38  ;;  %8745 = vsinq.f32 %v15536_v28 }
 0x698   :  { %v15669_v58 = vmul.f32 %v6932_v33, %v6930_v44  ;;  %v1173_v57 = vadd.s32 1, %v7836_v20  ;;  %v4838_v35 = vsel %vm4836_vm10, %v4837_v23, %v18146_v0  ;;  %v1171_v48 = vor.u32 8388608, %v1170_v49  ;;  %v18150_v44 = vld [vmem:[#allocation18_spill] sm:$0xff]  ;;  %v18151_v33 = vld [vmem:[#allocation73_spill] sm:$0xff] }
 0x699   :  { %v8055_v15 = vmin.u32 %v7020_v18, %v15657_v27  ;;  %vm4832_vm15 = vcmp.lt.s32.totalorder %v4831_v31, 2  ;;  %v4934_v4 = vadd.s32 3, %v4930_v22  ;;  %v15676_v19 = vsel %vm853_vm6, %v935_v8, %v15546_v43  ;;  %v160_v31 = vpop.permute.xlu1 %159 }
 0x69a   :  { %v15681_v51 = vsel %vm853_vm6, %v937_v14, %v15419_v12  ;;  %vm1174_vm14 = vcmp.gt.s32.totalorder %v1173_v57, 0  ;;  %v4839_v28 = vsel %vm4832_vm15, %v4835_v3, %v4838_v35  ;;  %v6726_v53 = vxor.u32 2147483648, %v15655_v54 }
 0x69b   :  { %v7022_v1 = vclz %v8055_v15  ;;  %v1175_v16 = vsel %vm1174_vm14, %v1173_v57, 0  ;;  %v15684_v60 = vand.u32 3, %v4934_v4  ;;  %v7010_v43 = vadd.s32 %v15596_v26, %v15602_v25 }
 0x69c   :  { %v1177_v8 = vand.u32 31, %v1175_v16  ;;  %vm4829_vm9 = vweird.f32 %v18150_v44  ;;  %v15690_v12 = vshll.u32 %v1171_v48, 8  ;;  %v4938_v49 = vxor.u32 2147483648, %v14453_v7 }
 0x69d   :  { %v8056_v59 = vadd.s32 4294967294, %v7022_v1  ;;  %v15692_v14 = vsel %vm4829_vm9, nan, %v4839_v28  ;;  %v15695_v0 = vshrl.u32 %v1175_v16, 5  ;;  %v4941_v20 = vxor.u32 2147483648, %v18151_v33 }
 0x69e   :  { %v1178_v17 = vsub.s32 32, %v1177_v8  ;;  %v201_v62 = vmul.f32 %v15402_v39, %v160_v31  ;;  %v1180_v26 = vshll.u32 %v17463_v61, %v1177_v8  ;;  %v1183_v25 = vshll.u32 %v17511_v34, %v1177_v8 }
 0x69f   :  { %vm8057_vm6 = vcmp.lt.s32.totalorder %v8056_v59, 0  ;;  %v1186_v23 = vshll.u32 %v17475_v29, %v1177_v8  ;;  %vm4937_vm5 = vcmp.eq.s32.totalorder %v15684_v60, 0  ;;  %v15703_v18 = vpop.eup %8743  ;;  %v1189_v22 = vshll.u32 %v17510_v30, %v1177_v8 }
 0x6a0   :  { %v7025_v3 = vsel %vm8057_vm6, 0, %v8056_v59  ;;  %v1181_v38 = vshrl.u32 %v17511_v34, %v1178_v17  ;;  %v1184_v56 = vshrl.u32 %v17475_v29, %v1178_v17  ;;  %v1187_v15 = vshrl.u32 %v17510_v30, %v1178_v17 }
 0x6a1   :  { %v7026_v57 = vsub.s32 32, %v7025_v3  ;;  %v7030_v35 = vsub.s32 4294967266, %v7025_v3  ;;  %v1192_v48 = vshll.u32 %v17472_v10, %v1177_v8  ;;  %v1190_v1 = vshrl.u32 %v17472_v10, %v1178_v17 }
 0x6a2   :  { %v1182_v4 = vor.u32 %v1181_v38, %v1180_v26  ;;  %v1185_v28 = vor.u32 %v1184_v56, %v1183_v25  ;;  %v1193_v16 = vshrl.u32 %v17473_v55, %v1178_v17  ;;  %v1188_v59 = vor.u32 %v1187_v15, %v1186_v23 }
 0x6a3   :  { %v7028_v31 = vshrl.u32 %v7010_v43, %v7026_v57  ;;  %v7031_v44 = vadd.s32 127, %v7030_v35  ;;  %vm1195_vm10 = vcmp.lt.s32.totalorder %v15695_v0, 1  ;;  %v18153_v52 = vand.u32 2147483647, %v15259_v9 }
 0x6a4   :  { %v7027_v26 = vshll.u32 %v15657_v27, %v7025_v3  ;;  %v1191_v25 = vor.u32 %v1190_v1, %v1189_v22  ;;  %v1194_v38 = vor.u32 %v1193_v16, %v1192_v48  ;;  %vm1198_vm9 = vcmp.lt.s32.totalorder %v15695_v0, 4  ;;  %v15724_v56 = vpop.eup %8745  ;;  %v5764_v48 = vpop.permute.xlu1 %5763 }
 0x6a5   :  { %vm15718_vm14 = vcmp.le.f32.partialorder %v18153_v52, 0.7853982  ;;  %vm6644_vm6 = vcmp.lt.s32.totalorder %v15275_v21, 0  ;;  %v7032_v43 = vshll.u32 %v7031_v44, 23  ;;  %v1179_v23 = vshrl.u32 %v17463_v61, %v1178_v17 }
 0x6a6   :  { %vm1196_vm15 = vcmp.lt.s32.totalorder %v15695_v0, 2  ;;  %v1200_v52 = vsel %vm1198_vm9, %v1188_v59, 2102212464  ;;  %v7029_v57 = vor.u32 %v7028_v31, %v7027_v26  ;;  %vm1197_vm1 = vcmp.lt.s32.totalorder %v15695_v0, 3 }
 0x6a7   :  { %v1203_v27 = vsel %vm1195_vm10, %v1182_v4, %v1185_v28  ;;  %v1204_v3 = vsel %vm1198_vm9, %v1191_v25, 920167782  ;;  %v7033_v22 = vor.u32 4788187, %v7032_v43  ;;  %v1199_v35 = vsel %vm1195_vm10, %v1179_v23, %v1182_v4 }
 0x6a8   :  { %v1205_v15 = vsel %vm1197_vm1, %v1188_v59, %v1204_v3  ;;  %v1207_v17 = vsel %vm1195_vm10, %v1185_v28, %v1188_v59  ;;  %v18156_v1 = vand.u32 2147483647, %v15275_v21  ;;  %v18157_v16 = vmov 0 }
 0x6a9   :  { %v1201_v31 = vsel %vm1197_vm1, %v1185_v28, %v1200_v52  ;;  %v1206_v44 = vsel %vm1196_vm15, %v1203_v27, %v1205_v15  ;;  %v1208_v26 = vsel %vm1198_vm9, %v1194_v38, 1326507024  ;;  %v4939_v4 = vsel %vm4937_vm5, %v18151_v33, %v4938_v49 }
 0x6aa   :  { %vm15743_vm0 = vcmp.le.f32.partialorder %v18156_v1, 0.7853982  ;;  %v18160_v59 = vand.u32 2147483647, %v15313_v41  ;;  %v18161_v43 = vmov 0  ;;  %v1209_v3 = vsel %vm1197_vm1, %v1191_v25, %v1208_v26 }
 0x6ab   :  { %v18158_v16 = vsel %vm15743_vm0, 4294967295, %v18157_v16  ;;  %v7034_v23 = vand.u32 2147483647, %v7033_v22  ;;  %v15761_v28 = vmul.u32.u64.low %v15690_v12, %v1206_v44  ;;  %v15762_v52 = vmul.u32.u64.high %v15690_v12, %v1206_v44, %v15761_v28 }
 0x6ac   :  { %18159 = vst [vmem:[#allocation158_spill] sm:$0xff] %v18158_v16  ;;  %vm15756_vm10 = vcmp.le.f32.partialorder %v18160_v59, 0.7853982  ;;  %v1210_v38 = vsel %vm1196_vm15, %v1207_v17, %v1209_v3  ;;  %vm18164_vm9 = vcmp.eq.s32.totalorder %v15684_v60, 2  ;;  %v15771_v33 = vadd.f32 %v15442_v45, %v201_v62  ;;  %v5772_v59 = vpop.permute.xlu1 %5771 }
 0x6ad   :  { %v18162_v43 = vsel %vm15756_vm10, 4294967295, %v18161_v43  ;;  %v4942_v49 = vsel %vm18164_vm9, %v4941_v20, %v14453_v7  ;;  %v5790_v27 = vmul.f32 %v15402_v39, %v5764_v48  ;;  %v7036_v15 = vcvt.s32.f32 %v7029_v57 }
 0x6ae   :  { %18163 = vst [vmem:[#allocation153_spill] sm:$0xff] %v18162_v43  ;;  %18165 = vst [vmem:[#allocation40_spill] sm:$0xff] %v15771_v33  ;;  %v15775_v25 = vmul.u32.u64.low %v15690_v12, %v1210_v38  ;;  %v15776_v22 = vmul.u32.u64.high %v15690_v12, %v1210_v38, %v15775_v25  ;;  %vm18166_vm5 = vcmp.lt.s32.totalorder %v15684_v60, 2  ;;  %v1202_v17 = vsel %vm1196_vm15, %v1199_v35, %v1201_v31 }
 0x6af   :  { %v4943_v1 = vsel %vm18166_vm5, %v4939_v4, %v4942_v49  ;;  %vm18167_vm1 = vweird.f32 %v18152_v36  ;;  %v17401_v7 = vand.u32 2147483647, %v15771_v33  ;;  %v1270_v20 = vand.u32 2139095040, %v15771_v33 }
 0x6b0   :  { %v4944_v44 = vsel %vm18167_vm1, nan, %v4943_v1  ;;  %v939_v62 = vsel %vm15718_vm14, %v15259_v9, %v15676_v19  ;;  %vm17402_vm9 = vcmp.lt.s32.totalorder %v15445_v40, 0  ;;  %v1221_v60 = vadd.s32 1, %v15762_v52 }
 0x6b1   :  { %v5573_v57 = vpack.c.bf16 %v4944_v44, %v15692_v14  ;;  %v15794_v0 = vadd.f32 %v15442_v45, %v5790_v27  ;;  %v6727_v36 = vsel %vm6644_vm6, %v6726_v53, %v15655_v54  ;;  %v18169_v35 = vxor.u32 2147483648, %v15669_v58 }
 0x6b2   :  { %vm18170_vm15 = vcmp.lt.s32.totalorder %v15313_v41, 0  ;;  %v7037_v48 = vmul.f32 %v7036_v15, %v7034_v23  ;;  %v1271_v31 = vshrl.u32 %v1270_v20, 23  ;;  %v1218_v26 = vmul.u32 %v15690_v12, %v1202_v17 }
 0x6b3   :  { %18168 = vst [vmem:[#allocation161_spill] sm:$0xff] %v15794_v0  ;;  %v6935_v19 = vsel %vm18170_vm15, %v18169_v35, %v15669_v58  ;;  %vm1220_vm5 = vc.u32 %v15776_v22, %v15761_v28  ;;  %vm18171_vm1 = vcmask 261120   ;;  %v1274_v14 = vand.u32 8388607, %v17401_v7 }
 0x6b4   :  { %8165 = vmatprep.mubr.msk.bf16.mxu1 %vm18171_vm1, %v5573_v57  ;;  %v17400_v54 = vand.u32 2147483647, %v15794_v0  ;;  %8747 = vcosq.f32 %v939_v62  ;;  %v6728_v53 = vsub.s32 4, %v15474_v13  ;;  %v1222_v4 = vsel %vm1220_vm5, %v1221_v60, %v15762_v52 }
 0x6b5   :  { %v7840_v58 = vadd.s32 4294967169, %v1271_v31  ;;  %8749 = vsinq.f32 %v939_v62  ;;  %v6730_v12 = vsel %vm15743_vm0, %v15275_v21, %v6727_v36  ;;  %v6936_v23 = vsub.s32 4, %v15554_v42 }
 0x6b6   :  { %v1223_v3 = vadd.s32 %v1222_v4, %v1218_v26  ;;  %v15822_v38 = vsel %vm15756_vm10, %v15313_v41, %v6935_v19  ;;  %v7038_v49 = vxor.u32 2147483648, %v7037_v48  ;;  %v7061_v15 = vand.u32 2139095040, %v15794_v0 }
 0x6b7   :  { %v1277_v27 = vadd.s32 1, %v7840_v58  ;;  %v1275_v25 = vor.u32 8388608, %v1274_v14  ;;  %v15827_v1 = vand.u32 8388607, %v17400_v54  ;;  %v5792_v17 = vmul.f32 %v15402_v39, %v5772_v59 }
 0x6b8   :  { %v1224_v52 = vadd.s32 536870912, %v1223_v3  ;;  %v15833_v44 = vsel %vm6644_vm6, %v6728_v53, %v15474_v13  ;;  %8751 = vcosq.f32 %v6730_v12  ;;  %v7062_v20 = vshrl.u32 %v7061_v15, 23 }
 0x6b9   :  { %18172 = vst [vmem:[#allocation162_spill] sm:$0xff] %v15833_v44  ;;  %vm1278_vm15 = vcmp.gt.s32.totalorder %v1277_v27, 0  ;;  %8753 = vsinq.f32 %v6730_v12  ;;  %vm18173_vm5 = vcmp.lt.s32.totalorder %v15313_v41, 0  ;;  %v7039_v39 = vsel %vm17402_vm9, %v7038_v49, %v7037_v48 }
 0x6ba   :  { %v15838_v62 = vsel %vm18173_vm5, %v6936_v23, %v15554_v42  ;;  %v15840_v60 = vshrl.u32 %v1224_v52, 30  ;;  %v1279_v57 = vsel %vm1278_vm15, %v1277_v27, 0  ;;  %8755 = vcosq.f32 %v15822_v38 }
 0x6bb   :  { %18174 = vst [vmem:[#allocation164_spill] sm:$0xff] %v15838_v62  ;;  %v1281_v36 = vand.u32 31, %v1279_v57  ;;  %v15847_v19 = vshll.u32 %v1275_v25, 8  ;;  %v15851_v42 = vadd.f32 %v15442_v45, %v5792_v17  ;;  %v1280_v26 = vshrl.u32 %v1279_v57, 5 }
 0x6bc   :  { %v1226_v35 = vshll.u32 %v15840_v60, 30  ;;  %v8058_v4 = vadd.s32 4294967169, %v7062_v20  ;;  %v18176_v15 = vand.u32 2147483647, %v15445_v40  ;;  %v18177_v52 = vmov 0 }
 0x6bd   :  { %18175 = vst [vmem:[#allocation71_spill] sm:$0xff] %v15851_v42  ;;  %v1282_v14 = vsub.s32 32, %v1281_v36  ;;  %v1284_v53 = vshll.u32 %v17463_v61, %v1281_v36  ;;  %v1287_v48 = vshll.u32 %v17511_v34, %v1281_v36  ;;  %v1290_v59 = vshll.u32 %v17475_v29, %v1281_v36 }
 0x6be   :  { %v15854_v58 = vsub.s32 %v1223_v3, %v1226_v35  ;;  %v1293_v12 = vshll.u32 %v17510_v30, %v1281_v36  ;;  %v1296_v27 = vshll.u32 %v17472_v10, %v1281_v36  ;;  %vm15865_vm6 = vcmp.le.f32.partialorder %v18176_v15, 0.7853982 }
 0x6bf   :  { %v1285_v23 = vshrl.u32 %v17511_v34, %v1282_v14  ;;  %v1288_v49 = vshrl.u32 %v17475_v29, %v1282_v14  ;;  %v1291_v45 = vshrl.u32 %v17510_v30, %v1282_v14  ;;  %v18178_v52 = vsel %vm15865_vm6, 4294967295, %v18177_v52 }
 0x6c0   :  { %18179 = vst [vmem:[#allocation78_spill] sm:$0xff] %v18178_v52  ;;  %v1229_v3 = vsub.s32 0, %v15854_v58  ;;  %v1283_v25 = vshrl.u32 %v17463_v61, %v1282_v14  ;;  %v1294_v17 = vshrl.u32 %v17472_v10, %v1282_v14  ;;  %v1297_v20 = vshrl.u32 %v17473_v55, %v1282_v14 }
 0x6c1   :  { %v1286_v57 = vor.u32 %v1285_v23, %v1284_v53  ;;  %v1289_v35 = vor.u32 %v1288_v49, %v1287_v48  ;;  %v1292_v54 = vor.u32 %v1291_v45, %v1290_v59  ;;  %vm1299_vm1 = vcmp.lt.s32.totalorder %v1280_v26, 1  ;;  %v15873_v7 = vpop.eup %8747 }
 0x6c2   :  { %18180 = vst [vmem:[#allocation72_spill] sm:$0xff] %v15873_v7  ;;  %v7837_v36 = vmin.u32 %v1229_v3, %v15854_v58  ;;  %v1295_v15 = vor.u32 %v1294_v17, %v1293_v12  ;;  %v1298_v13 = vor.u32 %v1297_v20, %v1296_v27  ;;  %vm1300_vm15 = vcmp.lt.s32.totalorder %v1280_v26, 2  ;;  %v15876_v31 = vpop.eup %8749 }
 0x6c3   :  { %vm1301_vm5 = vcmp.lt.s32.totalorder %v1280_v26, 3  ;;  %vm1302_vm9 = vcmp.lt.s32.totalorder %v1280_v26, 4  ;;  %v1307_v41 = vsel %vm1299_vm1, %v1286_v57, %v1289_v35  ;;  %v1311_v43 = vsel %vm1299_vm1, %v1289_v35, %v1292_v54 }
 0x6c4   :  { %v1231_v62 = vclz %v7837_v36  ;;  %v1304_v21 = vsel %vm1302_vm9, %v1292_v54, 2102212464  ;;  %v1308_v14 = vsel %vm1302_vm9, %v1295_v15, 920167782  ;;  %v1312_v53 = vsel %vm1302_vm9, %v1298_v13, 1326507024 }
 0x6c5   :  { %v1303_v48 = vsel %vm1299_vm1, %v1283_v25, %v1286_v57  ;;  %v1309_v59 = vsel %vm1301_vm5, %v1292_v54, %v1308_v14  ;;  %v1313_v23 = vsel %vm1301_vm5, %v1295_v15, %v1312_v53  ;;  %v7068_v49 = vadd.s32 1, %v8058_v4  ;;  %v15878_v45 = vpop.eup %8751  ;;  %v18184_v15 = vld [vmem:[#allocation83_spill] sm:$0xff] }
 0x6c6   :  { %18181 = vst [vmem:[#allocation18_spill] sm:$0xff] %v15878_v45  ;;  %v7838_v3 = vadd.s32 4294967294, %v1231_v62  ;;  %v1305_v12 = vsel %vm1301_vm5, %v1289_v35, %v1304_v21  ;;  %v1310_v27 = vsel %vm1300_vm15, %v1307_v41, %v1309_v59  ;;  %v1314_v17 = vsel %vm1300_vm15, %v1311_v43, %v1313_v23  ;;  %v15882_v20 = vpop.eup %8753 }
 0x6c7   :  { %18182 = vst [vmem:[#allocation73_spill] sm:$0xff] %v15882_v20  ;;  %v15885_v16 = vmul.u32.u64.low %v15847_v19, %v1314_v17  ;;  %v15886_v36 = vmul.u32.u64.high %v15847_v19, %v1314_v17, %v15885_v16  ;;  %v15889_v13 = vmul.u32.u64.low %v15847_v19, %v1310_v27  ;;  %v15890_v25 = vmul.u32.u64.high %v15847_v19, %v1310_v27, %v15889_v13  ;;  %v15893_v54 = vpop.eup %8755 }
 0x6c8   :  { %18183 = vst [vmem:[#allocation24_spill] sm:$0xff] %v15893_v54  ;;  %8757 = vsinq.f32 %v15822_v38  ;;  %v1219_v21 = vadd.s32 %v15761_v28, %v15776_v22  ;;  %vm7839_vm9 = vcmp.lt.s32.totalorder %v7838_v3, 0  ;;  %vm7069_vm1 = vcmp.gt.s32.totalorder %v7068_v49, 0 }
 0x6c9   :  { %v15901_v41 = vsel %vm15865_vm6, %v15445_v40, %v7039_v39  ;;  %v1234_v16 = vsel %vm7839_vm9, 0, %v7838_v3  ;;  %v1306_v43 = vsel %vm1300_vm15, %v1303_v48, %v1305_v12  ;;  %v7070_v62 = vsel %vm7069_vm1, %v7068_v49, 0  ;;  %v18383_v8 = vld [vmem:[#allocation72_spill] sm:$0xff] }
 0x6ca   :  { %v1235_v4 = vsub.s32 32, %v1234_v16  ;;  %v1239_v57 = vsub.s32 4294967266, %v1234_v16  ;;  %vm1324_vm5 = vc.u32 %v15886_v36, %v15889_v13  ;;  %v1325_v28 = vadd.s32 1, %v15890_v25 }
 0x6cb   :  { %v7072_v22 = vand.u32 31, %v7070_v62  ;;  %v18186_v39 = vor.u32 8388608, %v15827_v1  ;;  %v1236_v26 = vshll.u32 %v15854_v58, %v1234_v16  ;;  %v1322_v23 = vmul.u32 %v15847_v19, %v1306_v43 }
 0x6cc   :  { %v1237_v48 = vshrl.u32 %v1219_v21, %v1235_v4  ;;  %v1240_v59 = vadd.s32 127, %v1239_v57  ;;  %v1326_v49 = vsel %vm1324_vm5, %v1325_v28, %v15890_v25  ;;  %v7071_v3 = vshrl.u32 %v7070_v62, 5 }
 0x6cd   :  { %v15913_v53 = vshll.u32 %v18186_v39, 8  ;;  %v7073_v12 = vsub.s32 32, %v7072_v22  ;;  %v7075_v27 = vshll.u32 %v17463_v61, %v7072_v22  ;;  %v1327_v35 = vadd.s32 %v1326_v49, %v1322_v23 }
 0x6ce   :  { %v1238_v17 = vor.u32 %v1237_v48, %v1236_v26  ;;  %v1241_v14 = vshll.u32 %v1240_v59, 23  ;;  %v7078_v54 = vshll.u32 %v17511_v34, %v7072_v22  ;;  %v7081_v58 = vshll.u32 %v17475_v29, %v7072_v22 }
 0x6cf   :  { %v7076_v1 = vshrl.u32 %v17511_v34, %v7073_v12  ;;  %v7079_v39 = vshrl.u32 %v17475_v29, %v7073_v12  ;;  %v7082_v21 = vshrl.u32 %v17510_v30, %v7073_v12  ;;  %v1328_v16 = vadd.s32 536870912, %v1327_v35 }
 0x6d0   :  { %v1242_v19 = vor.u32 4788187, %v1241_v14  ;;  %v7084_v25 = vshll.u32 %v17510_v30, %v7072_v22  ;;  %v7269_v43 = vand.u32 2139095040, %v15851_v42  ;;  %v7085_v28 = vshrl.u32 %v17472_v10, %v7073_v12 }
 0x6d1   :  { %v7077_v62 = vor.u32 %v7076_v1, %v7075_v27  ;;  %v7080_v4 = vor.u32 %v7079_v39, %v7078_v54  ;;  %v7083_v57 = vor.u32 %v7082_v21, %v7081_v58  ;;  %v15927_v48 = vshrl.u32 %v1328_v16, 30 }
 0x6d2   :  { %v1243_v26 = vand.u32 2147483647, %v1242_v19  ;;  %v7087_v59 = vshll.u32 %v17472_v10, %v7072_v22  ;;  %v7088_v23 = vshrl.u32 %v17473_v55, %v7073_v12  ;;  %v1245_v49 = vcvt.s32.f32 %v1238_v17 }
 0x6d3   :  { %v7086_v52 = vor.u32 %v7085_v28, %v7084_v25  ;;  %vm7090_vm15 = vcmp.lt.s32.totalorder %v7071_v3, 1  ;;  %v18187_v14 = vand.u32 2147483647, %v15851_v42  ;;  %vm1165_vm9 = vcmp.lt.s32.totalorder %v15631_v46, 0 }
 0x6d4   :  { %v1330_v54 = vshll.u32 %v15927_v48, 30  ;;  %v7074_v27 = vshrl.u32 %v17463_v61, %v7073_v12  ;;  %v7089_v1 = vor.u32 %v7088_v23, %v7087_v59  ;;  %vm7093_vm1 = vcmp.lt.s32.totalorder %v7071_v3, 4 }
 0x6d5   :  { %v7273_v45 = vand.u32 8388607, %v18187_v14  ;;  %v15936_v39 = vpop.eup %8757  ;;  %v1246_v58 = vmul.f32 %v1245_v49, %v1243_v26  ;;  %v7095_v22 = vsel %vm7093_vm1, %v7083_v57, 2102212464  ;;  %v7098_v21 = vsel %vm7090_vm15, %v7077_v62, %v7080_v4 }
 0x6d6   :  { %18188 = vst [vmem:[#allocation83_spill] sm:$0xff] %v15936_v39  ;;  %v7099_v17 = vsel %vm7093_vm1, %v7086_v52, 920167782  ;;  %v15939_v19 = vsub.s32 %v1327_v35, %v1330_v54  ;;  %vm7091_vm5 = vcmp.lt.s32.totalorder %v7071_v3, 2  ;;  %vm7092_vm6 = vcmp.lt.s32.totalorder %v7071_v3, 3 }
 0x6d7   :  { %v7102_v16 = vsel %vm7090_vm15, %v7080_v4, %v7083_v57  ;;  %v7094_v25 = vsel %vm7090_vm15, %v7074_v27, %v7077_v62  ;;  %v7100_v28 = vsel %vm7092_vm6, %v7083_v57, %v7099_v17  ;;  %v7103_v14 = vsel %vm7093_vm1, %v7089_v1, 1326507024 }
 0x6d8   :  { %v7270_v12 = vshrl.u32 %v7269_v43, 23  ;;  %v1333_v59 = vsub.s32 0, %v15939_v19  ;;  %v7096_v23 = vsel %vm7092_vm6, %v7080_v4, %v7095_v22  ;;  %v7101_v26 = vsel %vm7091_vm5, %v7098_v21, %v7100_v28 }
 0x6d9   :  { %v7104_v49 = vsel %vm7092_vm6, %v7086_v52, %v7103_v14  ;;  %v1247_v39 = vxor.u32 2147483648, %v1246_v58  ;;  %v15947_v35 = vmul.u32.u64.low %v15913_v53, %v7101_v26  ;;  %v15948_v54 = vmul.u32.u64.high %v15913_v53, %v7101_v26, %v15947_v35 }
 0x6da   :  { %v7105_v20 = vsel %vm7091_vm5, %v7102_v16, %v7104_v49  ;;  %v1249_v44 = vsub.s32 4, %v15840_v60  ;;  %v7841_v62 = vmin.u32 %v1333_v59, %v15939_v19  ;;  %8759 = vcosq.f32 %v15901_v41 }
 0x6db   :  { %v15954_v43 = vmul.u32.u64.low %v15913_v53, %v7105_v20  ;;  %v15955_v57 = vmul.u32.u64.high %v15913_v53, %v7105_v20, %v15954_v43  ;;  %v7097_v52 = vsel %vm7091_vm5, %v7094_v25, %v7096_v23  ;;  %v8066_v4 = vadd.s32 4294967169, %v7270_v12  ;;  %v18198_v23 = vld [vmem:[#allocation76_spill] sm:$0xff] }
 0x6dc   :  { %v18189_v27 = vsel %vm14336_vm3, 0, %v18184_v15  ;;  %v18190_v22 = vsub.s32 4, %v15635_v47  ;;  %vm18191_vm6 = vcmp.lt.s32.totalorder %v15445_v40, 0  ;;  %8761 = vsinq.f32 %v15901_v41 }
 0x6dd   :  { %v3132_v1 = vadd.s32 3, %v18189_v27  ;;  %v18193_v20 = vand.u32 2147483647, %v15631_v46  ;;  %v18194_v3 = vmov 0  ;;  %v1335_v17 = vclz %v7841_v62 }
 0x6de   :  { %v15968_v21 = vsel %vm18191_vm6, %v18190_v22, %v15635_v47  ;;  %v1248_v15 = vsel %vm1165_vm9, %v1247_v39, %v1246_v58  ;;  %v7116_v38 = vadd.s32 1, %v15948_v54  ;;  %v7274_v16 = vor.u32 8388608, %v7273_v45 }
 0x6df   :  { %18192 = vst [vmem:[#allocation79_spill] sm:$0xff] %v15968_v21  ;;  %vm15973_vm15 = vcmp.le.f32.partialorder %v18193_v20, 0.7853982  ;;  %v7276_v25 = vadd.s32 1, %v8066_v4  ;;  %v15983_v47 = vsel %vm1165_vm9, %v1249_v44, %v15840_v60  ;;  %v7842_v41 = vadd.s32 4294967294, %v1335_v17 }
 0x6e0   :  { %v18195_v3 = vsel %vm15973_vm15, 4294967295, %v18194_v3  ;;  %18197 = vst [vmem:[#allocation168_spill] sm:$0xff] %v15983_v47  ;;  %v7113_v28 = vmul.u32 %v15913_v53, %v7097_v52  ;;  %vm7115_vm3 = vc.u32 %v15955_v57, %v15947_v35  ;;  %v1323_v14 = vadd.s32 %v15889_v13, %v15886_v36  ;;  %v16098_v47 = vld [vmem:[#allocation4 + $0x1] ss:$0 sm:$0xff] }
 0x6e1   :  { %18196 = vst [vmem:[#allocation167_spill] sm:$0xff] %v18195_v3  ;;  %v7117_v39 = vsel %vm7115_vm3, %v7116_v38, %v15948_v54  ;;  %vm7277_vm1 = vcmp.gt.s32.totalorder %v7276_v25, 0  ;;  %v15991_v58 = vand.u32 3, %v3132_v1  ;;  %v15996_v45 = vsel %vm15973_vm15, %v15631_v46, %v1248_v15  ;;  %v18199_v54 = vld [vmem:[#allocation82_spill] sm:$0xff] }
 0x6e2   :  { %vm7843_vm9 = vcmp.lt.s32.totalorder %v7842_v41, 0  ;;  %v7118_v44 = vadd.s32 %v7117_v39, %v7113_v28  ;;  %v7278_v60 = vsel %vm7277_vm1, %v7276_v25, 0  ;;  %v15998_v59 = vshll.u32 %v7274_v16, 8 }
 0x6e3   :  { %v1338_v53 = vsel %vm7843_vm9, 0, %v7842_v41  ;;  %v7280_v12 = vand.u32 31, %v7278_v60  ;;  %v16003_v52 = vshrl.u32 %v7278_v60, 5  ;;  %8763 = vcosq.f32 %v15996_v45 }
 0x6e4   :  { %v1339_v36 = vsub.s32 32, %v1338_v53  ;;  %v1343_v13 = vsub.s32 4294967266, %v1338_v53  ;;  %v7119_v49 = vadd.s32 536870912, %v7118_v44  ;;  %v1340_v43 = vshll.u32 %v15939_v19, %v1338_v53 }
 0x6e5   :  { %v7281_v4 = vsub.s32 32, %v7280_v12  ;;  %v7283_v27 = vshll.u32 %v17463_v61, %v7280_v12  ;;  %v7286_v17 = vshll.u32 %v17511_v34, %v7280_v12  ;;  %v7289_v16 = vshll.u32 %v17475_v29, %v7280_v12 }
 0x6e6   :  { %v1341_v1 = vshrl.u32 %v1323_v14, %v1339_v36  ;;  %v1344_v22 = vadd.s32 127, %v1343_v13  ;;  %v16006_v20 = vshrl.u32 %v7119_v49, 30  ;;  %v7292_v39 = vshll.u32 %v17510_v30, %v7280_v12 }
 0x6e7   :  { %v7284_v15 = vshrl.u32 %v17511_v34, %v7281_v4  ;;  %v7287_v38 = vshrl.u32 %v17475_v29, %v7281_v4  ;;  %v7290_v25 = vshrl.u32 %v17510_v30, %v7281_v4  ;;  %v7282_v14 = vshrl.u32 %v17463_v61, %v7281_v4  ;;  %v16017_v13 = vpop.eup %8759 }
 0x6e8   :  { %v1342_v19 = vor.u32 %v1341_v1, %v1340_v43  ;;  %v1345_v41 = vshll.u32 %v1344_v22, 23  ;;  %v7121_v28 = vshll.u32 %v16006_v20, 30  ;;  %v7293_v36 = vshrl.u32 %v17472_v10, %v7281_v4  ;;  %18200 = vst [vmem:[#allocation76_spill] sm:$0xff] %v16017_v13 }
 0x6e9   :  { %v7285_v60 = vor.u32 %v7284_v15, %v7283_v27  ;;  %v7288_v53 = vor.u32 %v7287_v38, %v7286_v17  ;;  %v7291_v46 = vor.u32 %v7290_v25, %v7289_v16  ;;  %v16022_v43 = vpop.eup %8761  ;;  %v7295_v22 = vshll.u32 %v17472_v10, %v7280_v12 }
 0x6ea   :  { %v1346_v49 = vor.u32 4788187, %v1345_v41  ;;  %v1349_v62 = vcvt.s32.f32 %v1342_v19  ;;  %v16019_v26 = vsub.s32 %v7118_v44, %v7121_v28  ;;  %18201 = vst [vmem:[#allocation82_spill] sm:$0xff] %v16022_v43  ;;  %v7294_v1 = vor.u32 %v7293_v36, %v7292_v39  ;;  %v8533_v19 = vld [vmem:[#allocation6 + $0x8] sm:$0xff]   ;;  %v8534_v41 = vld [vmem:[#allocation6] sm:$0xff]  }
 0x6eb   :  { %v7296_v3 = vshrl.u32 %v17473_v55, %v7281_v4  ;;  %vm7298_vm6 = vcmp.lt.s32.totalorder %v16003_v52, 1  ;;  %vm7299_vm1 = vcmp.lt.s32.totalorder %v16003_v52, 2  ;;  %vm7300_vm9 = vcmp.lt.s32.totalorder %v16003_v52, 3  ;;  %8193 = vmatprep.subr.bf16.mxu1 %v8533_v19 }
 0x6ec   :  { %v1347_v27 = vand.u32 2147483647, %v1346_v49  ;;  %v7124_v17 = vsub.s32 0, %v16019_v26  ;;  %vm7301_vm5 = vcmp.lt.s32.totalorder %v16003_v52, 4  ;;  %v7302_v15 = vsel %vm7298_vm6, %v7282_v14, %v7285_v60  ;;  %v18202_v49 = vld [vmem:[#allocation49_spill] sm:$0xff]  ;;  %8194 = vmatpush3.bf16.msra.mxu1 %v8533_v19 }
 0x6ed   :  { %v7297_v44 = vor.u32 %v7296_v3, %v7295_v22  ;;  %v7306_v12 = vsel %vm7298_vm6, %v7285_v60, %v7288_v53  ;;  %v7303_v16 = vsel %vm7301_vm5, %v7291_v46, 2102212464  ;;  %v7307_v25 = vsel %vm7301_vm5, %v7294_v1, 920167782  ;;  %8195 = vmatprep.subr.bf16.mxu1 %v8534_v41  ;;  %v18210_v22 = vld [vmem:[#allocation165_spill] sm:$0xff] }
 0x6ee   :  { %v1350_v4 = vmul.f32 %v1349_v62, %v1347_v27  ;;  %v8059_v38 = vmin.u32 %v7124_v17, %v16019_v26  ;;  %v7304_v3 = vsel %vm7300_vm9, %v7288_v53, %v7303_v16  ;;  %v7308_v28 = vsel %vm7300_vm9, %v7291_v46, %v7307_v25 }
 0x6ef   :  { %v7310_v39 = vsel %vm7298_vm6, %v7288_v53, %v7291_v46  ;;  %v7311_v14 = vsel %vm7301_vm5, %v7297_v44, 1326507024  ;;  %v7309_v36 = vsel %vm7299_vm1, %v7306_v12, %v7308_v28  ;;  %v3232_v27 = vsel %vm14579_vm7, 0, %v18202_v49 }
 0x6f0   :  { %v1351_v60 = vxor.u32 2147483648, %v1350_v4  ;;  %v7126_v62 = vclz %v8059_v38  ;;  %v7305_v17 = vsel %vm7299_vm1, %v7302_v15, %v7304_v3  ;;  %v7312_v16 = vsel %vm7300_vm9, %v7294_v1, %v7311_v14  ;;  %v18204_v1 = vld [vmem:[#allocation31_spill] sm:$0xff]  ;;  %v5776_v14 = vpop.permute.xlu1 %5775  ;;  %8196 = vmatpush3.bf16.msra.mxu1 %v8534_v41 }
 0x6f1   :  { %v16054_v25 = vmul.u32.u64.low %v15998_v59, %v7309_v36  ;;  %v16055_v46 = vmul.u32.u64.high %v15998_v59, %v7309_v36, %v16054_v25  ;;  %v7114_v53 = vadd.s32 %v15947_v35, %v15955_v57  ;;  %v7313_v12 = vsel %vm7299_vm1, %v7310_v39, %v7312_v16  ;;  %v18207_v35 = vld [vmem:[#allocation56_spill] sm:$0xff]  ;;  %v16094_v41 = vld [vmem:[#allocation4] ss:$0 sm:$0xff] }
 0x6f2   :  { %v8060_v44 = vadd.s32 4294967294, %v7126_v62  ;;  %vm3138_vm7 = vcmp.eq.s32.totalorder %v15991_v58, 2  ;;  %v16064_v15 = vmul.u32.u64.low %v15998_v59, %v7313_v12  ;;  %v16065_v38 = vmul.u32.u64.high %v15998_v59, %v7313_v12, %v16064_v15 }
 0x6f3   :  { %v18205_v3 = vxor.u32 2147483648, %v18198_v23  ;;  %vm18206_vm6 = vcmp.eq.s32.totalorder %v15991_v58, 0  ;;  %v7321_v57 = vmul.u32 %v15998_v59, %v7305_v17  ;;  %v18208_v52 = vxor.u32 2147483648, %v18199_v54 }
 0x6f4   :  { %vm8061_vm3 = vcmp.lt.s32.totalorder %v8060_v44, 0  ;;  %v3236_v39 = vadd.s32 3, %v3232_v27  ;;  %vm18209_vm1 = vcmp.lt.s32.totalorder %v15771_v33, 0  ;;  %v7324_v49 = vadd.s32 1, %v16055_v46  ;;  %v18215_v27 = vld [vmem:[#allocation109_spill] sm:$0xff]  ;;  %v175_v21 = vpop.permute.xlu1 %174 }
 0x6f5   :  { %v3137_v19 = vsel %vm18206_vm6, %v18199_v54, %v18205_v3  ;;  %v3140_v28 = vsel %vm3138_vm7, %v18208_v52, %v18198_v23  ;;  %v1352_v62 = vsel %vm18209_vm1, %v1351_v60, %v1350_v4  ;;  %v7129_v36 = vsel %vm8061_vm3, 0, %v8060_v44 }
 0x6f6   :  { %v3240_v16 = vxor.u32 2147483648, %v18210_v22  ;;  %v18211_v12 = vand.u32 2147483647, %v15771_v33  ;;  %v18212_v15 = vmov 0  ;;  %v7130_v59 = vsub.s32 32, %v7129_v36 }
 0x6f7   :  { %v7134_v54 = vsub.s32 4294967266, %v7129_v36  ;;  %v3237_v23 = vand.u32 3, %v3236_v39  ;;  %v3243_v17 = vxor.u32 2147483648, %v18215_v27  ;;  %v7131_v3 = vshll.u32 %v16019_v26, %v7129_v36 }
 0x6f8   :  { %vm16084_vm6 = vcmp.le.f32.partialorder %v18211_v12, 0.7853982  ;;  %vm7323_vm3 = vc.u32 %v16065_v38, %v16054_v25  ;;  %vm18216_vm7 = vcmp.lt.s32.totalorder %v15991_v58, 2  ;;  %v5793_v60 = vmul.f32 %v16094_v41, %v5776_v14 }
 0x6f9   :  { %v18213_v15 = vsel %vm16084_vm6, 4294967295, %v18212_v15  ;;  %v3141_v4 = vsel %vm18216_vm7, %v3137_v19, %v3140_v28  ;;  %v7132_v44 = vshrl.u32 %v7114_v53, %v7130_v59  ;;  %v7135_v52 = vadd.s32 127, %v7134_v54 }
 0x6fa   :  { %18214 = vst [vmem:[#allocation49_spill] sm:$0xff] %v18213_v15  ;;  %v7325_v12 = vsel %vm7323_vm3, %v7324_v49, %v16055_v46  ;;  %vm3238_vm1 = vcmp.lt.s32.totalorder %v3237_v23, 2  ;;  %vm3239_vm9 = vcmp.eq.s32.totalorder %v3237_v23, 0  ;;  %vm3242_vm5 = vcmp.eq.s32.totalorder %v3237_v23, 2  ;;  %v18217_v46 = vld [vmem:[#allocation50_spill] sm:$0xff] }
 0x6fb   :  { %v7326_v39 = vadd.s32 %v7325_v12, %v7321_v57  ;;  %v16101_v26 = vadd.f32 %v16098_v47, %v5793_v60  ;;  %v7133_v36 = vor.u32 %v7132_v44, %v7131_v3  ;;  %v7136_v58 = vshll.u32 %v7135_v52, 23  ;;  %v18218_v49 = vld [vmem:[#allocation90_spill] sm:$0xff] }
 0x6fc   :  { %v3241_v19 = vsel %vm3239_vm9, %v18215_v27, %v3240_v16  ;;  %v3244_v28 = vsel %vm3242_vm5, %v3243_v17, %v18210_v22  ;;  %vm18219_vm3 = vnez %v18218_v49  ;;  %vm18220_vm7 = vweird.f32 %v18204_v1 }
 0x6fd   :  { %v7327_v14 = vadd.s32 536870912, %v7326_v39  ;;  %v3245_v53 = vsel %vm3238_vm1, %v3241_v19, %v3244_v28  ;;  %v17418_v59 = vand.u32 2147483647, %v16101_v26  ;;  %v5034_v57 = vsel %vm18219_vm3, 0, %v18217_v46 }
 0x6fe   :  { %v7137_v54 = vor.u32 4788187, %v7136_v58  ;;  %v3142_v23 = vsel %vm18220_vm7, nan, %v3141_v4  ;;  %vm18221_vm15 = vweird.f32 %v18207_v35  ;;  %v7373_v60 = vand.u32 2139095040, %v16101_v26 }
 0x6ff   :  { %v3246_v3 = vsel %vm18221_vm15, nan, %v3245_v53  ;;  %v1353_v16 = vsub.s32 4, %v15927_v48  ;;  %v7140_v22 = vcvt.s32.f32 %v7133_v36  ;;  %v16115_v27 = vshrl.u32 %v7327_v14, 30  ;;  %v18223_v36 = vld [vmem:[#allocation97_spill] sm:$0xff]  ;;  %v18224_v53 = vld [vmem:[#allocation95_spill] sm:$0xff] }
 0x700   :  { %v3668_v17 = vpack.c.bf16 %v3246_v3, %v3142_v23  ;;  %vm17427_vm5 = vcmp.lt.s32.totalorder %v15794_v0, 0  ;;  %v7138_v44 = vand.u32 2147483647, %v7137_v54  ;;  %v7374_v52 = vshrl.u32 %v7373_v60, 23 }
 0x701   :  { %v7377_v12 = vand.u32 8388607, %v17418_v59  ;;  %v5038_v1 = vadd.s32 3, %v5034_v57  ;;  %v16124_v35 = vsel %vm16084_vm6, %v15771_v33, %v1352_v62  ;;  %v7329_v4 = vshll.u32 %v16115_v27, 30  ;;  %v18227_v57 = vld [vmem:[#allocation89_spill] sm:$0xff] }
 0x702   :  { %vm18222_vm15 = vcmask 261120   ;;  %v5042_v58 = vxor.u32 2147483648, %v18223_v36  ;;  %v7141_v19 = vmul.f32 %v7140_v22, %v7138_v44  ;;  %v8070_v28 = vadd.s32 4294967169, %v7374_v52 }
 0x703   :  { %8146 = vmatmul.mubr.msk.bf16.gmra.mxu0 %vm18222_vm15, %v3668_v17  ;;  %v5039_v14 = vand.u32 3, %v5038_v1  ;;  %v5045_v46 = vxor.u32 2147483648, %v18224_v53  ;;  %8765 = vsinq.f32 %v15996_v45  ;;  %vm18225_vm9 = vcmp.lt.s32.totalorder %v15771_v33, 0  ;;  %v16178_v1 = vpop.eup %8763 }
 0x704   :  { %v16134_v49 = vsel %vm18225_vm9, %v1353_v16, %v15927_v48  ;;  %v16136_v62 = vsub.s32 %v7326_v39, %v7329_v4  ;;  %v5138_v23 = vsel %vm14603_vm12, 0, %v18227_v57  ;;  %8767 = vcosq.f32 %v16124_v35 }
 0x705   :  { %18226 = vst [vmem:[#allocation34_spill] sm:$0xff] %v16134_v49  ;;  %v7378_v60 = vor.u32 8388608, %v7377_v12  ;;  %v7380_v22 = vadd.s32 1, %v8070_v28  ;;  %v7142_v17 = vxor.u32 2147483648, %v7141_v19  ;;  %vm5041_vm1 = vcmp.eq.s32.totalorder %v5039_v14, 0 }
 0x706   :  { %v7332_v45 = vsub.s32 0, %v16136_v62  ;;  %vm5044_vm3 = vcmp.eq.s32.totalorder %v5039_v14, 2  ;;  %v5043_v48 = vsel %vm5041_vm1, %v18224_v53, %v5042_v58  ;;  %v5142_v16 = vadd.s32 3, %v5138_v23  ;;  %v18229_v23 = vld [vmem:[#allocation110_spill] sm:$0xff] }
 0x707   :  { %vm7381_vm7 = vcmp.gt.s32.totalorder %v7380_v22, 0  ;;  %v5046_v39 = vsel %vm5044_vm3, %v5045_v46, %v18223_v36  ;;  %v7322_v44 = vadd.s32 %v16054_v25, %v16065_v38  ;;  %v16152_v57 = vshll.u32 %v7378_v60, 8 }
 0x708   :  { %v8067_v52 = vmin.u32 %v7332_v45, %v16136_v62  ;;  %v7382_v12 = vsel %vm7381_vm7, %v7380_v22, 0  ;;  %vm5040_vm12 = vcmp.lt.s32.totalorder %v5039_v14, 2  ;;  %v7143_v58 = vsel %vm17427_vm5, %v7142_v17, %v7141_v19 }
 0x709   :  { %v16150_v4 = vshrl.u32 %v7382_v12, 5  ;;  %v7384_v28 = vand.u32 31, %v7382_v12  ;;  %v5047_v36 = vsel %vm5040_vm12, %v5043_v48, %v5046_v39  ;;  %v16156_v46 = vand.u32 3, %v5142_v16  ;;  %v18233_v39 = vld [vmem:[#allocation44_spill] sm:$0xff] }
 0x70a   :  { %v7334_v53 = vclz %v8067_v52  ;;  %v5146_v22 = vxor.u32 2147483648, %v18229_v23  ;;  %v18230_v45 = vand.u32 2147483647, %v15794_v0  ;;  %v18231_v60 = vmov 0 }
 0x70b   :  { %v7385_v54 = vsub.s32 32, %v7384_v28  ;;  %v7387_v25 = vshll.u32 %v17463_v61, %v7384_v28  ;;  %v7390_v38 = vshll.u32 %v17511_v34, %v7384_v28  ;;  %v7393_v19 = vshll.u32 %v17475_v29, %v7384_v28 }
 0x70c   :  { %vm16163_vm15 = vcmp.le.f32.partialorder %v18230_v45, 0.7853982  ;;  %v8068_v14 = vadd.s32 4294967294, %v7334_v53  ;;  %v7396_v17 = vshll.u32 %v17510_v30, %v7384_v28  ;;  %v7399_v48 = vshll.u32 %v17472_v10, %v7384_v28 }
 0x70d   :  { %v18232_v60 = vsel %vm16163_vm15, 4294967295, %v18231_v60  ;;  %v7388_v16 = vshrl.u32 %v17511_v34, %v7385_v54  ;;  %v7391_v52 = vshrl.u32 %v17475_v29, %v7385_v54  ;;  %v7394_v12 = vshrl.u32 %v17510_v30, %v7385_v54 }
 0x70e   :  { %vm7402_vm1 = vcmp.lt.s32.totalorder %v16150_v4, 1  ;;  %vm8069_vm3 = vcmp.lt.s32.totalorder %v8068_v14, 0  ;;  %v7386_v45 = vshrl.u32 %v17463_v61, %v7385_v54  ;;  %v7397_v53 = vshrl.u32 %v17472_v10, %v7385_v54 }
 0x70f   :  { %v7400_v59 = vshrl.u32 %v17473_v55, %v7385_v54  ;;  %v7337_v28 = vsel %vm8069_vm3, 0, %v8068_v14  ;;  %v7389_v3 = vor.u32 %v7388_v16, %v7387_v25  ;;  %v7392_v33 = vor.u32 %v7391_v52, %v7390_v38  ;;  %v18234_v52 = vld [vmem:[#allocation37_spill] sm:$0xff] }
 0x710   :  { %v7395_v15 = vor.u32 %v7394_v12, %v7393_v19  ;;  %v7338_v49 = vsub.s32 32, %v7337_v28  ;;  %v7339_v40 = vshll.u32 %v16136_v62, %v7337_v28  ;;  %v7342_v13 = vsub.s32 4294967266, %v7337_v28  ;;  %v16181_v9 = vpop.eup %8765  ;;  %v180_v28 = vpop.permute.xlu1 %179 }
 0x711   :  { %v7398_v43 = vor.u32 %v7397_v53, %v7396_v17  ;;  %v7401_v7 = vor.u32 %v7400_v59, %v7399_v48  ;;  %vm7404_vm7 = vcmp.lt.s32.totalorder %v16150_v4, 3  ;;  %vm7405_vm12 = vcmp.lt.s32.totalorder %v16150_v4, 4  ;;  %v16187_v14 = vpop.eup %8767 }
 0x712   :  { %v7406_v54 = vsel %vm7402_vm1, %v7386_v45, %v7389_v3  ;;  %v7340_v25 = vshrl.u32 %v7322_v44, %v7338_v49  ;;  %v7343_v38 = vadd.s32 127, %v7342_v13  ;;  %v7407_v19 = vsel %vm7405_vm12, %v7395_v15, 2102212464 }
 0x713   :  { %v7410_v62 = vsel %vm7402_vm1, %v7389_v3, %v7392_v33  ;;  %v7408_v17 = vsel %vm7404_vm7, %v7392_v33, %v7407_v19  ;;  %v7411_v16 = vsel %vm7405_vm12, %v7398_v43, 920167782  ;;  %v7414_v59 = vsel %vm7402_vm1, %v7392_v33, %v7395_v15 }
 0x714   :  { %v7415_v48 = vsel %vm7405_vm12, %v7401_v7, 1326507024  ;;  %v7341_v12 = vor.u32 %v7340_v25, %v7339_v40  ;;  %v7344_v45 = vshll.u32 %v7343_v38, 23  ;;  %vm7403_vm5 = vcmp.lt.s32.totalorder %v16150_v4, 2 }
 0x715   :  { %v7412_v13 = vsel %vm7404_vm7, %v7395_v15, %v7411_v16  ;;  %v7146_v49 = vsel %vm16163_vm15, %v15794_v0, %v7143_v58  ;;  %v7416_v33 = vsel %vm7404_vm7, %v7398_v43, %v7415_v48  ;;  %vm18235_vm1 = vweird.f32 %v18233_v39  ;;  %v18242_v48 = vld [vmem:[#allocation102_spill] sm:$0xff] }
 0x716   :  { %v7413_v3 = vsel %vm7403_vm5, %v7410_v62, %v7412_v13  ;;  %v5048_v7 = vsel %vm18235_vm1, nan, %v5047_v36  ;;  %v7345_v40 = vor.u32 4788187, %v7344_v45  ;;  %v7409_v44 = vsel %vm7403_vm5, %v7406_v54, %v7408_v17  ;;  %v18240_v54 = vld [vmem:[#allocation121_spill] sm:$0xff] }
 0x717   :  { %v7417_v53 = vsel %vm7403_vm5, %v7414_v59, %v7416_v33  ;;  %vm5145_vm12 = vcmp.eq.s32.totalorder %v16156_v46, 0  ;;  %v18236_v15 = vand.u32 2147483647, %v15851_v42  ;;  %v18237_v25 = vmov 0  ;;  %v18241_v59 = vld [vmem:[#allocation107_spill] sm:$0xff] }
 0x718   :  { %v16215_v58 = vmul.u32.u64.low %v16152_v57, %v7417_v53  ;;  %v16216_v38 = vmul.u32.u64.high %v16152_v57, %v7417_v53, %v16215_v58  ;;  %v16219_v43 = vmul.u32.u64.low %v16152_v57, %v7413_v3  ;;  %v16220_v4 = vmul.u32.u64.high %v16152_v57, %v7413_v3, %v16219_v43 }
 0x719   :  { %vm16210_vm3 = vcmp.le.f32.partialorder %v18236_v15, 0.7853982  ;;  %v7346_v36 = vand.u32 2147483647, %v7345_v40  ;;  %v7348_v39 = vcvt.s32.f32 %v7341_v12  ;;  %v5147_v19 = vsel %vm5145_vm12, %v18240_v54, %v5146_v22 }
 0x71a   :  { %v18238_v25 = vsel %vm16210_vm3, 4294967295, %v18237_v25  ;;  %v5149_v62 = vxor.u32 2147483648, %v18240_v54  ;;  %vm5148_vm5 = vcmp.eq.s32.totalorder %v16156_v46, 2  ;;  %v204_v17 = vmul.f32 %v16094_v41, %v175_v21 }
 0x71b   :  { %18239 = vst [vmem:[#allocation31_spill] sm:$0xff] %v18238_v25  ;;  %v205_v16 = vmul.f32 %v16094_v41, %v180_v28  ;;  %vm18243_vm7 = vnez %v18242_v48  ;;  %v7349_v13 = vmul.f32 %v7348_v39, %v7346_v36  ;;  %v7425_v3 = vmul.u32 %v16152_v57, %v7409_v44 }
 0x71c   :  { %v3336_v45 = vsel %vm18243_vm7, 0, %v18241_v59  ;;  %vm5144_vm1 = vcmp.lt.s32.totalorder %v16156_v46, 2  ;;  %v5150_v12 = vsel %vm5148_vm5, %v5149_v62, %v18229_v23  ;;  %vm7427_vm12 = vc.u32 %v16216_v38, %v16219_v43  ;;  %v18252_v62 = vld [vmem:[#allocation74_spill] sm:$0xff] }
 0x71d   :  { %v7428_v22 = vadd.s32 1, %v16220_v4  ;;  %v5151_v33 = vsel %vm5144_vm1, %v5147_v19, %v5150_v12  ;;  %v3340_v40 = vadd.s32 3, %v3336_v45  ;;  %v7350_v21 = vxor.u32 2147483648, %v7349_v13  ;;  %v18254_v59 = vld [vmem:[#allocation38_spill] sm:$0xff] }
 0x71e   :  { %vm18244_vm9 = vweird.f32 %v18234_v52  ;;  %v16238_v53 = vadd.f32 %v16098_v47, %v204_v17  ;;  %v16241_v28 = vadd.f32 %v16098_v47, %v205_v16  ;;  %8769 = vsinq.f32 %v16124_v35  ;;  %v18253_v17 = vld [vmem:[#allocation117_spill] sm:$0xff] }
 0x71f   :  { %v5152_v41 = vsel %vm18244_vm9, nan, %v5151_v33  ;;  %v18245_v57 = vsub.s32 4, %v16006_v20  ;;  %vm18246_vm5 = vcmp.lt.s32.totalorder %v15794_v0, 0  ;;  %v7429_v23 = vsel %vm7427_vm12, %v7428_v22, %v16220_v4 }
 0x720   :  { %v5574_v44 = vpack.c.bf16 %v5152_v41, %v5048_v7  ;;  %vm18247_vm9 = vcmp.lt.s32.totalorder %v15851_v42, 0  ;;  %v18248_v15 = vsub.s32 4, %v16115_v27  ;;  %v7430_v35 = vadd.s32 %v7429_v23, %v7425_v3 }
 0x721   :  { %v16249_v46 = vsel %vm18246_vm5, %v18245_v57, %v16006_v20  ;;  %v7351_v52 = vsel %vm18247_vm9, %v7350_v21, %v7349_v13  ;;  %vm18249_vm7 = vmmov %vm18247_vm9  ;;  %v17429_v58 = vand.u32 2147483647, %v16238_v53  ;;  %8771 = vcosq.f32 %v7146_v49 }
 0x722   :  { %v16259_v47 = vsel %vm18249_vm7, %v18248_v15, %v16115_v27  ;;  %vm7372_vm1 = vcmp.lt.s32.totalorder %v16101_v26, 0  ;;  %vm18251_vm5 = vcmask 261120   ;;  %v1582_v20 = vand.u32 2139095040, %v16238_v53 }
 0x723   :  { %18250 = vst [vmem:[#allocation56_spill] sm:$0xff] %v16259_v47  ;;  %8166 = vmatmul.mubr.msk.bf16.gmra.mxu1 %vm18251_vm5, %v5574_v44  ;;  %v17428_v7 = vand.u32 2147483647, %v16241_v28  ;;  %v3341_v4 = vand.u32 3, %v3340_v40  ;;  %8773 = vsinq.f32 %v7146_v49  ;;  %v7354_v36 = vsel %vm16210_vm3, %v15851_v42, %v7351_v52 }
 0x724   :  { %v7431_v27 = vadd.s32 536870912, %v7430_v35  ;;  %v1586_v39 = vand.u32 8388607, %v17429_v58  ;;  %v1583_v54 = vshrl.u32 %v1582_v20, 23  ;;  %v1686_v19 = vand.u32 2139095040, %v16241_v28  ;;  %v18255_v20 = vld [vmem:[#allocation127_spill] sm:$0xff] }
 0x725   :  { %v3344_v16 = vxor.u32 2147483648, %v18253_v17  ;;  %v3347_v48 = vxor.u32 2147483648, %v18254_v59  ;;  %v16276_v45 = vadd.s32 %v16219_v43, %v16216_v38  ;;  %v1690_v3 = vand.u32 8388607, %v17428_v7 }
 0x726   :  { %v7432_v49 = vshrl.u32 %v7431_v27, 30  ;;  %v1587_v13 = vor.u32 8388608, %v1586_v39  ;;  %8775 = vcosq.f32 %v7354_v36  ;;  %v7852_v12 = vadd.s32 4294967169, %v1583_v54 }
 0x727   :  { %v1687_v22 = vshrl.u32 %v1686_v19, 23  ;;  %vm3343_vm9 = vcmp.eq.s32.totalorder %v3341_v4, 0  ;;  %v1691_v21 = vor.u32 8388608, %v1690_v3  ;;  %vm3346_vm7 = vcmp.eq.s32.totalorder %v3341_v4, 2 }
 0x728   :  { %v7433_v33 = vshll.u32 %v7432_v49, 30  ;;  %v7456_v40 = vsub.s32 4, %v7432_v49  ;;  %v1589_v41 = vadd.s32 1, %v7852_v12  ;;  %v3345_v23 = vsel %vm3343_vm9, %v18254_v59, %v3344_v16  ;;  %v18259_v12 = vld [vmem:[#allocation46_spill] sm:$0xff] }
 0x729   :  { %v7856_v57 = vadd.s32 4294967169, %v1687_v22  ;;  %v3348_v38 = vsel %vm3346_vm7, %v3347_v48, %v18253_v17  ;;  %8777 = vsinq.f32 %v7354_v36  ;;  %v16284_v44 = vshll.u32 %v1587_v13, 8 }
 0x72a   :  { %v16282_v43 = vsub.s32 %v7430_v35, %v7433_v33  ;;  %vm3342_vm5 = vcmp.lt.s32.totalorder %v3341_v4, 2  ;;  %vm1590_vm12 = vcmp.gt.s32.totalorder %v1589_v41, 0  ;;  %v3440_v39 = vsel %vm14809_vm13, 0, %v18255_v20 }
 0x72b   :  { %v1693_v52 = vadd.s32 1, %v7856_v57  ;;  %v3349_v15 = vsel %vm3342_vm5, %v3345_v23, %v3348_v38  ;;  %v16292_v19 = vsel %vm7372_vm1, %v7456_v40, %v7432_v49  ;;  %v1591_v17 = vsel %vm1590_vm12, %v1589_v41, 0  ;;  %v16296_v4 = vpop.eup %8769 }
 0x72c   :  { %v7436_v54 = vsub.s32 0, %v16282_v43  ;;  %18257 = vst [vmem:[#allocation165_spill] sm:$0xff] %v16292_v19  ;;  %v3444_v36 = vadd.s32 3, %v3440_v39  ;;  %v1592_v35 = vshrl.u32 %v1591_v17, 5  ;;  %v1593_v16 = vand.u32 31, %v1591_v17 }
 0x72d   :  { %vm1694_vm9 = vcmp.gt.s32.totalorder %v1693_v52, 0  ;;  %v16294_v59 = vshll.u32 %v1691_v21, 8  ;;  %vm18258_vm13 = vweird.f32 %v18252_v62  ;;  %vm3651_vm15 = vweird.f32 %v14731_v24 }
 0x72e   :  { %v8071_v48 = vmin.u32 %v7436_v54, %v16282_v43  ;;  %v1695_v13 = vsel %vm1694_vm9, %v1693_v52, 0  ;;  %v16301_v3 = vsel %vm18258_vm13, nan, %v3349_v15  ;;  %v1594_v49 = vsub.s32 32, %v1593_v16  ;;  %v16308_v21 = vpop.eup %8771 }
 0x72f   :  { %v1596_v33 = vshll.u32 %v17463_v61, %v1593_v16  ;;  %v1599_v40 = vshll.u32 %v17511_v34, %v1593_v16  ;;  %v16306_v41 = vand.u32 3, %v3444_v36  ;;  %18260 = vst [vmem:[#allocation109_spill] sm:$0xff] %v16308_v21  ;;  %v1602_v23 = vshll.u32 %v17475_v29, %v1593_v16 }
 0x730   :  { %v7438_v57 = vclz %v8071_v48  ;;  %v1605_v38 = vshll.u32 %v17510_v30, %v1593_v16  ;;  %v1608_v62 = vshll.u32 %v17472_v10, %v1593_v16  ;;  %v16313_v52 = vpop.eup %8773  ;;  %v1597_v15 = vshrl.u32 %v17511_v34, %v1594_v49 }
 0x731   :  { %v1600_v20 = vshrl.u32 %v17475_v29, %v1594_v49  ;;  %v1603_v27 = vshrl.u32 %v17510_v30, %v1594_v49  ;;  %vm1611_vm12 = vcmp.lt.s32.totalorder %v1592_v35, 1  ;;  %v1595_v54 = vshrl.u32 %v17463_v61, %v1594_v49 }
 0x732   :  { %v8072_v39 = vadd.s32 4294967294, %v7438_v57  ;;  %v1606_v17 = vshrl.u32 %v17472_v10, %v1594_v49  ;;  %v1609_v36 = vshrl.u32 %v17473_v55, %v1594_v49  ;;  %v1598_v48 = vor.u32 %v1597_v15, %v1596_v33 }
 0x733   :  { %v1601_v7 = vor.u32 %v1600_v20, %v1599_v40  ;;  %v1604_v58 = vor.u32 %v1603_v27, %v1602_v23  ;;  %vm1612_vm7 = vcmp.lt.s32.totalorder %v1592_v35, 2  ;;  %v16321_v16 = vpop.eup %8775  ;;  %vm1614_vm9 = vcmp.lt.s32.totalorder %v1592_v35, 4 }
 0x734   :  { %18261 = vst [vmem:[#allocation50_spill] sm:$0xff] %v16321_v16  ;;  %vm8073_vm5 = vcmp.lt.s32.totalorder %v8072_v39, 0  ;;  %v1607_v22 = vor.u32 %v1606_v17, %v1605_v38  ;;  %v1610_v42 = vor.u32 %v1609_v36, %v1608_v62  ;;  %vm1613_vm13 = vcmp.lt.s32.totalorder %v1592_v35, 3 }
 0x735   :  { %v7441_v19 = vsel %vm8073_vm5, 0, %v8072_v39  ;;  %v1615_v57 = vsel %vm1611_vm12, %v1595_v54, %v1598_v48  ;;  %v1616_v25 = vsel %vm1614_vm9, %v1604_v58, 2102212464  ;;  %v1619_v49 = vsel %vm1611_vm12, %v1598_v48, %v1601_v7 }
 0x736   :  { %v7442_v47 = vsub.s32 32, %v7441_v19  ;;  %v7446_v0 = vsub.s32 4294967266, %v7441_v19  ;;  %v1617_v21 = vsel %vm1613_vm13, %v1601_v7, %v1616_v25  ;;  %v16325_v33 = vpop.eup %8777  ;;  %v7443_v40 = vshll.u32 %v16282_v43, %v7441_v19 }
 0x737   :  { %18262 = vst [vmem:[#allocation90_spill] sm:$0xff] %v16325_v33  ;;  %v1620_v23 = vsel %vm1614_vm9, %v1607_v22, 920167782  ;;  %v1623_v15 = vsel %vm1611_vm12, %v1601_v7, %v1604_v58  ;;  %v1624_v38 = vsel %vm1614_vm9, %v1610_v42, 1326507024  ;;  %v1618_v54 = vsel %vm1612_vm7, %v1615_v57, %v1617_v21 }
 0x738   :  { %v7444_v62 = vshrl.u32 %v16276_v45, %v7442_v47  ;;  %v7447_v20 = vadd.s32 127, %v7446_v0  ;;  %v1621_v27 = vsel %vm1613_vm13, %v1604_v58, %v1620_v23  ;;  %v1625_v39 = vsel %vm1613_vm13, %v1607_v22, %v1624_v38  ;;  %v18263_v58 = vld [vmem:[#allocation134_spill] sm:$0xff] }
 0x739   :  { %v1622_v17 = vsel %vm1612_vm7, %v1619_v49, %v1621_v27  ;;  %v1626_v25 = vsel %vm1612_vm7, %v1623_v15, %v1625_v39  ;;  %v16333_v36 = vshrl.u32 %v1695_v13, 5  ;;  %v1697_v0 = vand.u32 31, %v1695_v13 }
 0x73a   :  { %v7445_v48 = vor.u32 %v7444_v62, %v7443_v40  ;;  %v7448_v16 = vshll.u32 %v7447_v20, 23  ;;  %v16336_v43 = vmul.u32.u64.low %v16284_v44, %v1626_v25  ;;  %v16337_v19 = vmul.u32.u64.high %v16284_v44, %v1626_v25, %v16336_v43 }
 0x73b   :  { %v16340_v42 = vmul.u32.u64.low %v16284_v44, %v1622_v17  ;;  %v16341_v47 = vmul.u32.u64.high %v16284_v44, %v1622_v17, %v16340_v42  ;;  %v18264_v45 = vand.u32 2147483647, %v16101_v26  ;;  %v18265_v35 = vmov 0 }
 0x73c   :  { %v7449_v22 = vor.u32 4788187, %v7448_v16  ;;  %v7452_v21 = vcvt.s32.f32 %v7445_v48  ;;  %v1634_v57 = vmul.u32 %v16284_v44, %v1618_v54  ;;  %vm1715_vm7 = vcmp.lt.s32.totalorder %v16333_v36, 1 }
 0x73d   :  { %vm16346_vm12 = vcmp.le.f32.partialorder %v18264_v45, 0.7853982  ;;  %v1698_v49 = vsub.s32 32, %v1697_v0  ;;  %v1700_v40 = vshll.u32 %v17463_v61, %v1697_v0  ;;  %vm1636_vm13 = vc.u32 %v16337_v19, %v16340_v42 }
 0x73e   :  { %v18266_v35 = vsel %vm16346_vm12, 4294967295, %v18265_v35  ;;  %v7450_v13 = vand.u32 2147483647, %v7449_v22  ;;  %v1703_v23 = vshll.u32 %v17511_v34, %v1697_v0  ;;  %v1706_v15 = vshll.u32 %v17475_v29, %v1697_v0 }
 0x73f   :  { %v1637_v16 = vadd.s32 1, %v16341_v47  ;;  %v1701_v44 = vshrl.u32 %v17511_v34, %v1698_v49  ;;  %v1704_v38 = vshrl.u32 %v17475_v29, %v1698_v49  ;;  %v1709_v62 = vshll.u32 %v17510_v30, %v1697_v0 }
 0x740   :  { %v7453_v20 = vmul.f32 %v7452_v21, %v7450_v13  ;;  %v1707_v27 = vshrl.u32 %v17510_v30, %v1698_v49  ;;  %v1710_v39 = vshrl.u32 %v17472_v10, %v1698_v49  ;;  %v1712_v54 = vshll.u32 %v17472_v10, %v1697_v0  ;;  %v18267_v21 = vld [vmem:[#allocation85_spill] sm:$0xff] }
 0x741   :  { %v1638_v17 = vsel %vm1636_vm13, %v1637_v16, %v16341_v47  ;;  %v1702_v25 = vor.u32 %v1701_v44, %v1700_v40  ;;  %v1705_v48 = vor.u32 %v1704_v38, %v1703_v23  ;;  %v1713_v43 = vshrl.u32 %v17473_v55, %v1698_v49 }
 0x742   :  { %v7454_v45 = vxor.u32 2147483648, %v7453_v20  ;;  %v1639_v22 = vadd.s32 %v1638_v17, %v1634_v57  ;;  %v1708_v34 = vor.u32 %v1707_v27, %v1706_v15  ;;  %v1711_v7 = vor.u32 %v1710_v39, %v1709_v62 }
 0x743   :  { %v1699_v29 = vshrl.u32 %v17463_v61, %v1698_v49  ;;  %v1714_v33 = vor.u32 %v1713_v43, %v1712_v54  ;;  %vm17437_vm5 = vcmp.lt.s32.totalorder %v16333_v36, 4  ;;  %v1723_v30 = vsel %vm1715_vm7, %v1702_v25, %v1705_v48 }
 0x744   :  { %v7455_v10 = vsel %vm7372_vm1, %v7454_v45, %v7453_v20  ;;  %v1640_v47 = vadd.s32 536870912, %v1639_v22  ;;  %v1720_v55 = vsel %vm17437_vm5, %v1708_v34, 2102212464  ;;  %v1724_v0 = vsel %vm17437_vm5, %v1711_v7, 920167782  ;;  %v18275_v45 = vld [vmem:[#allocation94_spill] sm:$0xff] }
 0x745   :  { %v7458_v61 = vsel %vm16346_vm12, %v16101_v26, %v7455_v10  ;;  %v1719_v57 = vsel %vm1715_vm7, %v1699_v29, %v1702_v25  ;;  %vm18268_vm1 = vcmp.lt.s32.totalorder %v16333_v36, 3  ;;  %v16389_v13 = vadd.s32 %v16340_v42, %v16337_v19 }
 0x746   :  { %v1721_v49 = vsel %vm18268_vm1, %v1705_v48, %v1720_v55  ;;  %vm18269_vm13 = vmmov %vm18268_vm1  ;;  %v1641_v23 = vshrl.u32 %v1640_v47, 30  ;;  %vm18270_vm5 = vcmp.lt.s32.totalorder %v16333_v36, 2  ;;  %v1727_v16 = vsel %vm1715_vm7, %v1705_v48, %v1708_v34 }
 0x747   :  { %v1725_v40 = vsel %vm18269_vm13, %v1708_v34, %v1724_v0  ;;  %8779 = vcosq.f32 %v7458_v61  ;;  %vm18271_vm9 = vcmp.lt.s32.totalorder %v16333_v36, 4  ;;  %vm18272_vm13 = vmmov %vm18270_vm5  ;;  %vm3446_vm7 = vcmp.lt.s32.totalorder %v16306_v41, 2  ;;  %v18276_v34 = vld [vmem:[#allocation88_spill] sm:$0xff]  ;;  %v18280_v0 = vld [vmem:[#allocation98_spill] sm:$0xff] }
 0x748   :  { %v1726_v15 = vsel %vm18270_vm5, %v1723_v30, %v1725_v40  ;;  %v1728_v44 = vsel %vm18271_vm9, %v1714_v33, 1326507024  ;;  %8781 = vsinq.f32 %v7458_v61  ;;  %v1642_v20 = vshll.u32 %v1641_v23, 30  ;;  %v18282_v61 = vld [vmem:[#allocation124_spill] sm:$0xff] }
 0x749   :  { %v16398_v38 = vmul.u32.u64.low %v16294_v59, %v1726_v15  ;;  %v16399_v62 = vmul.u32.u64.high %v16294_v59, %v1726_v15, %v16398_v38  ;;  %v1722_v19 = vsel %vm18272_vm13, %v1719_v57, %v1721_v49  ;;  %v1729_v42 = vsel %vm18268_vm1, %v1711_v7, %v1728_v44  ;;  %v18284_v40 = vld [vmem:[#allocation96_spill] sm:$0xff] }
 0x74a   :  { %v1665_v27 = vsub.s32 4, %v1641_v23  ;;  %v1730_v39 = vsel %vm18270_vm5, %v1727_v16, %v1729_v42  ;;  %vm3447_vm9 = vcmp.eq.s32.totalorder %v16306_v41, 0  ;;  %v16409_v33 = vsub.s32 %v1639_v22, %v1642_v20  ;;  %v18285_v16 = vld [vmem:[#allocation70_spill] sm:$0xff] }
 0x74b   :  { %v16412_v54 = vmul.u32.u64.low %v16294_v59, %v1730_v39  ;;  %v16413_v17 = vmul.u32.u64.high %v16294_v59, %v1730_v39, %v16412_v54  ;;  %vm3450_vm12 = vcmp.eq.s32.totalorder %v16306_v41, 2  ;;  %v1741_v25 = vadd.s32 1, %v16399_v62  ;;  %v18287_v42 = vld [vmem:[#allocation166_spill] sm:$0xff]  ;;  %v18288_v39 = vld [vmem:[#allocation93_spill] sm:$0xff] }
 0x74c   :  { %v18273_v7 = vxor.u32 2147483648, %v18259_v12  ;;  %v18274_v36 = vxor.u32 2147483648, %v18263_v58  ;;  %vm18277_vm13 = vnez %v18276_v34  ;;  %v1645_v29 = vsub.s32 0, %v16409_v33 }
 0x74d   :  { %v5242_v22 = vsel %vm18277_vm13, 0, %v18275_v45  ;;  %v1738_v30 = vmul.u32 %v16294_v59, %v1722_v19  ;;  %vm18278_vm1 = vcmp.lt.s32.totalorder %v16238_v53, 0  ;;  %vm18279_vm5 = vweird.f32 %v18267_v21  ;;  %v18289_v45 = vld [vmem:[#allocation19_spill] sm:$0xff] }
 0x74e   :  { %v3449_v48 = vsel %vm3447_vm9, %v18263_v58, %v18273_v7  ;;  %v3452_v43 = vsel %vm3450_vm12, %v18274_v36, %v18259_v12  ;;  %v5246_v41 = vadd.s32 3, %v5242_v22  ;;  %v16430_v47 = vsel %vm18278_vm1, %v1665_v27, %v1641_v23  ;;  %v18281_v12 = vld [vmem:[#allocation129_spill] sm:$0xff] }
 0x74f   :  { %v3453_v10 = vsel %vm3446_vm7, %v3449_v48, %v3452_v43  ;;  %v5250_v58 = vxor.u32 2147483648, %v18280_v0  ;;  %vm18283_vm12 = vnez %v18282_v61  ;;  %v7853_v49 = vmin.u32 %v1645_v29, %v16409_v33 }
 0x750   :  { %v3454_v55 = vsel %vm18279_vm5, nan, %v3453_v10  ;;  %v5346_v57 = vsel %vm18283_vm12, 0, %v18281_v12  ;;  %vm1740_vm9 = vc.u32 %v16413_v17, %v16398_v38  ;;  %v5253_v15 = vxor.u32 2147483648, %v18284_v40 }
 0x751   :  { %v3669_v59 = vpack.c.bf16 %v3454_v55, %v16301_v3  ;;  %v1742_v23 = vsel %vm1740_vm9, %v1741_v25, %v16399_v62  ;;  %v5247_v21 = vand.u32 3, %v5246_v41  ;;  %v5350_v44 = vadd.s32 3, %v5346_v57  ;;  %v18290_v55 = vld [vmem:[#allocation147_spill] sm:$0xff] }
 0x752   :  { %v1647_v20 = vclz %v7853_v49  ;;  %v1743_v19 = vadd.s32 %v1742_v23, %v1738_v30  ;;  %vm18286_vm13 = vcmask 261120   ;;  %v5354_v27 = vxor.u32 2147483648, %v18287_v42 }
 0x753   :  { %8149 = vmatprep.mubr.msk.bf16.mxu0 %vm18286_vm13, %v3669_v59  ;;  %v5357_v54 = vxor.u32 2147483648, %v18288_v39  ;;  %vm5248_vm1 = vcmp.lt.s32.totalorder %v5247_v21, 2  ;;  %vm5249_vm5 = vcmp.eq.s32.totalorder %v5247_v21, 0  ;;  %vm5252_vm12 = vcmp.eq.s32.totalorder %v5247_v21, 2 }
 0x754   :  { %v5351_v3 = vand.u32 3, %v5350_v44  ;;  %v7854_v7 = vadd.s32 4294967294, %v1647_v20  ;;  %v1744_v48 = vadd.s32 536870912, %v1743_v19  ;;  %v5251_v62 = vsel %vm5249_vm5, %v18284_v40, %v5250_v58  ;;  %v16453_v34 = vpop.eup %8779  ;;  %v18293_v40 = vld [vmem:[#allocation33_spill] sm:$0xff] }
 0x755   :  { %v5254_v25 = vsel %vm5252_vm12, %v5253_v15, %v18280_v0  ;;  %v16450_v36 = vadd.s32 %v16398_v38, %v16413_v17  ;;  %vm5349_vm9 = vweird.f32 %v18289_v45  ;;  %v16456_v30 = vpop.eup %8781  ;;  %v5450_v17 = vsel %vm15104_vm2, 0, %v18290_v55 }
 0x756   :  { %v5255_v43 = vsel %vm5248_vm1, %v5251_v62, %v5254_v25  ;;  %vm5353_vm13 = vcmp.eq.s32.totalorder %v5351_v3, 0  ;;  %vm7855_vm7 = vcmp.lt.s32.totalorder %v7854_v7, 0  ;;  %v1745_v22 = vshrl.u32 %v1744_v48, 30  ;;  %v18296_v48 = vld [vmem:[#allocation99_spill] sm:$0xff]  ;;  %v18297_v62 = vld [vmem:[#allocation104_spill] sm:$0xff] }
 0x757   :  { %v5355_v29 = vsel %vm5353_vm13, %v18288_v39, %v5354_v27  ;;  %vm5356_vm3 = vcmp.eq.s32.totalorder %v5351_v3, 2  ;;  %v1650_v10 = vsel %vm7855_vm7, 0, %v7854_v7  ;;  %vm5352_vm5 = vcmp.lt.s32.totalorder %v5351_v3, 2  ;;  %v18294_v27 = vld [vmem:[#allocation75_spill] sm:$0xff] }
 0x758   :  { %v5358_v41 = vsel %vm5356_vm3, %v5357_v54, %v18287_v42  ;;  %v1651_v0 = vsub.s32 32, %v1650_v10  ;;  %v1655_v58 = vsub.s32 4294967266, %v1650_v10  ;;  %vm17440_vm1 = vcmp.lt.s32.totalorder %v16241_v28, 0 }
 0x759   :  { %v1746_v12 = vshll.u32 %v1745_v22, 30  ;;  %vm18292_vm12 = vweird.f32 %v18285_v16  ;;  %v1652_v57 = vshll.u32 %v16409_v33, %v1650_v10  ;;  %v5359_v49 = vsel %vm5352_vm5, %v5355_v29, %v5358_v41  ;;  %v18295_v16 = vld [vmem:[#allocation103_spill] sm:$0xff] }
 0x75a   :  { %v5256_v61 = vsel %vm18292_vm12, nan, %v5255_v43  ;;  %v5454_v59 = vadd.s32 3, %v5450_v17  ;;  %v5458_v15 = vxor.u32 2147483648, %v18293_v40  ;;  %v1653_v23 = vshrl.u32 %v16389_v13, %v1651_v0  ;;  %v18303_v17 = vld [vmem:[#allocation114_spill] sm:$0xff] }
 0x75b   :  { %v1656_v21 = vadd.s32 127, %v1655_v58  ;;  %v16468_v44 = vsub.s32 %v1743_v19, %v1746_v12  ;;  %v5360_v20 = vsel %vm5349_vm9, nan, %v5359_v49  ;;  %vm5453_vm2 = vweird.f32 %v18294_v27  ;;  %v18304_v58 = vld [vmem:[#allocation113_spill] sm:$0xff] }
 0x75c   :  { %v5575_v42 = vpack.c.bf16 %v5360_v20, %v5256_v61  ;;  %v5455_v39 = vand.u32 3, %v5454_v59  ;;  %v5461_v54 = vxor.u32 2147483648, %v18295_v16  ;;  %v1654_v3 = vor.u32 %v1653_v23, %v1652_v57  ;;  %v18305_v59 = vld [vmem:[#allocation122_spill] sm:$0xff]  ;;  %v18306_v23 = vld [vmem:[#allocation115_spill] sm:$0xff] }
 0x75d   :  { %v1657_v33 = vshll.u32 %v1656_v21, 23  ;;  %v1749_v7 = vsub.s32 0, %v16468_v44  ;;  %vm18298_vm3 = vnez %v18297_v62  ;;  %v1769_v25 = vsub.s32 4, %v1745_v22 }
 0x75e   :  { %v5554_v13 = vsel %vm18298_vm3, 0, %v18296_v48  ;;  %vm18299_vm7 = vcmask 261120   ;;  %vm5456_vm13 = vcmp.lt.s32.totalorder %v5455_v39, 2  ;;  %vm5457_vm5 = vcmp.eq.s32.totalorder %v5455_v39, 0 }
 0x75f   :  { %8169 = vmatprep.mubr.msk.bf16.mxu1 %vm18299_vm7, %v5575_v42  ;;  %vm5460_vm9 = vcmp.eq.s32.totalorder %v5455_v39, 2  ;;  %v18300_v19 = vand.u32 2147483647, %v16238_v53  ;;  %v18301_v43 = vmov 0  ;;  %v1658_v45 = vor.u32 4788187, %v1657_v33 }
 0x760   :  { %v1661_v29 = vcvt.s32.f32 %v1654_v3  ;;  %v7857_v10 = vmin.u32 %v1749_v7, %v16468_v44  ;;  %v5459_v41 = vsel %vm5457_vm5, %v18295_v16, %v5458_v15  ;;  %v5462_v55 = vsel %vm5460_vm9, %v5461_v54, %v18293_v40  ;;  %v18308_v42 = vld [vmem:[#allocation47_spill] sm:$0xff] }
 0x761   :  { %vm16481_vm12 = vcmp.le.f32.partialorder %v18300_v19, 0.7853982  ;;  %v5558_v38 = vadd.s32 3, %v5554_v13  ;;  %v5562_v0 = vxor.u32 2147483648, %v18303_v17  ;;  %v5565_v12 = vxor.u32 2147483648, %v18304_v58  ;;  %v18309_v3 = vld [vmem:[#allocation131_spill] sm:$0xff] }
 0x762   :  { %v18302_v43 = vsel %vm16481_vm12, 4294967295, %v18301_v43  ;;  %v1659_v61 = vand.u32 2147483647, %v1658_v45  ;;  %v1751_v57 = vclz %v7857_v10  ;;  %v5463_v49 = vsel %vm5456_vm13, %v5459_v41, %v5462_v55  ;;  %v18310_v19 = vld [vmem:[#allocation92_spill] sm:$0xff]  ;;  %v18311_v45 = vld [vmem:[#allocation130_spill] sm:$0xff] }
 0x763   :  { %vm18307_vm3 = vnez %v18306_v23  ;;  %v16495_v20 = vsel %vm17440_vm1, %v1769_v25, %v1745_v22  ;;  %v5559_v15 = vand.u32 3, %v5558_v38  ;;  %v5464_v54 = vsel %vm5453_vm2, nan, %v5463_v49  ;;  %v18314_v49 = vld [vmem:[#allocation58_spill] sm:$0xff] }
 0x764   :  { %v316_v21 = vsel %vm18307_vm3, 0, %v18305_v59  ;;  %v1662_v39 = vmul.f32 %v1661_v29, %v1659_v61  ;;  %v7858_v16 = vadd.s32 4294967294, %v1751_v57  ;;  %v324_v33 = vxor.u32 2147483648, %v18309_v3  ;;  %v18315_v59 = vld [vmem:[#allocation57_spill] sm:$0xff] }
 0x765   :  { %v320_v40 = vadd.s32 3, %v316_v21  ;;  %vm5560_vm13 = vcmp.lt.s32.totalorder %v5559_v15, 2  ;;  %vm5561_vm5 = vcmp.eq.s32.totalorder %v5559_v15, 0  ;;  %vm5564_vm9 = vcmp.eq.s32.totalorder %v5559_v15, 2 }
 0x766   :  { %v1663_v48 = vxor.u32 2147483648, %v1662_v39  ;;  %vm7859_vm3 = vcmp.lt.s32.totalorder %v7858_v16, 0  ;;  %v5563_v22 = vsel %vm5561_vm5, %v18304_v58, %v5562_v0  ;;  %v5566_v62 = vsel %vm5564_vm9, %v5565_v12, %v18303_v17 }
 0x767   :  { %v321_v7 = vand.u32 3, %v320_v40  ;;  %v1754_v13 = vsel %vm7859_vm3, 0, %v7858_v16  ;;  %v5567_v25 = vsel %vm5560_vm13, %v5563_v22, %v5566_v62  ;;  %vm319_vm1 = vweird.f32 %v18310_v19  ;;  %v18318_v40 = vld [vmem:[#allocation67_spill] sm:$0xff]  ;;  %v18323_v22 = vld [vmem:[#allocation14_spill] sm:$0xff]  ;;  %v18330_v19 = vld [vmem:[#allocation149_spill] sm:$0xff] }
 0x768   :  { %v327_v29 = vxor.u32 2147483648, %v18311_v45  ;;  %vm18312_vm2 = vcmp.lt.s32.totalorder %v16238_v53, 0  ;;  %v1755_v10 = vsub.s32 32, %v1754_v13  ;;  %v1759_v41 = vsub.s32 4294967266, %v1754_v13 }
 0x769   :  { %v1664_v27 = vsel %vm18312_vm2, %v1663_v48, %v1662_v39  ;;  %vm323_vm7 = vcmp.eq.s32.totalorder %v321_v7, 0  ;;  %v1756_v38 = vshll.u32 %v16468_v44, %v1754_v13  ;;  %vm18313_vm5 = vweird.f32 %v18308_v42  ;;  %v18319_v39 = vld [vmem:[#allocation48_spill] sm:$0xff] }
 0x76a   :  { %v1667_v55 = vsel %vm16481_vm12, %v16238_v53, %v1664_v27  ;;  %v5568_v17 = vsel %vm18313_vm5, nan, %v5567_v25  ;;  %v325_v0 = vsel %vm323_vm7, %v18311_v45, %v324_v33  ;;  %v1757_v58 = vshrl.u32 %v16450_v36, %v1755_v10  ;;  %v18321_v33 = vld [vmem:[#allocation141_spill] sm:$0xff]  ;;  %v18324_v45 = vld [vmem:[#allocation135_spill] sm:$0xff]  ;;  %v18325_v27 = vld [vmem:[#allocation16_spill] sm:$0xff] }
 0x76b   :  { %v1760_v12 = vadd.s32 127, %v1759_v41  ;;  %v5576_v61 = vpack.c.bf16 %v5568_v17, %v5464_v54  ;;  %vm326_vm13 = vcmp.eq.s32.totalorder %v321_v7, 2  ;;  %8783 = vcosq.f32 %v1667_v55  ;;  %v18320_v54 = vld [vmem:[#allocation118_spill] sm:$0xff] }
 0x76c   :  { %vm322_vm9 = vcmp.lt.s32.totalorder %v321_v7, 2  ;;  %v328_v57 = vsel %vm326_vm13, %v327_v29, %v18309_v3  ;;  %vm18316_vm3 = vnez %v18315_v59  ;;  %v1758_v21 = vor.u32 %v1757_v58, %v1756_v38 }
 0x76d   :  { %v420_v23 = vsel %vm18316_vm3, 0, %v18314_v49  ;;  %v1761_v44 = vshll.u32 %v1760_v12, 23  ;;  %vm18317_vm2 = vcmask 261120   ;;  %v329_v42 = vsel %vm322_vm9, %v325_v0, %v328_v57 }
 0x76e   :  { %8170 = vmatmul.mubr.msk.bf16.gmra.mxu1 %vm18317_vm2, %v5576_v61  ;;  %v424_v15 = vadd.s32 3, %v420_v23  ;;  %8785 = vsinq.f32 %v1667_v55  ;;  %v428_v36 = vxor.u32 2147483648, %v18318_v40  ;;  %v431_v16 = vxor.u32 2147483648, %v18319_v39  ;;  %v18464_v55 = vld [vmem:[#allocation160_spill] sm:$0xff] }
 0x76f   :  { %vm18322_vm7 = vnez %v18321_v33  ;;  %v1762_v3 = vor.u32 4788187, %v1761_v44  ;;  %v330_v48 = vsel %vm319_vm1, nan, %v329_v42  ;;  %vm423_vm5 = vweird.f32 %v18323_v22  ;;  %v18337_v22 = vld [vmem:[#allocation12_spill] sm:$0xff] }
 0x770   :  { %v3544_v7 = vsel %vm18322_vm7, 0, %v18320_v54  ;;  %v425_v62 = vand.u32 3, %v424_v15  ;;  %v1765_v13 = vcvt.s32.f32 %v1758_v21  ;;  %v3552_v29 = vxor.u32 2147483648, %v18324_v45 }
 0x771   :  { %v3548_v25 = vadd.s32 3, %v3544_v7  ;;  %vm18326_vm13 = vnez %v18325_v27  ;;  %v18327_v41 = vand.u32 2147483647, %v16241_v28  ;;  %v1763_v38 = vand.u32 2147483647, %v1762_v3  ;;  %v18336_v7 = vld [vmem:[#allocation64_spill] sm:$0xff] }
 0x772   :  { %v3648_v10 = vsel %vm18326_vm13, 0, %v15282_v37  ;;  %vm427_vm3 = vcmp.eq.s32.totalorder %v425_v62, 0  ;;  %vm430_vm1 = vcmp.eq.s32.totalorder %v425_v62, 2  ;;  %v3555_v17 = vxor.u32 2147483648, %v18330_v19 }
 0x773   :  { %vm16534_vm9 = vcmp.le.f32.partialorder %v18327_v41, 0.7853982  ;;  %vm426_vm2 = vcmp.lt.s32.totalorder %v425_v62, 2  ;;  %v429_v0 = vsel %vm427_vm3, %v18319_v39, %v428_v36  ;;  %v432_v58 = vsel %vm430_vm1, %v431_v16, %v18318_v40  ;;  %v18331_v39 = vld [vmem:[#allocation36_spill] sm:$0xff]  ;;  %v18332_v16 = vld [vmem:[#allocation51_spill] sm:$0xff]  ;;  %v18338_v62 = vld [vmem:[#allocation142_spill] sm:$0xff] }
 0x774   :  { %v3549_v12 = vand.u32 3, %v3548_v25  ;;  %v1766_v61 = vmul.f32 %v1765_v13, %v1763_v38  ;;  %v433_v57 = vsel %vm426_vm2, %v429_v0, %v432_v58  ;;  %v3652_v37 = vadd.s32 3, %v3648_v10  ;;  %v18339_v13 = vld [vmem:[#allocation81_spill] sm:$0xff]  ;;  %v18343_v0 = vld [vmem:[#allocation60_spill] sm:$0xff] }
 0x775   :  { %v3656_v49 = vxor.u32 2147483648, %v15361_v2  ;;  %v434_v59 = vsel %vm423_vm5, nan, %v433_v57  ;;  %v3659_v36 = vxor.u32 2147483648, %v15346_v5  ;;  %vm18333_vm3 = vnez %v18332_v16 }
 0x776   :  { %vm3550_vm7 = vcmp.lt.s32.totalorder %v3549_v12, 2  ;;  %vm3551_vm13 = vcmp.eq.s32.totalorder %v3549_v12, 0  ;;  %vm3554_vm12 = vcmp.eq.s32.totalorder %v3549_v12, 2  ;;  %v1767_v23 = vxor.u32 2147483648, %v1766_v61 }
 0x777   :  { %v1891_v21 = vpack.c.bf16 %v434_v59, %v330_v48  ;;  %v3553_v44 = vsel %vm3551_vm13, %v18330_v19, %v3552_v29  ;;  %v3556_v42 = vsel %vm3554_vm12, %v3555_v17, %v18324_v45  ;;  %v3653_v40 = vand.u32 3, %v3652_v37  ;;  %v18342_v19 = vld [vmem:[#allocation61_spill] sm:$0xff] }
 0x778   :  { %v3557_v15 = vsel %vm3550_vm7, %v3553_v44, %v3556_v42  ;;  %v5899_v54 = vsel %vm18333_vm3, 0, %v18331_v39  ;;  %vm18334_vm1 = vcmp.lt.s32.totalorder %v16241_v28, 0  ;;  %vm18335_vm5 = vcmask 261120   ;;  %v16560_v45 = vpop.eup %8783  ;;  %v18344_v37 = vld [vmem:[#allocation45_spill] sm:$0xff]  ;;  %v18349_v42 = vld [vmem:[#allocation63_spill] sm:$0xff] }
 0x779   :  { %v1768_v33 = vsel %vm18334_vm1, %v1767_v23, %v1766_v61  ;;  %8197 = vmatprep.mubr.msk.bf16.mxu1 %vm18335_vm5, %v1891_v21  ;;  %vm3547_vm2 = vweird.f32 %v18336_v7  ;;  %v5903_v3 = vadd.s32 3, %v5899_v54  ;;  %vm3655_vm12 = vcmp.eq.s32.totalorder %v3653_v40, 0  ;;  %vm18341_vm6 = vmmov %vm18335_vm5  ;;  %v18347_v21 = vld [vmem:[#allocation13_spill] sm:$0xff] }
 0x77a   :  { %v3558_v48 = vsel %vm3547_vm2, nan, %v3557_v15  ;;  %vm3658_vm7 = vcmp.eq.s32.totalorder %v3653_v40, 2  ;;  %vm5902_vm13 = vweird.f32 %v18337_v22  ;;  %v18340_v25 = vpack.c.bf16 %v18338_v62, %v18339_v13  ;;  %v18351_v39 = vld [vmem:[#allocation25_spill] sm:$0xff]  ;;  %v18355_v62 = vld [vmem:[#allocation43_spill] sm:$0xff] }
 0x77b   :  { %vm3654_vm3 = vcmp.lt.s32.totalorder %v3653_v40, 2  ;;  %v3657_v29 = vsel %vm3655_vm12, %v15346_v5, %v3656_v49  ;;  %v3660_v27 = vsel %vm3658_vm7, %v3659_v36, %v15361_v2  ;;  %v5904_v10 = vand.u32 3, %v5903_v3  ;;  %v16571_v12 = vpop.eup %8785  ;;  %v18345_v49 = vld [vmem:[#allocation52_spill] sm:$0xff]  ;;  %v18350_v40 = vld [vmem:[#allocation62_spill] sm:$0xff]  ;;  %v18354_v3 = vld [vmem:[#allocation27_spill] sm:$0xff] }
 0x77c   :  { %8198 = vmatmul.mubr.msk.bf16.vlgmr.msra.gmra.mxu1 %vm18341_vm6, %v18340_v25  ;;  %v16567_v41 = vsel %vm16534_vm9, %v16241_v28, %v1768_v33  ;;  %v3661_v38 = vsel %vm3654_vm3, %v3657_v29, %v3660_v27  ;;  %v5907_v17 = vxor.u32 2147483648, %v18342_v19  ;;  %v5910_v58 = vxor.u32 2147483648, %v18343_v0  ;;  %v18353_v33 = vld [vmem:[#allocation86_spill] sm:$0xff]  ;;  %v18356_v25 = vld [vmem:[#allocation65_spill] sm:$0xff]  ;;  %v18357_v29 = vld [vmem:[#allocation59_spill] sm:$0xff] }
 0x77d   :  { %v3662_v61 = vsel %vm3651_vm15, nan, %v3661_v38  ;;  %vm5905_vm6 = vcmp.lt.s32.totalorder %v5904_v10, 2  ;;  %vm5906_vm1 = vcmp.eq.s32.totalorder %v5904_v10, 0  ;;  %vm5909_vm5 = vcmp.eq.s32.totalorder %v5904_v10, 2  ;;  %v18359_v27 = vld [vmem:[#allocation69_spill] sm:$0xff]  ;;  %v18360_v38 = vld [vmem:[#allocation68_spill] sm:$0xff] }
 0x77e   :  { %v3670_v5 = vpack.c.bf16 %v3662_v61, %v3558_v48  ;;  %v5908_v2 = vsel %vm5906_vm1, %v18343_v0, %v5907_v17  ;;  %v5911_v57 = vsel %vm5909_vm5, %v5910_v58, %v18342_v19  ;;  %vm18346_vm2 = vnez %v18345_v49  ;;  %v18361_v61 = vld [vmem:[#allocation152_spill] sm:$0xff] }
 0x77f   :  { %v6003_v59 = vsel %vm18346_vm2, 0, %v18344_v37  ;;  %8787 = vcosq.f32 %v16567_v41  ;;  %v5912_v23 = vsel %vm5905_vm6, %v5908_v2, %v5911_v57  ;;  %vm6006_vm12 = vweird.f32 %v18347_v21 }
 0x780   :  { %v6007_v44 = vadd.s32 3, %v6003_v59  ;;  %vm18348_vm7 = vcmask 261120   ;;  %v5913_v24 = vsel %vm5902_vm13, nan, %v5912_v23  ;;  %v6011_v15 = vxor.u32 2147483648, %v18349_v42 }
 0x781   :  { %8150 = vmatmul.mubr.msk.bf16.gmra.mxu0 %vm18348_vm7, %v3670_v5  ;;  %v6014_v36 = vxor.u32 2147483648, %v18350_v40  ;;  %vm18352_vm15 = vnez %v18351_v39  ;;  %vm6318_vm3 = vweird.f32 %v18353_v33  ;;  %v6323_v48 = vxor.u32 2147483648, %v18354_v3  ;;  %v18369_v33 = vld [vmem:[#allocation105_spill] sm:$0xff] }
 0x782   :  { %v6315_v16 = vsel %vm18352_vm15, 0, %v15320_v32  ;;  %v6008_v54 = vand.u32 3, %v6007_v44  ;;  %v6326_v13 = vxor.u32 2147483648, %v18355_v62  ;;  %vm18358_vm6 = vnez %v18357_v29 }
 0x783   :  { %v6319_v7 = vadd.s32 3, %v6315_v16  ;;  %v6419_v22 = vsel %vm18358_vm6, 0, %v18356_v25  ;;  %v6427_v10 = vxor.u32 2147483648, %v18359_v27  ;;  %v6430_v19 = vxor.u32 2147483648, %v18360_v38 }
 0x784   :  { %vm6009_vm13 = vcmp.lt.s32.totalorder %v6008_v54, 2  ;;  %vm6010_vm1 = vcmp.eq.s32.totalorder %v6008_v54, 0  ;;  %vm6013_vm5 = vcmp.eq.s32.totalorder %v6008_v54, 2  ;;  %v6423_v58 = vadd.s32 3, %v6419_v22 }
 0x785   :  { %v6320_v32 = vand.u32 3, %v6319_v7  ;;  %v6012_v17 = vsel %vm6010_vm1, %v18350_v40, %v6011_v15  ;;  %v6015_v0 = vsel %vm6013_vm5, %v6014_v36, %v18349_v42  ;;  %v6523_v2 = vsel %vm15353_vm8, 0, %v18361_v61  ;;  %v18363_v42 = vld [vmem:[#allocation17_spill] sm:$0xff]  ;;  %v18373_v61 = vld [vmem:[#allocation55_spill] sm:$0xff] }
 0x786   :  { %v6016_v57 = vsel %vm6009_vm13, %v6012_v17, %v6015_v0  ;;  %v6424_v23 = vand.u32 3, %v6423_v58  ;;  %vm6422_vm6 = vweird.f32 %v18363_v42  ;;  %v6527_v40 = vadd.s32 3, %v6523_v2  ;;  %v18366_v7 = vld [vmem:[#allocation77_spill] sm:$0xff]  ;;  %v18372_v0 = vld [vmem:[#allocation26_spill] sm:$0xff]  ;;  %v18374_v2 = vld [vmem:[#allocation143_spill] sm:$0xff] }
 0x787   :  { %vm6321_vm2 = vcmp.lt.s32.totalorder %v6320_v32, 2  ;;  %vm6322_vm7 = vcmp.eq.s32.totalorder %v6320_v32, 0  ;;  %vm6325_vm15 = vcmp.eq.s32.totalorder %v6320_v32, 2  ;;  %v6017_v37 = vsel %vm6006_vm12, nan, %v6016_v57  ;;  %v18375_v57 = vld [vmem:[#allocation139_spill] sm:$0xff]  ;;  %v18381_v42 = vld [vmem:[#allocation148_spill] sm:$0xff] }
 0x788   :  { %v6324_v49 = vsel %vm6322_vm7, %v18355_v62, %v6323_v48  ;;  %v6327_v59 = vsel %vm6325_vm15, %v6326_v13, %v18354_v3  ;;  %v7474_v44 = vpack.c.bf16 %v6017_v37, %v5913_v24  ;;  %vm6425_vm8 = vcmp.lt.s32.totalorder %v6424_v23, 2  ;;  %v18365_v24 = vld [vmem:[#allocation91_spill] sm:$0xff] }
 0x789   :  { %v6328_v15 = vsel %vm6321_vm2, %v6324_v49, %v6327_v59  ;;  %vm6426_vm13 = vcmp.eq.s32.totalorder %v6424_v23, 0  ;;  %vm6429_vm1 = vcmp.eq.s32.totalorder %v6424_v23, 2  ;;  %vm18364_vm5 = vcmask 261120   ;;  %v18370_v13 = vld [vmem:[#allocation151_spill] sm:$0xff]  ;;  %v18378_v59 = vld [vmem:[#allocation137_spill] sm:$0xff] }
 0x78a   :  { %v6329_v36 = vsel %vm6318_vm3, nan, %v6328_v15  ;;  %8177 = vmatprep.mubr.msk.bf16.mxu0 %vm18364_vm5, %v7474_v44  ;;  %v6428_v21 = vsel %vm6426_vm13, %v18360_v38, %v6427_v10  ;;  %v6431_v39 = vsel %vm6429_vm1, %v6430_v19, %v18359_v27  ;;  %v6528_v16 = vand.u32 3, %v6527_v40  ;;  %vm18368_vm12 = vmmov %vm18364_vm5  ;;  %v18380_v44 = vld [vmem:[#allocation150_spill] sm:$0xff] }
 0x78b   :  { %v6531_v54 = vxor.u32 2147483648, %v15575_v11  ;;  %v18367_v3 = vpack.c.bf16 %v18365_v24, %v18366_v7  ;;  %v6432_v48 = vsel %vm6425_vm8, %v6428_v21, %v6431_v39  ;;  %vm6526_vm3 = vweird.f32 %v18369_v33 }
 0x78c   :  { %v6534_v62 = vxor.u32 2147483648, %v15562_v6  ;;  %v6627_v29 = vsel %vm15468_vm11, 0, %v18370_v13  ;;  %v6433_v22 = vsel %vm6422_vm6, nan, %v6432_v48  ;;  %vm6529_vm2 = vcmp.lt.s32.totalorder %v6528_v16, 2  ;;  %v16625_v27 = vpop.eup %8787  ;;  %vm18377_vm6 = vmmov %vm18364_vm5 }
 0x78d   :  { %8178 = vmatmul.mubr.msk.bf16.vlgmr.msra.gmra.mxu0 %vm18368_vm12, %v18367_v3  ;;  %vm6530_vm7 = vcmp.eq.s32.totalorder %v6528_v16, 0  ;;  %vm6533_vm15 = vcmp.eq.s32.totalorder %v6528_v16, 2  ;;  %v7476_v10 = vpack.c.bf16 %v6433_v22, %v6329_v36  ;;  %v6631_v32 = vadd.s32 3, %v6627_v29 }
 0x78e   :  { %v6532_v38 = vsel %vm6530_vm7, %v15562_v6, %v6531_v54  ;;  %v6535_v19 = vsel %vm6533_vm15, %v6534_v62, %v15575_v11  ;;  %v6635_v58 = vxor.u32 2147483648, %v18372_v0  ;;  %v6638_v5 = vxor.u32 2147483648, %v18373_v61  ;;  %v18379_v11 = vld [vmem:[#allocation87_spill] sm:$0xff] }
 0x78f   :  { %v6536_v17 = vsel %vm6529_vm2, %v6532_v38, %v6535_v19  ;;  %vm18376_vm11 = vnez %v18375_v57  ;;  %8181 = vmatprep.mubr.msk.bf16.mxu0 %vm18377_vm6, %v7476_v10  ;;  %vm6630_vm8 = vweird.f32 %v18378_v59  ;;  %v6632_v6 = vand.u32 3, %v6631_v32  ;;  %v18388_v59 = vld [vmem:[#allocation156_spill] sm:$0xff] }
 0x790   :  { %v732_v37 = vsel %vm18376_vm11, 0, %v18374_v2  ;;  %v6537_v49 = vsel %vm6526_vm3, nan, %v6536_v17  ;;  %vm735_vm13 = vweird.f32 %v18379_v11  ;;  %v740_v15 = vxor.u32 2147483648, %v18380_v44  ;;  %v18387_v2 = vld [vmem:[#allocation100_spill] sm:$0xff] }
 0x791   :  { %v736_v23 = vadd.s32 3, %v732_v37  ;;  %v743_v40 = vxor.u32 2147483648, %v18381_v42  ;;  %v836_v21 = vsel %vm15528_vm4, 0, %v15648_v63  ;;  %vm6633_vm1 = vcmp.lt.s32.totalorder %v6632_v6, 2  ;;  %v18411_v11 = vld [vmem:[#allocation24_spill] sm:$0xff] }
 0x792   :  { %vm6634_vm5 = vcmp.eq.s32.totalorder %v6632_v6, 0  ;;  %vm6637_vm12 = vcmp.eq.s32.totalorder %v6632_v6, 2  ;;  %v840_v24 = vadd.s32 3, %v836_v21  ;;  %v844_v7 = vxor.u32 2147483648, %v15724_v56  ;;  %v18389_v6 = vld [vmem:[#allocation155_spill] sm:$0xff] }
 0x793   :  { %v737_v39 = vand.u32 3, %v736_v23  ;;  %v6636_v16 = vsel %vm6634_vm5, %v18373_v61, %v6635_v58  ;;  %v6639_v54 = vsel %vm6637_vm12, %v6638_v5, %v18372_v0  ;;  %v847_v29 = vxor.u32 2147483648, %v15703_v18  ;;  %v18384_v58 = vld [vmem:[#allocation145_spill] sm:$0xff]  ;;  %v18385_v61 = vld [vmem:[#allocation146_spill] sm:$0xff] }
 0x794   :  { %v6640_v3 = vsel %vm6633_vm1, %v6636_v16, %v6639_v54  ;;  %v841_v62 = vand.u32 3, %v840_v24  ;;  %v940_v22 = vsel %vm15718_vm14, 0, %v15681_v51  ;;  %vm839_vm4 = vweird.f32 %v15128_v50  ;;  %v18390_v23 = vld [vmem:[#allocation162_spill] sm:$0xff] }
 0x795   :  { %vm738_vm3 = vcmp.lt.s32.totalorder %v737_v39, 2  ;;  %vm739_vm2 = vcmp.eq.s32.totalorder %v737_v39, 0  ;;  %vm742_vm7 = vcmp.eq.s32.totalorder %v737_v39, 2  ;;  %v6641_v48 = vsel %vm6630_vm8, nan, %v6640_v3 }
 0x796   :  { %v741_v63 = vsel %vm739_vm2, %v18381_v42, %v740_v15  ;;  %v744_v33 = vsel %vm742_vm7, %v743_v40, %v18380_v44  ;;  %v7477_v13 = vpack.c.bf16 %v6641_v48, %v6537_v49  ;;  %vm843_vm15 = vcmp.eq.s32.totalorder %v841_v62, 0  ;;  %v18392_v15 = vld [vmem:[#allocation126_spill] sm:$0xff]  ;;  %v18394_v48 = vld [vmem:[#allocation73_spill] sm:$0xff] }
 0x797   :  { %v745_v25 = vsel %vm738_vm3, %v741_v63, %v744_v33  ;;  %vm846_vm11 = vcmp.eq.s32.totalorder %v841_v62, 2  ;;  %vm842_vm8 = vcmp.lt.s32.totalorder %v841_v62, 2  ;;  %v845_v38 = vsel %vm843_vm15, %v15703_v18, %v844_v7  ;;  %vm18393_vm3 = vmmov %vm18377_vm6  ;;  %v18395_v33 = vld [vmem:[#allocation18_spill] sm:$0xff] }
 0x798   :  { %v746_v10 = vsel %vm735_vm13, nan, %v745_v25  ;;  %8182 = vmatmul.mubr.msk.bf16.gmra.mxu0 %vm18377_vm6, %v7477_v13  ;;  %v848_v19 = vsel %vm846_vm11, %v847_v29, %v15724_v56  ;;  %v944_v32 = vadd.s32 3, %v940_v22  ;;  %v948_v0 = vxor.u32 2147483648, %v15876_v31  ;;  %v18396_v13 = vld [vmem:[#allocation111_spill] sm:$0xff] }
 0x799   :  { %v849_v17 = vsel %vm842_vm8, %v845_v38, %v848_v19  ;;  %v951_v51 = vxor.u32 2147483648, %v18383_v8  ;;  %vm18386_vm14 = vnez %v18385_v61  ;;  %vm943_vm13 = vweird.f32 %v18387_v2  ;;  %v18399_v19 = vld [vmem:[#allocation144_spill] sm:$0xff] }
 0x79a   :  { %v1044_v5 = vsel %vm18386_vm14, 0, %v18384_v58  ;;  %v850_v50 = vsel %vm839_vm4, nan, %v849_v17  ;;  %v945_v57 = vand.u32 3, %v944_v32  ;;  %v1052_v18 = vxor.u32 2147483648, %v18388_v59  ;;  %v18400_v17 = vld [vmem:[#allocation80_spill] sm:$0xff]  ;;  %v18403_v58 = vld [vmem:[#allocation119_spill] sm:$0xff] }
 0x79b   :  { %v1048_v37 = vadd.s32 3, %v1044_v5  ;;  %v1893_v49 = vpack.c.bf16 %v850_v50, %v746_v10  ;;  %v1055_v56 = vxor.u32 2147483648, %v18389_v6  ;;  %v6731_v44 = vsel %vm15743_vm0, 0, %v18390_v23  ;;  %v18404_v5 = vld [vmem:[#allocation164_spill] sm:$0xff]  ;;  %v18422_v50 = vld [vmem:[#allocation167_spill] sm:$0xff] }
 0x79c   :  { %vm947_vm1 = vcmp.eq.s32.totalorder %v945_v57, 0  ;;  %vm950_vm5 = vcmp.eq.s32.totalorder %v945_v57, 2  ;;  %vm1047_vm12 = vweird.f32 %v18392_v15  ;;  %vm946_vm2 = vcmp.lt.s32.totalorder %v945_v57, 2 }
 0x79d   :  { %v1049_v42 = vand.u32 3, %v1048_v37  ;;  %8201 = vmatprep.mubr.msk.bf16.mxu1 %vm18393_vm3, %v1893_v49  ;;  %v949_v40 = vsel %vm947_vm1, %v18383_v8, %v948_v0  ;;  %v952_v36 = vsel %vm950_vm5, %v951_v51, %v15876_v31  ;;  %v6735_v21 = vadd.s32 3, %v6731_v44  ;;  %v18397_v31 = vld [vmem:[#allocation106_spill] sm:$0xff]  ;;  %vm18401_vm1 = vmmov %vm18393_vm3  ;;  %v18402_v8 = vld [vmem:[#allocation120_spill] sm:$0xff] }
 0x79e   :  { %v953_v39 = vsel %vm946_vm2, %v949_v40, %v952_v36  ;;  %v6739_v63 = vxor.u32 2147483648, %v18394_v48  ;;  %v6742_v62 = vxor.u32 2147483648, %v18395_v33  ;;  %vm18398_vm0 = vnez %v18397_v31  ;;  %v18406_v37 = vld [vmem:[#allocation140_spill] sm:$0xff] }
 0x79f   :  { %vm1050_vm7 = vcmp.lt.s32.totalorder %v1049_v42, 2  ;;  %vm1051_vm4 = vcmp.eq.s32.totalorder %v1049_v42, 0  ;;  %vm1054_vm15 = vcmp.eq.s32.totalorder %v1049_v42, 2  ;;  %v954_v16 = vsel %vm943_vm13, nan, %v953_v39  ;;  %v18412_v42 = vld [vmem:[#allocation82_spill] sm:$0xff] }
 0x7a0   :  { %v1053_v54 = vsel %vm1051_vm4, %v18389_v6, %v1052_v18  ;;  %v1056_v24 = vsel %vm1054_vm15, %v1055_v56, %v18388_v59  ;;  %v6736_v7 = vand.u32 3, %v6735_v21  ;;  %v6835_v25 = vsel %vm18398_vm0, 0, %v18396_v13  ;;  %v18407_v59 = vld [vmem:[#allocation79_spill] sm:$0xff]  ;;  %v18408_v18 = vld [vmem:[#allocation78_spill] sm:$0xff]  ;;  %v18413_v21 = vld [vmem:[#allocation76_spill] sm:$0xff] }
 0x7a1   :  { %v1057_v3 = vsel %vm1050_vm7, %v1053_v54, %v1056_v24  ;;  %8789 = vsinq.f32 %v16567_v41  ;;  %vm6734_vm14 = vweird.f32 %v18399_v19  ;;  %vm6838_vm13 = vweird.f32 %v18400_v17  ;;  %v18410_v56 = vld [vmem:[#allocation83_spill] sm:$0xff] }
 0x7a2   :  { %v1058_v29 = vsel %vm1047_vm12, nan, %v1057_v3  ;;  %vm6738_vm11 = vcmp.eq.s32.totalorder %v6736_v7, 0  ;;  %vm6741_vm6 = vcmp.eq.s32.totalorder %v6736_v7, 2  ;;  %vm6737_vm8 = vcmp.lt.s32.totalorder %v6736_v7, 2  ;;  %v18414_v3 = vld [vmem:[#allocation154_spill] sm:$0xff] }
 0x7a3   :  { %v1894_v22 = vpack.c.bf16 %v1058_v29, %v954_v16  ;;  %v6740_v10 = vsel %vm6738_vm11, %v18395_v33, %v6739_v63  ;;  %v6743_v38 = vsel %vm6741_vm6, %v6742_v62, %v18394_v48  ;;  %v6839_v0 = vadd.s32 3, %v6835_v25  ;;  %v18415_v48 = vld [vmem:[#allocation23_spill] sm:$0xff]  ;;  %v18417_v29 = vld [vmem:[#allocation21_spill] sm:$0xff] }
 0x7a4   :  { %v6744_v32 = vsel %vm6737_vm8, %v6740_v10, %v6743_v38  ;;  %v6843_v51 = vxor.u32 2147483648, %v18402_v8  ;;  %v6846_v61 = vxor.u32 2147483648, %v18403_v58  ;;  %v6939_v2 = vsel %vm15756_vm10, 0, %v18404_v5  ;;  %v18421_v5 = vld [vmem:[#allocation168_spill] sm:$0xff] }
 0x7a5   :  { %8202 = vmatmul.mubr.msk.bf16.gmra.mxu1 %vm18401_vm1, %v1894_v22  ;;  %v6745_v41 = vsel %vm6734_vm14, nan, %v6744_v32  ;;  %v6840_v57 = vand.u32 3, %v6839_v0  ;;  %vm6942_vm5 = vweird.f32 %v18406_v37  ;;  %v6943_v49 = vadd.s32 3, %v6939_v2  ;;  %v18418_v32 = vld [vmem:[#allocation128_spill] sm:$0xff] }
 0x7a6   :  { %vm18409_vm12 = vnez %v18408_v18  ;;  %v6947_v23 = vxor.u32 2147483648, %v18410_v56  ;;  %v6950_v44 = vxor.u32 2147483648, %v18411_v11  ;;  %v7051_v40 = vxor.u32 2147483648, %v18412_v42 }
 0x7a7   :  { %v7043_v6 = vsel %vm18409_vm12, 0, %v18407_v59  ;;  %vm6842_vm3 = vcmp.eq.s32.totalorder %v6840_v57, 0  ;;  %vm6845_vm2 = vcmp.eq.s32.totalorder %v6840_v57, 2  ;;  %v6944_v36 = vand.u32 3, %v6943_v49  ;;  %v18424_v59 = vld [vmem:[#allocation159_spill] sm:$0xff] }
 0x7a8   :  { %v7047_v15 = vadd.s32 3, %v7043_v6  ;;  %v7054_v39 = vxor.u32 2147483648, %v18413_v21  ;;  %vm6841_vm10 = vcmp.lt.s32.totalorder %v6840_v57, 2  ;;  %v6844_v16 = vsel %vm6842_vm3, %v18403_v58, %v6843_v51  ;;  %v18420_v58 = vld [vmem:[#allocation28_spill] sm:$0xff] }
 0x7a9   :  { %v6847_v54 = vsel %vm6845_vm2, %v6846_v61, %v18402_v8  ;;  %vm6946_vm7 = vcmp.eq.s32.totalorder %v6944_v36, 0  ;;  %vm6949_vm4 = vcmp.eq.s32.totalorder %v6944_v36, 2  ;;  %vm18416_vm15 = vnez %v18415_v48  ;;  %v18419_v8 = vld [vmem:[#allocation35_spill] sm:$0xff]  ;;  %vm18428_vm2 = vmmov %vm18401_vm1 }
 0x7aa   :  { %v7048_v24 = vand.u32 3, %v7047_v15  ;;  %v6848_v7 = vsel %vm6841_vm10, %v6844_v16, %v6847_v54  ;;  %v1148_v63 = vsel %vm18416_vm15, 0, %v18414_v3  ;;  %vm6945_vm0 = vcmp.lt.s32.totalorder %v6944_v36, 2 }
 0x7ab   :  { %v6849_v33 = vsel %vm6838_vm13, nan, %v6848_v7  ;;  %v6948_v62 = vsel %vm6946_vm7, %v18411_v11, %v6947_v23  ;;  %v6951_v13 = vsel %vm6949_vm4, %v6950_v44, %v18410_v56  ;;  %vm7046_vm8 = vweird.f32 %v18417_v29  ;;  %v18425_v56 = vld [vmem:[#allocation34_spill] sm:$0xff]  ;;  %v18426_v23 = vld [vmem:[#allocation49_spill] sm:$0xff] }
 0x7ac   :  { %v7478_v31 = vpack.c.bf16 %v6849_v33, %v6745_v41  ;;  %v6952_v25 = vsel %vm6945_vm0, %v6948_v62, %v6951_v13  ;;  %vm7050_vm11 = vcmp.eq.s32.totalorder %v7048_v24, 0  ;;  %vm7053_vm6 = vcmp.eq.s32.totalorder %v7048_v24, 2  ;;  %v18432_v13 = vld [vmem:[#allocation20_spill] sm:$0xff] }
 0x7ad   :  { %vm7049_vm14 = vcmp.lt.s32.totalorder %v7048_v24, 2  ;;  %v7052_v22 = vsel %vm7050_vm11, %v18413_v21, %v7051_v40  ;;  %v7055_v10 = vsel %vm7053_vm6, %v7054_v39, %v18412_v42  ;;  %v6953_v38 = vsel %vm6942_vm5, nan, %v6952_v25  ;;  %v18429_v21 = vld [vmem:[#allocation32_spill] sm:$0xff]  ;;  %v18430_v39 = vld [vmem:[#allocation29_spill] sm:$0xff] }
 0x7ae   :  { %8185 = vmatprep.mubr.msk.bf16.mxu0 %vm18401_vm1, %v7478_v31  ;;  %v7056_v19 = vsel %vm7049_vm14, %v7052_v22, %v7055_v10  ;;  %vm1151_vm13 = vweird.f32 %v18418_v32  ;;  %v1152_v17 = vadd.s32 3, %v1148_v63  ;;  %v16722_v0 = vpop.eup %8789  ;;  %v1156_v51 = vxor.u32 2147483648, %v18419_v8  ;;  %v18433_v10 = vld [vmem:[#allocation40_spill] sm:$0xff] }
 0x7af   :  { %v7057_v41 = vsel %vm7046_vm8, nan, %v7056_v19  ;;  %v1159_v61 = vxor.u32 2147483648, %v18420_v58  ;;  %vm18423_vm12 = vnez %v18422_v50  ;;  %vm1255_vm3 = vweird.f32 %v18424_v59  ;;  %v18434_v19 = vld [vmem:[#allocation39_spill] sm:$0xff] }
 0x7b0   :  { %v1252_v2 = vsel %vm18423_vm12, 0, %v18421_v5  ;;  %v7479_v57 = vpack.c.bf16 %v7057_v41, %v6953_v38  ;;  %v1153_v49 = vand.u32 3, %v1152_v17  ;;  %v1260_v18 = vxor.u32 2147483648, %v16181_v9  ;;  %v18438_v5 = vld [vmem:[#allocation109_spill] sm:$0xff] }
 0x7b1   :  { %v1256_v37 = vadd.s32 3, %v1252_v2  ;;  %v1263_v6 = vxor.u32 2147483648, %v16178_v1  ;;  %vm18427_vm5 = vnez %v18426_v23  ;;  %v1364_v44 = vxor.u32 2147483648, %v16296_v4  ;;  %v18444_v23 = vld [vmem:[#allocation101_spill] sm:$0xff] }
 0x7b2   :  { %v1356_v11 = vsel %vm18427_vm5, 0, %v18425_v56  ;;  %8186 = vmatmul.mubr.msk.bf16.gmra.mxu0 %vm18428_vm2, %v7479_v57  ;;  %vm1154_vm10 = vcmp.lt.s32.totalorder %v1153_v49, 2  ;;  %vm1155_vm7 = vcmp.eq.s32.totalorder %v1153_v49, 0  ;;  %vm1158_vm4 = vcmp.eq.s32.totalorder %v1153_v49, 2  ;;  %vm18436_vm5 = vmmov %vm18428_vm2  ;;  %v18442_v49 = vld [vmem:[#allocation161_spill] sm:$0xff] }
 0x7b3   :  { %v1257_v15 = vand.u32 3, %v1256_v37  ;;  %v1157_v42 = vsel %vm1155_vm7, %v18420_v58, %v1156_v51  ;;  %v1160_v40 = vsel %vm1158_vm4, %v1159_v61, %v18419_v8  ;;  %v1360_v36 = vadd.s32 3, %v1356_v11  ;;  %v18437_v8 = vld [vmem:[#allocation133_spill] sm:$0xff] }
 0x7b4   :  { %vm18431_vm15 = vnez %v18430_v39  ;;  %v1161_v54 = vsel %vm1154_vm10, %v1157_v42, %v1160_v40  ;;  %v1367_v24 = vxor.u32 2147483648, %v16187_v14  ;;  %v1468_v31 = vxor.u32 2147483648, %v18432_v13 }
 0x7b5   :  { %v1460_v16 = vsel %vm18431_vm15, 0, %v18429_v21  ;;  %vm1259_vm0 = vcmp.eq.s32.totalorder %v1257_v15, 0  ;;  %vm1262_vm11 = vcmp.eq.s32.totalorder %v1257_v15, 2  ;;  %vm1258_vm6 = vcmp.lt.s32.totalorder %v1257_v15, 2  ;;  %v18446_v15 = vld [vmem:[#allocation31_spill] sm:$0xff] }
 0x7b6   :  { %v1261_v7 = vsel %vm1259_vm0, %v16178_v1, %v1260_v18  ;;  %v1264_v3 = vsel %vm1262_vm11, %v1263_v6, %v16181_v9  ;;  %v1361_v48 = vand.u32 3, %v1360_v36  ;;  %v1162_v63 = vsel %vm1151_vm13, nan, %v1161_v54  ;;  %v18443_v6 = vld [vmem:[#allocation123_spill] sm:$0xff] }
 0x7b7   :  { %v1265_v33 = vsel %vm1258_vm6, %v1261_v7, %v1264_v3  ;;  %v1464_v62 = vadd.s32 3, %v1460_v16  ;;  %vm1359_vm12 = vweird.f32 %v18433_v10  ;;  %v1471_v32 = vxor.u32 2147483648, %v18434_v19  ;;  %v18449_v16 = vld [vmem:[#allocation90_spill] sm:$0xff] }
 0x7b8   :  { %v1266_v25 = vsel %vm1255_vm3, nan, %v1265_v33  ;;  %vm1362_vm8 = vcmp.lt.s32.totalorder %v1361_v48, 2  ;;  %vm1363_vm14 = vcmp.eq.s32.totalorder %v1361_v48, 0  ;;  %vm1366_vm1 = vcmp.eq.s32.totalorder %v1361_v48, 2  ;;  %v18450_v33 = vld [vmem:[#allocation84_spill] sm:$0xff] }
 0x7b9   :  { %v1895_v29 = vpack.c.bf16 %v1266_v25, %v1162_v63  ;;  %v1365_v22 = vsel %vm1363_vm14, %v16187_v14, %v1364_v44  ;;  %v1368_v1 = vsel %vm1366_vm1, %v1367_v24, %v16296_v4  ;;  %v1465_v9 = vand.u32 3, %v1464_v62  ;;  %v18445_v44 = vld [vmem:[#allocation56_spill] sm:$0xff]  ;;  %vm18448_vm14 = vmmov %vm18436_vm5 }
 0x7ba   :  { %v1369_v38 = vsel %vm1362_vm8, %v1365_v22, %v1368_v1  ;;  %vm18435_vm13 = vnez %v18232_v60  ;;  %vm1463_vm3 = vweird.f32 %v18437_v8  ;;  %v7155_v61 = vxor.u32 2147483648, %v16313_v52  ;;  %v18439_v60 = vld [vmem:[#allocation112_spill] sm:$0xff]  ;;  %v18458_v8 = vld [vmem:[#allocation71_spill] sm:$0xff] }
 0x7bb   :  { %v7147_v17 = vsel %vm18435_vm13, 0, %v16249_v46  ;;  %8205 = vmatprep.mubr.msk.bf16.mxu1 %vm18436_vm5, %v1895_v29  ;;  %v1370_v41 = vsel %vm1359_vm12, nan, %v1369_v38  ;;  %vm1467_vm2 = vcmp.eq.s32.totalorder %v1465_v9, 0  ;;  %vm1470_vm10 = vcmp.eq.s32.totalorder %v1465_v9, 2  ;;  %v18440_v46 = vld [vmem:[#allocation108_spill] sm:$0xff] }
 0x7bc   :  { %vm1466_vm7 = vcmp.lt.s32.totalorder %v1465_v9, 2  ;;  %v1469_v14 = vsel %vm1467_vm2, %v18434_v19, %v1468_v31  ;;  %v1472_v4 = vsel %vm1470_vm10, %v1471_v32, %v18432_v13  ;;  %v7151_v51 = vadd.s32 3, %v7147_v17  ;;  %v18451_v13 = vld [vmem:[#allocation50_spill] sm:$0xff]  ;;  %v18452_v31 = vld [vmem:[#allocation165_spill] sm:$0xff] }
 0x7bd   :  { %v1473_v58 = vsel %vm1466_vm7, %v1469_v14, %v1472_v4  ;;  %v7158_v50 = vxor.u32 2147483648, %v18438_v5  ;;  %vm18441_vm4 = vnez %v18440_v46  ;;  %vm7150_vm15 = vweird.f32 %v18442_v49  ;;  %v18454_v17 = vld [vmem:[#allocation42_spill] sm:$0xff]  ;;  %v18462_v46 = vld [vmem:[#allocation132_spill] sm:$0xff] }
 0x7be   :  { %v7251_v2 = vsel %vm18441_vm4, 0, %v18439_v60  ;;  %v1474_v57 = vsel %vm1463_vm3, nan, %v1473_v58  ;;  %v7152_v59 = vand.u32 3, %v7151_v51  ;;  %v7259_v56 = vxor.u32 2147483648, %v18443_v6  ;;  %v18459_v58 = vld [vmem:[#allocation157_spill] sm:$0xff] }
 0x7bf   :  { %v7255_v37 = vadd.s32 3, %v7251_v2  ;;  %v1896_v18 = vpack.c.bf16 %v1474_v57, %v1370_v41  ;;  %v7262_v11 = vxor.u32 2147483648, %v18444_v23  ;;  %vm18447_vm0 = vnez %v18446_v15  ;;  %v18455_v41 = vld [vmem:[#allocation30_spill] sm:$0xff] }
 0x7c0   :  { %v7355_v42 = vsel %vm18447_vm0, 0, %v18445_v44  ;;  %vm7153_vm11 = vcmp.lt.s32.totalorder %v7152_v59, 2  ;;  %vm7154_vm6 = vcmp.eq.s32.totalorder %v7152_v59, 0  ;;  %vm7157_vm8 = vcmp.eq.s32.totalorder %v7152_v59, 2 }
 0x7c1   :  { %v7256_v40 = vand.u32 3, %v7255_v37  ;;  %8206 = vmatmul.mubr.msk.bf16.gmra.mxu1 %vm18448_vm14, %v1896_v18  ;;  %v7156_v36 = vsel %vm7154_vm6, %v18438_v5, %v7155_v61  ;;  %v7159_v21 = vsel %vm7157_vm8, %v7158_v50, %v16313_v52  ;;  %v7359_v39 = vadd.s32 3, %v7355_v42  ;;  %v18460_v5 = vld [vmem:[#allocation41_spill] sm:$0xff] }
 0x7c2   :  { %v7363_v54 = vxor.u32 2147483648, %v18449_v16  ;;  %v7160_v24 = vsel %vm7153_vm11, %v7156_v36, %v7159_v21  ;;  %vm7254_vm5 = vweird.f32 %v18450_v33  ;;  %v7366_v52 = vxor.u32 2147483648, %v18451_v13 }
 0x7c3   :  { %vm7257_vm1 = vcmp.lt.s32.totalorder %v7256_v40, 2  ;;  %vm7258_vm12 = vcmp.eq.s32.totalorder %v7256_v40, 0  ;;  %vm7261_vm13 = vcmp.eq.s32.totalorder %v7256_v40, 2  ;;  %v7161_v7 = vsel %vm7150_vm15, nan, %v7160_v24  ;;  %vm18457_vm15 = vmmov %vm18448_vm14 }
 0x7c4   :  { %v7260_v3 = vsel %vm7258_vm12, %v18444_v23, %v7259_v56  ;;  %v7263_v48 = vsel %vm7261_vm13, %v7262_v11, %v18443_v6  ;;  %v7360_v63 = vand.u32 3, %v7359_v39  ;;  %vm18453_vm3 = vnez %v18266_v35 }
 0x7c5   :  { %v7264_v62 = vsel %vm7257_vm1, %v7260_v3, %v7263_v48  ;;  %v7459_v25 = vsel %vm18453_vm3, 0, %v18452_v31  ;;  %v7467_v19 = vxor.u32 2147483648, %v16456_v30  ;;  %v7470_v32 = vxor.u32 2147483648, %v16453_v34 }
 0x7c6   :  { %v7265_v29 = vsel %vm7254_vm5, nan, %v7264_v62  ;;  %vm7361_vm2 = vcmp.lt.s32.totalorder %v7360_v63, 2  ;;  %vm7362_vm10 = vcmp.eq.s32.totalorder %v7360_v63, 0  ;;  %vm7365_vm7 = vcmp.eq.s32.totalorder %v7360_v63, 2 }
 0x7c7   :  { %v7480_v22 = vpack.c.bf16 %v7265_v29, %v7161_v7  ;;  %v7364_v1 = vsel %vm7362_vm10, %v18451_v13, %v7363_v54  ;;  %v7367_v9 = vsel %vm7365_vm7, %v7366_v52, %v18449_v16  ;;  %v7463_v10 = vadd.s32 3, %v7459_v25  ;;  %v18470_v25 = vld [vmem:[#allocation22_spill] sm:$0xff] }
 0x7c8   :  { %v7368_v38 = vsel %vm7361_vm2, %v7364_v1, %v7367_v9  ;;  %vm18456_vm4 = vnez %v18455_v41  ;;  %vm7358_vm0 = vweird.f32 %v18458_v8  ;;  %vm7462_vm11 = vweird.f32 %v16101_v26 }
 0x7c9   :  { %v1564_v35 = vsel %vm18456_vm4, 0, %v18454_v17  ;;  %8189 = vmatprep.mubr.msk.bf16.mxu0 %vm18457_vm15, %v7480_v22  ;;  %v7464_v14 = vand.u32 3, %v7463_v10  ;;  %v7369_v51 = vsel %vm7358_vm0, nan, %v7368_v38  ;;  %v1572_v61 = vxor.u32 2147483648, %v18459_v58  ;;  %vm18463_vm4 = vmmov %vm18457_vm15 }
 0x7ca   :  { %v1568_v4 = vadd.s32 3, %v1564_v35  ;;  %v1575_v50 = vxor.u32 2147483648, %v18460_v5  ;;  %vm18461_vm6 = vnez %v18302_v43  ;;  %vm1567_vm1 = vweird.f32 %v18462_v46 }
 0x7cb   :  { %v1668_v60 = vsel %vm18461_vm6, 0, %v16430_v47  ;;  %vm7466_vm8 = vcmp.eq.s32.totalorder %v7464_v14, 0  ;;  %vm7469_vm14 = vcmp.eq.s32.totalorder %v7464_v14, 2  ;;  %vm7465_vm12 = vcmp.lt.s32.totalorder %v7464_v14, 2  ;;  %vm18469_vm6 = vmmov %vm18463_vm4 }
 0x7cc   :  { %v1569_v2 = vand.u32 3, %v1568_v4  ;;  %v7468_v57 = vsel %vm7466_vm8, %v16453_v34, %v7467_v19  ;;  %v7471_v49 = vsel %vm7469_vm14, %v7470_v32, %v16456_v30  ;;  %v1672_v59 = vadd.s32 3, %v1668_v60 }
 0x7cd   :  { %v7472_v37 = vsel %vm7465_vm12, %v7468_v57, %v7471_v49  ;;  %v1676_v18 = vxor.u32 2147483648, %v16571_v12  ;;  %v1679_v34 = vxor.u32 2147483648, %v16560_v45  ;;  %v1772_v30 = vsel %vm16534_vm9, 0, %v16495_v20  ;;  %v18465_v20 = vld [vmem:[#allocation54_spill] sm:$0xff] }
 0x7ce   :  { %vm1571_vm13 = vcmp.eq.s32.totalorder %v1569_v2, 0  ;;  %vm1574_vm5 = vcmp.eq.s32.totalorder %v1569_v2, 2  ;;  %v7473_v43 = vsel %vm7462_vm11, nan, %v7472_v37  ;;  %v1673_v56 = vand.u32 3, %v1672_v59 }
 0x7cf   :  { %v1573_v47 = vsel %vm1571_vm13, %v18460_v5, %v1572_v61  ;;  %v1576_v6 = vsel %vm1574_vm5, %v1575_v50, %v18459_v58  ;;  %v7481_v23 = vpack.c.bf16 %v7473_v43, %v7369_v51  ;;  %vm1570_vm3 = vcmp.lt.s32.totalorder %v1569_v2, 2 }
 0x7d0   :  { %v1577_v11 = vsel %vm1570_vm3, %v1573_v47, %v1576_v6  ;;  %vm1671_vm2 = vweird.f32 %v16238_v53  ;;  %vm1675_vm10 = vcmp.eq.s32.totalorder %v1673_v56, 0  ;;  %vm1678_vm7 = vcmp.eq.s32.totalorder %v1673_v56, 2  ;;  %vm18471_vm3 = vmmov %vm18463_vm4 }
 0x7d1   :  { %8190 = vmatmul.mubr.msk.bf16.gmra.mxu0 %vm18463_vm4, %v7481_v23  ;;  %vm1674_vm15 = vcmp.lt.s32.totalorder %v1673_v56, 2  ;;  %v1677_v26 = vsel %vm1675_vm10, %v16560_v45, %v1676_v18  ;;  %v1680_v44 = vsel %vm1678_vm7, %v1679_v34, %v16571_v12  ;;  %v1776_v15 = vadd.s32 3, %v1772_v30  ;;  %v18467_v45 = vld [vmem:[#allocation66_spill] sm:$0xff]  ;;  %v18468_v12 = vld [vmem:[#allocation163_spill] sm:$0xff] }
 0x7d2   :  { %v1681_v42 = vsel %vm1674_vm15, %v1677_v26, %v1680_v44  ;;  %v1780_v40 = vxor.u32 2147483648, %v16722_v0  ;;  %v1783_v36 = vxor.u32 2147483648, %v16625_v27  ;;  %vm18466_vm9 = vnez %v18465_v20  ;;  %v16888_v20 = vld [vmem:[%s17000_s4] ss:$0 sm:$0xff] }
 0x7d3   :  { %v1876_v21 = vsel %vm18466_vm9, 0, %v18464_v55  ;;  %v1578_v53 = vsel %vm1567_vm1, nan, %v1577_v11  ;;  %v1682_v39 = vsel %vm1671_vm2, nan, %v1681_v42  ;;  %v1777_v16 = vand.u32 3, %v1776_v15  ;;  %vm18472_vm2 = vmmov %vm18471_vm3 }
 0x7d4   :  { %v1880_v54 = vadd.s32 3, %v1876_v21  ;;  %v1897_v24 = vpack.c.bf16 %v1682_v39, %v1578_v53  ;;  %v1884_v7 = vxor.u32 2147483648, %v18467_v45  ;;  %v1887_v3 = vxor.u32 2147483648, %v18468_v12  ;;  %vm18473_vm10 = vmmov %vm18472_vm2 }
 0x7d5   :  { %vm1779_vm0 = vcmp.eq.s32.totalorder %v1777_v16, 0  ;;  %vm1782_vm11 = vcmp.eq.s32.totalorder %v1777_v16, 2  ;;  %vm1778_vm8 = vcmp.lt.s32.totalorder %v1777_v16, 2  ;;  %vm1775_vm14 = vweird.f32 %v16241_v28  ;;  %v8139_v28 = vpop.f32.mrf.mxu0  ;;  %vm18474_vm7 = vmmov %vm18472_vm2 }
 0x7d6   :  { %v1881_v48 = vand.u32 3, %v1880_v54  ;;  %8209 = vmatprep.mubr.msk.bf16.mxu1 %vm18469_vm6, %v1897_v24  ;;  %v1781_v63 = vsel %vm1779_vm0, %v16625_v27, %v1780_v40  ;;  %v1784_v33 = vsel %vm1782_vm11, %v1783_v36, %v16722_v0  ;;  %vm1879_vm5 = vweird.f32 %v18470_v25  ;;  %v8159_v27 = vpop.f32.mrf.mxu1  ;;  %vm18475_vm4 = vmmov %vm18472_vm2 }
 0x7d7   :  { %v1785_v62 = vsel %vm1778_vm8, %v1781_v63, %v1784_v33  ;;  %v3746_v38 = vpop.f32.mrf.mxu0  ;;  %v5700_v15 = vmax.f32 %v8139_v28, %v8159_v27  ;;  %vm18476_vm15 = vmmov %vm18472_vm2 }
 0x7d8   :  { %vm1883_vm1 = vcmp.eq.s32.totalorder %v1881_v48, 0  ;;  %vm1886_vm12 = vcmp.eq.s32.totalorder %v1881_v48, 2  ;;  %v1786_v13 = vsel %vm1775_vm14, nan, %v1785_v62  ;;  %vm1882_vm13 = vcmp.lt.s32.totalorder %v1881_v48, 2  ;;  %v5635_v0 = vpop.f32.mrf.mxu1  ;;  %vm18477_vm9 = vmmov %vm18472_vm2 }
 0x7d9   :  { %v1885_v52 = vsel %vm1883_vm1, %v18468_v12, %v1884_v7  ;;  %v1888_v31 = vsel %vm1886_vm12, %v1887_v3, %v18467_v45  ;;  %v8140_v32 = vpop.f32.mrf.mxu0  ;;  %v5698_v36 = vmax.f32 %v3746_v38, %v5635_v0  ;;  %vm18478_vm0 = vmmov %vm18472_vm2 }
 0x7da   :  { %v1889_v29 = vsel %vm1882_vm13, %v1885_v52, %v1888_v31  ;;  %v8160_v9 = vpop.f32.mrf.mxu1  ;;  %vm18479_vm11 = vmmov %vm18478_vm0 }
 0x7db   :  { %v1890_v22 = vsel %vm1879_vm5, nan, %v1889_v29  ;;  %v3749_v41 = vpop.f32.mrf.mxu0  ;;  %v5701_v53 = vmax.f32 %v8140_v32, %v8160_v9  ;;  %vm18480_vm6 = vmmov %vm18478_vm0 }
 0x7dc   :  { %v1898_v1 = vpack.c.bf16 %v1890_v22, %v1786_v13  ;;  %v5638_v10 = vpop.f32.mrf.mxu1  ;;  %vm18481_vm8 = vmmov %vm18478_vm0 }
 0x7dd   :  { %v8143_v8 = vpop.f32.mrf.mxu0  ;;  %v5699_v45 = vmax.f32 %v3749_v41, %v5638_v10  ;;  %vm18482_vm14 = vmmov %vm18478_vm0 }
 0x7de   :  { %8210 = vmatmul.mubr.msk.bf16.gmra.mxu1 %vm18471_vm3, %v1898_v1  ;;  %v16833_v19 = vpop.f32.mrf.mxu1  ;;  %vm18483_vm1 = vmmov %vm18478_vm0 }
 0x7df   :  { %v3762_v4 = vpop.f32.mrf.mxu0  ;;  %v5704_v1 = vmax.f32 %v8143_v8, %v16833_v19  ;;  %vm18484_vm12 = vmmov %vm18478_vm0 }
 0x7e0   :  { %v16835_v17 = vpop.f32.mrf.mxu1  ;;  %vm18485_vm13 = vmmov %vm18478_vm0 }
 0x7e1   :  { %v16843_v58 = vpop.f32.mrf.mxu0  ;;  %v5702_v0 = vmax.f32 %v3762_v4, %v16835_v17  ;;  %vm18486_vm5 = vmmov %vm18478_vm0 }
 0x7e2   :  { %v16837_v35 = vpop.f32.mrf.mxu1  ;;  %vm18487_vm3 = vmmov %vm18478_vm0 }
 0x7e3   :  { %v16847_v5 = vpop.f32.mrf.mxu0  ;;  %v5705_v10 = vmax.f32 %v16843_v58, %v16837_v35 }
 0x7e4   :  { %v16839_v14 = vpop.f32.mrf.mxu1 }
 0x7e5   :  { %v16851_v60 = vpop.f32.mrf.mxu0 }
 0x7e6   :  { %v16841_v51 = vpop.f32.mrf.mxu1 }
 0x7e7   :  { %v16855_v2 = vpop.f32.mrf.mxu0 }
 0x7e8   :  { %v16845_v61 = vpop.f32.mrf.mxu1 }
 0x7e9   :  { %v16859_v49 = vpop.f32.mrf.mxu0 }
 0x7ea   :  { %v16849_v50 = vpop.f32.mrf.mxu1 }
 0x7eb   :  { %v16863_v37 = vpop.f32.mrf.mxu0 }
 0x7ec   :  { %v16853_v46 = vpop.f32.mrf.mxu1 }
 0x82e   :  { %v16857_v57 = vpop.f32.mrf.mxu1 }
 0x830   :  { %v16861_v59 = vpop.f32.mrf.mxu1 }
 0x832   :  { %v16865_v18 = vpop.f32.mrf.mxu1 }
 0x834   :  { %v16871_v6 = vpop.f32.mrf.mxu1 }
 0x83c   :  { %v8199_v11 = vpop.f32.mrf.mxu1 }
 0x83e   :  { %v7689_v42 = vpop.f32.mrf.mxu1 }
 0x840   :  { %v8200_v54 = vpop.f32.mrf.mxu1 }
 0x841   :  { %v16867_v43 = vpop.f32.mrf.mxu0 }
 0x842   :  { %v5712_v47 = vmax.f32 %v16867_v43, %v16857_v57  ;;  %v7692_v13 = vpop.f32.mrf.mxu1 }
 0x843   :  { %v16873_v56 = vpop.f32.mrf.mxu0 }
 0x844   :  { %v5710_v23 = vmax.f32 %v16873_v56, %v16861_v59 }
 0x845   :  { %v16877_v34 = vpop.f32.mrf.mxu0 }
 0x846   :  { %v5713_v30 = vmax.f32 %v16877_v34, %v16865_v18 }
 0x847   :  { %v16881_v26 = vpop.f32.mrf.mxu0 }
 0x848   :  { %v5711_v44 = vmax.f32 %v16881_v26, %v16871_v6 }
 0x84d   :  { %v8179_v40 = vpop.f32.mrf.mxu0 }
 0x84e   :  { %v7605_v55 = vmax.f32 %v5700_v15, %v8179_v40  ;;  %v5703_v15 = vmax.f32 %v16847_v5, %v16839_v14 }
 0x84f   :  { %v7540_v21 = vpop.f32.mrf.mxu0 }
 0x850   :  { %v7698_v39 = vadd.f32 %v8199_v11, %v7605_v55  ;;  %v7603_v16 = vmax.f32 %v5698_v36, %v7540_v21 }
 0x851   :  { %v8180_v24 = vpop.f32.mrf.mxu0 }
 0x852   :  { %v7761_v7 = vadd.f32 %v16888_v20, %v7698_v39  ;;  %v7690_v12 = vadd.f32 %v7689_v42, %v7603_v16  ;;  %v7606_v3 = vmax.f32 %v5701_v53, %v8180_v24  ;;  %v5708_v53 = vmax.f32 %v16851_v60, %v16841_v51 }
 0x853   :  { %v7543_v48 = vpop.f32.mrf.mxu0  ;;  %v5706_v16 = vmax.f32 %v16855_v2, %v16845_v61 }
 0x854   :  { %7777 = vst.msk [vmem:[%s17001_s5 + $0x10] sm:$0xff] %vm18472_vm2, %v7761_v7  ;;  %v7759_v63 = vadd.f32 %v16888_v20, %v7690_v12  ;;  %v7701_v33 = vadd.f32 %v8200_v54, %v7606_v3  ;;  %v7604_v62 = vmax.f32 %v5699_v45, %v7543_v48  ;;  %v5709_v45 = vmax.f32 %v16859_v49, %v16849_v50 }
 0x856   :  { %7775 = vst.msk [vmem:[%s17001_s5] sm:$0xff] %vm18473_vm10, %v7759_v63  ;;  %v7762_v52 = vadd.f32 %v16888_v20, %v7701_v33  ;;  %v7693_v31 = vadd.f32 %v7692_v13, %v7604_v62  ;;  %v5707_v63 = vmax.f32 %v16863_v37, %v16853_v46 }
 0x858   :  { %7778 = vst.msk [vmem:[%s17001_s5 + $0x18] sm:$0xff] %vm18474_vm7, %v7762_v52  ;;  %v7760_v25 = vadd.f32 %v16888_v20, %v7693_v31  ;;  %v8183_v29 = vpop.f32.mrf.mxu0 }
 0x859   :  { %v7609_v9 = vmax.f32 %v5704_v1, %v8183_v29 }
 0x85a   :  { %7776 = vst.msk [vmem:[%s17001_s5 + $0x8] sm:$0xff] %vm18475_vm4, %v7760_v25  ;;  %v7556_v22 = vpop.f32.mrf.mxu0 }
 0x85b   :  { %v7607_v38 = vmax.f32 %v5702_v0, %v7556_v22 }
 0x85c   :  { %v8184_v27 = vpop.f32.mrf.mxu0 }
 0x85d   :  { %v7610_v42 = vmax.f32 %v5705_v10, %v8184_v27 }
 0x85e   :  { %v7559_v41 = vpop.f32.mrf.mxu0 }
 0x85f   :  { %v7608_v8 = vmax.f32 %v5703_v15, %v7559_v41 }
 0x865   :  { %v8203_v28 = vpop.f32.mrf.mxu1 }
 0x866   :  { %v7714_v32 = vadd.f32 %v8203_v28, %v7609_v9 }
 0x867   :  { %v7705_v11 = vpop.f32.mrf.mxu1 }
 0x868   :  { %v7765_v40 = vadd.f32 %v16888_v20, %v7714_v32  ;;  %v7706_v36 = vadd.f32 %v7705_v11, %v7607_v38 }
 0x869   :  { %v8204_v19 = vpop.f32.mrf.mxu1 }
 0x86a   :  { %7781 = vst.msk [vmem:[%s17001_s5 + $0x30] sm:$0xff] %vm18476_vm15, %v7765_v40  ;;  %v7763_v17 = vadd.f32 %v16888_v20, %v7706_v36  ;;  %v7717_v35 = vadd.f32 %v8204_v19, %v7610_v42 }
 0x86b   :  { %v7708_v4 = vpop.f32.mrf.mxu1 }
 0x86c   :  { %7779 = vst.msk [vmem:[%s17001_s5 + $0x20] sm:$0xff] %vm18477_vm9, %v7763_v17  ;;  %v7766_v14 = vadd.f32 %v16888_v20, %v7717_v35  ;;  %v7709_v58 = vadd.f32 %v7708_v4, %v7608_v8 }
 0x86e   :  { %7782 = vst.msk [vmem:[%s17001_s5 + $0x38] sm:$0xff] %vm18478_vm0, %v7766_v14  ;;  %v7764_v5 = vadd.f32 %v16888_v20, %v7709_v58 }
 0x870   :  { %7780 = vst.msk [vmem:[%s17001_s5 + $0x28] sm:$0xff] %vm18479_vm11, %v7764_v5 }
 0x872   :  { %v8187_v55 = vpop.f32.mrf.mxu0 }
 0x873   :  { %v7613_v54 = vmax.f32 %v5708_v53, %v8187_v55 }
 0x874   :  { %v7572_v21 = vpop.f32.mrf.mxu0 }
 0x875   :  { %v7611_v7 = vmax.f32 %v5706_v16, %v7572_v21 }
 0x876   :  { %v8188_v39 = vpop.f32.mrf.mxu0 }
 0x877   :  { %v7614_v33 = vmax.f32 %v5709_v45, %v8188_v39 }
 0x878   :  { %v7575_v3 = vpop.f32.mrf.mxu0 }
 0x879   :  { %v7612_v13 = vmax.f32 %v5707_v63, %v7575_v3 }
 0x881   :  { %v8207_v24 = vpop.f32.mrf.mxu1 }
 0x882   :  { %v7730_v12 = vadd.f32 %v8207_v24, %v7613_v54 }
 0x883   :  { %v7721_v48 = vpop.f32.mrf.mxu1 }
 0x884   :  { %v7769_v62 = vadd.f32 %v16888_v20, %v7730_v12  ;;  %v7722_v51 = vadd.f32 %v7721_v48, %v7611_v7 }
 0x885   :  { %v8208_v60 = vpop.f32.mrf.mxu1 }
 0x886   :  { %7785 = vst.msk [vmem:[%s17001_s5 + $0x50] sm:$0xff] %vm18480_vm6, %v7769_v62  ;;  %v7767_v61 = vadd.f32 %v16888_v20, %v7722_v51  ;;  %v7733_v50 = vadd.f32 %v8208_v60, %v7614_v33 }
 0x887   :  { %v7724_v2 = vpop.f32.mrf.mxu1 }
 0x888   :  { %7783 = vst.msk [vmem:[%s17001_s5 + $0x40] sm:$0xff] %vm18481_vm8, %v7767_v61  ;;  %v7770_v46 = vadd.f32 %v16888_v20, %v7733_v50  ;;  %v7725_v49 = vadd.f32 %v7724_v2, %v7612_v13 }
 0x88a   :  { %7786 = vst.msk [vmem:[%s17001_s5 + $0x58] sm:$0xff] %vm18482_vm14, %v7770_v46  ;;  %v7768_v37 = vadd.f32 %v16888_v20, %v7725_v49 }
 0x88c   :  { %7784 = vst.msk [vmem:[%s17001_s5 + $0x48] sm:$0xff] %vm18483_vm1, %v7768_v37 }
 0x891   :  { %v8191_v52 = vpop.f32.mrf.mxu0 }
 0x892   :  { %v7617_v29 = vmax.f32 %v5712_v47, %v8191_v52 }
 0x893   :  { %v7588_v31 = vpop.f32.mrf.mxu0 }
 0x894   :  { %v7615_v1 = vmax.f32 %v5710_v23, %v7588_v31 }
 0x895   :  { %v8192_v25 = vpop.f32.mrf.mxu0 }
 0x896   :  { %v7618_v28 = vmax.f32 %v5713_v30, %v8192_v25 }
 0x897   :  { %v7591_v0 = vpop.f32.mrf.mxu0 }
 0x898   :  { %v7616_v57 = vmax.f32 %v5711_v44, %v7591_v0 }
 0x89e   :  { %v8211_v22 = vpop.f32.mrf.mxu1 }
 0x89f   :  { %v7746_v27 = vadd.f32 %v8211_v22, %v7617_v29 }
 0x8a0   :  { %v7737_v9 = vpop.f32.mrf.mxu1 }
 0x8a1   :  { %v7773_v10 = vadd.f32 %v16888_v20, %v7746_v27  ;;  %v7738_v38 = vadd.f32 %v7737_v9, %v7615_v1 }
 0x8a2   :  { %v8212_v32 = vpop.f32.mrf.mxu1 }
 0x8a3   :  { %7789 = vst.msk [vmem:[%s17001_s5 + $0x70] sm:$0xff] %vm18484_vm12, %v7773_v10  ;;  %v7771_v59 = vadd.f32 %v16888_v20, %v7738_v38  ;;  %v7749_v43 = vadd.f32 %v8212_v32, %v7618_v28 }
 0x8a4   :  { %v7740_v47 = vpop.f32.mrf.mxu1 }
 0x8a5   :  { %7787 = vst.msk [vmem:[%s17001_s5 + $0x60] sm:$0xff] %vm18485_vm13, %v7771_v59  ;;  %v7774_v18 = vadd.f32 %v16888_v20, %v7749_v43  ;;  %v7741_v56 = vadd.f32 %v7740_v47, %v7616_v57 }
 0x8a7   :  { %7790 = vst.msk [vmem:[%s17001_s5 + $0x78] sm:$0xff] %vm18486_vm5, %v7774_v18  ;;  %v7772_v6 = vadd.f32 %v16888_v20, %v7741_v56 }
 0x8a9   :  { %7788 = vst.msk [vmem:[%s17001_s5 + $0x68] sm:$0xff] %vm18487_vm3, %v7772_v6 }
 0x8aa   :  { %7795 = vsyncpa [#allocation3], 1 }
 0x8ab   :  { %7796 = vsyncpa [#allocation5], 1 }
 0x8ac   :  { %7797 = vsyncpa [#allocation8], 1 }

</bundles_post_ra>
